<compile_context>
chip_gen: v7x
topology: tpu7x:2x2x1
jax: 0.10.0
libtpu: 0.0.40
codegen_flags: <defaults>
</compile_context>

<pallas_src>
import jax
import jax.numpy as jnp
from jax import lax
from jax.experimental import pallas as pl
from jax.experimental.pallas import tpu as pltpu


def _round_up(x, m):
    return (x + m - 1) // m * m


# ---------------------------------------------------------------------------
# Fused kernel: conv_down (3x3x3, s=2) + conv0 (3x3x3, pad=1) + concat + 1x1
#               + conv (3x3x3, pad=1), all ReLU'd, for one batch element.
# ---------------------------------------------------------------------------
def _make_fused_kernel(Cin, Cout, sd, sh, P, L, Wbuf):
    taps = [(kd, kh, kw) for kd in range(3) for kh in range(3) for kw in range(3)]
    base = L - (sd + sh + 1)          # >= 0 by construction of L

    def kernel(xs_ref, x0p_ref, mask_ref,
               w0_ref, b0_ref, wd_ref, bd_ref, wo_ref, bo_ref, wc_ref, bc_ref,
               o_ref, patches_ref, x0c_ref, xd_ref, x1_ref):
        f32 = jnp.float32
        # Keep every patch row finite so the zero-padded weight columns never
        # multiply uninitialized VMEM (128 vreg stores -> negligible).
        patches_ref[...] = jnp.zeros_like(patches_ref)
        mask = mask_ref[...]                                   # (1, P) 0/1 interior mask

        def conv_dot(w_ref, b_ref, c_rows):
            acc = jnp.dot(w_ref[...], patches_ref[...],
                          preferred_element_type=f32)          # (8, P) on the MXU
            return jnp.maximum(acc[:c_rows, :] + b_ref[...], 0.0)

        # ---- conv0: Conv3d(1, Cin, k=3, pad=1) + ReLU on x0 -------------------
        for t, (kd, kh, kw) in enumerate(taps):
            s = base + kd * sd + kh * sh + kw
            patches_ref[t:t + 1, :] = x0p_ref[:, s:s + P]
        x0c_ref[...] = conv_dot(w0_ref, b0_ref, Cin)

        # ---- conv_down: Conv3d(Cin, Cin, k=3, stride=2, pad=0) + ReLU on x ----
        # x is pre-split into 8 parity phases, each embedded in the padded
        # flat-volume layout, so each tap is a plain static lane-offset window.
        for t, (kd, kh, kw) in enumerate(taps):
            ph = (kd % 2) * 4 + (kh % 2) * 2 + (kw % 2)
            s = base + (kd // 2) * sd + (kh // 2) * sh + (kw // 2)
            patches_ref[t * Cin:(t + 1) * Cin, :] = \
                xs_ref[ph * Cin:(ph + 1) * Cin, s:s + P]
        xd_ref[...] = conv_dot(wd_ref, bd_ref, Cin)

        # ---- torch.cat([x0c, xd], dim=C) + Conv3d(2*Cin, Cin, k=1) + ReLU -----
        patches_ref[0:Cin, :] = x0c_ref[...]
        patches_ref[Cin:2 * Cin, :] = xd_ref[...]
        x1 = conv_dot(wo_ref, bo_ref, Cin) * mask              # zero the conv pad border
        x1_ref[:, 0:L] = jnp.zeros((Cin, L), f32)
        x1_ref[:, L:L + P] = x1
        x1_ref[:, L + P:Wbuf] = jnp.zeros((Cin, Wbuf - L - P), f32)

        # ---- conv: Conv3d(Cin, Cout, k=3, pad=1) + ReLU ------------------------
        for t, (kd, kh, kw) in enumerate(taps):
            s = base + kd * sd + kh * sh + kw
            patches_ref[t * Cin:(t + 1) * Cin, :] = x1_ref[:, s:s + P]
        o_ref[...] = conv_dot(wc_ref, bc_ref, Cout) * mask

    return kernel


# ---------------------------------------------------------------------------
# ConvDown forward
# ---------------------------------------------------------------------------
def conv_down_forward(params, x, x0):
    """x: (N, Cin, D, H, W), x0: (N, 1, Dd, Hd, Wd) (NCDHW). Returns NCDHW."""
    N, Cin, D, H, W = x.shape
    Cout = params["w_c"].shape[0]
    Dd, Hd, Wd = (D - 3) // 2 + 1, (H - 3) // 2 + 1, (W - 3) // 2 + 1
    assert x0.shape == (N, 1, Dd, Hd, Wd), x0.shape

    # Padded (for the pad=1 convs) volume geometry shared by the whole chain.
    Dp, Hp, Wp = Dd + 2, Hd + 2, Wd + 2
    sd, sh = Hp * Wp, Wp                         # flat strides of (depth, row)
    V = Dp * Hp * Wp                             # flat padded-volume length
    P = _round_up(V, 128)                        # lane-dense compute width
    L = max(128, _round_up(sd + sh + 1, 128))    # left margin so all tap starts >= 0
    Wbuf = _round_up(L + sd + sh + 1 + P, 128)   # buffer width covering max tap window

    f32 = jnp.float32
    x = x.astype(f32)
    x0 = x0.astype(f32)

    # --- space-to-depth of x (8 parity phases), embedded in the padded layout ---
    De, He, We = 2 * (Dd + 1), 2 * (Hd + 1), 2 * (Wd + 1)
    xp = jnp.pad(x, ((0, 0), (0, 0), (0, De - D), (0, He - H), (0, We - W)))
    xp = xp.reshape(N, Cin, Dd + 1, 2, Hd + 1, 2, Wd + 1, 2)
    xp = jnp.transpose(xp, (0, 3, 5, 7, 1, 2, 4, 6))   # (N,2,2,2,Cin,Dd+1,Hd+1,Wd+1)
    xp = jnp.pad(xp, ((0, 0),) * 5 + ((0, Dp - (Dd + 1)),
                                      (0, Hp - (Hd + 1)),
                                      (0, Wp - (Wd + 1))))
    xs = xp.reshape(N, 8 * Cin, V)
    xs = jnp.pad(xs, ((0, 0), (0, 0), (L, Wbuf - L - V)))

    # --- x0 embedded (its conv pad=1 border is exactly the layout border) -------
    x0p = jnp.pad(x0, ((0, 0), (0, 0), (1, 1), (1, 1), (1, 1))).reshape(N, 1, V)
    x0p = jnp.pad(x0p, ((0, 0), (0, 0), (L, Wbuf - L - V)))

    # --- 0/1 interior mask over the compute region -------------------------------
    m = jnp.zeros((Dp, Hp, Wp), f32).at[1:1 + Dd, 1:1 + Hd, 1:1 + Wd].set(1.0)
    mask = jnp.pad(m.reshape(1, V), ((0, 0), (0, P - V)))

    # --- weights packed to (rows->mult of 8, K->KP) to keep every dot aligned ---
    KP = _round_up(27 * Cin, 128)

    def _pad(w2):
        return jnp.pad(w2.astype(f32),
                       ((0, _round_up(w2.shape[0], 8) - w2.shape[0]),
                        (0, KP - w2.shape[1])))

    def pack3(w):                                    # (Co, Ci, 3,3,3) -> (8k, KP)
        Co, Ci = w.shape[0], w.shape[1]
        return _pad(jnp.transpose(w, (0, 2, 3, 4, 1)).reshape(Co, 27 * Ci))

    w0p = pack3(params["w0"])                        # conv0
    wdp = pack3(params["w_down"])                    # conv_down
    wcp = pack3(params["w_c"])                       # conv
    wop = _pad(params["w_out"][:, :, 0, 0, 0])       # 1x1 (x0c cols first, xd cols next)
    b0 = params["b0"].reshape(Cin, 1).astype(f32)
    bd = params["b_down"].reshape(Cin, 1).astype(f32)
    bo = params["b_out"].reshape(Cin, 1).astype(f32)
    bc = params["b_c"].reshape(Cout, 1).astype(f32)

    fixed = lambda n: (0, 0)
    out = pl.pallas_call(
        _make_fused_kernel(Cin, Cout, sd, sh, P, L, Wbuf),
        out_shape=jax.ShapeDtypeStruct((N, Cout, P), f32),
        grid_spec=pltpu.PrefetchScalarGridSpec(
            num_scalar_prefetch=0,
            grid=(N,),
            in_specs=[
                pl.BlockSpec((None, 8 * Cin, Wbuf), lambda n: (n, 0, 0)),
                pl.BlockSpec((None, 1, Wbuf), lambda n: (n, 0, 0)),
                pl.BlockSpec((1, P), fixed),
                pl.BlockSpec(w0p.shape, fixed), pl.BlockSpec(b0.shape, fixed),
                pl.BlockSpec(wdp.shape, fixed), pl.BlockSpec(bd.shape, fixed),
                pl.BlockSpec(wop.shape, fixed), pl.BlockSpec(bo.shape, fixed),
                pl.BlockSpec(wcp.shape, fixed), pl.BlockSpec(bc.shape, fixed),
            ],
            out_specs=pl.BlockSpec((None, Cout, P), lambda n: (n, 0, 0)),
            scratch_shapes=[
                pltpu.VMEM((KP, P), f32),        # shared im2col patch matrix
                pltpu.VMEM((Cin, P), f32),       # conv0 output
                pltpu.VMEM((Cin, P), f32),       # conv_down output
                pltpu.VMEM((Cin, Wbuf), f32),    # 1x1 output in padded-flat layout
            ]),
        compiler_params=pltpu.CompilerParams(
            dimension_semantics=("parallel",),
            vmem_limit_bytes=32 * 1024 * 1024),
    )(xs, x0p, mask, w0p, b0, wdp, bd, wop, bo, wcp, bc)

    # Single tiny crop at the very end: padded-flat -> (N, Cout, Dd, Hd, Wd).
    out = out[:, :, :V].reshape(N, Cout, Dp, Hp, Wp)
    return out[:, :, 1:1 + Dd, 1:1 + Hd, 1:1 + Wd]


# ---------------------------------------------------------------------------
# Deterministic parameter init (shapes from ConvDown.__init__)
# ---------------------------------------------------------------------------
def init_params(key, in_channels, out_channels):
    ks = jax.random.split(key, 8)

    def w_init(k, cout, cin, ksz):
        fan_in = cin * ksz ** 3
        return (jax.random.normal(k, (cout, cin, ksz, ksz, ksz), jnp.float32)
                / jnp.sqrt(jnp.float32(fan_in)))

    def b_init(k, cout):
        return 0.05 * jax.random.normal(k, (cout,), jnp.float32)

    return {
        "w_down": w_init(ks[0], in_channels, in_channels, 3),
        "b_down": b_init(ks[1], in_channels),
        "w0":     w_init(ks[2], in_channels, 1, 3),
        "b0":     b_init(ks[3], in_channels),
        "w_out":  w_init(ks[4], in_channels, in_channels * 2, 1),
        "b_out":  b_init(ks[5], in_channels),
        "w_c":    w_init(ks[6], out_channels, in_channels, 3),
        "b_c":    b_init(ks[7], out_channels),
    }


# ---------------------------------------------------------------------------
# Pure-XLA reference (for correctness check)
# ---------------------------------------------------------------------------
def _ref_conv3d_relu(x_ncdhw, w, b, stride, padding):
    out = lax.conv_general_dilated(
        x_ncdhw, w,
        window_strides=(stride,) * 3,
        padding=[(padding, padding)] * 3,
        dimension_numbers=("NCDHW", "OIDHW", "NCDHW"),
        precision=lax.Precision.HIGHEST)
    return jnp.maximum(out + b.reshape(1, -1, 1, 1, 1), 0.0)


def _ref_forward(params, x, x0):
    x = _ref_conv3d_relu(x, params["w_down"], params["b_down"], 2, 0)
    x0 = _ref_conv3d_relu(x0, params["w0"], params["b0"], 1, 1)
    x1 = jnp.concatenate([x0, x], axis=1)
    x1 = _ref_conv3d_relu(x1, params["w_out"], params["b_out"], 1, 0)
    return _ref_conv3d_relu(x1, params["w_c"], params["b_c"], 1, 1)


if __name__ == "__main__":
    in_channels, out_channels = 4, 8
    N, D = 2, 17                                   # (17-3)//2+1 = 8 after conv_down

    key = jax.random.PRNGKey(0)
    k_x, k_x0, k_p = jax.random.split(key, 3)

    x = jax.random.normal(k_x, (N, in_channels, D, D, D), jnp.float32)
    Dd = (D - 3) // 2 + 1                          # downsampled spatial size
    x0 = jax.random.normal(k_x0, (N, 1, Dd, Dd, Dd), jnp.float32)

    params = init_params(k_p, in_channels, out_channels)

    fwd = jax.jit(conv_down_forward)
    y = jax.block_until_ready(fwd(params, x, x0))
    assert y.shape == (N, out_channels, Dd, Dd, Dd), y.shape

    y_ref = jax.block_until_ready(_ref_forward(params, x, x0))
    max_err = float(jnp.max(jnp.abs(y - y_ref)))
    # f32 activations/weights, MXU accumulation vs HIGHEST-precision XLA reference.
    assert jnp.allclose(y, y_ref, rtol=5e-2, atol=5e-2), max_err

    print("KERNEL_OK")
</pallas_src>

<mosaic_0001>
module attributes {stable_mosaic.version = 11 : i64} {
  func.func @kernel(%arg0: i32, %arg1: memref<1x32x1280xf32, #tpu.memory_space<vmem>>, %arg2: memref<1x1x1280xf32, #tpu.memory_space<vmem>>, %arg3: memref<1x1024xf32, #tpu.memory_space<vmem>>, %arg4: memref<8x128xf32, #tpu.memory_space<vmem>>, %arg5: memref<4x1xf32, #tpu.memory_space<vmem>>, %arg6: memref<8x128xf32, #tpu.memory_space<vmem>>, %arg7: memref<4x1xf32, #tpu.memory_space<vmem>>, %arg8: memref<8x128xf32, #tpu.memory_space<vmem>>, %arg9: memref<4x1xf32, #tpu.memory_space<vmem>>, %arg10: memref<8x128xf32, #tpu.memory_space<vmem>>, %arg11: memref<8x1xf32, #tpu.memory_space<vmem>>, %arg12: memref<1x8x1024xf32, #tpu.memory_space<vmem>>, %arg13: memref<128x1024xf32, #tpu.memory_space<vmem>>, %arg14: memref<4x1024xf32, #tpu.memory_space<vmem>>, %arg15: memref<4x1024xf32, #tpu.memory_space<vmem>>, %arg16: memref<4x1280xf32, #tpu.memory_space<vmem>>) attributes {dimension_semantics = [#tpu.dimension_semantics<parallel>], iteration_bounds = array<i64: 2>, scalar_prefetch = 0 : i64, scratch_operands = 4 : i64, tpu.core_type = #tpu.core_type<tc>, window_params = [{transform_indices = @transform_0, window_bounds = array<i64: 1, 32, 1280>}, {transform_indices = @transform_1, window_bounds = array<i64: 1, 1, 1280>}, {pipeline_mode = #tpu.pipeline_mode<synchronous>, transform_indices = @transform_2, window_bounds = array<i64: 1, 1024>}, {pipeline_mode = #tpu.pipeline_mode<synchronous>, transform_indices = @transform_3, window_bounds = array<i64: 8, 128>}, {pipeline_mode = #tpu.pipeline_mode<synchronous>, transform_indices = @transform_4, window_bounds = array<i64: 4, 1>}, {pipeline_mode = #tpu.pipeline_mode<synchronous>, transform_indices = @transform_5, window_bounds = array<i64: 8, 128>}, {pipeline_mode = #tpu.pipeline_mode<synchronous>, transform_indices = @transform_6, window_bounds = array<i64: 4, 1>}, {pipeline_mode = #tpu.pipeline_mode<synchronous>, transform_indices = @transform_7, window_bounds = array<i64: 8, 128>}, {pipeline_mode = #tpu.pipeline_mode<synchronous>, transform_indices = @transform_8, window_bounds = array<i64: 4, 1>}, {pipeline_mode = #tpu.pipeline_mode<synchronous>, transform_indices = @transform_9, window_bounds = array<i64: 8, 128>}, {pipeline_mode = #tpu.pipeline_mode<synchronous>, transform_indices = @transform_10, window_bounds = array<i64: 8, 1>}, {transform_indices = @transform_11, window_bounds = array<i64: 1, 8, 1024>}]} {
    %cst = arith.constant 0.000000e+00 : f32
    %0 = vector.broadcast %cst : f32 to vector<128x1024xf32>
    %c0 = arith.constant 0 : index
    %c0_0 = arith.constant 0 : index
    %1 = vector.load %arg13[%c0, %c0_0] : memref<128x1024xf32, #tpu.memory_space<vmem>>, vector<128x1024xf32>
    tpu.vector_store %arg13[%c0, %c0_0], %0 {strides = array<i32>} : memref<128x1024xf32, #tpu.memory_space<vmem>>, vector<128x1024xf32>,
    %c0_1 = arith.constant 0 : index
    %c0_2 = arith.constant 0 : index
    %2 = vector.load %arg3[%c0_1, %c0_2] : memref<1x1024xf32, #tpu.memory_space<vmem>>, vector<1x1024xf32>
    %c0_3 = arith.constant 0 : index
    %c0_4 = arith.constant 0 : index
    %c17 = arith.constant 17 : index
    %3 = vector.load %arg2[%c0_3, %c0_4, %c17] : memref<1x1x1280xf32, #tpu.memory_space<vmem>>, vector<1x1x1024xf32>
    %4 = vector.shape_cast %3 : vector<1x1x1024xf32> to vector<1x1024xf32>
    %c0_5 = arith.constant 0 : index
    %c0_6 = arith.constant 0 : index
    %5 = vector.load %arg13[%c0_5, %c0_6] : memref<128x1024xf32, #tpu.memory_space<vmem>>, vector<1x1024xf32>
    tpu.vector_store %arg13[%c0_5, %c0_6], %4 {strides = array<i32>} : memref<128x1024xf32, #tpu.memory_space<vmem>>, vector<1x1024xf32>,
    %c0_7 = arith.constant 0 : index
    %c0_8 = arith.constant 0 : index
    %c18 = arith.constant 18 : index
    %6 = vector.load %arg2[%c0_7, %c0_8, %c18] : memref<1x1x1280xf32, #tpu.memory_space<vmem>>, vector<1x1x1024xf32>
    %7 = vector.shape_cast %6 : vector<1x1x1024xf32> to vector<1x1024xf32>
    %c1 = arith.constant 1 : index
    %c0_9 = arith.constant 0 : index
    %8 = vector.load %arg13[%c1, %c0_9] : memref<128x1024xf32, #tpu.memory_space<vmem>>, vector<1x1024xf32>
    tpu.vector_store %arg13[%c1, %c0_9], %7 {strides = array<i32>} : memref<128x1024xf32, #tpu.memory_space<vmem>>, vector<1x1024xf32>,
    %c0_10 = arith.constant 0 : index
    %c0_11 = arith.constant 0 : index
    %c19 = arith.constant 19 : index
    %9 = vector.load %arg2[%c0_10, %c0_11, %c19] : memref<1x1x1280xf32, #tpu.memory_space<vmem>>, vector<1x1x1024xf32>
    %10 = vector.shape_cast %9 : vector<1x1x1024xf32> to vector<1x1024xf32>
    %c2 = arith.constant 2 : index
    %c0_12 = arith.constant 0 : index
    %11 = vector.load %arg13[%c2, %c0_12] : memref<128x1024xf32, #tpu.memory_space<vmem>>, vector<1x1024xf32>
    tpu.vector_store %arg13[%c2, %c0_12], %10 {strides = array<i32>} : memref<128x1024xf32, #tpu.memory_space<vmem>>, vector<1x1024xf32>,
    %c0_13 = arith.constant 0 : index
    %c0_14 = arith.constant 0 : index
    %c27 = arith.constant 27 : index
    %12 = vector.load %arg2[%c0_13, %c0_14, %c27] : memref<1x1x1280xf32, #tpu.memory_space<vmem>>, vector<1x1x1024xf32>
    %13 = vector.shape_cast %12 : vector<1x1x1024xf32> to vector<1x1024xf32>
    %c3 = arith.constant 3 : index
    %c0_15 = arith.constant 0 : index
    %14 = vector.load %arg13[%c3, %c0_15] : memref<128x1024xf32, #tpu.memory_space<vmem>>, vector<1x1024xf32>
    tpu.vector_store %arg13[%c3, %c0_15], %13 {strides = array<i32>} : memref<128x1024xf32, #tpu.memory_space<vmem>>, vector<1x1024xf32>,
    %c0_16 = arith.constant 0 : index
    %c0_17 = arith.constant 0 : index
    %c28 = arith.constant 28 : index
    %15 = vector.load %arg2[%c0_16, %c0_17, %c28] : memref<1x1x1280xf32, #tpu.memory_space<vmem>>, vector<1x1x1024xf32>
    %16 = vector.shape_cast %15 : vector<1x1x1024xf32> to vector<1x1024xf32>
    %c4 = arith.constant 4 : index
    %c0_18 = arith.constant 0 : index
    %17 = vector.load %arg13[%c4, %c0_18] : memref<128x1024xf32, #tpu.memory_space<vmem>>, vector<1x1024xf32>
    tpu.vector_store %arg13[%c4, %c0_18], %16 {strides = array<i32>} : memref<128x1024xf32, #tpu.memory_space<vmem>>, vector<1x1024xf32>,
    %c0_19 = arith.constant 0 : index
    %c0_20 = arith.constant 0 : index
    %c29 = arith.constant 29 : index
    %18 = vector.load %arg2[%c0_19, %c0_20, %c29] : memref<1x1x1280xf32, #tpu.memory_space<vmem>>, vector<1x1x1024xf32>
    %19 = vector.shape_cast %18 : vector<1x1x1024xf32> to vector<1x1024xf32>
    %c5 = arith.constant 5 : index
    %c0_21 = arith.constant 0 : index
    %20 = vector.load %arg13[%c5, %c0_21] : memref<128x1024xf32, #tpu.memory_space<vmem>>, vector<1x1024xf32>
    tpu.vector_store %arg13[%c5, %c0_21], %19 {strides = array<i32>} : memref<128x1024xf32, #tpu.memory_space<vmem>>, vector<1x1024xf32>,
    %c0_22 = arith.constant 0 : index
    %c0_23 = arith.constant 0 : index
    %c37 = arith.constant 37 : index
    %21 = vector.load %arg2[%c0_22, %c0_23, %c37] : memref<1x1x1280xf32, #tpu.memory_space<vmem>>, vector<1x1x1024xf32>
    %22 = vector.shape_cast %21 : vector<1x1x1024xf32> to vector<1x1024xf32>
    %c6 = arith.constant 6 : index
    %c0_24 = arith.constant 0 : index
    %23 = vector.load %arg13[%c6, %c0_24] : memref<128x1024xf32, #tpu.memory_space<vmem>>, vector<1x1024xf32>
    tpu.vector_store %arg13[%c6, %c0_24], %22 {strides = array<i32>} : memref<128x1024xf32, #tpu.memory_space<vmem>>, vector<1x1024xf32>,
    %c0_25 = arith.constant 0 : index
    %c0_26 = arith.constant 0 : index
    %c38 = arith.constant 38 : index
    %24 = vector.load %arg2[%c0_25, %c0_26, %c38] : memref<1x1x1280xf32, #tpu.memory_space<vmem>>, vector<1x1x1024xf32>
    %25 = vector.shape_cast %24 : vector<1x1x1024xf32> to vector<1x1024xf32>
    %c7 = arith.constant 7 : index
    %c0_27 = arith.constant 0 : index
    %26 = vector.load %arg13[%c7, %c0_27] : memref<128x1024xf32, #tpu.memory_space<vmem>>, vector<1x1024xf32>
    tpu.vector_store %arg13[%c7, %c0_27], %25 {strides = array<i32>} : memref<128x1024xf32, #tpu.memory_space<vmem>>, vector<1x1024xf32>,
    %c0_28 = arith.constant 0 : index
    %c0_29 = arith.constant 0 : index
    %c39 = arith.constant 39 : index
    %27 = vector.load %arg2[%c0_28, %c0_29, %c39] : memref<1x1x1280xf32, #tpu.memory_space<vmem>>, vector<1x1x1024xf32>
    %28 = vector.shape_cast %27 : vector<1x1x1024xf32> to vector<1x1024xf32>
    %c8 = arith.constant 8 : index
    %c0_30 = arith.constant 0 : index
    %29 = vector.load %arg13[%c8, %c0_30] : memref<128x1024xf32, #tpu.memory_space<vmem>>, vector<1x1024xf32>
    tpu.vector_store %arg13[%c8, %c0_30], %28 {strides = array<i32>} : memref<128x1024xf32, #tpu.memory_space<vmem>>, vector<1x1024xf32>,
    %c0_31 = arith.constant 0 : index
    %c0_32 = arith.constant 0 : index
    %c117 = arith.constant 117 : index
    %30 = vector.load %arg2[%c0_31, %c0_32, %c117] : memref<1x1x1280xf32, #tpu.memory_space<vmem>>, vector<1x1x1024xf32>
    %31 = vector.shape_cast %30 : vector<1x1x1024xf32> to vector<1x1024xf32>
    %c9 = arith.constant 9 : index
    %c0_33 = arith.constant 0 : index
    %32 = vector.load %arg13[%c9, %c0_33] : memref<128x1024xf32, #tpu.memory_space<vmem>>, vector<1x1024xf32>
    tpu.vector_store %arg13[%c9, %c0_33], %31 {strides = array<i32>} : memref<128x1024xf32, #tpu.memory_space<vmem>>, vector<1x1024xf32>,
    %c0_34 = arith.constant 0 : index
    %c0_35 = arith.constant 0 : index
    %c118 = arith.constant 118 : index
    %33 = vector.load %arg2[%c0_34, %c0_35, %c118] : memref<1x1x1280xf32, #tpu.memory_space<vmem>>, vector<1x1x1024xf32>
    %34 = vector.shape_cast %33 : vector<1x1x1024xf32> to vector<1x1024xf32>
    %c10 = arith.constant 10 : index
    %c0_36 = arith.constant 0 : index
    %35 = vector.load %arg13[%c10, %c0_36] : memref<128x1024xf32, #tpu.memory_space<vmem>>, vector<1x1024xf32>
    tpu.vector_store %arg13[%c10, %c0_36], %34 {strides = array<i32>} : memref<128x1024xf32, #tpu.memory_space<vmem>>, vector<1x1024xf32>,
    %c0_37 = arith.constant 0 : index
    %c0_38 = arith.constant 0 : index
    %c119 = arith.constant 119 : index
    %36 = vector.load %arg2[%c0_37, %c0_38, %c119] : memref<1x1x1280xf32, #tpu.memory_space<vmem>>, vector<1x1x1024xf32>
    %37 = vector.shape_cast %36 : vector<1x1x1024xf32> to vector<1x1024xf32>
    %c11 = arith.constant 11 : index
    %c0_39 = arith.constant 0 : index
    %38 = vector.load %arg13[%c11, %c0_39] : memref<128x1024xf32, #tpu.memory_space<vmem>>, vector<1x1024xf32>
    tpu.vector_store %arg13[%c11, %c0_39], %37 {strides = array<i32>} : memref<128x1024xf32, #tpu.memory_space<vmem>>, vector<1x1024xf32>,
    %c0_40 = arith.constant 0 : index
    %c0_41 = arith.constant 0 : index
    %c127 = arith.constant 127 : index
    %39 = vector.load %arg2[%c0_40, %c0_41, %c127] : memref<1x1x1280xf32, #tpu.memory_space<vmem>>, vector<1x1x1024xf32>
    %40 = vector.shape_cast %39 : vector<1x1x1024xf32> to vector<1x1024xf32>
    %c12 = arith.constant 12 : index
    %c0_42 = arith.constant 0 : index
    %41 = vector.load %arg13[%c12, %c0_42] : memref<128x1024xf32, #tpu.memory_space<vmem>>, vector<1x1024xf32>
    tpu.vector_store %arg13[%c12, %c0_42], %40 {strides = array<i32>} : memref<128x1024xf32, #tpu.memory_space<vmem>>, vector<1x1024xf32>,
    %c0_43 = arith.constant 0 : index
    %c0_44 = arith.constant 0 : index
    %c128 = arith.constant 128 : index
    %42 = vector.load %arg2[%c0_43, %c0_44, %c128] : memref<1x1x1280xf32, #tpu.memory_space<vmem>>, vector<1x1x1024xf32>
    %43 = vector.shape_cast %42 : vector<1x1x1024xf32> to vector<1x1024xf32>
    %c13 = arith.constant 13 : index
    %c0_45 = arith.constant 0 : index
    %44 = vector.load %arg13[%c13, %c0_45] : memref<128x1024xf32, #tpu.memory_space<vmem>>, vector<1x1024xf32>
    tpu.vector_store %arg13[%c13, %c0_45], %43 {strides = array<i32>} : memref<128x1024xf32, #tpu.memory_space<vmem>>, vector<1x1024xf32>,
    %c0_46 = arith.constant 0 : index
    %c0_47 = arith.constant 0 : index
    %c129 = arith.constant 129 : index
    %45 = vector.load %arg2[%c0_46, %c0_47, %c129] : memref<1x1x1280xf32, #tpu.memory_space<vmem>>, vector<1x1x1024xf32>
    %46 = vector.shape_cast %45 : vector<1x1x1024xf32> to vector<1x1024xf32>
    %c14 = arith.constant 14 : index
    %c0_48 = arith.constant 0 : index
    %47 = vector.load %arg13[%c14, %c0_48] : memref<128x1024xf32, #tpu.memory_space<vmem>>, vector<1x1024xf32>
    tpu.vector_store %arg13[%c14, %c0_48], %46 {strides = array<i32>} : memref<128x1024xf32, #tpu.memory_space<vmem>>, vector<1x1024xf32>,
    %c0_49 = arith.constant 0 : index
    %c0_50 = arith.constant 0 : index
    %c137 = arith.constant 137 : index
    %48 = vector.load %arg2[%c0_49, %c0_50, %c137] : memref<1x1x1280xf32, #tpu.memory_space<vmem>>, vector<1x1x1024xf32>
    %49 = vector.shape_cast %48 : vector<1x1x1024xf32> to vector<1x1024xf32>
    %c15 = arith.constant 15 : index
    %c0_51 = arith.constant 0 : index
    %50 = vector.load %arg13[%c15, %c0_51] : memref<128x1024xf32, #tpu.memory_space<vmem>>, vector<1x1024xf32>
    tpu.vector_store %arg13[%c15, %c0_51], %49 {strides = array<i32>} : memref<128x1024xf32, #tpu.memory_space<vmem>>, vector<1x1024xf32>,
    %c0_52 = arith.constant 0 : index
    %c0_53 = arith.constant 0 : index
    %c138 = arith.constant 138 : index
    %51 = vector.load %arg2[%c0_52, %c0_53, %c138] : memref<1x1x1280xf32, #tpu.memory_space<vmem>>, vector<1x1x1024xf32>
    %52 = vector.shape_cast %51 : vector<1x1x1024xf32> to vector<1x1024xf32>
    %c16 = arith.constant 16 : index
    %c0_54 = arith.constant 0 : index
    %53 = vector.load %arg13[%c16, %c0_54] : memref<128x1024xf32, #tpu.memory_space<vmem>>, vector<1x1024xf32>
    tpu.vector_store %arg13[%c16, %c0_54], %52 {strides = array<i32>} : memref<128x1024xf32, #tpu.memory_space<vmem>>, vector<1x1024xf32>,
    %c0_55 = arith.constant 0 : index
    %c0_56 = arith.constant 0 : index
    %c139 = arith.constant 139 : index
    %54 = vector.load %arg2[%c0_55, %c0_56, %c139] : memref<1x1x1280xf32, #tpu.memory_space<vmem>>, vector<1x1x1024xf32>
    %55 = vector.shape_cast %54 : vector<1x1x1024xf32> to vector<1x1024xf32>
    %c17_57 = arith.constant 17 : index
    %c0_58 = arith.constant 0 : index
    %56 = vector.load %arg13[%c17_57, %c0_58] : memref<128x1024xf32, #tpu.memory_space<vmem>>, vector<1x1024xf32>
    tpu.vector_store %arg13[%c17_57, %c0_58], %55 {strides = array<i32>} : memref<128x1024xf32, #tpu.memory_space<vmem>>, vector<1x1024xf32>,
    %c0_59 = arith.constant 0 : index
    %c0_60 = arith.constant 0 : index
    %c217 = arith.constant 217 : index
    %57 = vector.load %arg2[%c0_59, %c0_60, %c217] : memref<1x1x1280xf32, #tpu.memory_space<vmem>>, vector<1x1x1024xf32>
    %58 = vector.shape_cast %57 : vector<1x1x1024xf32> to vector<1x1024xf32>
    %c18_61 = arith.constant 18 : index
    %c0_62 = arith.constant 0 : index
    %59 = vector.load %arg13[%c18_61, %c0_62] : memref<128x1024xf32, #tpu.memory_space<vmem>>, vector<1x1024xf32>
    tpu.vector_store %arg13[%c18_61, %c0_62], %58 {strides = array<i32>} : memref<128x1024xf32, #tpu.memory_space<vmem>>, vector<1x1024xf32>,
    %c0_63 = arith.constant 0 : index
    %c0_64 = arith.constant 0 : index
    %c218 = arith.constant 218 : index
    %60 = vector.load %arg2[%c0_63, %c0_64, %c218] : memref<1x1x1280xf32, #tpu.memory_space<vmem>>, vector<1x1x1024xf32>
    %61 = vector.shape_cast %60 : vector<1x1x1024xf32> to vector<1x1024xf32>
    %c19_65 = arith.constant 19 : index
    %c0_66 = arith.constant 0 : index
    %62 = vector.load %arg13[%c19_65, %c0_66] : memref<128x1024xf32, #tpu.memory_space<vmem>>, vector<1x1024xf32>
    tpu.vector_store %arg13[%c19_65, %c0_66], %61 {strides = array<i32>} : memref<128x1024xf32, #tpu.memory_space<vmem>>, vector<1x1024xf32>,
    %c0_67 = arith.constant 0 : index
    %c0_68 = arith.constant 0 : index
    %c219 = arith.constant 219 : index
    %63 = vector.load %arg2[%c0_67, %c0_68, %c219] : memref<1x1x1280xf32, #tpu.memory_space<vmem>>, vector<1x1x1024xf32>
    %64 = vector.shape_cast %63 : vector<1x1x1024xf32> to vector<1x1024xf32>
    %c20 = arith.constant 20 : index
    %c0_69 = arith.constant 0 : index
    %65 = vector.load %arg13[%c20, %c0_69] : memref<128x1024xf32, #tpu.memory_space<vmem>>, vector<1x1024xf32>
    tpu.vector_store %arg13[%c20, %c0_69], %64 {strides = array<i32>} : memref<128x1024xf32, #tpu.memory_space<vmem>>, vector<1x1024xf32>,
    %c0_70 = arith.constant 0 : index
    %c0_71 = arith.constant 0 : index
    %c227 = arith.constant 227 : index
    %66 = vector.load %arg2[%c0_70, %c0_71, %c227] : memref<1x1x1280xf32, #tpu.memory_space<vmem>>, vector<1x1x1024xf32>
    %67 = vector.shape_cast %66 : vector<1x1x1024xf32> to vector<1x1024xf32>
    %c21 = arith.constant 21 : index
    %c0_72 = arith.constant 0 : index
    %68 = vector.load %arg13[%c21, %c0_72] : memref<128x1024xf32, #tpu.memory_space<vmem>>, vector<1x1024xf32>
    tpu.vector_store %arg13[%c21, %c0_72], %67 {strides = array<i32>} : memref<128x1024xf32, #tpu.memory_space<vmem>>, vector<1x1024xf32>,
    %c0_73 = arith.constant 0 : index
    %c0_74 = arith.constant 0 : index
    %c228 = arith.constant 228 : index
    %69 = vector.load %arg2[%c0_73, %c0_74, %c228] : memref<1x1x1280xf32, #tpu.memory_space<vmem>>, vector<1x1x1024xf32>
    %70 = vector.shape_cast %69 : vector<1x1x1024xf32> to vector<1x1024xf32>
    %c22 = arith.constant 22 : index
    %c0_75 = arith.constant 0 : index
    %71 = vector.load %arg13[%c22, %c0_75] : memref<128x1024xf32, #tpu.memory_space<vmem>>, vector<1x1024xf32>
    tpu.vector_store %arg13[%c22, %c0_75], %70 {strides = array<i32>} : memref<128x1024xf32, #tpu.memory_space<vmem>>, vector<1x1024xf32>,
    %c0_76 = arith.constant 0 : index
    %c0_77 = arith.constant 0 : index
    %c229 = arith.constant 229 : index
    %72 = vector.load %arg2[%c0_76, %c0_77, %c229] : memref<1x1x1280xf32, #tpu.memory_space<vmem>>, vector<1x1x1024xf32>
    %73 = vector.shape_cast %72 : vector<1x1x1024xf32> to vector<1x1024xf32>
    %c23 = arith.constant 23 : index
    %c0_78 = arith.constant 0 : index
    %74 = vector.load %arg13[%c23, %c0_78] : memref<128x1024xf32, #tpu.memory_space<vmem>>, vector<1x1024xf32>
    tpu.vector_store %arg13[%c23, %c0_78], %73 {strides = array<i32>} : memref<128x1024xf32, #tpu.memory_space<vmem>>, vector<1x1024xf32>,
    %c0_79 = arith.constant 0 : index
    %c0_80 = arith.constant 0 : index
    %c237 = arith.constant 237 : index
    %75 = vector.load %arg2[%c0_79, %c0_80, %c237] : memref<1x1x1280xf32, #tpu.memory_space<vmem>>, vector<1x1x1024xf32>
    %76 = vector.shape_cast %75 : vector<1x1x1024xf32> to vector<1x1024xf32>
    %c24 = arith.constant 24 : index
    %c0_81 = arith.constant 0 : index
    %77 = vector.load %arg13[%c24, %c0_81] : memref<128x1024xf32, #tpu.memory_space<vmem>>, vector<1x1024xf32>
    tpu.vector_store %arg13[%c24, %c0_81], %76 {strides = array<i32>} : memref<128x1024xf32, #tpu.memory_space<vmem>>, vector<1x1024xf32>,
    %c0_82 = arith.constant 0 : index
    %c0_83 = arith.constant 0 : index
    %c238 = arith.constant 238 : index
    %78 = vector.load %arg2[%c0_82, %c0_83, %c238] : memref<1x1x1280xf32, #tpu.memory_space<vmem>>, vector<1x1x1024xf32>
    %79 = vector.shape_cast %78 : vector<1x1x1024xf32> to vector<1x1024xf32>
    %c25 = arith.constant 25 : index
    %c0_84 = arith.constant 0 : index
    %80 = vector.load %arg13[%c25, %c0_84] : memref<128x1024xf32, #tpu.memory_space<vmem>>, vector<1x1024xf32>
    tpu.vector_store %arg13[%c25, %c0_84], %79 {strides = array<i32>} : memref<128x1024xf32, #tpu.memory_space<vmem>>, vector<1x1024xf32>,
    %c0_85 = arith.constant 0 : index
    %c0_86 = arith.constant 0 : index
    %c239 = arith.constant 239 : index
    %81 = vector.load %arg2[%c0_85, %c0_86, %c239] : memref<1x1x1280xf32, #tpu.memory_space<vmem>>, vector<1x1x1024xf32>
    %82 = vector.shape_cast %81 : vector<1x1x1024xf32> to vector<1x1024xf32>
    %c26 = arith.constant 26 : index
    %c0_87 = arith.constant 0 : index
    %83 = vector.load %arg13[%c26, %c0_87] : memref<128x1024xf32, #tpu.memory_space<vmem>>, vector<1x1024xf32>
    tpu.vector_store %arg13[%c26, %c0_87], %82 {strides = array<i32>} : memref<128x1024xf32, #tpu.memory_space<vmem>>, vector<1x1024xf32>,
    %c0_88 = arith.constant 0 : index
    %c0_89 = arith.constant 0 : index
    %84 = vector.load %arg4[%c0_88, %c0_89] : memref<8x128xf32, #tpu.memory_space<vmem>>, vector<8x128xf32>
    %c0_90 = arith.constant 0 : index
    %c0_91 = arith.constant 0 : index
    %85 = vector.load %arg13[%c0_90, %c0_91] : memref<128x1024xf32, #tpu.memory_space<vmem>>, vector<128x1024xf32>
    %cst_92 = arith.constant dense<0.000000e+00> : vector<8x1024xf32>
    %86 = tpu.matmul %84, %85, %cst_92 {dimension_numbers = #tpu.dot_dimension_numbers<[1], [0], [0], [1], [0, 0, 1, 1], [], []>} : vector<8x128xf32>, vector<128x1024xf32>, vector<8x1024xf32> -> vector<8x1024xf32>
    %87 = vector.extract_strided_slice %86 {offsets = [0, 0], sizes = [4, 1024], strides = [1, 1]} : vector<8x1024xf32> to vector<4x1024xf32>
    %c0_93 = arith.constant 0 : index
    %c0_94 = arith.constant 0 : index
    %88 = vector.load %arg5[%c0_93, %c0_94] : memref<4x1xf32, #tpu.memory_space<vmem>>, vector<4x1xf32>
    %89 = vector.broadcast %88 : vector<4x1xf32> to vector<4x1024xf32>
    %90 = arith.addf %87, %89 : vector<4x1024xf32>
    %cst_95 = arith.constant 0.000000e+00 : f32
    %91 = vector.broadcast %cst_95 : f32 to vector<4x1024xf32>
    %92 = arith.maximumf %90, %91 : vector<4x1024xf32>
    %c0_96 = arith.constant 0 : index
    %c0_97 = arith.constant 0 : index
    %93 = vector.load %arg14[%c0_96, %c0_97] : memref<4x1024xf32, #tpu.memory_space<vmem>>, vector<4x1024xf32>
    tpu.vector_store %arg14[%c0_96, %c0_97], %92 {strides = array<i32>} : memref<4x1024xf32, #tpu.memory_space<vmem>>, vector<4x1024xf32>,
    %c0_98 = arith.constant 0 : index
    %c0_99 = arith.constant 0 : index
    %c17_100 = arith.constant 17 : index
    %94 = vector.load %arg1[%c0_98, %c0_99, %c17_100] : memref<1x32x1280xf32, #tpu.memory_space<vmem>>, vector<1x4x1024xf32>
    %95 = vector.shape_cast %94 : vector<1x4x1024xf32> to vector<4x1024xf32>
    %c0_101 = arith.constant 0 : index
    %c0_102 = arith.constant 0 : index
    %96 = vector.load %arg13[%c0_101, %c0_102] : memref<128x1024xf32, #tpu.memory_space<vmem>>, vector<4x1024xf32>
    tpu.vector_store %arg13[%c0_101, %c0_102], %95 {strides = array<i32>} : memref<128x1024xf32, #tpu.memory_space<vmem>>, vector<4x1024xf32>,
    %c0_103 = arith.constant 0 : index
    %c4_104 = arith.constant 4 : index
    %c17_105 = arith.constant 17 : index
    %97 = vector.load %arg1[%c0_103, %c4_104, %c17_105] : memref<1x32x1280xf32, #tpu.memory_space<vmem>>, vector<1x4x1024xf32>
    %98 = vector.shape_cast %97 : vector<1x4x1024xf32> to vector<4x1024xf32>
    %c4_106 = arith.constant 4 : index
    %c0_107 = arith.constant 0 : index
    %99 = vector.load %arg13[%c4_106, %c0_107] : memref<128x1024xf32, #tpu.memory_space<vmem>>, vector<4x1024xf32>
    tpu.vector_store %arg13[%c4_106, %c0_107], %98 {strides = array<i32>} : memref<128x1024xf32, #tpu.memory_space<vmem>>, vector<4x1024xf32>,
    %c0_108 = arith.constant 0 : index
    %c0_109 = arith.constant 0 : index
    %c18_110 = arith.constant 18 : index
    %100 = vector.load %arg1[%c0_108, %c0_109, %c18_110] : memref<1x32x1280xf32, #tpu.memory_space<vmem>>, vector<1x4x1024xf32>
    %101 = vector.shape_cast %100 : vector<1x4x1024xf32> to vector<4x1024xf32>
    %c8_111 = arith.constant 8 : index
    %c0_112 = arith.constant 0 : index
    %102 = vector.load %arg13[%c8_111, %c0_112] : memref<128x1024xf32, #tpu.memory_space<vmem>>, vector<4x1024xf32>
    tpu.vector_store %arg13[%c8_111, %c0_112], %101 {strides = array<i32>} : memref<128x1024xf32, #tpu.memory_space<vmem>>, vector<4x1024xf32>,
    %c0_113 = arith.constant 0 : index
    %c8_114 = arith.constant 8 : index
    %c17_115 = arith.constant 17 : index
    %103 = vector.load %arg1[%c0_113, %c8_114, %c17_115] : memref<1x32x1280xf32, #tpu.memory_space<vmem>>, vector<1x4x1024xf32>
    %104 = vector.shape_cast %103 : vector<1x4x1024xf32> to vector<4x1024xf32>
    %c12_116 = arith.constant 12 : index
    %c0_117 = arith.constant 0 : index
    %105 = vector.load %arg13[%c12_116, %c0_117] : memref<128x1024xf32, #tpu.memory_space<vmem>>, vector<4x1024xf32>
    tpu.vector_store %arg13[%c12_116, %c0_117], %104 {strides = array<i32>} : memref<128x1024xf32, #tpu.memory_space<vmem>>, vector<4x1024xf32>,
    %c0_118 = arith.constant 0 : index
    %c12_119 = arith.constant 12 : index
    %c17_120 = arith.constant 17 : index
    %106 = vector.load %arg1[%c0_118, %c12_119, %c17_120] : memref<1x32x1280xf32, #tpu.memory_space<vmem>>, vector<1x4x1024xf32>
    %107 = vector.shape_cast %106 : vector<1x4x1024xf32> to vector<4x1024xf32>
    %c16_121 = arith.constant 16 : index
    %c0_122 = arith.constant 0 : index
    %108 = vector.load %arg13[%c16_121, %c0_122] : memref<128x1024xf32, #tpu.memory_space<vmem>>, vector<4x1024xf32>
    tpu.vector_store %arg13[%c16_121, %c0_122], %107 {strides = array<i32>} : memref<128x1024xf32, #tpu.memory_space<vmem>>, vector<4x1024xf32>,
    %c0_123 = arith.constant 0 : index
    %c8_124 = arith.constant 8 : index
    %c18_125 = arith.constant 18 : index
    %109 = vector.load %arg1[%c0_123, %c8_124, %c18_125] : memref<1x32x1280xf32, #tpu.memory_space<vmem>>, vector<1x4x1024xf32>
    %110 = vector.shape_cast %109 : vector<1x4x1024xf32> to vector<4x1024xf32>
    %c20_126 = arith.constant 20 : index
    %c0_127 = arith.constant 0 : index
    %111 = vector.load %arg13[%c20_126, %c0_127] : memref<128x1024xf32, #tpu.memory_space<vmem>>, vector<4x1024xf32>
    tpu.vector_store %arg13[%c20_126, %c0_127], %110 {strides = array<i32>} : memref<128x1024xf32, #tpu.memory_space<vmem>>, vector<4x1024xf32>,
    %c0_128 = arith.constant 0 : index
    %c0_129 = arith.constant 0 : index
    %c27_130 = arith.constant 27 : index
    %112 = vector.load %arg1[%c0_128, %c0_129, %c27_130] : memref<1x32x1280xf32, #tpu.memory_space<vmem>>, vector<1x4x1024xf32>
    %113 = vector.shape_cast %112 : vector<1x4x1024xf32> to vector<4x1024xf32>
    %c24_131 = arith.constant 24 : index
    %c0_132 = arith.constant 0 : index
    %114 = vector.load %arg13[%c24_131, %c0_132] : memref<128x1024xf32, #tpu.memory_space<vmem>>, vector<4x1024xf32>
    tpu.vector_store %arg13[%c24_131, %c0_132], %113 {strides = array<i32>} : memref<128x1024xf32, #tpu.memory_space<vmem>>, vector<4x1024xf32>,
    %c0_133 = arith.constant 0 : index
    %c4_134 = arith.constant 4 : index
    %c27_135 = arith.constant 27 : index
    %115 = vector.load %arg1[%c0_133, %c4_134, %c27_135] : memref<1x32x1280xf32, #tpu.memory_space<vmem>>, vector<1x4x1024xf32>
    %116 = vector.shape_cast %115 : vector<1x4x1024xf32> to vector<4x1024xf32>
    %c28_136 = arith.constant 28 : index
    %c0_137 = arith.constant 0 : index
    %117 = vector.load %arg13[%c28_136, %c0_137] : memref<128x1024xf32, #tpu.memory_space<vmem>>, vector<4x1024xf32>
    tpu.vector_store %arg13[%c28_136, %c0_137], %116 {strides = array<i32>} : memref<128x1024xf32, #tpu.memory_space<vmem>>, vector<4x1024xf32>,
    %c0_138 = arith.constant 0 : index
    %c0_139 = arith.constant 0 : index
    %c28_140 = arith.constant 28 : index
    %118 = vector.load %arg1[%c0_138, %c0_139, %c28_140] : memref<1x32x1280xf32, #tpu.memory_space<vmem>>, vector<1x4x1024xf32>
    %119 = vector.shape_cast %118 : vector<1x4x1024xf32> to vector<4x1024xf32>
    %c32 = arith.constant 32 : index
    %c0_141 = arith.constant 0 : index
    %120 = vector.load %arg13[%c32, %c0_141] : memref<128x1024xf32, #tpu.memory_space<vmem>>, vector<4x1024xf32>
    tpu.vector_store %arg13[%c32, %c0_141], %119 {strides = array<i32>} : memref<128x1024xf32, #tpu.memory_space<vmem>>, vector<4x1024xf32>,
    %c0_142 = arith.constant 0 : index
    %c16_143 = arith.constant 16 : index
    %c17_144 = arith.constant 17 : index
    %121 = vector.load %arg1[%c0_142, %c16_143, %c17_144] : memref<1x32x1280xf32, #tpu.memory_space<vmem>>, vector<1x4x1024xf32>
    %122 = vector.shape_cast %121 : vector<1x4x1024xf32> to vector<4x1024xf32>
    %c36 = arith.constant 36 : index
    %c0_145 = arith.constant 0 : index
    %123 = vector.load %arg13[%c36, %c0_145] : memref<128x1024xf32, #tpu.memory_space<vmem>>, vector<4x1024xf32>
    tpu.vector_store %arg13[%c36, %c0_145], %122 {strides = array<i32>} : memref<128x1024xf32, #tpu.memory_space<vmem>>, vector<4x1024xf32>,
    %c0_146 = arith.constant 0 : index
    %c20_147 = arith.constant 20 : index
    %c17_148 = arith.constant 17 : index
    %124 = vector.load %arg1[%c0_146, %c20_147, %c17_148] : memref<1x32x1280xf32, #tpu.memory_space<vmem>>, vector<1x4x1024xf32>
    %125 = vector.shape_cast %124 : vector<1x4x1024xf32> to vector<4x1024xf32>
    %c40 = arith.constant 40 : index
    %c0_149 = arith.constant 0 : index
    %126 = vector.load %arg13[%c40, %c0_149] : memref<128x1024xf32, #tpu.memory_space<vmem>>, vector<4x1024xf32>
    tpu.vector_store %arg13[%c40, %c0_149], %125 {strides = array<i32>} : memref<128x1024xf32, #tpu.memory_space<vmem>>, vector<4x1024xf32>,
    %c0_150 = arith.constant 0 : index
    %c16_151 = arith.constant 16 : index
    %c18_152 = arith.constant 18 : index
    %127 = vector.load %arg1[%c0_150, %c16_151, %c18_152] : memref<1x32x1280xf32, #tpu.memory_space<vmem>>, vector<1x4x1024xf32>
    %128 = vector.shape_cast %127 : vector<1x4x1024xf32> to vector<4x1024xf32>
    %c44 = arith.constant 44 : index
    %c0_153 = arith.constant 0 : index
    %129 = vector.load %arg13[%c44, %c0_153] : memref<128x1024xf32, #tpu.memory_space<vmem>>, vector<4x1024xf32>
    tpu.vector_store %arg13[%c44, %c0_153], %128 {strides = array<i32>} : memref<128x1024xf32, #tpu.memory_space<vmem>>, vector<4x1024xf32>,
    %c0_154 = arith.constant 0 : index
    %c24_155 = arith.constant 24 : index
    %c17_156 = arith.constant 17 : index
    %130 = vector.load %arg1[%c0_154, %c24_155, %c17_156] : memref<1x32x1280xf32, #tpu.memory_space<vmem>>, vector<1x4x1024xf32>
    %131 = vector.shape_cast %130 : vector<1x4x1024xf32> to vector<4x1024xf32>
    %c48 = arith.constant 48 : index
    %c0_157 = arith.constant 0 : index
    %132 = vector.load %arg13[%c48, %c0_157] : memref<128x1024xf32, #tpu.memory_space<vmem>>, vector<4x1024xf32>
    tpu.vector_store %arg13[%c48, %c0_157], %131 {strides = array<i32>} : memref<128x1024xf32, #tpu.memory_space<vmem>>, vector<4x1024xf32>,
    %c0_158 = arith.constant 0 : index
    %c28_159 = arith.constant 28 : index
    %c17_160 = arith.constant 17 : index
    %133 = vector.load %arg1[%c0_158, %c28_159, %c17_160] : memref<1x32x1280xf32, #tpu.memory_space<vmem>>, vector<1x4x1024xf32>
    %134 = vector.shape_cast %133 : vector<1x4x1024xf32> to vector<4x1024xf32>
    %c52 = arith.constant 52 : index
    %c0_161 = arith.constant 0 : index
    %135 = vector.load %arg13[%c52, %c0_161] : memref<128x1024xf32, #tpu.memory_space<vmem>>, vector<4x1024xf32>
    tpu.vector_store %arg13[%c52, %c0_161], %134 {strides = array<i32>} : memref<128x1024xf32, #tpu.memory_space<vmem>>, vector<4x1024xf32>,
    %c0_162 = arith.constant 0 : index
    %c24_163 = arith.constant 24 : index
    %c18_164 = arith.constant 18 : index
    %136 = vector.load %arg1[%c0_162, %c24_163, %c18_164] : memref<1x32x1280xf32, #tpu.memory_space<vmem>>, vector<1x4x1024xf32>
    %137 = vector.shape_cast %136 : vector<1x4x1024xf32> to vector<4x1024xf32>
    %c56 = arith.constant 56 : index
    %c0_165 = arith.constant 0 : index
    %138 = vector.load %arg13[%c56, %c0_165] : memref<128x1024xf32, #tpu.memory_space<vmem>>, vector<4x1024xf32>
    tpu.vector_store %arg13[%c56, %c0_165], %137 {strides = array<i32>} : memref<128x1024xf32, #tpu.memory_space<vmem>>, vector<4x1024xf32>,
    %c0_166 = arith.constant 0 : index
    %c16_167 = arith.constant 16 : index
    %c27_168 = arith.constant 27 : index
    %139 = vector.load %arg1[%c0_166, %c16_167, %c27_168] : memref<1x32x1280xf32, #tpu.memory_space<vmem>>, vector<1x4x1024xf32>
    %140 = vector.shape_cast %139 : vector<1x4x1024xf32> to vector<4x1024xf32>
    %c60 = arith.constant 60 : index
    %c0_169 = arith.constant 0 : index
    %141 = vector.load %arg13[%c60, %c0_169] : memref<128x1024xf32, #tpu.memory_space<vmem>>, vector<4x1024xf32>
    tpu.vector_store %arg13[%c60, %c0_169], %140 {strides = array<i32>} : memref<128x1024xf32, #tpu.memory_space<vmem>>, vector<4x1024xf32>,
    %c0_170 = arith.constant 0 : index
    %c20_171 = arith.constant 20 : index
    %c27_172 = arith.constant 27 : index
    %142 = vector.load %arg1[%c0_170, %c20_171, %c27_172] : memref<1x32x1280xf32, #tpu.memory_space<vmem>>, vector<1x4x1024xf32>
    %143 = vector.shape_cast %142 : vector<1x4x1024xf32> to vector<4x1024xf32>
    %c64 = arith.constant 64 : index
    %c0_173 = arith.constant 0 : index
    %144 = vector.load %arg13[%c64, %c0_173] : memref<128x1024xf32, #tpu.memory_space<vmem>>, vector<4x1024xf32>
    tpu.vector_store %arg13[%c64, %c0_173], %143 {strides = array<i32>} : memref<128x1024xf32, #tpu.memory_space<vmem>>, vector<4x1024xf32>,
    %c0_174 = arith.constant 0 : index
    %c16_175 = arith.constant 16 : index
    %c28_176 = arith.constant 28 : index
    %145 = vector.load %arg1[%c0_174, %c16_175, %c28_176] : memref<1x32x1280xf32, #tpu.memory_space<vmem>>, vector<1x4x1024xf32>
    %146 = vector.shape_cast %145 : vector<1x4x1024xf32> to vector<4x1024xf32>
    %c68 = arith.constant 68 : index
    %c0_177 = arith.constant 0 : index
    %147 = vector.load %arg13[%c68, %c0_177] : memref<128x1024xf32, #tpu.memory_space<vmem>>, vector<4x1024xf32>
    tpu.vector_store %arg13[%c68, %c0_177], %146 {strides = array<i32>} : memref<128x1024xf32, #tpu.memory_space<vmem>>, vector<4x1024xf32>,
    %c0_178 = arith.constant 0 : index
    %c0_179 = arith.constant 0 : index
    %c117_180 = arith.constant 117 : index
    %148 = vector.load %arg1[%c0_178, %c0_179, %c117_180] : memref<1x32x1280xf32, #tpu.memory_space<vmem>>, vector<1x4x1024xf32>
    %149 = vector.shape_cast %148 : vector<1x4x1024xf32> to vector<4x1024xf32>
    %c72 = arith.constant 72 : index
    %c0_181 = arith.constant 0 : index
    %150 = vector.load %arg13[%c72, %c0_181] : memref<128x1024xf32, #tpu.memory_space<vmem>>, vector<4x1024xf32>
    tpu.vector_store %arg13[%c72, %c0_181], %149 {strides = array<i32>} : memref<128x1024xf32, #tpu.memory_space<vmem>>, vector<4x1024xf32>,
    %c0_182 = arith.constant 0 : index
    %c4_183 = arith.constant 4 : index
    %c117_184 = arith.constant 117 : index
    %151 = vector.load %arg1[%c0_182, %c4_183, %c117_184] : memref<1x32x1280xf32, #tpu.memory_space<vmem>>, vector<1x4x1024xf32>
    %152 = vector.shape_cast %151 : vector<1x4x1024xf32> to vector<4x1024xf32>
    %c76 = arith.constant 76 : index
    %c0_185 = arith.constant 0 : index
    %153 = vector.load %arg13[%c76, %c0_185] : memref<128x1024xf32, #tpu.memory_space<vmem>>, vector<4x1024xf32>
    tpu.vector_store %arg13[%c76, %c0_185], %152 {strides = array<i32>} : memref<128x1024xf32, #tpu.memory_space<vmem>>, vector<4x1024xf32>,
    %c0_186 = arith.constant 0 : index
    %c0_187 = arith.constant 0 : index
    %c118_188 = arith.constant 118 : index
    %154 = vector.load %arg1[%c0_186, %c0_187, %c118_188] : memref<1x32x1280xf32, #tpu.memory_space<vmem>>, vector<1x4x1024xf32>
    %155 = vector.shape_cast %154 : vector<1x4x1024xf32> to vector<4x1024xf32>
    %c80 = arith.constant 80 : index
    %c0_189 = arith.constant 0 : index
    %156 = vector.load %arg13[%c80, %c0_189] : memref<128x1024xf32, #tpu.memory_space<vmem>>, vector<4x1024xf32>
    tpu.vector_store %arg13[%c80, %c0_189], %155 {strides = array<i32>} : memref<128x1024xf32, #tpu.memory_space<vmem>>, vector<4x1024xf32>,
    %c0_190 = arith.constant 0 : index
    %c8_191 = arith.constant 8 : index
    %c117_192 = arith.constant 117 : index
    %157 = vector.load %arg1[%c0_190, %c8_191, %c117_192] : memref<1x32x1280xf32, #tpu.memory_space<vmem>>, vector<1x4x1024xf32>
    %158 = vector.shape_cast %157 : vector<1x4x1024xf32> to vector<4x1024xf32>
    %c84 = arith.constant 84 : index
    %c0_193 = arith.constant 0 : index
    %159 = vector.load %arg13[%c84, %c0_193] : memref<128x1024xf32, #tpu.memory_space<vmem>>, vector<4x1024xf32>
    tpu.vector_store %arg13[%c84, %c0_193], %158 {strides = array<i32>} : memref<128x1024xf32, #tpu.memory_space<vmem>>, vector<4x1024xf32>,
    %c0_194 = arith.constant 0 : index
    %c12_195 = arith.constant 12 : index
    %c117_196 = arith.constant 117 : index
    %160 = vector.load %arg1[%c0_194, %c12_195, %c117_196] : memref<1x32x1280xf32, #tpu.memory_space<vmem>>, vector<1x4x1024xf32>
    %161 = vector.shape_cast %160 : vector<1x4x1024xf32> to vector<4x1024xf32>
    %c88 = arith.constant 88 : index
    %c0_197 = arith.constant 0 : index
    %162 = vector.load %arg13[%c88, %c0_197] : memref<128x1024xf32, #tpu.memory_space<vmem>>, vector<4x1024xf32>
    tpu.vector_store %arg13[%c88, %c0_197], %161 {strides = array<i32>} : memref<128x1024xf32, #tpu.memory_space<vmem>>, vector<4x1024xf32>,
    %c0_198 = arith.constant 0 : index
    %c8_199 = arith.constant 8 : index
    %c118_200 = arith.constant 118 : index
    %163 = vector.load %arg1[%c0_198, %c8_199, %c118_200] : memref<1x32x1280xf32, #tpu.memory_space<vmem>>, vector<1x4x1024xf32>
    %164 = vector.shape_cast %163 : vector<1x4x1024xf32> to vector<4x1024xf32>
    %c92 = arith.constant 92 : index
    %c0_201 = arith.constant 0 : index
    %165 = vector.load %arg13[%c92, %c0_201] : memref<128x1024xf32, #tpu.memory_space<vmem>>, vector<4x1024xf32>
    tpu.vector_store %arg13[%c92, %c0_201], %164 {strides = array<i32>} : memref<128x1024xf32, #tpu.memory_space<vmem>>, vector<4x1024xf32>,
    %c0_202 = arith.constant 0 : index
    %c0_203 = arith.constant 0 : index
    %c127_204 = arith.constant 127 : index
    %166 = vector.load %arg1[%c0_202, %c0_203, %c127_204] : memref<1x32x1280xf32, #tpu.memory_space<vmem>>, vector<1x4x1024xf32>
    %167 = vector.shape_cast %166 : vector<1x4x1024xf32> to vector<4x1024xf32>
    %c96 = arith.constant 96 : index
    %c0_205 = arith.constant 0 : index
    %168 = vector.load %arg13[%c96, %c0_205] : memref<128x1024xf32, #tpu.memory_space<vmem>>, vector<4x1024xf32>
    tpu.vector_store %arg13[%c96, %c0_205], %167 {strides = array<i32>} : memref<128x1024xf32, #tpu.memory_space<vmem>>, vector<4x1024xf32>,
    %c0_206 = arith.constant 0 : index
    %c4_207 = arith.constant 4 : index
    %c127_208 = arith.constant 127 : index
    %169 = vector.load %arg1[%c0_206, %c4_207, %c127_208] : memref<1x32x1280xf32, #tpu.memory_space<vmem>>, vector<1x4x1024xf32>
    %170 = vector.shape_cast %169 : vector<1x4x1024xf32> to vector<4x1024xf32>
    %c100 = arith.constant 100 : index
    %c0_209 = arith.constant 0 : index
    %171 = vector.load %arg13[%c100, %c0_209] : memref<128x1024xf32, #tpu.memory_space<vmem>>, vector<4x1024xf32>
    tpu.vector_store %arg13[%c100, %c0_209], %170 {strides = array<i32>} : memref<128x1024xf32, #tpu.memory_space<vmem>>, vector<4x1024xf32>,
    %c0_210 = arith.constant 0 : index
    %c0_211 = arith.constant 0 : index
    %c128_212 = arith.constant 128 : index
    %172 = vector.load %arg1[%c0_210, %c0_211, %c128_212] : memref<1x32x1280xf32, #tpu.memory_space<vmem>>, vector<1x4x1024xf32>
    %173 = vector.shape_cast %172 : vector<1x4x1024xf32> to vector<4x1024xf32>
    %c104 = arith.constant 104 : index
    %c0_213 = arith.constant 0 : index
    %174 = vector.load %arg13[%c104, %c0_213] : memref<128x1024xf32, #tpu.memory_space<vmem>>, vector<4x1024xf32>
    tpu.vector_store %arg13[%c104, %c0_213], %173 {strides = array<i32>} : memref<128x1024xf32, #tpu.memory_space<vmem>>, vector<4x1024xf32>,
    %c0_214 = arith.constant 0 : index
    %c0_215 = arith.constant 0 : index
    %175 = vector.load %arg6[%c0_214, %c0_215] : memref<8x128xf32, #tpu.memory_space<vmem>>, vector<8x128xf32>
    %c0_216 = arith.constant 0 : index
    %c0_217 = arith.constant 0 : index
    %176 = vector.load %arg13[%c0_216, %c0_217] : memref<128x1024xf32, #tpu.memory_space<vmem>>, vector<128x1024xf32>
    %cst_218 = arith.constant dense<0.000000e+00> : vector<8x1024xf32>
    %177 = tpu.matmul %175, %176, %cst_218 {dimension_numbers = #tpu.dot_dimension_numbers<[1], [0], [0], [1], [0, 0, 1, 1], [], []>} : vector<8x128xf32>, vector<128x1024xf32>, vector<8x1024xf32> -> vector<8x1024xf32>
    %178 = vector.extract_strided_slice %177 {offsets = [0, 0], sizes = [4, 1024], strides = [1, 1]} : vector<8x1024xf32> to vector<4x1024xf32>
    %c0_219 = arith.constant 0 : index
    %c0_220 = arith.constant 0 : index
    %179 = vector.load %arg7[%c0_219, %c0_220] : memref<4x1xf32, #tpu.memory_space<vmem>>, vector<4x1xf32>
    %180 = vector.broadcast %179 : vector<4x1xf32> to vector<4x1024xf32>
    %181 = arith.addf %178, %180 : vector<4x1024xf32>
    %cst_221 = arith.constant 0.000000e+00 : f32
    %182 = vector.broadcast %cst_221 : f32 to vector<4x1024xf32>
    %183 = arith.maximumf %181, %182 : vector<4x1024xf32>
    %c0_222 = arith.constant 0 : index
    %c0_223 = arith.constant 0 : index
    %184 = vector.load %arg15[%c0_222, %c0_223] : memref<4x1024xf32, #tpu.memory_space<vmem>>, vector<4x1024xf32>
    tpu.vector_store %arg15[%c0_222, %c0_223], %183 {strides = array<i32>} : memref<4x1024xf32, #tpu.memory_space<vmem>>, vector<4x1024xf32>,
    %c0_224 = arith.constant 0 : index
    %c0_225 = arith.constant 0 : index
    %185 = vector.load %arg14[%c0_224, %c0_225] : memref<4x1024xf32, #tpu.memory_space<vmem>>, vector<4x1024xf32>
    %c0_226 = arith.constant 0 : index
    %c0_227 = arith.constant 0 : index
    %186 = vector.load %arg13[%c0_226, %c0_227] : memref<128x1024xf32, #tpu.memory_space<vmem>>, vector<4x1024xf32>
    tpu.vector_store %arg13[%c0_226, %c0_227], %185 {strides = array<i32>} : memref<128x1024xf32, #tpu.memory_space<vmem>>, vector<4x1024xf32>,
    %c0_228 = arith.constant 0 : index
    %c0_229 = arith.constant 0 : index
    %187 = vector.load %arg15[%c0_228, %c0_229] : memref<4x1024xf32, #tpu.memory_space<vmem>>, vector<4x1024xf32>
    %c4_230 = arith.constant 4 : index
    %c0_231 = arith.constant 0 : index
    %188 = vector.load %arg13[%c4_230, %c0_231] : memref<128x1024xf32, #tpu.memory_space<vmem>>, vector<4x1024xf32>
    tpu.vector_store %arg13[%c4_230, %c0_231], %187 {strides = array<i32>} : memref<128x1024xf32, #tpu.memory_space<vmem>>, vector<4x1024xf32>,
    %c0_232 = arith.constant 0 : index
    %c0_233 = arith.constant 0 : index
    %189 = vector.load %arg8[%c0_232, %c0_233] : memref<8x128xf32, #tpu.memory_space<vmem>>, vector<8x128xf32>
    %c0_234 = arith.constant 0 : index
    %c0_235 = arith.constant 0 : index
    %190 = vector.load %arg13[%c0_234, %c0_235] : memref<128x1024xf32, #tpu.memory_space<vmem>>, vector<128x1024xf32>
    %cst_236 = arith.constant dense<0.000000e+00> : vector<8x1024xf32>
    %191 = tpu.matmul %189, %190, %cst_236 {dimension_numbers = #tpu.dot_dimension_numbers<[1], [0], [0], [1], [0, 0, 1, 1], [], []>} : vector<8x128xf32>, vector<128x1024xf32>, vector<8x1024xf32> -> vector<8x1024xf32>
    %192 = vector.extract_strided_slice %191 {offsets = [0, 0], sizes = [4, 1024], strides = [1, 1]} : vector<8x1024xf32> to vector<4x1024xf32>
    %c0_237 = arith.constant 0 : index
    %c0_238 = arith.constant 0 : index
    %193 = vector.load %arg9[%c0_237, %c0_238] : memref<4x1xf32, #tpu.memory_space<vmem>>, vector<4x1xf32>
    %194 = vector.broadcast %193 : vector<4x1xf32> to vector<4x1024xf32>
    %195 = arith.addf %192, %194 : vector<4x1024xf32>
    %cst_239 = arith.constant 0.000000e+00 : f32
    %196 = vector.broadcast %cst_239 : f32 to vector<4x1024xf32>
    %197 = arith.maximumf %195, %196 : vector<4x1024xf32>
    %198 = vector.broadcast %2 : vector<1x1024xf32> to vector<4x1024xf32>
    %199 = arith.mulf %197, %198 : vector<4x1024xf32>
    %cst_240 = arith.constant 0.000000e+00 : f32
    %200 = vector.broadcast %cst_240 : f32 to vector<4x128xf32>
    %c0_241 = arith.constant 0 : index
    %c0_242 = arith.constant 0 : index
    %201 = vector.load %arg16[%c0_241, %c0_242] : memref<4x1280xf32, #tpu.memory_space<vmem>>, vector<4x128xf32>
    tpu.vector_store %arg16[%c0_241, %c0_242], %200 {strides = array<i32>} : memref<4x1280xf32, #tpu.memory_space<vmem>>, vector<4x128xf32>,
    %c0_243 = arith.constant 0 : index
    %c128_244 = arith.constant 128 : index
    %202 = vector.load %arg16[%c0_243, %c128_244] : memref<4x1280xf32, #tpu.memory_space<vmem>>, vector<4x1024xf32>
    tpu.vector_store %arg16[%c0_243, %c128_244], %199 {strides = array<i32>} : memref<4x1280xf32, #tpu.memory_space<vmem>>, vector<4x1024xf32>,
    %cst_245 = arith.constant 0.000000e+00 : f32
    %203 = vector.broadcast %cst_245 : f32 to vector<4x128xf32>
    %c0_246 = arith.constant 0 : index
    %c1152 = arith.constant 1152 : index
    %204 = vector.load %arg16[%c0_246, %c1152] : memref<4x1280xf32, #tpu.memory_space<vmem>>, vector<4x128xf32>
    tpu.vector_store %arg16[%c0_246, %c1152], %203 {strides = array<i32>} : memref<4x1280xf32, #tpu.memory_space<vmem>>, vector<4x128xf32>,
    %c0_247 = arith.constant 0 : index
    %c17_248 = arith.constant 17 : index
    %205 = vector.load %arg16[%c0_247, %c17_248] : memref<4x1280xf32, #tpu.memory_space<vmem>>, vector<4x1024xf32>
    %c0_249 = arith.constant 0 : index
    %c0_250 = arith.constant 0 : index
    %206 = vector.load %arg13[%c0_249, %c0_250] : memref<128x1024xf32, #tpu.memory_space<vmem>>, vector<4x1024xf32>
    tpu.vector_store %arg13[%c0_249, %c0_250], %205 {strides = array<i32>} : memref<128x1024xf32, #tpu.memory_space<vmem>>, vector<4x1024xf32>,
    %c0_251 = arith.constant 0 : index
    %c18_252 = arith.constant 18 : index
    %207 = vector.load %arg16[%c0_251, %c18_252] : memref<4x1280xf32, #tpu.memory_space<vmem>>, vector<4x1024xf32>
    %c4_253 = arith.constant 4 : index
    %c0_254 = arith.constant 0 : index
    %208 = vector.load %arg13[%c4_253, %c0_254] : memref<128x1024xf32, #tpu.memory_space<vmem>>, vector<4x1024xf32>
    tpu.vector_store %arg13[%c4_253, %c0_254], %207 {strides = array<i32>} : memref<128x1024xf32, #tpu.memory_space<vmem>>, vector<4x1024xf32>,
    %c0_255 = arith.constant 0 : index
    %c19_256 = arith.constant 19 : index
    %209 = vector.load %arg16[%c0_255, %c19_256] : memref<4x1280xf32, #tpu.memory_space<vmem>>, vector<4x1024xf32>
    %c8_257 = arith.constant 8 : index
    %c0_258 = arith.constant 0 : index
    %210 = vector.load %arg13[%c8_257, %c0_258] : memref<128x1024xf32, #tpu.memory_space<vmem>>, vector<4x1024xf32>
    tpu.vector_store %arg13[%c8_257, %c0_258], %209 {strides = array<i32>} : memref<128x1024xf32, #tpu.memory_space<vmem>>, vector<4x1024xf32>,
    %c0_259 = arith.constant 0 : index
    %c27_260 = arith.constant 27 : index
    %211 = vector.load %arg16[%c0_259, %c27_260] : memref<4x1280xf32, #tpu.memory_space<vmem>>, vector<4x1024xf32>
    %c12_261 = arith.constant 12 : index
    %c0_262 = arith.constant 0 : index
    %212 = vector.load %arg13[%c12_261, %c0_262] : memref<128x1024xf32, #tpu.memory_space<vmem>>, vector<4x1024xf32>
    tpu.vector_store %arg13[%c12_261, %c0_262], %211 {strides = array<i32>} : memref<128x1024xf32, #tpu.memory_space<vmem>>, vector<4x1024xf32>,
    %c0_263 = arith.constant 0 : index
    %c28_264 = arith.constant 28 : index
    %213 = vector.load %arg16[%c0_263, %c28_264] : memref<4x1280xf32, #tpu.memory_space<vmem>>, vector<4x1024xf32>
    %c16_265 = arith.constant 16 : index
    %c0_266 = arith.constant 0 : index
    %214 = vector.load %arg13[%c16_265, %c0_266] : memref<128x1024xf32, #tpu.memory_space<vmem>>, vector<4x1024xf32>
    tpu.vector_store %arg13[%c16_265, %c0_266], %213 {strides = array<i32>} : memref<128x1024xf32, #tpu.memory_space<vmem>>, vector<4x1024xf32>,
    %c0_267 = arith.constant 0 : index
    %c29_268 = arith.constant 29 : index
    %215 = vector.load %arg16[%c0_267, %c29_268] : memref<4x1280xf32, #tpu.memory_space<vmem>>, vector<4x1024xf32>
    %c20_269 = arith.constant 20 : index
    %c0_270 = arith.constant 0 : index
    %216 = vector.load %arg13[%c20_269, %c0_270] : memref<128x1024xf32, #tpu.memory_space<vmem>>, vector<4x1024xf32>
    tpu.vector_store %arg13[%c20_269, %c0_270], %215 {strides = array<i32>} : memref<128x1024xf32, #tpu.memory_space<vmem>>, vector<4x1024xf32>,
    %c0_271 = arith.constant 0 : index
    %c37_272 = arith.constant 37 : index
    %217 = vector.load %arg16[%c0_271, %c37_272] : memref<4x1280xf32, #tpu.memory_space<vmem>>, vector<4x1024xf32>
    %c24_273 = arith.constant 24 : index
    %c0_274 = arith.constant 0 : index
    %218 = vector.load %arg13[%c24_273, %c0_274] : memref<128x1024xf32, #tpu.memory_space<vmem>>, vector<4x1024xf32>
    tpu.vector_store %arg13[%c24_273, %c0_274], %217 {strides = array<i32>} : memref<128x1024xf32, #tpu.memory_space<vmem>>, vector<4x1024xf32>,
    %c0_275 = arith.constant 0 : index
    %c38_276 = arith.constant 38 : index
    %219 = vector.load %arg16[%c0_275, %c38_276] : memref<4x1280xf32, #tpu.memory_space<vmem>>, vector<4x1024xf32>
    %c28_277 = arith.constant 28 : index
    %c0_278 = arith.constant 0 : index
    %220 = vector.load %arg13[%c28_277, %c0_278] : memref<128x1024xf32, #tpu.memory_space<vmem>>, vector<4x1024xf32>
    tpu.vector_store %arg13[%c28_277, %c0_278], %219 {strides = array<i32>} : memref<128x1024xf32, #tpu.memory_space<vmem>>, vector<4x1024xf32>,
    %c0_279 = arith.constant 0 : index
    %c39_280 = arith.constant 39 : index
    %221 = vector.load %arg16[%c0_279, %c39_280] : memref<4x1280xf32, #tpu.memory_space<vmem>>, vector<4x1024xf32>
    %c32_281 = arith.constant 32 : index
    %c0_282 = arith.constant 0 : index
    %222 = vector.load %arg13[%c32_281, %c0_282] : memref<128x1024xf32, #tpu.memory_space<vmem>>, vector<4x1024xf32>
    tpu.vector_store %arg13[%c32_281, %c0_282], %221 {strides = array<i32>} : memref<128x1024xf32, #tpu.memory_space<vmem>>, vector<4x1024xf32>,
    %c0_283 = arith.constant 0 : index
    %c117_284 = arith.constant 117 : index
    %223 = vector.load %arg16[%c0_283, %c117_284] : memref<4x1280xf32, #tpu.memory_space<vmem>>, vector<4x1024xf32>
    %c36_285 = arith.constant 36 : index
    %c0_286 = arith.constant 0 : index
    %224 = vector.load %arg13[%c36_285, %c0_286] : memref<128x1024xf32, #tpu.memory_space<vmem>>, vector<4x1024xf32>
    tpu.vector_store %arg13[%c36_285, %c0_286], %223 {strides = array<i32>} : memref<128x1024xf32, #tpu.memory_space<vmem>>, vector<4x1024xf32>,
    %c0_287 = arith.constant 0 : index
    %c118_288 = arith.constant 118 : index
    %225 = vector.load %arg16[%c0_287, %c118_288] : memref<4x1280xf32, #tpu.memory_space<vmem>>, vector<4x1024xf32>
    %c40_289 = arith.constant 40 : index
    %c0_290 = arith.constant 0 : index
    %226 = vector.load %arg13[%c40_289, %c0_290] : memref<128x1024xf32, #tpu.memory_space<vmem>>, vector<4x1024xf32>
    tpu.vector_store %arg13[%c40_289, %c0_290], %225 {strides = array<i32>} : memref<128x1024xf32, #tpu.memory_space<vmem>>, vector<4x1024xf32>,
    %c0_291 = arith.constant 0 : index
    %c119_292 = arith.constant 119 : index
    %227 = vector.load %arg16[%c0_291, %c119_292] : memref<4x1280xf32, #tpu.memory_space<vmem>>, vector<4x1024xf32>
    %c44_293 = arith.constant 44 : index
    %c0_294 = arith.constant 0 : index
    %228 = vector.load %arg13[%c44_293, %c0_294] : memref<128x1024xf32, #tpu.memory_space<vmem>>, vector<4x1024xf32>
    tpu.vector_store %arg13[%c44_293, %c0_294], %227 {strides = array<i32>} : memref<128x1024xf32, #tpu.memory_space<vmem>>, vector<4x1024xf32>,
    %c0_295 = arith.constant 0 : index
    %c127_296 = arith.constant 127 : index
    %229 = vector.load %arg16[%c0_295, %c127_296] : memref<4x1280xf32, #tpu.memory_space<vmem>>, vector<4x1024xf32>
    %c48_297 = arith.constant 48 : index
    %c0_298 = arith.constant 0 : index
    %230 = vector.load %arg13[%c48_297, %c0_298] : memref<128x1024xf32, #tpu.memory_space<vmem>>, vector<4x1024xf32>
    tpu.vector_store %arg13[%c48_297, %c0_298], %229 {strides = array<i32>} : memref<128x1024xf32, #tpu.memory_space<vmem>>, vector<4x1024xf32>,
    %c0_299 = arith.constant 0 : index
    %c128_300 = arith.constant 128 : index
    %231 = vector.load %arg16[%c0_299, %c128_300] : memref<4x1280xf32, #tpu.memory_space<vmem>>, vector<4x1024xf32>
    %c52_301 = arith.constant 52 : index
    %c0_302 = arith.constant 0 : index
    %232 = vector.load %arg13[%c52_301, %c0_302] : memref<128x1024xf32, #tpu.memory_space<vmem>>, vector<4x1024xf32>
    tpu.vector_store %arg13[%c52_301, %c0_302], %231 {strides = array<i32>} : memref<128x1024xf32, #tpu.memory_space<vmem>>, vector<4x1024xf32>,
    %c0_303 = arith.constant 0 : index
    %c129_304 = arith.constant 129 : index
    %233 = vector.load %arg16[%c0_303, %c129_304] : memref<4x1280xf32, #tpu.memory_space<vmem>>, vector<4x1024xf32>
    %c56_305 = arith.constant 56 : index
    %c0_306 = arith.constant 0 : index
    %234 = vector.load %arg13[%c56_305, %c0_306] : memref<128x1024xf32, #tpu.memory_space<vmem>>, vector<4x1024xf32>
    tpu.vector_store %arg13[%c56_305, %c0_306], %233 {strides = array<i32>} : memref<128x1024xf32, #tpu.memory_space<vmem>>, vector<4x1024xf32>,
    %c0_307 = arith.constant 0 : index
    %c137_308 = arith.constant 137 : index
    %235 = vector.load %arg16[%c0_307, %c137_308] : memref<4x1280xf32, #tpu.memory_space<vmem>>, vector<4x1024xf32>
    %c60_309 = arith.constant 60 : index
    %c0_310 = arith.constant 0 : index
    %236 = vector.load %arg13[%c60_309, %c0_310] : memref<128x1024xf32, #tpu.memory_space<vmem>>, vector<4x1024xf32>
    tpu.vector_store %arg13[%c60_309, %c0_310], %235 {strides = array<i32>} : memref<128x1024xf32, #tpu.memory_space<vmem>>, vector<4x1024xf32>,
    %c0_311 = arith.constant 0 : index
    %c138_312 = arith.constant 138 : index
    %237 = vector.load %arg16[%c0_311, %c138_312] : memref<4x1280xf32, #tpu.memory_space<vmem>>, vector<4x1024xf32>
    %c64_313 = arith.constant 64 : index
    %c0_314 = arith.constant 0 : index
    %238 = vector.load %arg13[%c64_313, %c0_314] : memref<128x1024xf32, #tpu.memory_space<vmem>>, vector<4x1024xf32>
    tpu.vector_store %arg13[%c64_313, %c0_314], %237 {strides = array<i32>} : memref<128x1024xf32, #tpu.memory_space<vmem>>, vector<4x1024xf32>,
    %c0_315 = arith.constant 0 : index
    %c139_316 = arith.constant 139 : index
    %239 = vector.load %arg16[%c0_315, %c139_316] : memref<4x1280xf32, #tpu.memory_space<vmem>>, vector<4x1024xf32>
    %c68_317 = arith.constant 68 : index
    %c0_318 = arith.constant 0 : index
    %240 = vector.load %arg13[%c68_317, %c0_318] : memref<128x1024xf32, #tpu.memory_space<vmem>>, vector<4x1024xf32>
    tpu.vector_store %arg13[%c68_317, %c0_318], %239 {strides = array<i32>} : memref<128x1024xf32, #tpu.memory_space<vmem>>, vector<4x1024xf32>,
    %c0_319 = arith.constant 0 : index
    %c217_320 = arith.constant 217 : index
    %241 = vector.load %arg16[%c0_319, %c217_320] : memref<4x1280xf32, #tpu.memory_space<vmem>>, vector<4x1024xf32>
    %c72_321 = arith.constant 72 : index
    %c0_322 = arith.constant 0 : index
    %242 = vector.load %arg13[%c72_321, %c0_322] : memref<128x1024xf32, #tpu.memory_space<vmem>>, vector<4x1024xf32>
    tpu.vector_store %arg13[%c72_321, %c0_322], %241 {strides = array<i32>} : memref<128x1024xf32, #tpu.memory_space<vmem>>, vector<4x1024xf32>,
    %c0_323 = arith.constant 0 : index
    %c218_324 = arith.constant 218 : index
    %243 = vector.load %arg16[%c0_323, %c218_324] : memref<4x1280xf32, #tpu.memory_space<vmem>>, vector<4x1024xf32>
    %c76_325 = arith.constant 76 : index
    %c0_326 = arith.constant 0 : index
    %244 = vector.load %arg13[%c76_325, %c0_326] : memref<128x1024xf32, #tpu.memory_space<vmem>>, vector<4x1024xf32>
    tpu.vector_store %arg13[%c76_325, %c0_326], %243 {strides = array<i32>} : memref<128x1024xf32, #tpu.memory_space<vmem>>, vector<4x1024xf32>,
    %c0_327 = arith.constant 0 : index
    %c219_328 = arith.constant 219 : index
    %245 = vector.load %arg16[%c0_327, %c219_328] : memref<4x1280xf32, #tpu.memory_space<vmem>>, vector<4x1024xf32>
    %c80_329 = arith.constant 80 : index
    %c0_330 = arith.constant 0 : index
    %246 = vector.load %arg13[%c80_329, %c0_330] : memref<128x1024xf32, #tpu.memory_space<vmem>>, vector<4x1024xf32>
    tpu.vector_store %arg13[%c80_329, %c0_330], %245 {strides = array<i32>} : memref<128x1024xf32, #tpu.memory_space<vmem>>, vector<4x1024xf32>,
    %c0_331 = arith.constant 0 : index
    %c227_332 = arith.constant 227 : index
    %247 = vector.load %arg16[%c0_331, %c227_332] : memref<4x1280xf32, #tpu.memory_space<vmem>>, vector<4x1024xf32>
    %c84_333 = arith.constant 84 : index
    %c0_334 = arith.constant 0 : index
    %248 = vector.load %arg13[%c84_333, %c0_334] : memref<128x1024xf32, #tpu.memory_space<vmem>>, vector<4x1024xf32>
    tpu.vector_store %arg13[%c84_333, %c0_334], %247 {strides = array<i32>} : memref<128x1024xf32, #tpu.memory_space<vmem>>, vector<4x1024xf32>,
    %c0_335 = arith.constant 0 : index
    %c228_336 = arith.constant 228 : index
    %249 = vector.load %arg16[%c0_335, %c228_336] : memref<4x1280xf32, #tpu.memory_space<vmem>>, vector<4x1024xf32>
    %c88_337 = arith.constant 88 : index
    %c0_338 = arith.constant 0 : index
    %250 = vector.load %arg13[%c88_337, %c0_338] : memref<128x1024xf32, #tpu.memory_space<vmem>>, vector<4x1024xf32>
    tpu.vector_store %arg13[%c88_337, %c0_338], %249 {strides = array<i32>} : memref<128x1024xf32, #tpu.memory_space<vmem>>, vector<4x1024xf32>,
    %c0_339 = arith.constant 0 : index
    %c229_340 = arith.constant 229 : index
    %251 = vector.load %arg16[%c0_339, %c229_340] : memref<4x1280xf32, #tpu.memory_space<vmem>>, vector<4x1024xf32>
    %c92_341 = arith.constant 92 : index
    %c0_342 = arith.constant 0 : index
    %252 = vector.load %arg13[%c92_341, %c0_342] : memref<128x1024xf32, #tpu.memory_space<vmem>>, vector<4x1024xf32>
    tpu.vector_store %arg13[%c92_341, %c0_342], %251 {strides = array<i32>} : memref<128x1024xf32, #tpu.memory_space<vmem>>, vector<4x1024xf32>,
    %c0_343 = arith.constant 0 : index
    %c237_344 = arith.constant 237 : index
    %253 = vector.load %arg16[%c0_343, %c237_344] : memref<4x1280xf32, #tpu.memory_space<vmem>>, vector<4x1024xf32>
    %c96_345 = arith.constant 96 : index
    %c0_346 = arith.constant 0 : index
    %254 = vector.load %arg13[%c96_345, %c0_346] : memref<128x1024xf32, #tpu.memory_space<vmem>>, vector<4x1024xf32>
    tpu.vector_store %arg13[%c96_345, %c0_346], %253 {strides = array<i32>} : memref<128x1024xf32, #tpu.memory_space<vmem>>, vector<4x1024xf32>,
    %c0_347 = arith.constant 0 : index
    %c238_348 = arith.constant 238 : index
    %255 = vector.load %arg16[%c0_347, %c238_348] : memref<4x1280xf32, #tpu.memory_space<vmem>>, vector<4x1024xf32>
    %c100_349 = arith.constant 100 : index
    %c0_350 = arith.constant 0 : index
    %256 = vector.load %arg13[%c100_349, %c0_350] : memref<128x1024xf32, #tpu.memory_space<vmem>>, vector<4x1024xf32>
    tpu.vector_store %arg13[%c100_349, %c0_350], %255 {strides = array<i32>} : memref<128x1024xf32, #tpu.memory_space<vmem>>, vector<4x1024xf32>,
    %c0_351 = arith.constant 0 : index
    %c239_352 = arith.constant 239 : index
    %257 = vector.load %arg16[%c0_351, %c239_352] : memref<4x1280xf32, #tpu.memory_space<vmem>>, vector<4x1024xf32>
    %c104_353 = arith.constant 104 : index
    %c0_354 = arith.constant 0 : index
    %258 = vector.load %arg13[%c104_353, %c0_354] : memref<128x1024xf32, #tpu.memory_space<vmem>>, vector<4x1024xf32>
    tpu.vector_store %arg13[%c104_353, %c0_354], %257 {strides = array<i32>} : memref<128x1024xf32, #tpu.memory_space<vmem>>, vector<4x1024xf32>,
    %c0_355 = arith.constant 0 : index
    %c0_356 = arith.constant 0 : index
    %259 = vector.load %arg10[%c0_355, %c0_356] : memref<8x128xf32, #tpu.memory_space<vmem>>, vector<8x128xf32>
    %c0_357 = arith.constant 0 : index
    %c0_358 = arith.constant 0 : index
    %260 = vector.load %arg13[%c0_357, %c0_358] : memref<128x1024xf32, #tpu.memory_space<vmem>>, vector<128x1024xf32>
    %cst_359 = arith.constant dense<0.000000e+00> : vector<8x1024xf32>
    %261 = tpu.matmul %259, %260, %cst_359 {dimension_numbers = #tpu.dot_dimension_numbers<[1], [0], [0], [1], [0, 0, 1, 1], [], []>} : vector<8x128xf32>, vector<128x1024xf32>, vector<8x1024xf32> -> vector<8x1024xf32>
    %c0_360 = arith.constant 0 : index
    %c0_361 = arith.constant 0 : index
    %262 = vector.load %arg11[%c0_360, %c0_361] : memref<8x1xf32, #tpu.memory_space<vmem>>, vector<8x1xf32>
    %263 = vector.broadcast %262 : vector<8x1xf32> to vector<8x1024xf32>
    %264 = arith.addf %261, %263 : vector<8x1024xf32>
    %cst_362 = arith.constant 0.000000e+00 : f32
    %265 = vector.broadcast %cst_362 : f32 to vector<8x1024xf32>
    %266 = arith.maximumf %264, %265 : vector<8x1024xf32>
    %267 = vector.broadcast %2 : vector<1x1024xf32> to vector<8x1024xf32>
    %268 = arith.mulf %266, %267 : vector<8x1024xf32>
    %c0_363 = arith.constant 0 : index
    %c0_364 = arith.constant 0 : index
    %c0_365 = arith.constant 0 : index
    %269 = vector.load %arg12[%c0_363, %c0_364, %c0_365] : memref<1x8x1024xf32, #tpu.memory_space<vmem>>, vector<1x8x1024xf32>
    %270 = vector.shape_cast %269 : vector<1x8x1024xf32> to vector<8x1024xf32>
    %271 = vector.shape_cast %268 : vector<8x1024xf32> to vector<1x8x1024xf32>
    tpu.vector_store %arg12[%c0_363, %c0_364, %c0_365], %271 {strides = array<i32>} : memref<1x8x1024xf32, #tpu.memory_space<vmem>>, vector<1x8x1024xf32>,
    return
  }
  func.func @transform_0(%arg0: i32) -> (i32, i32, i32) {
    %c0_i32 = arith.constant 0 : i32
    %c0_i32_0 = arith.constant 0 : i32
    %c0_i32_1 = arith.constant 0 : i32
    return %arg0, %c0_i32, %c0_i32_0 : i32, i32, i32
  }
  func.func @transform_1(%arg0: i32) -> (i32, i32, i32) {
    %c0_i32 = arith.constant 0 : i32
    %c0_i32_0 = arith.constant 0 : i32
    %c0_i32_1 = arith.constant 0 : i32
    return %arg0, %c0_i32, %c0_i32_0 : i32, i32, i32
  }
  func.func @transform_2(%arg0: i32) -> (i32, i32) {
    %c0_i32 = arith.constant 0 : i32
    %c0_i32_0 = arith.constant 0 : i32
    %c0_i32_1 = arith.constant 0 : i32
    return %c0_i32, %c0_i32_0 : i32, i32
  }
  func.func @transform_3(%arg0: i32) -> (i32, i32) {
    %c0_i32 = arith.constant 0 : i32
    %c0_i32_0 = arith.constant 0 : i32
    %c0_i32_1 = arith.constant 0 : i32
    return %c0_i32, %c0_i32_0 : i32, i32
  }
  func.func @transform_4(%arg0: i32) -> (i32, i32) {
    %c0_i32 = arith.constant 0 : i32
    %c0_i32_0 = arith.constant 0 : i32
    %c0_i32_1 = arith.constant 0 : i32
    return %c0_i32, %c0_i32_0 : i32, i32
  }
  func.func @transform_5(%arg0: i32) -> (i32, i32) {
    %c0_i32 = arith.constant 0 : i32
    %c0_i32_0 = arith.constant 0 : i32
    %c0_i32_1 = arith.constant 0 : i32
    return %c0_i32, %c0_i32_0 : i32, i32
  }
  func.func @transform_6(%arg0: i32) -> (i32, i32) {
    %c0_i32 = arith.constant 0 : i32
    %c0_i32_0 = arith.constant 0 : i32
    %c0_i32_1 = arith.constant 0 : i32
    return %c0_i32, %c0_i32_0 : i32, i32
  }
  func.func @transform_7(%arg0: i32) -> (i32, i32) {
    %c0_i32 = arith.constant 0 : i32
    %c0_i32_0 = arith.constant 0 : i32
    %c0_i32_1 = arith.constant 0 : i32
    return %c0_i32, %c0_i32_0 : i32, i32
  }
  func.func @transform_8(%arg0: i32) -> (i32, i32) {
    %c0_i32 = arith.constant 0 : i32
    %c0_i32_0 = arith.constant 0 : i32
    %c0_i32_1 = arith.constant 0 : i32
    return %c0_i32, %c0_i32_0 : i32, i32
  }
  func.func @transform_9(%arg0: i32) -> (i32, i32) {
    %c0_i32 = arith.constant 0 : i32
    %c0_i32_0 = arith.constant 0 : i32
    %c0_i32_1 = arith.constant 0 : i32
    return %c0_i32, %c0_i32_0 : i32, i32
  }
  func.func @transform_10(%arg0: i32) -> (i32, i32) {
    %c0_i32 = arith.constant 0 : i32
    %c0_i32_0 = arith.constant 0 : i32
    %c0_i32_1 = arith.constant 0 : i32
    return %c0_i32, %c0_i32_0 : i32, i32
  }
  func.func @transform_11(%arg0: i32) -> (i32, i32, i32) {
    %c0_i32 = arith.constant 0 : i32
    %c0_i32_0 = arith.constant 0 : i32
    %c0_i32_1 = arith.constant 0 : i32
    return %arg0, %c0_i32, %c0_i32_0 : i32, i32, i32
  }
}

</mosaic_0001>

<bundles_post_ra>
// kernel: conv_down_forward.1
= control target key start
LH: loop header
LB: loop body
LE: loop exit
PB: predicated region body
PF: predicated region fallthrough
CT: control target
= control target key end

     0   :  { %s6840_s17 = smov 0   ;;  %s9304_s0 = inlined_call_operand.vmem [shape: f32[2,32,1280], index: 0, kind: input, shape index: {}]   ;;  %s9305_s1 = inlined_call_operand.vmem [shape: f32[2,1,1280], index: 1, kind: input, shape index: {}]   ;;  %s9306_s2 = inlined_call_operand.vmem [shape: f32[1,1024], index: 2, kind: input, shape index: {}]   ;;  %s9307_s3 = inlined_call_operand.vmem [shape: f32[8,128], index: 3, kind: input, shape index: {}]   ;;  %s9308_s4 = inlined_call_operand.vmem [shape: f32[4,1], index: 4, kind: input, shape index: {}]   ;;  %s9309_s5 = inlined_call_operand.vmem [shape: f32[8,128], index: 5, kind: input, shape index: {}]   ;;  %s9310_s6 = inlined_call_operand.vmem [shape: f32[4,1], index: 6, kind: input, shape index: {}]   ;;  %s9311_s7 = inlined_call_operand.vmem [shape: f32[8,128], index: 7, kind: input, shape index: {}]   ;;  %s9312_s8 = inlined_call_operand.vmem [shape: f32[4,1], index: 8, kind: input, shape index: {}]   ;;  %s9313_s9 = inlined_call_operand.vmem [shape: f32[8,128], index: 9, kind: input, shape index: {}]   ;;  %s9314_s10 = inlined_call_operand.vmem [shape: f32[8,1], index: 10, kind: input, shape index: {}]   ;;  %s9315_s11 = inlined_call_operand.vmem [shape: f32[2,8,1024], index: 11, kind: output, shape index: {}]  }
   0x1 LB: > { %s6129_s18 = sadd.s32 4294967295, %s6750_s17   ;;  %p6133_p0 = scmp.ge.s32.totalorder %s6750_s17, 1  ;;  %s6750_s17 = sphi %s6840_s17, %s21_s17  }
   0x2   : > { %p346_p1 = scmp.lt.s32.totalorder %s6750_s17, 3 }
   0x4   : > { %p347_p2 = pnand %p6133_p0, %p346_p1 }
   0x5   : > { %p6850_p3 = scmp.lt.s32.totalorder (!%p347_p2), %s6129_s18, 1  ;;  %v6752_v0 = vmov (!%p347_p2), 0.0   ;;  %s6753_s24 = smov (!%p347_p2), 110   ;;  %vm543_vm0 = vcmask (!%p347_p2), 1046528   ;;  %vm561_vm1 = vcmask (!%p347_p2), 900096   ;;  %vm545_vm2 = vcmask (!%p347_p2), 908288  }
   0x6   : > { %350 = sbr.rel (%p347_p2) target bundleno = 1929 (0x789), region = 64  ;;  %404 = vst [vmem:[#allocation2] sm:$0xff] (!%p347_p2), %v6752_v0  ;;  %405 = vst [vmem:[#allocation2 + $0x8] sm:$0xff] (!%p347_p2), %v6752_v0  ;;  %1172 = vmatprep.mubr.f32.mxu0 (!%p347_p2), %v6752_v0  ;;  %1243 = vmatprep.mubr.f32.mxu1 (!%p347_p2), %v6752_v0  ;;  %s6754_s25 = smov (!%p347_p2), 111   ;;  %vm578_vm3 = vcmask (!%p347_p2), 891904   ;;  %vm595_vm4 = vcmask (!%p347_p2), 826368  }
   0x7   : > { %406 = vst [vmem:[#allocation2 + $0x10] sm:$0xff] (!%p347_p2), %v6752_v0  ;;  %407 = vst [vmem:[#allocation2 + $0x18] sm:$0xff] (!%p347_p2), %v6752_v0  ;;  %s6755_s26 = smov (!%p347_p2), 109   ;;  %s6756_s27 = smov (!%p347_p2), 101   ;;  %vm612_vm5 = vcmask (!%p347_p2), 818176   ;;  %vm629_vm6 = vcmask (!%p347_p2), 809984  }
   0x8   : > { %408 = vst [vmem:[#allocation2 + $0x20] sm:$0xff] (!%p347_p2), %v6752_v0  ;;  %409 = vst [vmem:[#allocation2 + $0x28] sm:$0xff] (!%p347_p2), %v6752_v0  ;;  %s6757_s28 = smov (!%p347_p2), 100   ;;  %s9338_s29 = smov (!%p347_p2), 99   ;;  %vm646_vm7 = vcmask (!%p347_p2), 744448   ;;  %vm663_vm8 = vcmask (!%p347_p2), 736256  }
   0x9   : > { %410 = vst [vmem:[#allocation2 + $0x30] sm:$0xff] (!%p347_p2), %v6752_v0  ;;  %411 = vst [vmem:[#allocation2 + $0x38] sm:$0xff] (!%p347_p2), %v6752_v0  ;;  %s9334_s30 = smov (!%p347_p2), 91   ;;  %s9316_s12 = smov (!%p347_p2), 90   ;;  %vm680_vm9 = vcmask (!%p347_p2), 728064   ;;  %vm697_vm10 = vcmask (!%p347_p2), 89088  }
   0xa   : > { %412 = vst [vmem:[#allocation2 + $0x40] sm:$0xff] (!%p347_p2), %v6752_v0  ;;  %413 = vst [vmem:[#allocation2 + $0x48] sm:$0xff] (!%p347_p2), %v6752_v0  ;;  %s6761_s13 = smov (!%p347_p2), 89   ;;  %s6762_s14 = smov (!%p347_p2), 11   ;;  %vm714_vm11 = vcmask (!%p347_p2), 80896   ;;  %vm731_vm12 = vcmask (!%p347_p2), 72704  }
   0xb   : > { %414 = vst [vmem:[#allocation2 + $0x50] sm:$0xff] (!%p347_p2), %v6752_v0  ;;  %415 = vst [vmem:[#allocation2 + $0x58] sm:$0xff] (!%p347_p2), %v6752_v0  ;;  %s9359_s15 = smov (!%p347_p2), 10   ;;  %s9357_s16 = smov (!%p347_p2), 9   ;;  %vm748_vm13 = vcmask (!%p347_p2), 7168   ;;  %vm9344_vm14 = vcmask (!%p347_p2), 1039360  }
   0xc   : > { %416 = vst [vmem:[#allocation2 + $0x60] sm:$0xff] (!%p347_p2), %v6752_v0  ;;  %417 = vst [vmem:[#allocation2 + $0x68] sm:$0xff] (!%p347_p2), %v6752_v0  ;;  %s9355_s19 = smov (!%p347_p2), 1   ;;  %s9320_s21 = smov (!%p347_p2), 119   ;;  %vm9345_vm15 = vcmask (!%p347_p2), 973824  }
   0xd   : > { %418 = vst [vmem:[#allocation2 + $0x70] sm:$0xff] %v6752_v0  ;;  %419 = vst [vmem:[#allocation2 + $0x78] sm:$0xff] %v6752_v0  ;;  %s9465_s18 = smov (!%p6850_p3, %s6129_s18), 1  ;;  %s9322_s22 = smov 118  }
   0xe   : > { %420 = vst [vmem:[#allocation2 + $0x80] sm:$0xff] %v6752_v0  ;;  %421 = vst [vmem:[#allocation2 + $0x88] sm:$0xff] %v6752_v0  ;;  %s6661_s20 = smul.u32 10, %s9465_s18 }
   0xf   : > { %422 = vst [vmem:[#allocation2 + $0x90] sm:$0xff] %v6752_v0  ;;  %423 = vst [vmem:[#allocation2 + $0x98] sm:$0xff] %v6752_v0 }
  0x10   : > { %424 = vst [vmem:[#allocation2 + $0xa0] sm:$0xff] %v6752_v0  ;;  %425 = vst [vmem:[#allocation2 + $0xa8] sm:$0xff] %v6752_v0  ;;  %s6981_s23 = scalar_lea.vmem %s9305_s1, %s6661_s20  ;;  %s9318_s20 = smov 127  }
  0x11   : > { %426 = vst [vmem:[#allocation2 + $0xb0] sm:$0xff] %v6752_v0  ;;  %427 = vst [vmem:[#allocation2 + $0xb8] sm:$0xff] %v6752_v0  ;;  %v550_v1 = vld [vmem:[%s6981_s23] sm:$0xff]  ;;  %v551_v2 = vld [vmem:[%s6981_s23 + $0x8] sm:$0x1] }
  0x12   : > { %428 = vst [vmem:[#allocation2 + $0xc0] sm:$0xff] %v6752_v0  ;;  %429 = vst [vmem:[#allocation2 + $0xc8] sm:$0xff] %v6752_v0  ;;  %554 = vrot.lane.b32.xlu1 %v550_v1, %s6753_s24  ;;  %537 = vrot.lane.b32.xlu0 %v550_v1, %s6754_s25  ;;  %v534_v3 = vld [vmem:[%s6981_s23 + $0x8] sm:$0x1]  ;;  %v759_v16 = vld [vmem:[%s6981_s23 + $0x9] sm:$0x1] }
  0x13   : > { %430 = vst [vmem:[#allocation2 + $0xd0] sm:$0xff] %v6752_v0  ;;  %431 = vst [vmem:[#allocation2 + $0xd8] sm:$0xff] %v6752_v0  ;;  %v568_v4 = vld [vmem:[%s6981_s23 + $0x8] sm:$0x1]  ;;  %v776_v17 = vld [vmem:[%s6981_s23 + $0x9] sm:$0x1] }
  0x14   : > { %432 = vst [vmem:[#allocation2 + $0xe0] sm:$0xff] %v6752_v0  ;;  %433 = vst [vmem:[#allocation2 + $0xe8] sm:$0xff] %v6752_v0  ;;  %v6992_v5 = vld [vmem:[%s6981_s23 + $0x1] sm:$0xff]  ;;  %v793_v18 = vld [vmem:[%s6981_s23 + $0x9] sm:$0x1] }
  0x15   : > { %434 = vst [vmem:[#allocation2 + $0xf0] sm:$0xff] %v6752_v0  ;;  %435 = vst [vmem:[#allocation2 + $0xf8] sm:$0xff] %v6752_v0  ;;  %v585_v6 = vld [vmem:[%s6981_s23 + $0x8] sm:$0x1]  ;;  %v810_v19 = vld [vmem:[%s6981_s23 + $0x9] sm:$0x1] }
  0x16   : > { %436 = vst [vmem:[#allocation2 + $0x100] sm:$0xff] %v6752_v0  ;;  %437 = vst [vmem:[#allocation2 + $0x108] sm:$0xff] %v6752_v0  ;;  %556 = vrot.lane.b32.xlu1 %v551_v2, %s6753_s24  ;;  %539 = vrot.lane.b32.xlu0 %v534_v3, %s6754_s25  ;;  %v602_v7 = vld [vmem:[%s6981_s23 + $0x8] sm:$0x1]  ;;  %v827_v20 = vld [vmem:[%s6981_s23 + $0x9] sm:$0x1] }
  0x17   : > { %438 = vst [vmem:[#allocation2 + $0x110] sm:$0xff] %v6752_v0  ;;  %439 = vst [vmem:[#allocation2 + $0x118] sm:$0xff] %v6752_v0  ;;  %v619_v8 = vld [vmem:[%s6981_s23 + $0x8] sm:$0x1]  ;;  %v844_v21 = vld [vmem:[%s6981_s23 + $0x9] sm:$0x1] }
  0x18   : > { %440 = vst [vmem:[#allocation2 + $0x120] sm:$0xff] %v6752_v0  ;;  %441 = vst [vmem:[#allocation2 + $0x128] sm:$0xff] %v6752_v0  ;;  %v636_v9 = vld [vmem:[%s6981_s23 + $0x8] sm:$0x1]  ;;  %v861_v22 = vld [vmem:[%s6981_s23 + $0x9] sm:$0x1] }
  0x19   : > { %442 = vst [vmem:[#allocation2 + $0x130] sm:$0xff] %v6752_v0  ;;  %443 = vst [vmem:[#allocation2 + $0x138] sm:$0xff] %v6752_v0  ;;  %v653_v10 = vld [vmem:[%s6981_s23 + $0x8] sm:$0x1]  ;;  %v878_v23 = vld [vmem:[%s6981_s23 + $0x9] sm:$0x1] }
  0x1a   : > { %444 = vst [vmem:[#allocation2 + $0x140] sm:$0xff] %v6752_v0  ;;  %445 = vst [vmem:[#allocation2 + $0x148] sm:$0xff] %v6752_v0  ;;  %573 = vrot.lane.b32.xlu1 %v568_v4, %s6755_s26  ;;  %571 = vrot.lane.b32.xlu0 %v550_v1, %s6755_s26  ;;  %v670_v11 = vld [vmem:[%s6981_s23 + $0x8] sm:$0x1]  ;;  %v895_v24 = vld [vmem:[%s6981_s23 + $0x9] sm:$0x1] }
  0x1b   : > { %446 = vst [vmem:[#allocation2 + $0x150] sm:$0xff] %v6752_v0  ;;  %447 = vst [vmem:[#allocation2 + $0x158] sm:$0xff] %v6752_v0  ;;  %v687_v12 = vld [vmem:[%s6981_s23 + $0x8] sm:$0x1]  ;;  %v912_v25 = vld [vmem:[%s6981_s23 + $0x9] sm:$0x1] }
  0x1c   : > { %448 = vst [vmem:[#allocation2 + $0x160] sm:$0xff] %v6752_v0  ;;  %449 = vst [vmem:[#allocation2 + $0x168] sm:$0xff] %v6752_v0  ;;  %v704_v13 = vld [vmem:[%s6981_s23 + $0x8] sm:$0x1]  ;;  %v929_v26 = vld [vmem:[%s6981_s23 + $0x9] sm:$0x1] }
  0x1d   : > { %450 = vst [vmem:[#allocation2 + $0x170] sm:$0xff] %v6752_v0  ;;  %451 = vst [vmem:[#allocation2 + $0x178] sm:$0xff] %v6752_v0  ;;  %v721_v14 = vld [vmem:[%s6981_s23 + $0x8] sm:$0x1]  ;;  %v946_v27 = vld [vmem:[%s6981_s23 + $0x9] sm:$0x1] }
  0x1e   : > { %452 = vst [vmem:[#allocation2 + $0x180] sm:$0xff] %v6752_v0  ;;  %453 = vst [vmem:[#allocation2 + $0x188] sm:$0xff] %v6752_v0  ;;  %590 = vrot.lane.b32.xlu1 %v585_v6, %s6756_s27  ;;  %588 = vrot.lane.b32.xlu0 %v550_v1, %s6756_s27  ;;  %v738_v15 = vld [vmem:[%s6981_s23 + $0x8] sm:$0x1]  ;;  %v963_v28 = vld [vmem:[%s6981_s23 + $0x9] sm:$0x1] }
  0x1f   : > { %454 = vst [vmem:[#allocation2 + $0x190] sm:$0xff] %v6752_v0  ;;  %455 = vst [vmem:[#allocation2 + $0x198] sm:$0xff] %v6752_v0  ;;  %s9371_s23 = smov 37  }
  0x20   : > { %456 = vst [vmem:[#allocation2 + $0x1a0] sm:$0xff] %v6752_v0  ;;  %457 = vst [vmem:[#allocation2 + $0x1a8] sm:$0xff] %v6752_v0 }
  0x21   : > { %458 = vst [vmem:[#allocation2 + $0x1b0] sm:$0xff] %v6752_v0  ;;  %459 = vst [vmem:[#allocation2 + $0x1b8] sm:$0xff] %v6752_v0 }
  0x22   : > { %460 = vst [vmem:[#allocation2 + $0x1c0] sm:$0xff] %v6752_v0  ;;  %461 = vst [vmem:[#allocation2 + $0x1c8] sm:$0xff] %v6752_v0  ;;  %607 = vrot.lane.b32.xlu1 %v602_v7, %s6757_s28  ;;  %605 = vrot.lane.b32.xlu0 %v550_v1, %s6757_s28 }
  0x23   : > { %462 = vst [vmem:[#allocation2 + $0x1d0] sm:$0xff] %v6752_v0  ;;  %463 = vst [vmem:[#allocation2 + $0x1d8] sm:$0xff] %v6752_v0 }
  0x24   : > { %464 = vst [vmem:[#allocation2 + $0x1e0] sm:$0xff] %v6752_v0  ;;  %465 = vst [vmem:[#allocation2 + $0x1e8] sm:$0xff] %v6752_v0 }
  0x25   : > { %466 = vst [vmem:[#allocation2 + $0x1f0] sm:$0xff] %v6752_v0  ;;  %467 = vst [vmem:[#allocation2 + $0x1f8] sm:$0xff] %v6752_v0 }
  0x26   : > { %468 = vst [vmem:[#allocation2 + $0x200] sm:$0xff] %v6752_v0  ;;  %469 = vst [vmem:[#allocation2 + $0x208] sm:$0xff] %v6752_v0  ;;  %624 = vrot.lane.b32.xlu1 %v619_v8, %s9338_s29  ;;  %622 = vrot.lane.b32.xlu0 %v550_v1, %s9338_s29  ;;  %s9362_s29 = smov 99  }
  0x27   : > { %470 = vst [vmem:[#allocation2 + $0x210] sm:$0xff] %v6752_v0  ;;  %471 = vst [vmem:[#allocation2 + $0x218] sm:$0xff] %v6752_v0 }
  0x28   : > { %472 = vst [vmem:[#allocation2 + $0x220] sm:$0xff] %v6752_v0  ;;  %473 = vst [vmem:[#allocation2 + $0x228] sm:$0xff] %v6752_v0 }
  0x29   : > { %474 = vst [vmem:[#allocation2 + $0x230] sm:$0xff] %v6752_v0  ;;  %475 = vst [vmem:[#allocation2 + $0x238] sm:$0xff] %v6752_v0 }
  0x2a   : > { %476 = vst [vmem:[#allocation2 + $0x240] sm:$0xff] %v6752_v0  ;;  %477 = vst [vmem:[#allocation2 + $0x248] sm:$0xff] %v6752_v0  ;;  %641 = vrot.lane.b32.xlu1 %v636_v9, %s9334_s30  ;;  %639 = vrot.lane.b32.xlu0 %v550_v1, %s9334_s30  ;;  %s6777_s30 = smov 18  }
  0x2b   : > { %478 = vst [vmem:[#allocation2 + $0x250] sm:$0xff] %v6752_v0  ;;  %479 = vst [vmem:[#allocation2 + $0x258] sm:$0xff] %v6752_v0 }
  0x2c   : > { %480 = vst [vmem:[#allocation2 + $0x260] sm:$0xff] %v6752_v0  ;;  %481 = vst [vmem:[#allocation2 + $0x268] sm:$0xff] %v6752_v0 }
  0x2d   : > { %482 = vst [vmem:[#allocation2 + $0x270] sm:$0xff] %v6752_v0  ;;  %483 = vst [vmem:[#allocation2 + $0x278] sm:$0xff] %v6752_v0 }
  0x2e   : > { %484 = vst [vmem:[#allocation2 + $0x280] sm:$0xff] %v6752_v0  ;;  %485 = vst [vmem:[#allocation2 + $0x288] sm:$0xff] %v6752_v0  ;;  %658 = vrot.lane.b32.xlu1 %v653_v10, %s9316_s12  ;;  %656 = vrot.lane.b32.xlu0 %v550_v1, %s9316_s12  ;;  %s9324_s12 = smov 117  }
  0x2f   : > { %486 = vst [vmem:[#allocation2 + $0x290] sm:$0xff] %v6752_v0  ;;  %487 = vst [vmem:[#allocation2 + $0x298] sm:$0xff] %v6752_v0 }
  0x30   : > { %488 = vst [vmem:[#allocation2 + $0x2a0] sm:$0xff] %v6752_v0  ;;  %489 = vst [vmem:[#allocation2 + $0x2a8] sm:$0xff] %v6752_v0 }
  0x31   : > { %490 = vst [vmem:[#allocation2 + $0x2b0] sm:$0xff] %v6752_v0  ;;  %491 = vst [vmem:[#allocation2 + $0x2b8] sm:$0xff] %v6752_v0 }
  0x32   : > { %492 = vst [vmem:[#allocation2 + $0x2c0] sm:$0xff] %v6752_v0  ;;  %493 = vst [vmem:[#allocation2 + $0x2c8] sm:$0xff] %v6752_v0  ;;  %675 = vrot.lane.b32.xlu1 %v670_v11, %s6761_s13  ;;  %673 = vrot.lane.b32.xlu0 %v550_v1, %s6761_s13 }
  0x33   : > { %494 = vst [vmem:[#allocation2 + $0x2d0] sm:$0xff] %v6752_v0  ;;  %495 = vst [vmem:[#allocation2 + $0x2d8] sm:$0xff] %v6752_v0 }
  0x34   : > { %496 = vst [vmem:[#allocation2 + $0x2e0] sm:$0xff] %v6752_v0  ;;  %497 = vst [vmem:[#allocation2 + $0x2e8] sm:$0xff] %v6752_v0 }
  0x35   : > { %498 = vst [vmem:[#allocation2 + $0x2f0] sm:$0xff] %v6752_v0  ;;  %499 = vst [vmem:[#allocation2 + $0x2f8] sm:$0xff] %v6752_v0 }
  0x36   : > { %500 = vst [vmem:[#allocation2 + $0x300] sm:$0xff] %v6752_v0  ;;  %501 = vst [vmem:[#allocation2 + $0x308] sm:$0xff] %v6752_v0  ;;  %692 = vrot.lane.b32.xlu1 %v687_v12, %s6762_s14  ;;  %690 = vrot.lane.b32.xlu0 %v550_v1, %s6762_s14 }
  0x37   : > { %502 = vst [vmem:[#allocation2 + $0x310] sm:$0xff] %v6752_v0  ;;  %503 = vst [vmem:[#allocation2 + $0x318] sm:$0xff] %v6752_v0 }
  0x38   : > { %504 = vst [vmem:[#allocation2 + $0x320] sm:$0xff] %v6752_v0  ;;  %505 = vst [vmem:[#allocation2 + $0x328] sm:$0xff] %v6752_v0 }
  0x39   : > { %506 = vst [vmem:[#allocation2 + $0x330] sm:$0xff] %v6752_v0  ;;  %507 = vst [vmem:[#allocation2 + $0x338] sm:$0xff] %v6752_v0 }
  0x3a   : > { %508 = vst [vmem:[#allocation2 + $0x340] sm:$0xff] %v6752_v0  ;;  %509 = vst [vmem:[#allocation2 + $0x348] sm:$0xff] %v6752_v0  ;;  %709 = vrot.lane.b32.xlu1 %v704_v13, %s9359_s15  ;;  %707 = vrot.lane.b32.xlu0 %v550_v1, %s9359_s15 }
  0x3b   : > { %510 = vst [vmem:[#allocation2 + $0x350] sm:$0xff] %v6752_v0  ;;  %511 = vst [vmem:[#allocation2 + $0x358] sm:$0xff] %v6752_v0 }
  0x3c   : > { %512 = vst [vmem:[#allocation2 + $0x360] sm:$0xff] %v6752_v0  ;;  %513 = vst [vmem:[#allocation2 + $0x368] sm:$0xff] %v6752_v0 }
  0x3d   : > { %514 = vst [vmem:[#allocation2 + $0x370] sm:$0xff] %v6752_v0  ;;  %515 = vst [vmem:[#allocation2 + $0x378] sm:$0xff] %v6752_v0 }
  0x3e   : > { %516 = vst [vmem:[#allocation2 + $0x380] sm:$0xff] %v6752_v0  ;;  %4105 = vst [vmem:[#allocation5] sm:$0xf] %v6752_v0  ;;  %726 = vrot.lane.b32.xlu1 %v721_v14, %s9357_s16  ;;  %724 = vrot.lane.b32.xlu0 %v550_v1, %s9357_s16 }
  0x3f   : > { %4126 = vst [vmem:[#allocation5 + $0x24] sm:$0xf] %v6752_v0  ;;  %757 = vst [vmem:[#allocation2 + $0x45] ss:$8 sm:$0xf0] %v6992_v5 }
  0x40   : > { %756 = vst [vmem:[#allocation2 + $0x45] ss:$8 sm:$0xf] %v6992_v5 }
  0x42   : > { %743 = vrot.lane.b32.xlu1 %v738_v15, %s9355_s19  ;;  %741 = vrot.lane.b32.xlu0 %v550_v1, %s9355_s19 }
  0x46   : > { %764 = vrot.lane.b32.xlu1 %v759_v16, %s9318_s20  ;;  %762 = vrot.lane.b32.xlu0 %v6992_v5, %s9318_s20  ;;  %s9326_s20 = smov 39  }
  0x4a   : > { %781 = vrot.lane.b32.xlu1 %v776_v17, %s9320_s21  ;;  %779 = vrot.lane.b32.xlu0 %v6992_v5, %s9320_s21  ;;  %s9328_s21 = smov 38  }
  0x4e   : > { %798 = vrot.lane.b32.xlu1 %v793_v18, %s9322_s22  ;;  %796 = vrot.lane.b32.xlu0 %v6992_v5, %s9322_s22  ;;  %s9330_s22 = smov 37  }
  0x52   : > { %815 = vrot.lane.b32.xlu1 %v810_v19, %s9324_s12  ;;  %813 = vrot.lane.b32.xlu0 %v6992_v5, %s9324_s12  ;;  %s9332_s12 = smov 29  }
  0x56   : > { %832 = vrot.lane.b32.xlu1 %v827_v20, %s9326_s20  ;;  %830 = vrot.lane.b32.xlu0 %v6992_v5, %s9326_s20  ;;  %s9336_s20 = smov 28  }
  0x5a   : > { %849 = vrot.lane.b32.xlu1 %v844_v21, %s9328_s21  ;;  %847 = vrot.lane.b32.xlu0 %v6992_v5, %s9328_s21  ;;  %s9340_s21 = smov 27  }
  0x5e   : > { %866 = vrot.lane.b32.xlu1 %v861_v22, %s9330_s22  ;;  %864 = vrot.lane.b32.xlu0 %v6992_v5, %s9330_s22  ;;  %s9342_s22 = smov 19  }
  0x62   : > { %883 = vrot.lane.b32.xlu1 %v878_v23, %s9332_s12  ;;  %881 = vrot.lane.b32.xlu0 %v6992_v5, %s9332_s12  ;;  %s6660_s12 = smul.u32 320, %s9465_s18 }
  0x66   : > { %900 = vrot.lane.b32.xlu1 %v895_v24, %s9336_s20  ;;  %898 = vrot.lane.b32.xlu0 %v6992_v5, %s9336_s20  ;;  %s9364_s20 = smov 90  }
  0x6a   : > { %917 = vrot.lane.b32.xlu1 %v912_v25, %s9340_s21  ;;  %915 = vrot.lane.b32.xlu0 %v6992_v5, %s9340_s21  ;;  %s7081_s21 = scalar_lea.vmem %s9304_s0, %s6660_s12  ;;  %s9363_s12 = smov 91  }
  0x6b   : > { %v1436_v29 = vld [vmem:[%s7081_s21 + $0x10] sm:$0xf]  ;;  %v1435_v30 = vld [vmem:[%s7081_s21 + $0x8] sm:$0xf]  ;;  %v1496_v31 = vld [vmem:[%s7081_s21 + $0x10] sm:$0xf0] }
  0x6c   : > { %v1495_v32 = vld [vmem:[%s7081_s21 + $0x8] sm:$0xf0]  ;;  %v1556_v33 = vld [vmem:[%s7081_s21 + $0x10] sm:$0xf]  ;;  %v1555_v34 = vld [vmem:[%s7081_s21 + $0x8] sm:$0xf] }
  0x6d   : > { %v1616_v35 = vld [vmem:[%s7081_s21 + $0x60] sm:$0xf]  ;;  %v1615_v36 = vld [vmem:[%s7081_s21 + $0x58] sm:$0xf]  ;;  %v1494_v41 = vld [vmem:[%s7081_s21] sm:$0xf0] }
  0x6e   : > { %934 = vrot.lane.b32.xlu1 %v929_v26, %s9342_s22  ;;  %932 = vrot.lane.b32.xlu0 %v6992_v5, %s9342_s22  ;;  %s6778_s22 = smov 17   ;;  %v1634_v37 = vrot.slane %v1616_v35, 4  ;;  %v1633_v38 = vrot.slane %v1615_v36, 4  ;;  %v1434_v42 = vld [vmem:[%s7081_s21] sm:$0xf] }
  0x6f   : > { %v1614_v43 = vld [vmem:[%s7081_s21 + $0x50] sm:$0xf]  ;;  %v1554_v51 = vld [vmem:[%s7081_s21] sm:$0xf]  ;;  %v1685_v52 = vld [vmem:[%s7081_s21 + $0x60] sm:$0xf0] }
  0x70   : > { %v1632_v50 = vrot.slane %v1614_v43, 4  ;;  %v1684_v55 = vld [vmem:[%s7081_s21 + $0x58] sm:$0xf0]  ;;  %v3103_v56 = vld [vmem:[%s7081_s21 + $0x10] sm:$0xf]  ;;  %v1703_v2 = vrot.slane %v1685_v52, 4 }
  0x71   : > { %v3105_v57 = vld [vmem:[%s7081_s21 + $0x20] sm:$0xf]  ;;  %3111 = vst [vmem:[#allocation2 + $0x348] sm:$0xf] %v3103_v56  ;;  %v3102_v62 = vld [vmem:[%s7081_s21 + $0x8] sm:$0xf] }
  0x72   : > { %951 = vrot.lane.b32.xlu1 %v946_v27, %s6777_s30  ;;  %949 = vrot.lane.b32.xlu0 %v6992_v5, %s6777_s30  ;;  %3113 = vst [vmem:[#allocation2 + $0x358] sm:$0xf] %v3105_v57  ;;  %v3104_v63 = vld [vmem:[%s7081_s21 + $0x18] sm:$0xf]  ;;  %3110 = vst [vmem:[#allocation2 + $0x340] sm:$0xf] %v3102_v62 }
  0x73   : > { %3112 = vst [vmem:[#allocation2 + $0x350] sm:$0xf] %v3104_v63  ;;  %v1702_v3 = vrot.slane %v1684_v55, 4  ;;  %v1753_v6 = vld [vmem:[%s7081_s21 + $0x58] sm:$0xf] }
  0x74   : > { %v1771_v13 = vrot.slane %v1753_v6, 4  ;;  %v1823_v21 = vld [vmem:[%s7081_s21 + $0x10] sm:$0xf]  ;;  %v1822_v22 = vld [vmem:[%s7081_s21 + $0x8] sm:$0xf] }
  0x75   : > { %v1942_v56 = vld [vmem:[%s7081_s21 + $0x8] sm:$0xf]  ;;  %v2003_v57 = vld [vmem:[%s7081_s21 + $0xb0] sm:$0xf] }
  0x76   : > { %968 = vrot.lane.b32.xlu1 %v963_v28, %s6778_s22  ;;  %966 = vrot.lane.b32.xlu0 %v6992_v5, %s6778_s22  ;;  %v1754_v5 = vld [vmem:[%s7081_s21 + $0x60] sm:$0xf]  ;;  %v1883_v28 = vld [vmem:[%s7081_s21 + $0x10] sm:$0xf0] }
  0x77   : > { %v1772_v12 = vrot.slane %v1754_v5, 4  ;;  %v3107_v5 = vld [vmem:[%s7081_s21 + $0x30] sm:$0xf] }
  0x78   : > { %3115 = vst [vmem:[#allocation2 + $0x368] sm:$0xf] %v3107_v5 }
  0x7a   : > { %1456 = vrot.lane.b32.xlu1 %v1436_v29, %s6754_s25  ;;  %1454 = vrot.lane.b32.xlu0 %v1435_v30, %s6754_s25  ;;  %v1882_v30 = vld [vmem:[%s7081_s21 + $0x8] sm:$0xf0] }
  0x7e   : > { %1516 = vrot.lane.b32.xlu1 %v1496_v31, %s6754_s25  ;;  %1514 = vrot.lane.b32.xlu0 %v1495_v32, %s6754_s25  ;;  %v1752_v31 = vld [vmem:[%s7081_s21 + $0x50] sm:$0xf]  ;;  %v1683_v32 = vld [vmem:[%s7081_s21 + $0x50] sm:$0xf0] }
  0x82   : > { %1576 = vrot.lane.b32.xlu1 %v1556_v33, %s6753_s24  ;;  %1574 = vrot.lane.b32.xlu0 %v1555_v34, %s6753_s24 }
  0x84   : > { %v555_v39 = vpop.permute.xlu1 %554  ;;  %v538_v40 = vpop.permute.xlu0 %537 }
  0x85   : > { %v558_v46 = vrot.slane %v555_v39, 1  ;;  %v541_v47 = vrot.slane %v538_v40, 1 }
  0x86   : > { %1645 = vrot.lane.b32.xlu1 %v1634_v37, %s6754_s25  ;;  %1643 = vrot.lane.b32.xlu0 %v1633_v38, %s6754_s25  ;;  %v1770_v38 = vrot.slane %v1752_v31, 4 }
  0x88   : > { %v557_v44 = vpop.permute.xlu1 %556  ;;  %v540_v45 = vpop.permute.xlu0 %539 }
  0x89   : > { %v559_v48 = vrot.slane %v557_v44, 1  ;;  %v542_v49 = vrot.slane %v540_v45, 1 }
  0x8a   : > { %1512 = vrot.lane.b32.xlu1 %v1494_v41, %s6754_s25  ;;  %1452 = vrot.lane.b32.xlu0 %v1434_v42, %s6754_s25 }
  0x8b   : > { %v560_v53 = vsel %vm543_vm0, %v558_v46, %v559_v48  ;;  %v544_v54 = vsel %vm543_vm0, %v541_v47, %v542_v49  ;;  %v1881_v47 = vld [vmem:[%s7081_s21] sm:$0xf0]  ;;  %v1821_v48 = vld [vmem:[%s7081_s21] sm:$0xf] }
  0x8c   : > { %v562_v58 = vsel %vm561_vm1, %v555_v39, %v560_v53  ;;  %v546_v59 = vsel %vm545_vm2, %v538_v40, %v544_v54  ;;  %v574_v60 = vpop.permute.xlu1 %573  ;;  %v572_v61 = vpop.permute.xlu0 %571  ;;  %v1701_v39 = vrot.slane %v1683_v32, 4  ;;  %v1943_v54 = vld [vmem:[%s7081_s21 + $0x10] sm:$0xf] }
  0x8d   : > { %565 = vst [vmem:[#allocation2 + $0x1] ss:$8 sm:$0xf] %v562_v58  ;;  %566 = vst [vmem:[#allocation2 + $0x1] ss:$8 sm:$0xf0] %v562_v58 }
  0x8e   : > { %548 = vst [vmem:[#allocation2] ss:$8 sm:$0xf] %v546_v59  ;;  %549 = vst [vmem:[#allocation2] ss:$8 sm:$0xf0] %v546_v59  ;;  %1641 = vrot.lane.b32.xlu1 %v1632_v50, %s6754_s25  ;;  %1572 = vrot.lane.b32.xlu0 %v1554_v51, %s6753_s24 }
  0x8f   : > { %v576_v0 = vrot.slane %v574_v60, 1  ;;  %v575_v1 = vrot.slane %v572_v61, 1  ;;  %v2002_v58 = vld [vmem:[%s7081_s21 + $0xa8] sm:$0xf] }
  0x90   : > { %v591_v8 = vpop.permute.xlu1 %590  ;;  %v589_v9 = vpop.permute.xlu0 %588 }
  0x91   : > { %v577_v4 = vsel %vm543_vm0, %v575_v1, %v576_v0  ;;  %v593_v10 = vrot.slane %v591_v8, 1  ;;  %v592_v11 = vrot.slane %v589_v9, 1  ;;  %v2021_v0 = vrot.slane %v2003_v57, 4 }
  0x92   : > { %v579_v7 = vsel %vm578_vm3, %v572_v61, %v577_v4  ;;  %1714 = vrot.lane.b32.xlu1 %v1703_v2, %s6754_s25  ;;  %1712 = vrot.lane.b32.xlu0 %v1702_v3, %s6754_s25  ;;  %v2020_v1 = vrot.slane %v2002_v58, 4  ;;  %v2072_v3 = vld [vmem:[%s7081_s21 + $0xb0] sm:$0xf0]  ;;  %v2071_v4 = vld [vmem:[%s7081_s21 + $0xa8] sm:$0xf0] }
  0x93   : > { %582 = vst [vmem:[#allocation2 + $0x2] ss:$8 sm:$0xf] %v579_v7  ;;  %583 = vst [vmem:[#allocation2 + $0x2] ss:$8 sm:$0xf0] %v579_v7  ;;  %v594_v14 = vsel %vm543_vm0, %v592_v11, %v593_v10 }
  0x94   : > { %v596_v15 = vsel %vm595_vm4, %v589_v9, %v594_v14  ;;  %v608_v16 = vpop.permute.xlu1 %607  ;;  %v606_v17 = vpop.permute.xlu0 %605  ;;  %v2090_v11 = vrot.slane %v2072_v3, 4  ;;  %v2270_v58 = vld [vmem:[%s7081_s21 + $0x100] sm:$0xf0]  ;;  %v2390_v3 = vld [vmem:[%s7081_s21 + $0xb0] sm:$0xf] }
  0x95   : > { %599 = vst [vmem:[#allocation2 + $0x3] ss:$8 sm:$0xf] %v596_v15  ;;  %600 = vst [vmem:[#allocation2 + $0x3] ss:$8 sm:$0xf0] %v596_v15 }
  0x96   : > { %v610_v18 = vrot.slane %v608_v16, 1  ;;  %v609_v19 = vrot.slane %v606_v17, 1  ;;  %1783 = vrot.lane.b32.xlu1 %v1772_v12, %s6753_s24  ;;  %1781 = vrot.lane.b32.xlu0 %v1771_v13, %s6753_s24  ;;  %v2089_v12 = vrot.slane %v2071_v4, 4  ;;  %v3106_v13 = vld [vmem:[%s7081_s21 + $0x28] sm:$0xf] }
  0x97   : > { %v2141_v15 = vld [vmem:[%s7081_s21 + $0xb0] sm:$0xf]  ;;  %v2140_v16 = vld [vmem:[%s7081_s21 + $0xa8] sm:$0xf]  ;;  %3114 = vst [vmem:[#allocation2 + $0x360] sm:$0xf] %v3106_v13 }
  0x98   : > { %v611_v20 = vsel %vm543_vm0, %v609_v19, %v610_v18  ;;  %v625_v24 = vpop.permute.xlu1 %624  ;;  %v623_v25 = vpop.permute.xlu0 %622 }
  0x99   : > { %v613_v23 = vsel %vm612_vm5, %v606_v17, %v611_v20  ;;  %v627_v26 = vrot.slane %v625_v24, 1  ;;  %v626_v27 = vrot.slane %v623_v25, 1 }
  0x9a   : > { %616 = vst [vmem:[#allocation2 + $0x4] ss:$8 sm:$0xf] %v613_v23  ;;  %617 = vst [vmem:[#allocation2 + $0x4] ss:$8 sm:$0xf0] %v613_v23  ;;  %1843 = vrot.lane.b32.xlu1 %v1823_v21, %s6756_s27  ;;  %1841 = vrot.lane.b32.xlu0 %v1822_v22, %s6756_s27 }
  0x9b   : > { %v628_v29 = vsel %vm543_vm0, %v626_v27, %v627_v26  ;;  %v2159_v22 = vrot.slane %v2141_v15, 4  ;;  %v2158_v23 = vrot.slane %v2140_v16, 4 }
  0x9c   : > { %v630_v33 = vsel %vm629_vm6, %v623_v25, %v628_v29  ;;  %v642_v34 = vpop.permute.xlu1 %641  ;;  %v640_v35 = vpop.permute.xlu0 %639  ;;  %v2001_v25 = vld [vmem:[%s7081_s21 + $0xa0] sm:$0xf] }
  0x9d   : > { %633 = vst [vmem:[#allocation2 + $0x5] ss:$8 sm:$0xf] %v630_v33  ;;  %634 = vst [vmem:[#allocation2 + $0x5] ss:$8 sm:$0xf0] %v630_v33 }
  0x9e   : > { %v644_v36 = vrot.slane %v642_v34, 1  ;;  %v643_v37 = vrot.slane %v640_v35, 1  ;;  %1903 = vrot.lane.b32.xlu1 %v1883_v28, %s6756_s27  ;;  %1901 = vrot.lane.b32.xlu0 %v1882_v30, %s6756_s27  ;;  %v2019_v31 = vrot.slane %v2001_v25, 4  ;;  %v1941_v33 = vld [vmem:[%s7081_s21] sm:$0xf] }
  0x9f   : > { %v2139_v34 = vld [vmem:[%s7081_s21 + $0xa0] sm:$0xf] }
  0xa0   : > { %v645_v40 = vsel %vm543_vm0, %v643_v37, %v644_v36  ;;  %v659_v42 = vpop.permute.xlu1 %658  ;;  %v657_v43 = vpop.permute.xlu0 %656 }
  0xa1   : > { %v647_v41 = vsel %vm646_vm7, %v640_v35, %v645_v40  ;;  %v661_v44 = vrot.slane %v659_v42, 1  ;;  %v660_v45 = vrot.slane %v657_v43, 1  ;;  %v2070_v35 = vld [vmem:[%s7081_s21 + $0xa0] sm:$0xf0] }
  0xa2   : > { %650 = vst [vmem:[#allocation2 + $0x6] ss:$8 sm:$0xf] %v647_v41  ;;  %651 = vst [vmem:[#allocation2 + $0x6] ss:$8 sm:$0xf0] %v647_v41  ;;  %1779 = vrot.lane.b32.xlu1 %v1770_v38, %s6753_s24  ;;  %1710 = vrot.lane.b32.xlu0 %v1701_v39, %s6754_s25 }
  0xa3   : > { %v662_v46 = vsel %vm543_vm0, %v660_v45, %v661_v44  ;;  %v2157_v41 = vrot.slane %v2139_v34, 4  ;;  %v2088_v42 = vrot.slane %v2070_v35, 4  ;;  %v2388_v34 = vld [vmem:[%s7081_s21 + $0xa0] sm:$0xf] }
  0xa4   : > { %v664_v49 = vsel %vm663_vm8, %v657_v43, %v662_v46  ;;  %v676_v50 = vpop.permute.xlu1 %675  ;;  %v674_v51 = vpop.permute.xlu0 %673 }
  0xa5   : > { %667 = vst [vmem:[#allocation2 + $0x7] ss:$8 sm:$0xf] %v664_v49  ;;  %668 = vst [vmem:[#allocation2 + $0x7] ss:$8 sm:$0xf0] %v664_v49 }
  0xa6   : > { %v678_v52 = vrot.slane %v676_v50, 1  ;;  %v677_v53 = vrot.slane %v674_v51, 1  ;;  %1899 = vrot.lane.b32.xlu1 %v1881_v47, %s6756_s27  ;;  %1839 = vrot.lane.b32.xlu0 %v1821_v48, %s6756_s27  ;;  %v2210_v50 = vld [vmem:[%s7081_s21 + $0x100] sm:$0xf] }
  0xa8   : > { %v679_v55 = vsel %vm543_vm0, %v677_v53, %v678_v52  ;;  %v693_v60 = vpop.permute.xlu1 %692  ;;  %v691_v61 = vpop.permute.xlu0 %690 }
  0xa9   : > { %v681_v59 = vsel %vm680_vm9, %v674_v51, %v679_v55  ;;  %v695_v62 = vrot.slane %v693_v60, 1  ;;  %v694_v63 = vrot.slane %v691_v61, 1  ;;  %v2209_v51 = vld [vmem:[%s7081_s21 + $0xf8] sm:$0xf] }
  0xaa   : > { %684 = vst [vmem:[#allocation2 + $0x40] ss:$8 sm:$0xf] %v681_v59  ;;  %685 = vst [vmem:[#allocation2 + $0x40] ss:$8 sm:$0xf0] %v681_v59  ;;  %1963 = vrot.lane.b32.xlu1 %v1943_v54, %s6757_s28  ;;  %1961 = vrot.lane.b32.xlu0 %v1942_v56, %s6757_s28 }
  0xab   : > { %v696_v2 = vsel %vm543_vm0, %v694_v63, %v695_v62  ;;  %v2269_v59 = vld [vmem:[%s7081_s21 + $0xf8] sm:$0xf0] }
  0xac   : > { %v698_v6 = vsel %vm697_vm10, %v691_v61, %v696_v2  ;;  %v710_v7 = vpop.permute.xlu1 %709  ;;  %v708_v8 = vpop.permute.xlu0 %707  ;;  %v2329_v2 = vld [vmem:[%s7081_s21 + $0xf8] sm:$0xf]  ;;  %v981_v5 = vld [vmem:[#allocation2 + $0x8] sm:$0xff] }
  0xad   : > { %701 = vst [vmem:[#allocation2 + $0x41] ss:$8 sm:$0xf] %v698_v6  ;;  %702 = vst [vmem:[#allocation2 + $0x41] ss:$8 sm:$0xf0] %v698_v6 }
  0xae   : > { %v712_v9 = vrot.slane %v710_v7, 1  ;;  %v711_v10 = vrot.slane %v708_v8, 1  ;;  %2032 = vrot.lane.b32.xlu1 %v2021_v0, %s6754_s25  ;;  %2030 = vrot.lane.b32.xlu0 %v2020_v1, %s6754_s25  ;;  %v2330_v1 = vld [vmem:[%s7081_s21 + $0x100] sm:$0xf]  ;;  %v983_v6 = vld [vmem:[#allocation2 + $0x18] sm:$0xff] }
  0xaf   : > { %v2389_v7 = vld [vmem:[%s7081_s21 + $0xa8] sm:$0xf] }
  0xb0   : > { %v713_v14 = vsel %vm543_vm0, %v711_v10, %v712_v9  ;;  %v727_v18 = vpop.permute.xlu1 %726  ;;  %v725_v19 = vpop.permute.xlu0 %724 }
  0xb1   : > { %v715_v17 = vsel %vm714_vm11, %v708_v8, %v713_v14  ;;  %v729_v20 = vrot.slane %v727_v18, 1  ;;  %v728_v21 = vrot.slane %v725_v19, 1  ;;  %v980_v18 = vld [vmem:[#allocation2] sm:$0xff] }
  0xb2   : > { %718 = vst [vmem:[#allocation2 + $0x42] ss:$8 sm:$0xf] %v715_v17  ;;  %719 = vst [vmem:[#allocation2 + $0x42] ss:$8 sm:$0xf0] %v715_v17  ;;  %2101 = vrot.lane.b32.xlu1 %v2090_v11, %s6754_s25  ;;  %2099 = vrot.lane.b32.xlu0 %v2089_v12, %s6754_s25 }
  0xb3   : > { %v730_v24 = vsel %vm543_vm0, %v728_v21, %v729_v20 }
  0xb4   : > { %v732_v26 = vsel %vm731_vm12, %v725_v19, %v730_v24  ;;  %v744_v27 = vpop.permute.xlu1 %743  ;;  %v742_v28 = vpop.permute.xlu0 %741  ;;  %v982_v19 = vld [vmem:[#allocation2 + $0x10] sm:$0xff]  ;;  %v2407_v24 = vrot.slane %v2389_v7, 4 }
  0xb5   : > { %735 = vst [vmem:[#allocation2 + $0x43] ss:$8 sm:$0xf] %v732_v26  ;;  %736 = vst [vmem:[#allocation2 + $0x43] ss:$8 sm:$0xf0] %v732_v26 }
  0xb6   : > { %v746_v29 = vrot.slane %v744_v27, 1  ;;  %v745_v30 = vrot.slane %v742_v28, 1  ;;  %2170 = vrot.lane.b32.xlu1 %v2159_v22, %s6753_s24  ;;  %2168 = vrot.lane.b32.xlu0 %v2158_v23, %s6753_s24  ;;  %v2408_v23 = vrot.slane %v2390_v3, 4 }
  0xb8   : > { %v747_v32 = vsel %vm543_vm0, %v745_v30, %v746_v29  ;;  %v765_v37 = vpop.permute.xlu1 %764  ;;  %v763_v38 = vpop.permute.xlu0 %762 }
  0xb9   : > { %v749_v36 = vsel %vm748_vm13, %v742_v28, %v747_v32  ;;  %v767_v39 = vrot.slane %v765_v37, 1  ;;  %v766_v40 = vrot.slane %v763_v38, 1  ;;  %v2268_v32 = vld [vmem:[%s7081_s21 + $0xf0] sm:$0xf0] }
  0xba   : > { %752 = vst [vmem:[#allocation2 + $0x44] ss:$8 sm:$0xf] %v749_v36  ;;  %753 = vst [vmem:[#allocation2 + $0x44] ss:$8 sm:$0xf0] %v749_v36  ;;  %2028 = vrot.lane.b32.xlu1 %v2019_v31, %s6754_s25  ;;  %1959 = vrot.lane.b32.xlu0 %v1941_v33, %s6757_s28 }
  0xbb   : > { %v768_v43 = vsel %vm543_vm0, %v766_v40, %v767_v39  ;;  %v2208_v33 = vld [vmem:[%s7081_s21 + $0xf0] sm:$0xf]  ;;  %v2406_v40 = vrot.slane %v2388_v34, 4 }
  0xbc   : > { %v770_v44 = vsel %vm9344_vm14, %v763_v38, %v768_v43  ;;  %v782_v45 = vpop.permute.xlu1 %781  ;;  %v780_v46 = vpop.permute.xlu0 %779  ;;  %vm9346_vm14 = vcmask 965632   ;;  %v2459_v43 = vld [vmem:[%s7081_s21 + $0xb0] sm:$0xf0] }
  0xbd   : > { %773 = vst [vmem:[#allocation2 + $0x46] ss:$8 sm:$0xf] %v770_v44  ;;  %774 = vst [vmem:[#allocation2 + $0x46] ss:$8 sm:$0xf0] %v770_v44 }
  0xbe   : > { %v784_v47 = vrot.slane %v782_v45, 1  ;;  %v783_v48 = vrot.slane %v780_v46, 1  ;;  %2166 = vrot.lane.b32.xlu1 %v2157_v41, %s6753_s24  ;;  %2097 = vrot.lane.b32.xlu0 %v2088_v42, %s6754_s25  ;;  %v2328_v42 = vld [vmem:[%s7081_s21 + $0xf0] sm:$0xf]  ;;  %v2458_v44 = vld [vmem:[%s7081_s21 + $0xa8] sm:$0xf0] }
  0xc0   : > { %v785_v49 = vsel %vm543_vm0, %v783_v48, %v784_v47  ;;  %v799_v53 = vpop.permute.xlu1 %798  ;;  %v797_v54 = vpop.permute.xlu0 %796 }
  0xc1   : > { %v787_v52 = vsel %vm9345_vm15, %v780_v46, %v785_v49  ;;  %v801_v55 = vrot.slane %v799_v53, 1  ;;  %v800_v56 = vrot.slane %v797_v54, 1  ;;  %vm9347_vm15 = vcmask 957440   ;;  %v2528_v53 = vld [vmem:[%s7081_s21 + $0xb0] sm:$0xf] }
  0xc2   : > { %790 = vst [vmem:[#allocation2 + $0x47] ss:$8 sm:$0xf] %v787_v52  ;;  %791 = vst [vmem:[#allocation2 + $0x47] ss:$8 sm:$0xf0] %v787_v52  ;;  %2230 = vrot.lane.b32.xlu1 %v2210_v50, %s6754_s25  ;;  %2228 = vrot.lane.b32.xlu0 %v2209_v51, %s6754_s25 }
  0xc3   : > { %v802_v57 = vsel %vm543_vm0, %v800_v56, %v801_v55  ;;  %v2477_v50 = vrot.slane %v2459_v43, 4  ;;  %v2476_v51 = vrot.slane %v2458_v44, 4 }
  0xc4   : > { %v804_v60 = vsel %vm9346_vm14, %v797_v54, %v802_v57  ;;  %v816_v61 = vpop.permute.xlu1 %815  ;;  %v814_v62 = vpop.permute.xlu0 %813  ;;  %vm9348_vm14 = vcmask 318464   ;;  %v2527_v54 = vld [vmem:[%s7081_s21 + $0xa8] sm:$0xf] }
  0xc5   : > { %807 = vst [vmem:[#allocation2 + $0x80] ss:$8 sm:$0xf] %v804_v60  ;;  %808 = vst [vmem:[#allocation2 + $0x80] ss:$8 sm:$0xf0] %v804_v60 }
  0xc6   : > { %v818_v63 = vrot.slane %v816_v61, 1  ;;  %v817_v0 = vrot.slane %v814_v62, 1  ;;  %2290 = vrot.lane.b32.xlu1 %v2270_v58, %s6754_s25  ;;  %2288 = vrot.lane.b32.xlu0 %v2269_v59, %s6754_s25  ;;  %v2546_v60 = vrot.slane %v2528_v53, 4  ;;  %v2545_v61 = vrot.slane %v2527_v54, 4 }
  0xc8   : > { %v819_v4 = vsel %vm543_vm0, %v817_v0, %v818_v63  ;;  %v833_v9 = vpop.permute.xlu1 %832  ;;  %v831_v10 = vpop.permute.xlu0 %830 }
  0xc9   : > { %v821_v8 = vsel %vm9347_vm15, %v814_v62, %v819_v4  ;;  %v989_v11 = vld [vmem:[#allocation2 + $0x48] sm:$0xff]  ;;  %v991_v12 = vld [vmem:[#allocation2 + $0x58] sm:$0xff]  ;;  %v988_v13 = vld [vmem:[#allocation2 + $0x40] sm:$0xff]  ;;  %v835_v14 = vrot.slane %v833_v9, 1  ;;  %v834_v15 = vrot.slane %v831_v10, 1  ;;  %vm9349_vm15 = vcmask 310272  }
  0xca   : > { %824 = vst [vmem:[#allocation2 + $0x81] ss:$8 sm:$0xf] %v821_v8  ;;  %825 = vst [vmem:[#allocation2 + $0x81] ss:$8 sm:$0xf0] %v821_v8  ;;  %v6148_v16 = vpack.c.bf16 %v989_v11, %v981_v5  ;;  %v6180_v17 = vpack.c.bf16 %v991_v12, %v983_v6  ;;  %2350 = vrot.lane.b32.xlu1 %v2330_v1, %s6753_s24  ;;  %2348 = vrot.lane.b32.xlu0 %v2329_v2, %s6753_s24 }
  0xcb   : > { %v990_v20 = vld [vmem:[#allocation2 + $0x50] sm:$0xff]  ;;  %v6150_v21 = vpack.c.bf16 %v988_v13, %v980_v18  ;;  %v836_v25 = vsel %vm543_vm0, %v834_v15, %v835_v14  ;;  %v2596_v6 = vld [vmem:[%s7081_s21 + $0x8] sm:$0xf]  ;;  %v2656_v14 = vld [vmem:[%s7081_s21 + $0x8] sm:$0xf0] }
  0xcc   : > { %v6182_v22 = vpack.c.bf16 %v990_v20, %v982_v19  ;;  %6149 = vmatprep.subr.bf16.mxu0 %v6148_v16  ;;  %6181 = vmatprep.subr.bf16.mxu1 %v6180_v17  ;;  %v838_v26 = vsel %vm9348_vm14, %v831_v10, %v836_v25  ;;  %v850_v27 = vpop.permute.xlu1 %849  ;;  %v848_v28 = vpop.permute.xlu0 %847  ;;  %vm9350_vm14 = vcmask 302080   ;;  %v2597_v5 = vld [vmem:[%s7081_s21 + $0x10] sm:$0xf]  ;;  %v2657_v12 = vld [vmem:[%s7081_s21 + $0x10] sm:$0xf0] }
  0xcd   : > { %6151 = vmatpush1.bf16.msra.mxu0 %v6150_v21  ;;  %841 = vst [vmem:[#allocation2 + $0x82] ss:$8 sm:$0xf] %v838_v26  ;;  %842 = vst [vmem:[#allocation2 + $0x82] ss:$8 sm:$0xf0] %v838_v26 }
  0xce   : > { %6183 = vmatpush1.bf16.msra.mxu1 %v6182_v22  ;;  %v852_v29 = vrot.slane %v850_v27, 1  ;;  %v851_v30 = vrot.slane %v848_v28, 1  ;;  %2419 = vrot.lane.b32.xlu1 %v2408_v23, %s6756_s27  ;;  %v2526_v15 = vld [vmem:[%s7081_s21 + $0xa0] sm:$0xf]  ;;  %v2457_v16 = vld [vmem:[%s7081_s21 + $0xa0] sm:$0xf0] }
  0xcf   : > { %2417 = vrot.lane.b32.xlu0 %v2407_v24, %s6756_s27  ;;  %v2544_v22 = vrot.slane %v2526_v15, 4  ;;  %v2475_v23 = vrot.slane %v2457_v16, 4  ;;  %v2715_v16 = vld [vmem:[%s7081_s21] sm:$0xf] }
  0xd0   : > { %v853_v31 = vsel %vm543_vm0, %v851_v30, %v852_v29  ;;  %v867_v36 = vpop.permute.xlu1 %866  ;;  %v865_v37 = vpop.permute.xlu0 %864 }
  0xd1   : > { %v855_v35 = vsel %vm9349_vm15, %v848_v28, %v853_v31  ;;  %v869_v38 = vrot.slane %v867_v36, 1  ;;  %v868_v39 = vrot.slane %v865_v37, 1  ;;  %vm9351_vm15 = vcmask 236544   ;;  %v2655_v31 = vld [vmem:[%s7081_s21] sm:$0xf0] }
  0xd2   : > { %858 = vst [vmem:[#allocation2 + $0x83] ss:$8 sm:$0xf] %v855_v35  ;;  %859 = vst [vmem:[#allocation2 + $0x83] ss:$8 sm:$0xf0] %v855_v35  ;;  %2286 = vrot.lane.b32.xlu1 %v2268_v32, %s6754_s25 }
  0xd3   : > { %2226 = vrot.lane.b32.xlu0 %v2208_v33, %s6754_s25  ;;  %v870_v41 = vsel %vm543_vm0, %v868_v39, %v869_v38  ;;  %v2595_v32 = vld [vmem:[%s7081_s21] sm:$0xf]  ;;  %v2716_v38 = vld [vmem:[%s7081_s21 + $0x8] sm:$0xf] }
  0xd4   : > { %v872_v45 = vsel %vm9350_vm14, %v865_v37, %v870_v41  ;;  %v884_v46 = vpop.permute.xlu1 %883  ;;  %v882_v47 = vpop.permute.xlu0 %881  ;;  %vm9352_vm14 = vcmask 228352   ;;  %v2717_v37 = vld [vmem:[%s7081_s21 + $0x10] sm:$0xf]  ;;  %v2777_v39 = vld [vmem:[%s7081_s21 + $0x60] sm:$0xf] }
  0xd5   : > { %875 = vst [vmem:[#allocation2 + $0x84] ss:$8 sm:$0xf] %v872_v45  ;;  %876 = vst [vmem:[#allocation2 + $0x84] ss:$8 sm:$0xf0] %v872_v45 }
  0xd6   : > { %v886_v48 = vrot.slane %v884_v46, 1  ;;  %v885_v49 = vrot.slane %v882_v47, 1  ;;  %2415 = vrot.lane.b32.xlu1 %v2406_v40, %s6756_s27  ;;  %v2776_v40 = vld [vmem:[%s7081_s21 + $0x58] sm:$0xf]  ;;  %v2795_v44 = vrot.slane %v2777_v39, 4 }
  0xd7   : > { %2346 = vrot.lane.b32.xlu0 %v2328_v42, %s6753_s24  ;;  %v2794_v45 = vrot.slane %v2776_v40, 4  ;;  %v2846_v46 = vld [vmem:[%s7081_s21 + $0x60] sm:$0xf0]  ;;  %v995_v39 = vld [vmem:[#allocation2 + $0x78] sm:$0xff] }
  0xd8   : > { %v887_v52 = vsel %vm543_vm0, %v885_v49, %v886_v48  ;;  %v901_v56 = vpop.permute.xlu1 %900  ;;  %v899_v57 = vpop.permute.xlu0 %898 }
  0xd9   : > { %v889_v55 = vsel %vm9351_vm15, %v882_v47, %v887_v52  ;;  %v903_v58 = vrot.slane %v901_v56, 1  ;;  %v902_v59 = vrot.slane %v899_v57, 1  ;;  %vm9353_vm15 = vcmask 220160   ;;  %v2845_v47 = vld [vmem:[%s7081_s21 + $0x58] sm:$0xf0]  ;;  %v7285_v56 = vld [vmem:[#allocation2 + $0x100] sm:$0xff] }
  0xda   : > { %892 = vst [vmem:[#allocation2 + $0x85] ss:$8 sm:$0xf] %v889_v55  ;;  %893 = vst [vmem:[#allocation2 + $0x85] ss:$8 sm:$0xf0] %v889_v55  ;;  %2488 = vrot.lane.b32.xlu1 %v2477_v50, %s6756_s27 }
  0xdb   : > { %2486 = vrot.lane.b32.xlu0 %v2476_v51, %s6756_s27  ;;  %v904_v62 = vsel %vm543_vm0, %v902_v59, %v903_v58 }
  0xdc   : > { %v906_v63 = vsel %vm9352_vm14, %v899_v57, %v904_v62  ;;  %v918_v0 = vpop.permute.xlu1 %917  ;;  %v916_v1 = vpop.permute.xlu0 %915  ;;  %vm9354_vm14 = vcmask 154624   ;;  %v7289_v57 = vpack.c.bf16 %v7285_v56, %v7285_v56 }
  0xdd   : > { %909 = vst [vmem:[#allocation2 + $0x86] ss:$8 sm:$0xf] %v906_v63  ;;  %910 = vst [vmem:[#allocation2 + $0x86] ss:$8 sm:$0xf0] %v906_v63 }
  0xde   : > { %v920_v2 = vrot.slane %v918_v0, 1  ;;  %v919_v3 = vrot.slane %v916_v1, 1  ;;  %2557 = vrot.lane.b32.xlu1 %v2546_v60, %s6757_s28 }
  0xdf   : > { %2555 = vrot.lane.b32.xlu0 %v2545_v61, %s6757_s28 }
  0xe0   : > { %v921_v4 = vsel %vm543_vm0, %v919_v3, %v920_v2  ;;  %v935_v8 = vpop.permute.xlu1 %934  ;;  %v933_v9 = vpop.permute.xlu0 %932  ;;  %v2863_v2 = vrot.slane %v2845_v47, 4  ;;  %v2915_v3 = vld [vmem:[%s7081_s21 + $0x60] sm:$0xf] }
  0xe1   : > { %v923_v7 = vsel %vm9353_vm15, %v916_v1, %v921_v4  ;;  %v937_v10 = vrot.slane %v935_v8, 1  ;;  %v936_v11 = vrot.slane %v933_v9, 1  ;;  %vm956_vm15 = vcmask 146432   ;;  %v2914_v4 = vld [vmem:[%s7081_s21 + $0x58] sm:$0xf] }
  0xe2   : > { %926 = vst [vmem:[#allocation2 + $0x87] ss:$8 sm:$0xf] %v923_v7  ;;  %927 = vst [vmem:[#allocation2 + $0x87] ss:$8 sm:$0xf0] %v923_v7  ;;  %2617 = vrot.lane.b32.xlu1 %v2597_v5, %s6762_s14 }
  0xe3   : > { %2615 = vrot.lane.b32.xlu0 %v2596_v6, %s6762_s14  ;;  %v938_v13 = vsel %vm543_vm0, %v936_v11, %v937_v10  ;;  %v2864_v1 = vrot.slane %v2846_v46, 4  ;;  %v2933_v8 = vrot.slane %v2915_v3, 4  ;;  %v2775_v10 = vld [vmem:[%s7081_s21 + $0x50] sm:$0xf]  ;;  %v2982_v47 = vld [vmem:[%s7081_s21] sm:$0xf] }
  0xe4   : > { %v940_v17 = vsel %vm9354_vm14, %v933_v9, %v938_v13  ;;  %v952_v18 = vpop.permute.xlu1 %951  ;;  %v950_v19 = vpop.permute.xlu0 %949  ;;  %vm973_vm14 = vcmask 138240   ;;  %v2932_v9 = vrot.slane %v2914_v4, 4  ;;  %v2793_v15 = vrot.slane %v2775_v10, 4  ;;  %v1437_v4 = vld [vmem:[%s7081_s21 + $0x18] sm:$0xf] }
  0xe5   : > { %943 = vst [vmem:[#allocation2 + $0xc0] ss:$8 sm:$0xf] %v940_v17  ;;  %944 = vst [vmem:[#allocation2 + $0xc0] ss:$8 sm:$0xf0] %v940_v17 }
  0xe6   : > { %v954_v20 = vrot.slane %v952_v18, 1  ;;  %v953_v21 = vrot.slane %v950_v19, 1  ;;  %2677 = vrot.lane.b32.xlu1 %v2657_v12, %s6762_s14  ;;  %v2913_v17 = vld [vmem:[%s7081_s21 + $0x50] sm:$0xf]  ;;  %v2844_v18 = vld [vmem:[%s7081_s21 + $0x50] sm:$0xf0] }
  0xe7   : > { %2675 = vrot.lane.b32.xlu0 %v2656_v14, %s6762_s14 }
  0xe8   : > { %v955_v24 = vsel %vm543_vm0, %v953_v21, %v954_v20  ;;  %v969_v26 = vpop.permute.xlu1 %968  ;;  %v967_v27 = vpop.permute.xlu0 %966 }
  0xe9   : > { %v957_v25 = vsel %vm956_vm15, %v950_v19, %v955_v24  ;;  %v971_v28 = vrot.slane %v969_v26, 1  ;;  %v970_v29 = vrot.slane %v967_v27, 1  ;;  %v997_v48 = vld [vmem:[#allocation2 + $0x88] sm:$0xff]  ;;  %v999_v49 = vld [vmem:[#allocation2 + $0x98] sm:$0xff]  ;;  %v996_v50 = vld [vmem:[#allocation2 + $0x80] sm:$0xff]  ;;  %v2862_v24 = vrot.slane %v2844_v18, 4 }
  0xea   : > { %960 = vst [vmem:[#allocation2 + $0xc1] ss:$8 sm:$0xf] %v957_v25  ;;  %961 = vst [vmem:[#allocation2 + $0xc1] ss:$8 sm:$0xf0] %v957_v25  ;;  %2553 = vrot.lane.b32.xlu1 %v2544_v22, %s6757_s28 }
  0xeb   : > { %2484 = vrot.lane.b32.xlu0 %v2475_v23, %s6756_s27  ;;  %v972_v30 = vsel %vm543_vm0, %v970_v29, %v971_v28  ;;  %v998_v62 = vld [vmem:[#allocation2 + $0x90] sm:$0xff]  ;;  %v2931_v23 = vrot.slane %v2913_v17, 4  ;;  %v2983_v29 = vld [vmem:[%s7081_s21 + $0x8] sm:$0xf]  ;;  %vm9376_vm0 = vcmask 1039360  }
  0xec   : > { %v974_v33 = vsel %vm973_vm14, %v967_v27, %v972_v30  ;;  %v7262_v34 = vpop.permute.xlu1 %1456  ;;  %v7264_v35 = vpop.permute.xlu0 %1454  ;;  %v2984_v28 = vld [vmem:[%s7081_s21 + $0x10] sm:$0xf]  ;;  %v1439_v17 = vld [vmem:[%s7081_s21 + $0x28] sm:$0xf] }
  0xed   : > { %977 = vst [vmem:[#allocation2 + $0xc2] ss:$8 sm:$0xf] %v974_v33  ;;  %978 = vst [vmem:[#allocation2 + $0xc2] ss:$8 sm:$0xf0] %v974_v33  ;;  %v1471_v36 = vsel %vm545_vm2, %v7264_v35, %v7262_v34 }
  0xee   : > { %1487 = vst [vmem:[#allocation2 + $0x8] sm:$0xf] %v1471_v36  ;;  %2673 = vrot.lane.b32.xlu1 %v2655_v31, %s6762_s14  ;;  %v3044_v33 = vld [vmem:[%s7081_s21 + $0x10] sm:$0xf0] }
  0xef   : > { %2613 = vrot.lane.b32.xlu0 %v2595_v32, %s6762_s14 }
  0xf0   : > { %v7275_v41 = vpop.permute.xlu1 %1516  ;;  %v1515_v42 = vpop.permute.xlu0 %1514 }
  0xf1   : > { %v1531_v43 = vsel %vm545_vm2, %v1515_v42, %v7275_v41 }
  0xf2   : > { %1547 = vst [vmem:[#allocation2 + $0x8] sm:$0xf0] %v1531_v43  ;;  %2737 = vrot.lane.b32.xlu1 %v2717_v37, %s9359_s15  ;;  %v987_v43 = vld [vmem:[#allocation2 + $0x38] sm:$0xff] }
  0xf3   : > { %2735 = vrot.lane.b32.xlu0 %v2716_v38, %s9359_s15  ;;  %v993_v38 = vld [vmem:[#allocation2 + $0x68] sm:$0xff]  ;;  %v6244_v46 = vpack.c.bf16 %v995_v39, %v987_v43  ;;  %v1560_v43 = vld [vmem:[%s7081_s21 + $0x30] sm:$0xf] }
  0xf4   : > { %v7283_v51 = vpop.permute.xlu1 %1576  ;;  %v1575_v52 = vpop.permute.xlu0 %1574  ;;  %v1005_v53 = vld [vmem:[#allocation2 + $0xc8] sm:$0xff]  ;;  %v1007_v54 = vld [vmem:[#allocation2 + $0xd8] sm:$0xff]  ;;  %v1004_v55 = vld [vmem:[#allocation2 + $0xc0] sm:$0xff] }
  0xf5   : > { %v1591_v58 = vsel %vm561_vm1, %v1575_v52, %v7283_v51  ;;  %v6152_v59 = vpack.c.bf16 %v1005_v53, %v997_v48  ;;  %v6184_v60 = vpack.c.bf16 %v1007_v54, %v999_v49  ;;  %v6154_v61 = vpack.c.bf16 %v1004_v55, %v996_v50  ;;  %v1006_v63 = vld [vmem:[#allocation2 + $0xd0] sm:$0xff]  ;;  %v992_v48 = vld [vmem:[#allocation2 + $0x60] sm:$0xff]  ;;  %v1009_v54 = vld [vmem:[#allocation2 + $0xe8] sm:$0xff] }
  0xf6   : > { %1607 = vst [vmem:[#allocation2 + $0x48] sm:$0xf] %v1591_v58  ;;  %2806 = vrot.lane.b32.xlu1 %v2795_v44, %s6762_s14  ;;  %v6186_v0 = vpack.c.bf16 %v1006_v63, %v998_v62  ;;  %v3042_v44 = vld [vmem:[%s7081_s21] sm:$0xf0]  ;;  %v994_v49 = vld [vmem:[#allocation2 + $0x70] sm:$0xff]  ;;  %v1011_v55 = vld [vmem:[#allocation2 + $0xf8] sm:$0xff] }
  0xf7   : > { %2804 = vrot.lane.b32.xlu0 %v2794_v45, %s6762_s14  ;;  %6153 = vmatprep.subr.bf16.mxu0 %v6152_v59  ;;  %v7375_v53 = vld [vmem:[%s9307_s3] sm:$0xff]  ;;  %v1001_v63 = vld [vmem:[#allocation2 + $0xa8] sm:$0xff] }
  0xf8   : > { %6185 = vmatprep.subr.bf16.mxu1 %v6184_v60  ;;  %6155 = vmatpush1.bf16.msra.mxu0 %v6154_v61  ;;  %v7297_v5 = vpop.permute.xlu1 %1645  ;;  %v1644_v6 = vpop.permute.xlu0 %1643  ;;  %v984_v59 = vld [vmem:[#allocation2 + $0x20] sm:$0xff]  ;;  %v986_v60 = vld [vmem:[#allocation2 + $0x30] sm:$0xff] }
  0xf9   : > { %6187 = vmatpush1.bf16.msra.mxu1 %v6186_v0  ;;  %v1660_v7 = vsel %vm545_vm2, %v1644_v6, %v7297_v5  ;;  %6157 = vmatprep.subr.bf16.mxu0 %v7289_v57  ;;  %v6214_v61 = vpack.c.bf16 %v992_v48, %v984_v59  ;;  %v6246_v62 = vpack.c.bf16 %v994_v49, %v986_v60  ;;  %v1003_v0 = vld [vmem:[#allocation2 + $0xb8] sm:$0xff] }
  0xfa   : > { %6189 = vmatprep.subr.bf16.mxu1 %v7289_v57  ;;  %1676 = vst [vmem:[#allocation2 + $0x48] sm:$0xf0] %v1660_v7  ;;  %2875 = vrot.lane.b32.xlu1 %v2864_v1, %s6762_s14  ;;  %v1438_v1 = vld [vmem:[%s7081_s21 + $0x20] sm:$0xf]  ;;  %v6248_v3 = vpack.c.bf16 %v1011_v55, %v1003_v0  ;;  %v1010_v7 = vld [vmem:[#allocation2 + $0xf0] sm:$0xff] }
  0xfb   : > { %2873 = vrot.lane.b32.xlu0 %v2863_v2, %s6762_s14  ;;  %v6216_v2 = vpack.c.bf16 %v1009_v54, %v1001_v63  ;;  %v1619_v59 = vld [vmem:[%s7081_s21 + $0x78] sm:$0xf] }
  0xfc   : > { %6159 = vmatpush1.bf16.msra.mxu0 %v7289_v57  ;;  %v1513_v11 = vpop.permute.xlu1 %1512  ;;  %v1453_v12 = vpop.permute.xlu0 %1452 }
  0xfd   : > { %6191 = vmatpush1.bf16.msra.mxu1 %v7289_v57  ;;  %v1530_v13 = vsel %vm545_vm2, %v1513_v11, %v1515_v42  ;;  %v1470_v14 = vsel %vm545_vm2, %v1453_v12, %v7264_v35  ;;  %6161 = vmatprep.subr.bf16.mxu0 %v7289_v57  ;;  %v3043_v35 = vld [vmem:[%s7081_s21 + $0x8] sm:$0xf0]  ;;  %v1000_v12 = vld [vmem:[#allocation2 + $0xa0] sm:$0xff] }
  0xfe   : > { %6193 = vmatprep.subr.bf16.mxu1 %v7289_v57  ;;  %1546 = vst [vmem:[#allocation2] sm:$0xf0] %v1530_v13  ;;  %1486 = vst [vmem:[#allocation2] sm:$0xf] %v1470_v14  ;;  %2944 = vrot.lane.b32.xlu1 %v2933_v8, %s9359_s15  ;;  %v985_v42 = vld [vmem:[#allocation2 + $0x28] sm:$0xff]  ;;  %v1002_v13 = vld [vmem:[#allocation2 + $0xb0] sm:$0xff] }
  0xff   : > { %2942 = vrot.lane.b32.xlu0 %v2932_v9, %s9359_s15  ;;  %v6212_v45 = vpack.c.bf16 %v993_v38, %v985_v42  ;;  %v3109_v38 = vld [vmem:[%s7081_s21 + $0x40] sm:$0xf] }
 0x100   : > { %6163 = vmatpush1.bf16.msra.mxu0 %v7289_v57  ;;  %v1642_v19 = vpop.permute.xlu1 %1641  ;;  %v1573_v20 = vpop.permute.xlu0 %1572  ;;  %3117 = vst [vmem:[#allocation2 + $0x378] sm:$0xf] %v3109_v38  ;;  %v1756_v38 = vld [vmem:[%s7081_s21 + $0x70] sm:$0xf] }
 0x101   : > { %6195 = vmatpush1.bf16.msra.mxu1 %v7289_v57  ;;  %v1659_v21 = vsel %vm545_vm2, %v1642_v19, %v1644_v6  ;;  %v1590_v22 = vsel %vm561_vm1, %v1573_v20, %v1575_v52  ;;  %6165 = vmatprep.subr.bf16.mxu0 %v7289_v57  ;;  %v1008_v6 = vld [vmem:[#allocation2 + $0xe0] sm:$0xff] }
 0x102   : > { %6197 = vmatprep.subr.bf16.mxu1 %v7289_v57  ;;  %1675 = vst [vmem:[#allocation2 + $0x40] sm:$0xf0] %v1659_v21  ;;  %1606 = vst [vmem:[#allocation2 + $0x40] sm:$0xf] %v1590_v22  ;;  %2802 = vrot.lane.b32.xlu1 %v2793_v15, %s6762_s14  ;;  %v6218_v14 = vpack.c.bf16 %v1008_v6, %v1000_v12  ;;  %v6250_v15 = vpack.c.bf16 %v1010_v7, %v1002_v13  ;;  %v1498_v22 = vld [vmem:[%s7081_s21 + $0x20] sm:$0xf0] }
 0x103   : > { %2733 = vrot.lane.b32.xlu0 %v2715_v16, %s9359_s15  ;;  %v1440_v16 = vld [vmem:[%s7081_s21 + $0x30] sm:$0xf]  ;;  %v1687_v7 = vld [vmem:[%s7081_s21 + $0x70] sm:$0xf0] }
 0x104   : > { %6167 = vmatpush1.bf16.msra.mxu0 %v7289_v57  ;;  %v7328_v25 = vpop.permute.xlu1 %1714  ;;  %v7330_v26 = vpop.permute.xlu0 %1712 }
 0x105   : > { %6199 = vmatpush1.bf16.msra.mxu1 %v7289_v57  ;;  %v1729_v27 = vsel %vm545_vm2, %v7330_v26, %v7328_v25  ;;  %6169 = vmatprep.subr.bf16.mxu0 %v7289_v57 }
 0x106   : > { %6201 = vmatprep.subr.bf16.mxu1 %v7289_v57  ;;  %1745 = vst [vmem:[#allocation2 + $0x88] sm:$0xf] %v1729_v27  ;;  %2940 = vrot.lane.b32.xlu1 %v2931_v23, %s9359_s15  ;;  %v1497_v23 = vld [vmem:[%s7081_s21 + $0x18] sm:$0xf0] }
 0x107   : > { %2871 = vrot.lane.b32.xlu0 %v2862_v24, %s6762_s14 }
 0x108   : > { %6171 = vmatpush1.bf16.msra.mxu0 %v7289_v57  ;;  %v7343_v30 = vpop.permute.xlu1 %1783  ;;  %v1782_v31 = vpop.permute.xlu0 %1781 }
 0x109   : > { %6203 = vmatpush1.bf16.msra.mxu1 %v7289_v57  ;;  %v1798_v32 = vsel %vm561_vm1, %v1782_v31, %v7343_v30  ;;  %6173 = vmatprep.subr.bf16.mxu0 %v7289_v57  ;;  %v3127_v6 = vld [vmem:[#allocation2 + $0x40] sm:$0xff] }
 0x10a   : > { %6205 = vmatprep.subr.bf16.mxu1 %v7289_v57  ;;  %1814 = vst [vmem:[#allocation2 + $0x88] sm:$0xf0] %v1798_v32  ;;  %3004 = vrot.lane.b32.xlu1 %v2984_v28, %s9355_s19  ;;  %v1500_v28 = vld [vmem:[%s7081_s21 + $0x30] sm:$0xf0] }
 0x10b   : > { %3002 = vrot.lane.b32.xlu0 %v2983_v29, %s9355_s19  ;;  %v1499_v29 = vld [vmem:[%s7081_s21 + $0x28] sm:$0xf0] }
 0x10c   : > { %6175 = vmatpush1.bf16.msra.mxu0 %v7289_v57  ;;  %v7355_v36 = vpop.permute.xlu1 %1843  ;;  %v7357_v37 = vpop.permute.xlu0 %1841 }
 0x10d   : > { %6207 = vmatpush1.bf16.msra.mxu1 %v7289_v57  ;;  %v1858_v40 = vsel %vm595_vm4, %v7357_v37, %v7355_v36  ;;  %6177 = vmatprep.subr.bf16.mxu0 %v7289_v57 }
 0x10e   : > { %6209 = vmatprep.subr.bf16.mxu1 %v7289_v57  ;;  %1874 = vst [vmem:[#allocation2 + $0xc8] sm:$0xf] %v1858_v40  ;;  %3064 = vrot.lane.b32.xlu1 %v3044_v33, %s9355_s19 }
 0x10f   : > { %3062 = vrot.lane.b32.xlu0 %v3043_v35, %s9355_s19  ;;  %v1558_v35 = vld [vmem:[%s7081_s21 + $0x20] sm:$0xf] }
 0x110   : > { %6179 = vmatpush1.bf16.msra.mxu0 %v7289_v57  ;;  %v7370_v50 = vpop.permute.xlu1 %1903  ;;  %v1902_v52 = vpop.permute.xlu0 %1901 }
 0x111   : > { %6211 = vmatpush1.bf16.msra.mxu1 %v7289_v57  ;;  %v1918_v58 = vsel %vm595_vm4, %v1902_v52, %v7370_v50  ;;  %6213 = vmatprep.subr.bf16.mxu0 %v6212_v45  ;;  %v1559_v45 = vld [vmem:[%s7081_s21 + $0x28] sm:$0xf] }
 0x112   : > { %6245 = vmatprep.subr.bf16.mxu1 %v6244_v46  ;;  %1934 = vst [vmem:[#allocation2 + $0xc8] sm:$0xf0] %v1918_v58  ;;  %3060 = vrot.lane.b32.xlu1 %v3042_v44, %s9355_s19  ;;  %v3108_v44 = vld [vmem:[%s7081_s21 + $0x38] sm:$0xf]  ;;  %v1618_v46 = vld [vmem:[%s7081_s21 + $0x70] sm:$0xf] }
 0x113   : > { %3000 = vrot.lane.b32.xlu0 %v2982_v47, %s9355_s19  ;;  %1173 = vmatmul.mubr.f32.vlgmr.msra.gmra.mrb[0].mxu0 %v7375_v53  ;;  %v1617_v47 = vld [vmem:[%s7081_s21 + $0x68] sm:$0xf]  ;;  %3116 = vst [vmem:[#allocation2 + $0x370] sm:$0xf] %v3108_v44  ;;  %v1636_v54 = vrot.slane %v1618_v46, 4 }
 0x114   : > { %1244 = vmatmul.mubr.f32.vlgmr.msra.gmra.mrb[0].mxu1 %v7375_v53  ;;  %6215 = vmatpush1.bf16.msra.mxu0 %v6214_v61  ;;  %v1780_v8 = vpop.permute.xlu1 %1779  ;;  %v1711_v9 = vpop.permute.xlu0 %1710  ;;  %v1635_v55 = vrot.slane %v1617_v47, 4  ;;  %v1620_v58 = vld [vmem:[%s7081_s21 + $0x80] sm:$0xf]  ;;  %v1774_v47 = vrot.slane %v1756_v38, 4 }
 0x115   : > { %6247 = vmatpush1.bf16.msra.mxu1 %v6246_v62  ;;  %v1797_v10 = vsel %vm561_vm1, %v1780_v8, %v1782_v31  ;;  %v1728_v11 = vsel %vm545_vm2, %v1711_v9, %v7330_v26  ;;  %6217 = vmatprep.subr.bf16.mxu0 %v6216_v2  ;;  %v3128_v62 = vld [vmem:[#allocation2 + $0x48] sm:$0xff]  ;;  %v1638_v2 = vrot.slane %v1620_v58, 4 }
 0x116   : > { %6249 = vmatprep.subr.bf16.mxu1 %v6248_v3  ;;  %1813 = vst [vmem:[#allocation2 + $0x80] sm:$0xf0] %v1797_v10  ;;  %1744 = vst [vmem:[#allocation2 + $0x80] sm:$0xf] %v1728_v11  ;;  %1460 = vrot.lane.b32.xlu1 %v1438_v1, %s6754_s25  ;;  %v3120_v1 = vld [vmem:[#allocation2 + $0x8] sm:$0xff]  ;;  %v1637_v3 = vrot.slane %v1619_v59, 4 }
 0x117   : > { %1458 = vrot.lane.b32.xlu0 %v1437_v4, %s6754_s25  ;;  %1314 = vmatprep.mubr.f32.mxu0 %v7285_v56  ;;  %v6276_v4 = vpack.c.bf16 %v3128_v62, %v3120_v1  ;;  %v1686_v8 = vld [vmem:[%s7081_s21 + $0x68] sm:$0xf0]  ;;  %v1825_v1 = vld [vmem:[%s7081_s21 + $0x20] sm:$0xf] }
 0x118   : > { %1385 = vmatprep.mubr.f32.mxu1 %v7285_v56  ;;  %6219 = vmatpush1.bf16.msra.mxu0 %v6218_v14  ;;  %v1900_v18 = vpop.permute.xlu1 %1899  ;;  %v1840_v19 = vpop.permute.xlu0 %1839  ;;  %v3119_v14 = vld [vmem:[#allocation2] sm:$0xff] }
 0x119   : > { %6251 = vmatpush1.bf16.msra.mxu1 %v6250_v15  ;;  %v1917_v20 = vsel %vm595_vm4, %v1900_v18, %v1902_v52  ;;  %v1857_v21 = vsel %vm595_vm4, %v1840_v19, %v7357_v37  ;;  %6221 = vmatprep.subr.bf16.mxu0 %v7289_v57  ;;  %v1557_v37 = vld [vmem:[%s7081_s21 + $0x18] sm:$0xf]  ;;  %v3144_v11 = vld [vmem:[#allocation2 + $0xc8] sm:$0xff]  ;;  %v6278_v15 = vpack.c.bf16 %v3127_v6, %v3119_v14  ;;  %v1704_v18 = vrot.slane %v1686_v8, 4  ;;  %v1827_v8 = vld [vmem:[%s7081_s21 + $0x30] sm:$0xf] }
 0x11a   : > { %6253 = vmatprep.subr.bf16.mxu1 %v7289_v57  ;;  %1933 = vst [vmem:[#allocation2 + $0xc0] sm:$0xf0] %v1917_v20  ;;  %1873 = vst [vmem:[#allocation2 + $0xc0] sm:$0xf] %v1857_v21  ;;  %1464 = vrot.lane.b32.xlu1 %v1440_v16, %s6754_s25  ;;  %v3136_v16 = vld [vmem:[#allocation2 + $0x88] sm:$0xff] }
 0x11b   : > { %1462 = vrot.lane.b32.xlu0 %v1439_v17, %s6754_s25  ;;  %v1705_v17 = vrot.slane %v1687_v7, 4  ;;  %v6280_v19 = vpack.c.bf16 %v3144_v11, %v3136_v16  ;;  %v1689_v21 = vld [vmem:[%s7081_s21 + $0x80] sm:$0xf0] }
 0x11c   : > { %6223 = vmatpush1.bf16.msra.mxu0 %v7289_v57  ;;  %v7404_v24 = vpop.permute.xlu1 %1963  ;;  %v1962_v26 = vpop.permute.xlu0 %1961 }
 0x11d   : > { %6255 = vmatpush1.bf16.msra.mxu1 %v7289_v57  ;;  %v1978_v27 = vsel %vm612_vm5, %v1962_v26, %v7404_v24  ;;  %6225 = vmatprep.subr.bf16.mxu0 %v7289_v57 }
 0x11e   : > { %6257 = vmatprep.subr.bf16.mxu1 %v7289_v57  ;;  %1994 = vst [vmem:[#allocation2 + $0x108] sm:$0xf] %v1978_v27  ;;  %1520 = vrot.lane.b32.xlu1 %v1498_v22, %s6754_s25  ;;  %v1688_v22 = vld [vmem:[%s7081_s21 + $0x78] sm:$0xf0] }
 0x11f   : > { %1518 = vrot.lane.b32.xlu0 %v1497_v23, %s6754_s25 }
 0x120   : > { %6227 = vmatpush1.bf16.msra.mxu0 %v7289_v57  ;;  %v7416_v31 = vpop.permute.xlu1 %2032  ;;  %v2031_v32 = vpop.permute.xlu0 %2030 }
 0x121   : > { %6259 = vmatpush1.bf16.msra.mxu1 %v7289_v57  ;;  %v2047_v33 = vsel %vm545_vm2, %v2031_v32, %v7416_v31  ;;  %6229 = vmatprep.subr.bf16.mxu0 %v7289_v57  ;;  %v3143_v20 = vld [vmem:[#allocation2 + $0xc0] sm:$0xff] }
 0x122   : > { %6261 = vmatprep.subr.bf16.mxu1 %v7289_v57  ;;  %2063 = vst [vmem:[#allocation2 + $0x108] sm:$0xf0] %v2047_v33  ;;  %1524 = vrot.lane.b32.xlu1 %v1500_v28, %s6754_s25  ;;  %v1707_v33 = vrot.slane %v1689_v21, 4 }
 0x123   : > { %1522 = vrot.lane.b32.xlu0 %v1499_v29, %s6754_s25  ;;  %v3135_v29 = vld [vmem:[#allocation2 + $0x80] sm:$0xff] }
 0x124   : > { %6231 = vmatpush1.bf16.msra.mxu0 %v7289_v57  ;;  %v7429_v39 = vpop.permute.xlu1 %2101  ;;  %v2100_v40 = vpop.permute.xlu0 %2099 }
 0x125   : > { %6263 = vmatpush1.bf16.msra.mxu1 %v7289_v57  ;;  %v2116_v42 = vsel %vm545_vm2, %v2100_v40, %v7429_v39  ;;  %6233 = vmatprep.subr.bf16.mxu0 %v7289_v57 }
 0x126   : > { %6265 = vmatprep.subr.bf16.mxu1 %v7289_v57  ;;  %2132 = vst [vmem:[#allocation2 + $0x148] sm:$0xf] %v2116_v42  ;;  %1580 = vrot.lane.b32.xlu1 %v1558_v35, %s6753_s24  ;;  %v1706_v35 = vrot.slane %v1688_v22, 4  ;;  %v1887_v22 = vld [vmem:[%s7081_s21 + $0x30] sm:$0xf0] }
 0x127   : > { %1578 = vrot.lane.b32.xlu0 %v1557_v37, %s6753_s24 }
 0x128   : > { %6235 = vmatpush1.bf16.msra.mxu0 %v7289_v57  ;;  %v7444_v48 = vpop.permute.xlu1 %2170  ;;  %v2169_v49 = vpop.permute.xlu0 %2168 }
 0x129   : > { %6267 = vmatpush1.bf16.msra.mxu1 %v7289_v57  ;;  %v2185_v52 = vsel %vm561_vm1, %v2169_v49, %v7444_v48  ;;  %6237 = vmatprep.subr.bf16.mxu0 %v7289_v57 }
 0x12a   : > { %6269 = vmatprep.subr.bf16.mxu1 %v7289_v57  ;;  %2201 = vst [vmem:[#allocation2 + $0x148] sm:$0xf0] %v2185_v52  ;;  %1584 = vrot.lane.b32.xlu1 %v1560_v43, %s6753_s24  ;;  %v1758_v52 = vld [vmem:[%s7081_s21 + $0x80] sm:$0xf] }
 0x12b   : > { %1582 = vrot.lane.b32.xlu0 %v1559_v45, %s6753_s24 }
 0x12c   : > { %6239 = vmatpush1.bf16.msra.mxu0 %v7289_v57  ;;  %v2029_v60 = vpop.permute.xlu1 %2028  ;;  %v1960_v61 = vpop.permute.xlu0 %1959 }
 0x12d   : > { %6271 = vmatpush1.bf16.msra.mxu1 %v7289_v57  ;;  %v2046_v63 = vsel %vm545_vm2, %v2029_v60, %v2031_v32  ;;  %v1977_v0 = vsel %vm612_vm5, %v1960_v61, %v1962_v26  ;;  %6241 = vmatprep.subr.bf16.mxu0 %v7289_v57  ;;  %v3152_v32 = vld [vmem:[#allocation2 + $0x108] sm:$0xff]  ;;  %v1776_v60 = vrot.slane %v1758_v52, 4 }
 0x12e   : > { %6273 = vmatprep.subr.bf16.mxu1 %v7289_v57  ;;  %2062 = vst [vmem:[#allocation2 + $0x100] sm:$0xf0] %v2046_v63  ;;  %1993 = vst [vmem:[#allocation2 + $0x100] sm:$0xf] %v1977_v0  ;;  %1649 = vrot.lane.b32.xlu1 %v1636_v54, %s6754_s25  ;;  %v1757_v54 = vld [vmem:[%s7081_s21 + $0x78] sm:$0xf] }
 0x12f   : > { %1647 = vrot.lane.b32.xlu0 %v1635_v55, %s6754_s25  ;;  %v1775_v61 = vrot.slane %v1757_v54, 4 }
 0x130   : > { %6243 = vmatpush1.bf16.msra.mxu0 %v7289_v57  ;;  %v2167_v9 = vpop.permute.xlu1 %2166  ;;  %v2098_v10 = vpop.permute.xlu0 %2097 }
 0x131   : > { %6275 = vmatpush1.bf16.msra.mxu1 %v7289_v57  ;;  %v2184_v12 = vsel %vm561_vm1, %v2167_v9, %v2169_v49  ;;  %v2115_v13 = vsel %vm545_vm2, %v2098_v10, %v2100_v40  ;;  %6277 = vmatprep.subr.bf16.mxu0 %v6276_v4  ;;  %v3160_v27 = vld [vmem:[#allocation2 + $0x148] sm:$0xff] }
 0x132   : > { %2200 = vst [vmem:[#allocation2 + $0x140] sm:$0xf0] %v2184_v12  ;;  %2131 = vst [vmem:[#allocation2 + $0x140] sm:$0xf] %v2115_v13  ;;  %1653 = vrot.lane.b32.xlu1 %v1638_v2, %s6754_s25  ;;  %v6284_v37 = vpack.c.bf16 %v3160_v27, %v3152_v32  ;;  %v1755_v40 = vld [vmem:[%s7081_s21 + $0x68] sm:$0xf] }
 0x133   : > { %1651 = vrot.lane.b32.xlu0 %v1637_v3, %s6754_s25  ;;  %1315 = vmatmul.mubr.f32.vlgmr.msra.gmra.mrb[2].mxu0 %v7375_v53  ;;  %v1773_v49 = vrot.slane %v1755_v40, 4  ;;  %v1824_v2 = vld [vmem:[%s7081_s21 + $0x18] sm:$0xf]  ;;  %v1826_v9 = vld [vmem:[%s7081_s21 + $0x28] sm:$0xf] }
 0x134   : > { %1386 = vmatmul.mubr.f32.vlgmr.msra.gmra.mrb[2].mxu1 %v7375_v53  ;;  %v7475_v23 = vpop.permute.xlu1 %2230  ;;  %6279 = vmatpush1.bf16.msra.mxu0 %v6278_v15  ;;  %v2229_v26 = vpop.permute.xlu0 %2228  ;;  %v6282_v53 = vpack.c.bf16 %v3143_v20, %v3135_v29 }
 0x135   : > { %3311 = vmatprep.mubr.f32.mxu0 %v7285_v56  ;;  %v2245_v28 = vsel %vm545_vm2, %v2229_v26, %v7475_v23  ;;  %6281 = vmatprep.subr.bf16.mxu0 %v6280_v19  ;;  %v3151_v44 = vld [vmem:[#allocation2 + $0x100] sm:$0xff] }
 0x136   : > { %3382 = vmatprep.mubr.f32.mxu1 %v7285_v56  ;;  %2261 = vst [vmem:[#allocation2 + $0x188] sm:$0xf] %v2245_v28  ;;  %1718 = vrot.lane.b32.xlu1 %v1705_v17, %s6754_s25  ;;  %v1885_v17 = vld [vmem:[%s7081_s21 + $0x20] sm:$0xf0] }
 0x137   : > { %1716 = vrot.lane.b32.xlu0 %v1704_v18, %s6754_s25  ;;  %v1884_v18 = vld [vmem:[%s7081_s21 + $0x18] sm:$0xf0] }
 0x138   : > { %v7485_v42 = vpop.permute.xlu1 %2290  ;;  %6283 = vmatpush1.bf16.msra.mxu0 %v6282_v53  ;;  %v2289_v43 = vpop.permute.xlu0 %2288 }
 0x139   : > { %v2305_v56 = vsel %vm545_vm2, %v2289_v43, %v7485_v42  ;;  %6285 = vmatprep.subr.bf16.mxu0 %v6284_v37  ;;  %v3159_v45 = vld [vmem:[#allocation2 + $0x140] sm:$0xff]  ;;  %v1944_v37 = vld [vmem:[%s7081_s21 + $0x18] sm:$0xf] }
 0x13a   : > { %2321 = vst [vmem:[#allocation2 + $0x188] sm:$0xf0] %v2305_v56  ;;  %1722 = vrot.lane.b32.xlu1 %v1707_v33, %s6754_s25  ;;  %v6286_v46 = vpack.c.bf16 %v3159_v45, %v3151_v44  ;;  %v1947_v56 = vld [vmem:[%s7081_s21 + $0x30] sm:$0xf]  ;;  %v1946_v44 = vld [vmem:[%s7081_s21 + $0x28] sm:$0xf] }
 0x13b   : > { %1720 = vrot.lane.b32.xlu0 %v1706_v35, %s6754_s25  ;;  %v1945_v35 = vld [vmem:[%s7081_s21 + $0x20] sm:$0xf] }
 0x13c   : > { %v7493_v55 = vpop.permute.xlu1 %2350  ;;  %6287 = vmatpush1.bf16.msra.mxu0 %v6286_v46  ;;  %v2349_v58 = vpop.permute.xlu0 %2348  ;;  %v2005_v45 = vld [vmem:[%s7081_s21 + $0xc0] sm:$0xf]  ;;  %v2004_v46 = vld [vmem:[%s7081_s21 + $0xb8] sm:$0xf] }
 0x13d   : > { %v2365_v59 = vsel %vm561_vm1, %v2349_v58, %v7493_v55  ;;  %v2023_v54 = vrot.slane %v2005_v45, 4  ;;  %v2144_v45 = vld [vmem:[%s7081_s21 + $0xc8] sm:$0xf] }
 0x13e   : > { %2381 = vst [vmem:[#allocation2 + $0x1c8] sm:$0xf] %v2365_v59  ;;  %1787 = vrot.lane.b32.xlu1 %v1774_v47, %s6753_s24  ;;  %v2007_v59 = vld [vmem:[%s7081_s21 + $0xd0] sm:$0xf] }
 0x13f   : > { %1785 = vrot.lane.b32.xlu0 %v1773_v49, %s6753_s24 }
 0x140   : > { %v7499_v62 = vpop.permute.xlu1 %2419 }
 0x141   : > { %v2418_v63 = vpop.permute.xlu0 %2417  ;;  %v3168_v14 = vld [vmem:[#allocation2 + $0x188] sm:$0xff] }
 0x142   : > { %v2434_v0 = vsel %vm595_vm4, %v2418_v63, %v7499_v62  ;;  %1791 = vrot.lane.b32.xlu1 %v1776_v60, %s6753_s24  ;;  %v2006_v60 = vld [vmem:[%s7081_s21 + $0xc8] sm:$0xf] }
 0x143   : > { %2450 = vst [vmem:[#allocation2 + $0x1c8] sm:$0xf0] %v2434_v0  ;;  %1789 = vrot.lane.b32.xlu0 %v1775_v61, %s6753_s24 }
 0x144   : > { %v2287_v3 = vpop.permute.xlu1 %2286 }
 0x145   : > { %v2227_v4 = vpop.permute.xlu0 %2226  ;;  %v2304_v6 = vsel %vm545_vm2, %v2287_v3, %v2289_v43  ;;  %v2024_v3 = vrot.slane %v2006_v60, 4 }
 0x146   : > { %v2244_v7 = vsel %vm545_vm2, %v2227_v4, %v2229_v26  ;;  %2320 = vst [vmem:[#allocation2 + $0x180] sm:$0xf0] %v2304_v6  ;;  %1847 = vrot.lane.b32.xlu1 %v1825_v1, %s6756_s27  ;;  %v1886_v26 = vld [vmem:[%s7081_s21 + $0x28] sm:$0xf0]  ;;  %v2074_v4 = vld [vmem:[%s7081_s21 + $0xc0] sm:$0xf0] }
 0x147   : > { %2260 = vst [vmem:[#allocation2 + $0x180] sm:$0xf] %v2244_v7  ;;  %1845 = vrot.lane.b32.xlu0 %v1824_v2, %s6756_s27  ;;  %v2025_v2 = vrot.slane %v2007_v59, 4  ;;  %v2073_v6 = vld [vmem:[%s7081_s21 + $0xb8] sm:$0xf0] }
 0x148   : > { %v2416_v10 = vpop.permute.xlu1 %2415 }
 0x149   : > { %v2347_v11 = vpop.permute.xlu0 %2346  ;;  %v2433_v12 = vsel %vm595_vm4, %v2416_v10, %v2418_v63 }
 0x14a   : > { %v2364_v13 = vsel %vm561_vm1, %v2347_v11, %v2349_v58  ;;  %v3176_v15 = vld [vmem:[#allocation2 + $0x1c8] sm:$0xff]  ;;  %2449 = vst [vmem:[#allocation2 + $0x1c0] sm:$0xf0] %v2433_v12  ;;  %1851 = vrot.lane.b32.xlu1 %v1827_v8, %s6756_s27  ;;  %v2022_v58 = vrot.slane %v2004_v46, 4 }
 0x14b   : > { %2380 = vst [vmem:[#allocation2 + $0x1c0] sm:$0xf] %v2364_v13  ;;  %1849 = vrot.lane.b32.xlu0 %v1826_v9, %s6756_s27  ;;  %v6288_v16 = vpack.c.bf16 %v3176_v15, %v3168_v14  ;;  %v2092_v14 = vrot.slane %v2074_v4, 4  ;;  %v2091_v15 = vrot.slane %v2073_v6, 4  ;;  %v2214_v6 = vld [vmem:[%s7081_s21 + $0x120] sm:$0xf] }
 0x14c   : > { %v7519_v19 = vpop.permute.xlu1 %2488 }
 0x14d   : > { %6289 = vmatprep.subr.bf16.mxu0 %v6288_v16  ;;  %v2487_v20 = vpop.permute.xlu0 %2486  ;;  %v2076_v16 = vld [vmem:[%s7081_s21 + $0xd0] sm:$0xf0] }
 0x14e   : > { %v2503_v21 = vsel %vm595_vm4, %v2487_v20, %v7519_v19  ;;  %1907 = vrot.lane.b32.xlu1 %v1885_v17, %s6756_s27  ;;  %v3167_v53 = vld [vmem:[#allocation2 + $0x180] sm:$0xff]  ;;  %v2075_v17 = vld [vmem:[%s7081_s21 + $0xc8] sm:$0xf0] }
 0x14f   : > { %2519 = vst [vmem:[#allocation2 + $0x208] sm:$0xf] %v2503_v21  ;;  %1905 = vrot.lane.b32.xlu0 %v1884_v18, %s6756_s27 }
 0x150   : > { %v7527_v27 = vpop.permute.xlu1 %2557 }
 0x151   : > { %v2556_v28 = vpop.permute.xlu0 %2555 }
 0x152   : > { %v2572_v29 = vsel %vm612_vm5, %v2556_v28, %v7527_v27  ;;  %v3175_v32 = vld [vmem:[#allocation2 + $0x1c0] sm:$0xff]  ;;  %1911 = vrot.lane.b32.xlu1 %v1887_v22, %s6756_s27  ;;  %v2094_v22 = vrot.slane %v2076_v16, 4  ;;  %v2271_v16 = vld [vmem:[%s7081_s21 + $0x108] sm:$0xf0] }
 0x153   : > { %2588 = vst [vmem:[#allocation2 + $0x208] sm:$0xf0] %v2572_v29  ;;  %1909 = vrot.lane.b32.xlu0 %v1886_v26, %s6756_s27  ;;  %v6290_v33 = vpack.c.bf16 %v3175_v32, %v3167_v53  ;;  %v2093_v26 = vrot.slane %v2075_v17, 4  ;;  %v2142_v29 = vld [vmem:[%s7081_s21 + $0xb8] sm:$0xf] }
 0x154   : > { %v7535_v38 = vpop.permute.xlu1 %2617 }
 0x155   : > { %6291 = vmatpush1.bf16.msra.mxu0 %v6290_v33  ;;  %v2616_v40 = vpop.permute.xlu0 %2615 }
 0x156   : > { %v2632_v43 = vsel %vm697_vm10, %v2616_v40, %v7535_v38  ;;  %1967 = vrot.lane.b32.xlu1 %v1945_v35, %s6757_s28 }
 0x157   : > { %2648 = vst [vmem:[#allocation2 + $0x248] sm:$0xf] %v2632_v43  ;;  %1965 = vrot.lane.b32.xlu0 %v1944_v37, %s6757_s28 }
 0x158   : > { %v7545_v47 = vpop.permute.xlu1 %2677 }
 0x159   : > { %v2676_v49 = vpop.permute.xlu0 %2675 }
 0x15a   : > { %v2692_v52 = vsel %vm697_vm10, %v2676_v49, %v7545_v47  ;;  %1971 = vrot.lane.b32.xlu1 %v1947_v56, %s6757_s28  ;;  %v3184_v11 = vld [vmem:[#allocation2 + $0x208] sm:$0xff]  ;;  %v2160_v56 = vrot.slane %v2142_v29, 4 }
 0x15b   : > { %2708 = vst [vmem:[#allocation2 + $0x248] sm:$0xf0] %v2692_v52  ;;  %1969 = vrot.lane.b32.xlu0 %v1946_v44, %s6757_s28  ;;  %v2145_v44 = vld [vmem:[%s7081_s21 + $0xd0] sm:$0xf] }
 0x15c   : > { %v2554_v61 = vpop.permute.xlu1 %2553 }
 0x15d   : > { %v2485_v63 = vpop.permute.xlu0 %2484  ;;  %v2571_v0 = vsel %vm612_vm5, %v2554_v61, %v2556_v28  ;;  %v2143_v28 = vld [vmem:[%s7081_s21 + $0xc0] sm:$0xf] }
 0x15e   : > { %v2502_v1 = vsel %vm595_vm4, %v2485_v63, %v2487_v20  ;;  %2587 = vst [vmem:[#allocation2 + $0x200] sm:$0xf0] %v2571_v0  ;;  %2036 = vrot.lane.b32.xlu1 %v2023_v54, %s6754_s25  ;;  %v2161_v43 = vrot.slane %v2143_v28, 4  ;;  %v2163_v54 = vrot.slane %v2145_v44, 4  ;;  %v2212_v63 = vld [vmem:[%s7081_s21 + $0x110] sm:$0xf] }
 0x15f   : > { %2518 = vst [vmem:[#allocation2 + $0x200] sm:$0xf] %v2502_v1  ;;  %2034 = vrot.lane.b32.xlu0 %v2022_v58, %s6754_s25  ;;  %v2162_v58 = vrot.slane %v2144_v45, 4  ;;  %v2211_v0 = vld [vmem:[%s7081_s21 + $0x108] sm:$0xf] }
 0x160   : > { %v2674_v7 = vpop.permute.xlu1 %2673 }
 0x161   : > { %v2614_v8 = vpop.permute.xlu0 %2613  ;;  %v2691_v9 = vsel %vm697_vm10, %v2674_v7, %v2676_v49  ;;  %v2213_v7 = vld [vmem:[%s7081_s21 + $0x118] sm:$0xf] }
 0x162   : > { %v2631_v10 = vsel %vm697_vm10, %v2614_v8, %v2616_v40  ;;  %v3192_v12 = vld [vmem:[#allocation2 + $0x248] sm:$0xff]  ;;  %2707 = vst [vmem:[#allocation2 + $0x240] sm:$0xf0] %v2691_v9  ;;  %2040 = vrot.lane.b32.xlu1 %v2025_v2, %s6754_s25 }
 0x163   : > { %2647 = vst [vmem:[#allocation2 + $0x240] sm:$0xf] %v2631_v10  ;;  %2038 = vrot.lane.b32.xlu0 %v2024_v3, %s6754_s25  ;;  %v6292_v13 = vpack.c.bf16 %v3192_v12, %v3184_v11 }
 0x164   : > { %v7565_v18 = vpop.permute.xlu1 %2737 }
 0x165   : > { %6293 = vmatprep.subr.bf16.mxu0 %v6292_v13  ;;  %v2736_v20 = vpop.permute.xlu0 %2735 }
 0x166   : > { %v2752_v21 = vsel %vm714_vm11, %v2736_v20, %v7565_v18  ;;  %2105 = vrot.lane.b32.xlu1 %v2092_v14, %s6754_s25  ;;  %v3183_v35 = vld [vmem:[#allocation2 + $0x200] sm:$0xff] }
 0x167   : > { %2768 = vst [vmem:[#allocation2 + $0x288] sm:$0xf] %v2752_v21  ;;  %2103 = vrot.lane.b32.xlu0 %v2091_v15, %s6754_s25  ;;  %v2272_v15 = vld [vmem:[%s7081_s21 + $0x110] sm:$0xf0] }
 0x168   : > { %v7573_v53 = vpop.permute.xlu1 %2806 }
 0x169   : > { %v2805_v32 = vpop.permute.xlu0 %2804 }
 0x16a   : > { %v2821_v33 = vsel %vm697_vm10, %v2805_v32, %v7573_v53  ;;  %v3191_v37 = vld [vmem:[#allocation2 + $0x240] sm:$0xff]  ;;  %2109 = vrot.lane.b32.xlu1 %v2094_v22, %s6754_s25 }
 0x16b   : > { %2837 = vst [vmem:[#allocation2 + $0x288] sm:$0xf0] %v2821_v33  ;;  %2107 = vrot.lane.b32.xlu0 %v2093_v26, %s6754_s25  ;;  %v6294_v40 = vpack.c.bf16 %v3191_v37, %v3183_v35  ;;  %v2274_v22 = vld [vmem:[%s7081_s21 + $0x120] sm:$0xf0]  ;;  %v2273_v26 = vld [vmem:[%s7081_s21 + $0x118] sm:$0xf0] }
 0x16c   : > { %v7581_v46 = vpop.permute.xlu1 %2875 }
 0x16d   : > { %6295 = vmatpush1.bf16.msra.mxu0 %v6294_v40  ;;  %v2874_v49 = vpop.permute.xlu0 %2873  ;;  %v2332_v40 = vld [vmem:[%s7081_s21 + $0x110] sm:$0xf] }
 0x16e   : > { %v2890_v52 = vsel %vm697_vm10, %v2874_v49, %v7581_v46  ;;  %2174 = vrot.lane.b32.xlu1 %v2161_v43, %s6753_s24  ;;  %v2331_v43 = vld [vmem:[%s7081_s21 + $0x108] sm:$0xf] }
 0x16f   : > { %2906 = vst [vmem:[#allocation2 + $0x2c8] sm:$0xf] %v2890_v52  ;;  %2172 = vrot.lane.b32.xlu0 %v2160_v56, %s6753_s24  ;;  %v2334_v52 = vld [vmem:[%s7081_s21 + $0x120] sm:$0xf] }
 0x170   : > { %v7587_v59 = vpop.permute.xlu1 %2944 }
 0x171   : > { %v2943_v60 = vpop.permute.xlu0 %2942 }
 0x172   : > { %v2959_v61 = vsel %vm714_vm11, %v2943_v60, %v7587_v59  ;;  %2178 = vrot.lane.b32.xlu1 %v2163_v54, %s6753_s24  ;;  %v3200_v12 = vld [vmem:[#allocation2 + $0x288] sm:$0xff]  ;;  %v2333_v54 = vld [vmem:[%s7081_s21 + $0x118] sm:$0xf] }
 0x173   : > { %2975 = vst [vmem:[#allocation2 + $0x2c8] sm:$0xf0] %v2959_v61  ;;  %2176 = vrot.lane.b32.xlu0 %v2162_v58, %s6753_s24  ;;  %v3224_v58 = vld [vmem:[#allocation2 + $0x348] sm:$0xff]  ;;  %v2391_v61 = vld [vmem:[%s7081_s21 + $0xb8] sm:$0xf] }
 0x174   : > { %v2803_v1 = vpop.permute.xlu1 %2802 }
 0x175   : > { %v2734_v2 = vpop.permute.xlu0 %2733  ;;  %v2820_v3 = vsel %vm697_vm10, %v2803_v1, %v2805_v32 }
 0x176   : > { %v2751_v4 = vsel %vm714_vm11, %v2734_v2, %v2736_v20  ;;  %2836 = vst [vmem:[#allocation2 + $0x280] sm:$0xf0] %v2820_v3  ;;  %2234 = vrot.lane.b32.xlu1 %v2212_v63, %s6754_s25 }
 0x177   : > { %2767 = vst [vmem:[#allocation2 + $0x280] sm:$0xf] %v2751_v4  ;;  %2232 = vrot.lane.b32.xlu0 %v2211_v0, %s6754_s25 }
 0x178   : > { %v2941_v8 = vpop.permute.xlu1 %2940 }
 0x179   : > { %v2872_v9 = vpop.permute.xlu0 %2871  ;;  %v2958_v10 = vsel %vm714_vm11, %v2941_v8, %v2943_v60  ;;  %v2392_v60 = vld [vmem:[%s7081_s21 + $0xc0] sm:$0xf] }
 0x17a   : > { %v2889_v11 = vsel %vm697_vm10, %v2872_v9, %v2874_v49  ;;  %v3208_v13 = vld [vmem:[#allocation2 + $0x2c8] sm:$0xff]  ;;  %2974 = vst [vmem:[#allocation2 + $0x2c0] sm:$0xf0] %v2958_v10  ;;  %2238 = vrot.lane.b32.xlu1 %v2214_v6, %s6754_s25  ;;  %v2410_v6 = vrot.slane %v2392_v60, 4  ;;  %v3223_v8 = vld [vmem:[#allocation2 + $0x340] sm:$0xff] }
 0x17b   : > { %2905 = vst [vmem:[#allocation2 + $0x2c0] sm:$0xf] %v2889_v11  ;;  %2236 = vrot.lane.b32.xlu0 %v2213_v7, %s6754_s25  ;;  %v6296_v14 = vpack.c.bf16 %v3208_v13, %v3200_v12  ;;  %v2409_v7 = vrot.slane %v2391_v61, 4  ;;  %v2394_v9 = vld [vmem:[%s7081_s21 + $0xd0] sm:$0xf] }
 0x17c   : > { %v7607_v17 = vpop.permute.xlu1 %3004  ;;  %v2393_v10 = vld [vmem:[%s7081_s21 + $0xc8] sm:$0xf] }
 0x17d   : > { %6297 = vmatprep.subr.bf16.mxu0 %v6296_v14  ;;  %v3003_v20 = vpop.permute.xlu0 %3002 }
 0x17e   : > { %v3019_v21 = vsel %vm748_vm13, %v3003_v20, %v7607_v17  ;;  %2294 = vrot.lane.b32.xlu1 %v2272_v15, %s6754_s25  ;;  %v3199_v33 = vld [vmem:[#allocation2 + $0x280] sm:$0xff] }
 0x17f   : > { %3035 = vst [vmem:[#allocation2 + $0x308] sm:$0xf] %v3019_v21  ;;  %2292 = vrot.lane.b32.xlu0 %v2271_v16, %s6754_s25  ;;  %v2412_v16 = vrot.slane %v2394_v9, 4  ;;  %v2461_v21 = vld [vmem:[%s7081_s21 + $0xc0] sm:$0xf0] }
 0x180   : > { %v7615_v28 = vpop.permute.xlu1 %3064 }
 0x181   : > { %v3063_v29 = vpop.permute.xlu0 %3062 }
 0x182   : > { %v3079_v32 = vsel %vm748_vm13, %v3063_v29, %v7615_v28  ;;  %v3207_v35 = vld [vmem:[#allocation2 + $0x2c0] sm:$0xff]  ;;  %2298 = vrot.lane.b32.xlu1 %v2274_v22, %s6754_s25  ;;  %v2460_v22 = vld [vmem:[%s7081_s21 + $0xb8] sm:$0xf0] }
 0x183   : > { %3095 = vst [vmem:[#allocation2 + $0x308] sm:$0xf0] %v3079_v32  ;;  %2296 = vrot.lane.b32.xlu0 %v2273_v26, %s6754_s25  ;;  %v6298_v37 = vpack.c.bf16 %v3207_v35, %v3199_v33  ;;  %v2479_v35 = vrot.slane %v2461_v21, 4 }
 0x184   : > { %v3061_v56 = vpop.permute.xlu1 %3060 }
 0x185   : > { %6299 = vmatpush1.bf16.msra.mxu0 %v6298_v37  ;;  %v3001_v44 = vpop.permute.xlu0 %3000  ;;  %v3078_v45 = vsel %vm748_vm13, %v3061_v56, %v3063_v29  ;;  %v2478_v37 = vrot.slane %v2460_v22, 4 }
 0x186   : > { %v3018_v49 = vsel %vm748_vm13, %v3001_v44, %v3003_v20  ;;  %3094 = vst [vmem:[#allocation2 + $0x300] sm:$0xf0] %v3078_v45  ;;  %2354 = vrot.lane.b32.xlu1 %v2332_v40, %s6753_s24  ;;  %v2411_v20 = vrot.slane %v2393_v10, 4  ;;  %v2463_v40 = vld [vmem:[%s7081_s21 + $0xd0] sm:$0xf0] }
 0x187   : > { %3034 = vst [vmem:[#allocation2 + $0x300] sm:$0xf] %v3018_v49  ;;  %2352 = vrot.lane.b32.xlu0 %v2331_v43, %s6753_s24  ;;  %v2462_v43 = vld [vmem:[%s7081_s21 + $0xc8] sm:$0xf0] }
 0x188   : > { %v1461_v63 = vpop.permute.xlu1 %1460 }
 0x189   : > { %v1459_v0 = vpop.permute.xlu0 %1458 }
 0x18a   : > { %v1472_v1 = vsel %vm545_vm2, %v7262_v34, %v1459_v0  ;;  %v1473_v2 = vsel %vm545_vm2, %v1459_v0, %v1461_v63  ;;  %v3216_v3 = vld [vmem:[#allocation2 + $0x308] sm:$0xff]  ;;  %2358 = vrot.lane.b32.xlu1 %v2334_v52, %s6753_s24  ;;  %v2481_v52 = vrot.slane %v2463_v40, 4 }
 0x18b   : > { %1488 = vst [vmem:[#allocation2 + $0x10] sm:$0xf] %v1472_v1  ;;  %1489 = vst [vmem:[#allocation2 + $0x18] sm:$0xf] %v1473_v2  ;;  %2356 = vrot.lane.b32.xlu0 %v2333_v54, %s6753_s24  ;;  %v6300_v4 = vpack.c.bf16 %v3224_v58, %v3216_v3  ;;  %v2480_v54 = vrot.slane %v2462_v43, 4 }
 0x18c   : > { %v7638_v11 = vpop.permute.xlu1 %1464  ;;  %v2530_v58 = vld [vmem:[%s7081_s21 + $0xc0] sm:$0xf] }
 0x18d   : > { %6301 = vmatprep.subr.bf16.mxu0 %v6300_v4  ;;  %v1463_v34 = vpop.permute.xlu0 %1462  ;;  %v2548_v2 = vrot.slane %v2530_v58, 4  ;;  %v2532_v4 = vld [vmem:[%s7081_s21 + $0xd0] sm:$0xf]  ;;  %v2658_v58 = vld [vmem:[%s7081_s21 + $0x18] sm:$0xf0] }
 0x18e   : > { %v1474_v12 = vsel %vm545_vm2, %v1461_v63, %v1463_v34  ;;  %v1475_v13 = vsel %vm545_vm2, %v1463_v34, %v7638_v11  ;;  %v3215_v14 = vld [vmem:[#allocation2 + $0x300] sm:$0xff]  ;;  %2423 = vrot.lane.b32.xlu1 %v2410_v6, %s6756_s27  ;;  %v6731_v63 = vld [vmem:[#allocation2 + $0x110] sm:$0xff]  ;;  %v2531_v6 = vld [vmem:[%s7081_s21 + $0xc8] sm:$0xf]  ;;  %v2550_v10 = vrot.slane %v2532_v4, 4 }
 0x18f   : > { %1490 = vst [vmem:[#allocation2 + $0x20] sm:$0xf] %v1474_v12  ;;  %1491 = vst [vmem:[#allocation2 + $0x28] sm:$0xf] %v1475_v13  ;;  %2421 = vrot.lane.b32.xlu0 %v2409_v7, %s6756_s27  ;;  %v6302_v15 = vpack.c.bf16 %v3223_v8, %v3215_v14  ;;  %v2549_v34 = vrot.slane %v2531_v6, 4 }
 0x190   : > { %v1521_v26 = vpop.permute.xlu1 %1520  ;;  %v2661_v6 = vld [vmem:[%s7081_s21 + $0x30] sm:$0xf0] }
 0x191   : > { %6303 = vmatpush1.bf16.msra.mxu0 %v6302_v15  ;;  %v1519_v29 = vpop.permute.xlu0 %1518 }
 0x192   : > { %v1532_v32 = vsel %vm545_vm2, %v7275_v41, %v1519_v29  ;;  %v1533_v33 = vsel %vm545_vm2, %v1519_v29, %v1521_v26  ;;  %6305 = vmatprep.subr.bf16.mxu0 %v7289_v57  ;;  %2427 = vrot.lane.b32.xlu1 %v2412_v16, %s6756_s27  ;;  %v3118_v41 = vld [vmem:[%s9309_s5] sm:$0xff]  ;;  %v2601_v29 = vld [vmem:[%s7081_s21 + $0x30] sm:$0xf] }
 0x193   : > { %1548 = vst [vmem:[#allocation2 + $0x10] sm:$0xf0] %v1532_v32  ;;  %1549 = vst [vmem:[#allocation2 + $0x18] sm:$0xf0] %v1533_v33  ;;  %2425 = vrot.lane.b32.xlu0 %v2411_v20, %s6756_s27  ;;  %v2599_v16 = vld [vmem:[%s7081_s21 + $0x20] sm:$0xf] }
 0x194   : > { %v7655_v56 = vpop.permute.xlu1 %1524  ;;  %v2598_v20 = vld [vmem:[%s7081_s21 + $0x18] sm:$0xf]  ;;  %v2600_v32 = vld [vmem:[%s7081_s21 + $0x28] sm:$0xf] }
 0x195   : > { %v1523_v44 = vpop.permute.xlu0 %1522  ;;  %6307 = vmatpush1.bf16.msra.mxu0 %v7289_v57  ;;  %v2529_v57 = vld [vmem:[%s7081_s21 + $0xb8] sm:$0xf] }
 0x196   : > { %v1534_v45 = vsel %vm545_vm2, %v1521_v26, %v1523_v44  ;;  %v1535_v49 = vsel %vm545_vm2, %v1523_v44, %v7655_v56  ;;  %2492 = vrot.lane.b32.xlu1 %v2479_v35, %s6756_s27  ;;  %v2547_v3 = vrot.slane %v2529_v57, 4 }
 0x197   : > { %1550 = vst [vmem:[#allocation2 + $0x20] sm:$0xf0] %v1534_v45  ;;  %1551 = vst [vmem:[#allocation2 + $0x28] sm:$0xf0] %v1535_v49  ;;  %2490 = vrot.lane.b32.xlu0 %v2478_v37, %s6756_s27 }
 0x198   : > { %3312 = vmatmul.mubr.f32.vlgmr.msra.gmra.mrb[4].mxu0 %v3118_v41  ;;  %v1581_v60 = vpop.permute.xlu1 %1580 }
 0x199   : > { %v1579_v61 = vpop.permute.xlu0 %1578  ;;  %3453 = vmatprep.mubr.f32.mxu0 %v6731_v63 }
 0x19a   : > { %v1592_v0 = vsel %vm561_vm1, %v7283_v51, %v1579_v61  ;;  %v1593_v1 = vsel %vm561_vm1, %v1579_v61, %v1581_v60  ;;  %2496 = vrot.lane.b32.xlu1 %v2481_v52, %s6756_s27  ;;  %v3122_v37 = vld [vmem:[#allocation2 + $0x18] sm:$0xff]  ;;  %v3121_v41 = vld [vmem:[#allocation2 + $0x10] sm:$0xff] }
 0x19b   : > { %1608 = vst [vmem:[#allocation2 + $0x50] sm:$0xf] %v1592_v0  ;;  %1609 = vst [vmem:[#allocation2 + $0x58] sm:$0xf] %v1593_v1  ;;  %2494 = vrot.lane.b32.xlu0 %v2480_v54, %s6756_s27  ;;  %v2659_v54 = vld [vmem:[%s7081_s21 + $0x20] sm:$0xf0] }
 0x19c   : > { %v7675_v7 = vpop.permute.xlu1 %1584 }
 0x19d   : > { %v1583_v8 = vpop.permute.xlu0 %1582 }
 0x19e   : > { %v1594_v9 = vsel %vm561_vm1, %v1581_v60, %v1583_v8  ;;  %v1595_v51 = vsel %vm561_vm1, %v1583_v8, %v7675_v7  ;;  %2561 = vrot.lane.b32.xlu1 %v2548_v2, %s6757_s28  ;;  %v3124_v60 = vld [vmem:[#allocation2 + $0x28] sm:$0xff]  ;;  %v3123_v1 = vld [vmem:[#allocation2 + $0x20] sm:$0xff] }
 0x19f   : > { %1610 = vst [vmem:[#allocation2 + $0x60] sm:$0xf] %v1594_v9  ;;  %1611 = vst [vmem:[#allocation2 + $0x68] sm:$0xf] %v1595_v51  ;;  %2559 = vrot.lane.b32.xlu0 %v2547_v3, %s6757_s28  ;;  %v2660_v8 = vld [vmem:[%s7081_s21 + $0x28] sm:$0xf0] }
 0x1a0   : > { %v1650_v12 = vpop.permute.xlu1 %1649 }
 0x1a1   : > { %v1648_v13 = vpop.permute.xlu0 %1647 }
 0x1a2   : > { %v1661_v14 = vsel %vm545_vm2, %v7297_v5, %v1648_v13  ;;  %v1662_v15 = vsel %vm545_vm2, %v1648_v13, %v1650_v12  ;;  %2565 = vrot.lane.b32.xlu1 %v2550_v10, %s6757_s28  ;;  %v2718_v13 = vld [vmem:[%s7081_s21 + $0x18] sm:$0xf] }
 0x1a3   : > { %1677 = vst [vmem:[#allocation2 + $0x50] sm:$0xf0] %v1661_v14  ;;  %1678 = vst [vmem:[#allocation2 + $0x58] sm:$0xf0] %v1662_v15  ;;  %2563 = vrot.lane.b32.xlu0 %v2549_v34, %s6757_s28 }
 0x1a4   : > { %v7689_v21 = vpop.permute.xlu1 %1653 }
 0x1a5   : > { %v1652_v22 = vpop.permute.xlu0 %1651 }
 0x1a6   : > { %v1663_v26 = vsel %vm545_vm2, %v1650_v12, %v1652_v22  ;;  %v1664_v5 = vsel %vm545_vm2, %v1652_v22, %v7689_v21  ;;  %2621 = vrot.lane.b32.xlu1 %v2599_v16, %s6762_s14  ;;  %v2719_v12 = vld [vmem:[%s7081_s21 + $0x20] sm:$0xf]  ;;  %v2720_v22 = vld [vmem:[%s7081_s21 + $0x28] sm:$0xf] }
 0x1a7   : > { %1679 = vst [vmem:[#allocation2 + $0x60] sm:$0xf0] %v1663_v26  ;;  %1680 = vst [vmem:[#allocation2 + $0x68] sm:$0xf0] %v1664_v5  ;;  %2619 = vrot.lane.b32.xlu0 %v2598_v20, %s6762_s14  ;;  %v2721_v20 = vld [vmem:[%s7081_s21 + $0x30] sm:$0xf] }
 0x1a8   : > { %v1719_v33 = vpop.permute.xlu1 %1718  ;;  %v2779_v26 = vld [vmem:[%s7081_s21 + $0x70] sm:$0xf]  ;;  %v2778_v5 = vld [vmem:[%s7081_s21 + $0x68] sm:$0xf] }
 0x1a9   : > { %v1717_v35 = vpop.permute.xlu0 %1716 }
 0x1aa   : > { %v1730_v40 = vsel %vm545_vm2, %v7328_v25, %v1717_v35  ;;  %v1731_v43 = vsel %vm545_vm2, %v1717_v35, %v1719_v33  ;;  %v3130_v44 = vld [vmem:[#allocation2 + $0x58] sm:$0xff]  ;;  %v3129_v45 = vld [vmem:[#allocation2 + $0x50] sm:$0xff]  ;;  %2625 = vrot.lane.b32.xlu1 %v2601_v29, %s6762_s14 }
 0x1ab   : > { %1746 = vst [vmem:[#allocation2 + $0x90] sm:$0xf] %v1730_v40  ;;  %1747 = vst [vmem:[#allocation2 + $0x98] sm:$0xf] %v1731_v43  ;;  %2623 = vrot.lane.b32.xlu0 %v2600_v32, %s6762_s14  ;;  %v6308_v49 = vpack.c.bf16 %v3130_v44, %v3122_v37  ;;  %v6310_v52 = vpack.c.bf16 %v3129_v45, %v3121_v41  ;;  %v2797_v37 = vrot.slane %v2779_v26, 4  ;;  %v2796_v40 = vrot.slane %v2778_v5, 4 }
 0x1ac   : > { %v7705_v57 = vpop.permute.xlu1 %1722  ;;  %v2781_v43 = vld [vmem:[%s7081_s21 + $0x80] sm:$0xf]  ;;  %v2780_v44 = vld [vmem:[%s7081_s21 + $0x78] sm:$0xf] }
 0x1ad   : > { %6309 = vmatprep.subr.bf16.mxu1 %v6308_v49  ;;  %v1721_v25 = vpop.permute.xlu0 %1720 }
 0x1ae   : > { %v1732_v61 = vsel %vm545_vm2, %v1719_v33, %v1721_v25  ;;  %v1733_v63 = vsel %vm545_vm2, %v1721_v25, %v7705_v57  ;;  %6311 = vmatpush1.bf16.msra.mxu1 %v6310_v52  ;;  %v3132_v0 = vld [vmem:[#allocation2 + $0x68] sm:$0xff]  ;;  %v3131_v2 = vld [vmem:[#allocation2 + $0x60] sm:$0xff]  ;;  %2681 = vrot.lane.b32.xlu1 %v2659_v54, %s6762_s14  ;;  %v2799_v52 = vrot.slane %v2781_v43, 4  ;;  %v2798_v54 = vrot.slane %v2780_v44, 4 }
 0x1af   : > { %1748 = vst [vmem:[#allocation2 + $0xa0] sm:$0xf] %v1732_v61  ;;  %1749 = vst [vmem:[#allocation2 + $0xa8] sm:$0xf] %v1733_v63  ;;  %2679 = vrot.lane.b32.xlu0 %v2658_v58, %s6762_s14  ;;  %v6340_v3 = vpack.c.bf16 %v3132_v0, %v3124_v60  ;;  %v6342_v4 = vpack.c.bf16 %v3131_v2, %v3123_v1  ;;  %v2848_v58 = vld [vmem:[%s7081_s21 + $0x70] sm:$0xf0] }
 0x1b0   : > { %v1788_v9 = vpop.permute.xlu1 %1787  ;;  %v2847_v25 = vld [vmem:[%s7081_s21 + $0x68] sm:$0xf0]  ;;  %v2866_v1 = vrot.slane %v2848_v58, 4 }
 0x1b1   : > { %6341 = vmatprep.subr.bf16.mxu0 %v6340_v3  ;;  %v1786_v51 = vpop.permute.xlu0 %1785  ;;  %v2865_v2 = vrot.slane %v2847_v25, 4  ;;  %v2850_v3 = vld [vmem:[%s7081_s21 + $0x80] sm:$0xf0] }
 0x1b2   : > { %v1799_v10 = vsel %vm561_vm1, %v7343_v30, %v1786_v51  ;;  %v1800_v34 = vsel %vm561_vm1, %v1786_v51, %v1788_v9  ;;  %6343 = vmatpush1.bf16.msra.mxu0 %v6342_v4  ;;  %2685 = vrot.lane.b32.xlu1 %v2661_v6, %s6762_s14  ;;  %v2849_v4 = vld [vmem:[%s7081_s21 + $0x78] sm:$0xf0]  ;;  %v2868_v51 = vrot.slane %v2850_v3, 4 }
 0x1b3   : > { %1815 = vst [vmem:[#allocation2 + $0x90] sm:$0xf0] %v1799_v10  ;;  %1816 = vst [vmem:[#allocation2 + $0x98] sm:$0xf0] %v1800_v34  ;;  %2683 = vrot.lane.b32.xlu0 %v2660_v8, %s6762_s14  ;;  %v2867_v10 = vrot.slane %v2849_v4, 4 }
 0x1b4   : > { %v7721_v14 = vpop.permute.xlu1 %1791  ;;  %v2917_v34 = vld [vmem:[%s7081_s21 + $0x70] sm:$0xf]  ;;  %v2986_v4 = vld [vmem:[%s7081_s21 + $0x20] sm:$0xf] }
 0x1b5   : > { %v1790_v15 = vpop.permute.xlu0 %1789 }
 0x1b6   : > { %v1801_v30 = vsel %vm561_vm1, %v1788_v9, %v1790_v15  ;;  %v1802_v16 = vsel %vm561_vm1, %v1790_v15, %v7721_v14  ;;  %2741 = vrot.lane.b32.xlu1 %v2719_v12, %s9359_s15  ;;  %v2916_v12 = vld [vmem:[%s7081_s21 + $0x68] sm:$0xf] }
 0x1b7   : > { %1817 = vst [vmem:[#allocation2 + $0xa0] sm:$0xf0] %v1801_v30  ;;  %1818 = vst [vmem:[#allocation2 + $0xa8] sm:$0xf0] %v1802_v16  ;;  %2739 = vrot.lane.b32.xlu0 %v2718_v13, %s9359_s15 }
 0x1b8   : > { %v1848_v29 = vpop.permute.xlu1 %1847 }
 0x1b9   : > { %v1846_v32 = vpop.permute.xlu0 %1845 }
 0x1ba   : > { %v1859_v33 = vsel %vm595_vm4, %v7355_v36, %v1846_v32  ;;  %v1860_v35 = vsel %vm595_vm4, %v1846_v32, %v1848_v29  ;;  %2745 = vrot.lane.b32.xlu1 %v2721_v20, %s9359_s15  ;;  %v3138_v30 = vld [vmem:[#allocation2 + $0x98] sm:$0xff]  ;;  %v3137_v26 = vld [vmem:[#allocation2 + $0x90] sm:$0xff] }
 0x1bb   : > { %1875 = vst [vmem:[#allocation2 + $0xd0] sm:$0xf] %v1859_v33  ;;  %1876 = vst [vmem:[#allocation2 + $0xd8] sm:$0xf] %v1860_v35  ;;  %2743 = vrot.lane.b32.xlu0 %v2720_v22, %s9359_s15  ;;  %v2935_v33 = vrot.slane %v2917_v34, 4  ;;  %v2934_v35 = vrot.slane %v2916_v12, 4 }
 0x1bc   : > { %v7739_v41 = vpop.permute.xlu1 %1851  ;;  %v2987_v34 = vld [vmem:[%s7081_s21 + $0x28] sm:$0xf] }
 0x1bd   : > { %v1850_v45 = vpop.permute.xlu0 %1849 }
 0x1be   : > { %v1861_v49 = vsel %vm595_vm4, %v1848_v29, %v1850_v45  ;;  %v1862_v36 = vsel %vm595_vm4, %v1850_v45, %v7739_v41  ;;  %2810 = vrot.lane.b32.xlu1 %v2797_v37, %s6762_s14  ;;  %v2919_v37 = vld [vmem:[%s7081_s21 + $0x80] sm:$0xf]  ;;  %v3140_v44 = vld [vmem:[#allocation2 + $0xa8] sm:$0xff] }
 0x1bf   : > { %1877 = vst [vmem:[#allocation2 + $0xe0] sm:$0xf] %v1861_v49  ;;  %1878 = vst [vmem:[#allocation2 + $0xe8] sm:$0xf] %v1862_v36  ;;  %2808 = vrot.lane.b32.xlu0 %v2796_v40, %s6762_s14  ;;  %v2918_v40 = vld [vmem:[%s7081_s21 + $0x78] sm:$0xf] }
 0x1c0   : > { %v1908_v60 = vpop.permute.xlu1 %1907  ;;  %v2937_v58 = vrot.slane %v2919_v37, 4 }
 0x1c1   : > { %v1906_v61 = vpop.permute.xlu0 %1905 }
 0x1c2   : > { %v1919_v63 = vsel %vm595_vm4, %v7370_v50, %v1906_v61  ;;  %v1920_v0 = vsel %vm595_vm4, %v1906_v61, %v1908_v60  ;;  %2814 = vrot.lane.b32.xlu1 %v2799_v52, %s6762_s14  ;;  %v3139_v52 = vld [vmem:[#allocation2 + $0xa0] sm:$0xff]  ;;  %v2936_v61 = vrot.slane %v2918_v40, 4 }
 0x1c3   : > { %1935 = vst [vmem:[#allocation2 + $0xd0] sm:$0xf0] %v1919_v63  ;;  %1936 = vst [vmem:[#allocation2 + $0xd8] sm:$0xf0] %v1920_v0  ;;  %2812 = vrot.lane.b32.xlu0 %v2798_v54, %s6762_s14  ;;  %v6779_v63 = vmov 0  }
 0x1c4   : > { %v7755_v6 = vpop.permute.xlu1 %1911  ;;  %6699 = vset.pattern.permute.xlu1 %v6779_v63  ;;  %6698 = vset.pattern.permute.xlu0 %v6779_v63 }
 0x1c5   : > { %v1910_v8 = vpop.permute.xlu0 %1909 }
 0x1c6   : > { %v1921_v9 = vsel %vm595_vm4, %v1908_v60, %v1910_v8  ;;  %v1922_v50 = vsel %vm595_vm4, %v1910_v8, %v7755_v6  ;;  %2879 = vrot.lane.b32.xlu1 %v2866_v1, %s6762_s14  ;;  %v2985_v8 = vld [vmem:[%s7081_s21 + $0x18] sm:$0xf] }
 0x1c7   : > { %1937 = vst [vmem:[#allocation2 + $0xe0] sm:$0xf0] %v1921_v9  ;;  %1938 = vst [vmem:[#allocation2 + $0xe8] sm:$0xf0] %v1922_v50  ;;  %2877 = vrot.lane.b32.xlu0 %v2865_v2, %s6762_s14 }
 0x1c8   : > { %v1968_v13 = vpop.permute.xlu1 %1967 }
 0x1c9   : > { %v1966_v15 = vpop.permute.xlu0 %1965 }
 0x1ca   : > { %v1979_v16 = vsel %vm612_vm5, %v7404_v24, %v1966_v15  ;;  %v1980_v20 = vsel %vm612_vm5, %v1966_v15, %v1968_v13  ;;  %v3146_v22 = vld [vmem:[#allocation2 + $0xd8] sm:$0xff]  ;;  %v3145_v5 = vld [vmem:[#allocation2 + $0xd0] sm:$0xff]  ;;  %2883 = vrot.lane.b32.xlu1 %v2868_v51, %s6762_s14 }
 0x1cb   : > { %1995 = vst [vmem:[#allocation2 + $0x110] sm:$0xf] %v1979_v16  ;;  %1996 = vst [vmem:[#allocation2 + $0x118] sm:$0xf] %v1980_v20  ;;  %2881 = vrot.lane.b32.xlu0 %v2867_v10, %s6762_s14  ;;  %v6312_v29 = vpack.c.bf16 %v3146_v22, %v3138_v30  ;;  %v6314_v32 = vpack.c.bf16 %v3145_v5, %v3137_v26  ;;  %v2988_v10 = vld [vmem:[%s7081_s21 + $0x30] sm:$0xf] }
 0x1cc   : > { %v7771_v43 = vpop.permute.xlu1 %1971  ;;  %v3046_v16 = vld [vmem:[%s7081_s21 + $0x20] sm:$0xf0]  ;;  %v3045_v20 = vld [vmem:[%s7081_s21 + $0x18] sm:$0xf0] }
 0x1cd   : > { %6313 = vmatprep.subr.bf16.mxu1 %v6312_v29  ;;  %v1970_v24 = vpop.permute.xlu0 %1969  ;;  %v3048_v29 = vld [vmem:[%s7081_s21 + $0x30] sm:$0xf0] }
 0x1ce   : > { %v1981_v45 = vsel %vm612_vm5, %v1968_v13, %v1970_v24  ;;  %v1982_v49 = vsel %vm612_vm5, %v1970_v24, %v7771_v43  ;;  %6315 = vmatpush1.bf16.msra.mxu1 %v6314_v32  ;;  %v3148_v36 = vld [vmem:[#allocation2 + $0xe8] sm:$0xff]  ;;  %v3147_v54 = vld [vmem:[#allocation2 + $0xe0] sm:$0xff]  ;;  %2948 = vrot.lane.b32.xlu1 %v2935_v33, %s9359_s15 }
 0x1cf   : > { %1997 = vst [vmem:[#allocation2 + $0x120] sm:$0xf] %v1981_v45  ;;  %1998 = vst [vmem:[#allocation2 + $0x128] sm:$0xf] %v1982_v49  ;;  %2946 = vrot.lane.b32.xlu0 %v2934_v35, %s9359_s15  ;;  %v6344_v25 = vpack.c.bf16 %v3148_v36, %v3140_v44  ;;  %v6346_v60 = vpack.c.bf16 %v3147_v54, %v3139_v52  ;;  %v3047_v32 = vld [vmem:[%s7081_s21 + $0x28] sm:$0xf0] }
 0x1d0   : > { %v2037_v0 = vpop.permute.xlu1 %2036  ;;  %v1442_v24 = vld [vmem:[%s7081_s21 + $0x40] sm:$0xf]  ;;  %v1441_v44 = vld [vmem:[%s7081_s21 + $0x38] sm:$0xf]  ;;  %v1502_v52 = vld [vmem:[%s7081_s21 + $0x40] sm:$0xf0] }
 0x1d1   : > { %6345 = vmatprep.subr.bf16.mxu0 %v6344_v25  ;;  %v2035_v1 = vpop.permute.xlu0 %2034  ;;  %v1501_v54 = vld [vmem:[%s7081_s21 + $0x38] sm:$0xf0] }
 0x1d2   : > { %v2048_v2 = vsel %vm545_vm2, %v7416_v31, %v2035_v1  ;;  %v2049_v3 = vsel %vm545_vm2, %v2035_v1, %v2037_v0  ;;  %6347 = vmatpush1.bf16.msra.mxu0 %v6346_v60  ;;  %2952 = vrot.lane.b32.xlu1 %v2937_v58, %s9359_s15 }
 0x1d3   : > { %2064 = vst [vmem:[#allocation2 + $0x110] sm:$0xf0] %v2048_v2  ;;  %2065 = vst [vmem:[#allocation2 + $0x118] sm:$0xf0] %v2049_v3  ;;  %2950 = vrot.lane.b32.xlu0 %v2936_v61, %s9359_s15 }
 0x1d4   : > { %v7785_v9 = vpop.permute.xlu1 %2040 }
 0x1d5   : > { %v2039_v50 = vpop.permute.xlu0 %2038 }
 0x1d6   : > { %v2050_v51 = vsel %vm545_vm2, %v2037_v0, %v2039_v50  ;;  %v2051_v31 = vsel %vm545_vm2, %v2039_v50, %v7785_v9  ;;  %3008 = vrot.lane.b32.xlu1 %v2986_v4, %s9355_s19  ;;  %v1561_v50 = vld [vmem:[%s7081_s21 + $0x38] sm:$0xf] }
 0x1d7   : > { %2066 = vst [vmem:[#allocation2 + $0x120] sm:$0xf0] %v2050_v51  ;;  %2067 = vst [vmem:[#allocation2 + $0x128] sm:$0xf0] %v2051_v31  ;;  %3006 = vrot.lane.b32.xlu0 %v2985_v8, %s9355_s19  ;;  %v1562_v8 = vld [vmem:[%s7081_s21 + $0x40] sm:$0xf] }
 0x1d8   : > { %v2106_v12 = vpop.permute.xlu1 %2105  ;;  %v1622_v51 = vld [vmem:[%s7081_s21 + $0x90] sm:$0xf]  ;;  %v1621_v31 = vld [vmem:[%s7081_s21 + $0x88] sm:$0xf] }
 0x1d9   : > { %v2104_v13 = vpop.permute.xlu0 %2103 }
 0x1da   : > { %v2117_v15 = vsel %vm545_vm2, %v7429_v39, %v2104_v13  ;;  %v2118_v30 = vsel %vm545_vm2, %v2104_v13, %v2106_v12  ;;  %3012 = vrot.lane.b32.xlu1 %v2988_v10, %s9355_s19  ;;  %v3154_v60 = vld [vmem:[#allocation2 + $0x118] sm:$0xff]  ;;  %v3153_v1 = vld [vmem:[#allocation2 + $0x110] sm:$0xff] }
 0x1db   : > { %2133 = vst [vmem:[#allocation2 + $0x150] sm:$0xf] %v2117_v15  ;;  %2134 = vst [vmem:[#allocation2 + $0x158] sm:$0xf] %v2118_v30  ;;  %3010 = vrot.lane.b32.xlu0 %v2987_v34, %s9355_s19 }
 0x1dc   : > { %v7801_v22 = vpop.permute.xlu1 %2109 }
 0x1dd   : > { %v2108_v26 = vpop.permute.xlu0 %2107 }
 0x1de   : > { %v2119_v5 = vsel %vm545_vm2, %v2106_v12, %v2108_v26  ;;  %v2120_v39 = vsel %vm545_vm2, %v2108_v26, %v7801_v22  ;;  %3068 = vrot.lane.b32.xlu1 %v3046_v16, %s9355_s19  ;;  %v3156_v34 = vld [vmem:[#allocation2 + $0x128] sm:$0xff]  ;;  %v3155_v30 = vld [vmem:[#allocation2 + $0x120] sm:$0xff] }
 0x1df   : > { %2135 = vst [vmem:[#allocation2 + $0x160] sm:$0xf] %v2119_v5  ;;  %2136 = vst [vmem:[#allocation2 + $0x168] sm:$0xf] %v2120_v39  ;;  %3066 = vrot.lane.b32.xlu0 %v3045_v20, %s9355_s19  ;;  %v1640_v5 = vrot.slane %v1622_v51, 4  ;;  %v1639_v39 = vrot.slane %v1621_v31, 4 }
 0x1e0   : > { %v2175_v33 = vpop.permute.xlu1 %2174  ;;  %v1888_v51 = vld [vmem:[%s7081_s21 + $0x38] sm:$0xf0] }
 0x1e1   : > { %v2173_v35 = vpop.permute.xlu0 %2172 }
 0x1e2   : > { %v2186_v37 = vsel %vm561_vm1, %v7444_v48, %v2173_v35  ;;  %v2187_v40 = vsel %vm561_vm1, %v2173_v35, %v2175_v33  ;;  %3072 = vrot.lane.b32.xlu1 %v3048_v29, %s9355_s19  ;;  %v1691_v29 = vld [vmem:[%s7081_s21 + $0x90] sm:$0xf0] }
 0x1e3   : > { %2202 = vst [vmem:[#allocation2 + $0x150] sm:$0xf0] %v2186_v37  ;;  %2203 = vst [vmem:[#allocation2 + $0x158] sm:$0xf0] %v2187_v40  ;;  %3070 = vrot.lane.b32.xlu0 %v3047_v32, %s9355_s19  ;;  %v1690_v32 = vld [vmem:[%s7081_s21 + $0x88] sm:$0xf0] }
 0x1e4   : > { %v7817_v45 = vpop.permute.xlu1 %2178 }
 0x1e5   : > { %v2177_v49 = vpop.permute.xlu0 %2176 }
 0x1e6   : > { %v2188_v36 = vsel %vm561_vm1, %v2175_v33, %v2177_v49  ;;  %v2189_v48 = vsel %vm561_vm1, %v2177_v49, %v7817_v45  ;;  %1468 = vrot.lane.b32.xlu1 %v1442_v24, %s6754_s25  ;;  %v1709_v24 = vrot.slane %v1691_v29, 4  ;;  %v1760_v49 = vld [vmem:[%s7081_s21 + $0x90] sm:$0xf] }
 0x1e7   : > { %2204 = vst [vmem:[#allocation2 + $0x160] sm:$0xf0] %v2188_v36  ;;  %2205 = vst [vmem:[#allocation2 + $0x168] sm:$0xf0] %v2189_v48  ;;  %1466 = vrot.lane.b32.xlu0 %v1441_v44, %s6754_s25  ;;  %v1708_v44 = vrot.slane %v1690_v32, 4 }
 0x1e8   : > { %v2235_v58 = vpop.permute.xlu1 %2234  ;;  %v1759_v36 = vld [vmem:[%s7081_s21 + $0x88] sm:$0xf]  ;;  %v2078_v32 = vld [vmem:[%s7081_s21 + $0xe0] sm:$0xf0] }
 0x1e9   : > { %v2233_v25 = vpop.permute.xlu0 %2232 }
 0x1ea   : > { %v2246_v61 = vsel %vm545_vm2, %v7475_v23, %v2233_v25  ;;  %v2247_v63 = vsel %vm545_vm2, %v2233_v25, %v2235_v58  ;;  %v3162_v0 = vld [vmem:[#allocation2 + $0x158] sm:$0xff]  ;;  %v3161_v2 = vld [vmem:[#allocation2 + $0x150] sm:$0xff]  ;;  %1528 = vrot.lane.b32.xlu1 %v1502_v52, %s6754_s25  ;;  %v1777_v25 = vrot.slane %v1759_v36, 4 }
 0x1eb   : > { %2262 = vst [vmem:[#allocation2 + $0x190] sm:$0xf] %v2246_v61  ;;  %2263 = vst [vmem:[#allocation2 + $0x198] sm:$0xf] %v2247_v63  ;;  %1526 = vrot.lane.b32.xlu0 %v1501_v54, %s6754_s25  ;;  %v6316_v3 = vpack.c.bf16 %v3162_v0, %v3154_v60  ;;  %v6318_v4 = vpack.c.bf16 %v3161_v2, %v3153_v1  ;;  %v1829_v1 = vld [vmem:[%s7081_s21 + $0x40] sm:$0xf] }
 0x1ec   : > { %v7835_v10 = vpop.permute.xlu1 %2238  ;;  %v1828_v2 = vld [vmem:[%s7081_s21 + $0x38] sm:$0xf] }
 0x1ed   : > { %6317 = vmatprep.subr.bf16.mxu1 %v6316_v3  ;;  %v2237_v23 = vpop.permute.xlu0 %2236 }
 0x1ee   : > { %v2248_v12 = vsel %vm545_vm2, %v2235_v58, %v2237_v23  ;;  %v2249_v13 = vsel %vm545_vm2, %v2237_v23, %v7835_v10  ;;  %6319 = vmatpush1.bf16.msra.mxu1 %v6318_v4  ;;  %v3164_v15 = vld [vmem:[#allocation2 + $0x168] sm:$0xff]  ;;  %v3163_v16 = vld [vmem:[#allocation2 + $0x160] sm:$0xff]  ;;  %1588 = vrot.lane.b32.xlu1 %v1562_v8, %s6753_s24  ;;  %v1778_v58 = vrot.slane %v1760_v49, 4 }
 0x1ef   : > { %2264 = vst [vmem:[#allocation2 + $0x1a0] sm:$0xf] %v2248_v12  ;;  %2265 = vst [vmem:[#allocation2 + $0x1a8] sm:$0xf] %v2249_v13  ;;  %1586 = vrot.lane.b32.xlu0 %v1561_v50, %s6753_s24  ;;  %v6348_v20 = vpack.c.bf16 %v3164_v15, %v3156_v34  ;;  %v6350_v26 = vpack.c.bf16 %v3163_v16, %v3155_v30  ;;  %v1889_v50 = vld [vmem:[%s7081_s21 + $0x40] sm:$0xf0] }
 0x1f0   : > { %v2295_v33 = vpop.permute.xlu1 %2294  ;;  %v1949_v13 = vld [vmem:[%s7081_s21 + $0x40] sm:$0xf]  ;;  %v1948_v15 = vld [vmem:[%s7081_s21 + $0x38] sm:$0xf] }
 0x1f1   : > { %6349 = vmatprep.subr.bf16.mxu0 %v6348_v20  ;;  %v2293_v35 = vpop.permute.xlu0 %2292  ;;  %v2009_v30 = vld [vmem:[%s7081_s21 + $0xe0] sm:$0xf]  ;;  %v2008_v16 = vld [vmem:[%s7081_s21 + $0xd8] sm:$0xf] }
 0x1f2   : > { %v2306_v37 = vsel %vm545_vm2, %v7485_v42, %v2293_v35  ;;  %v2307_v40 = vsel %vm545_vm2, %v2293_v35, %v2295_v33  ;;  %6351 = vmatpush1.bf16.msra.mxu0 %v6350_v26  ;;  %1657 = vrot.lane.b32.xlu1 %v1640_v5, %s6754_s25  ;;  %v2026_v29 = vrot.slane %v2008_v16, 4  ;;  %v2215_v16 = vld [vmem:[%s7081_s21 + $0x128] sm:$0xf] }
 0x1f3   : > { %2322 = vst [vmem:[#allocation2 + $0x190] sm:$0xf0] %v2306_v37  ;;  %2323 = vst [vmem:[#allocation2 + $0x198] sm:$0xf0] %v2307_v40  ;;  %1655 = vrot.lane.b32.xlu0 %v1639_v39, %s6754_s25  ;;  %v2027_v39 = vrot.slane %v2009_v30, 4 }
 0x1f4   : > { %v7851_v48 = vpop.permute.xlu1 %2298  ;;  %v2216_v30 = vld [vmem:[%s7081_s21 + $0x130] sm:$0xf] }
 0x1f5   : > { %v2297_v52 = vpop.permute.xlu0 %2296 }
 0x1f6   : > { %v2308_v54 = vsel %vm545_vm2, %v2295_v33, %v2297_v52  ;;  %v2309_v42 = vsel %vm545_vm2, %v2297_v52, %v7851_v48  ;;  %1726 = vrot.lane.b32.xlu1 %v1709_v24, %s6754_s25  ;;  %v2077_v33 = vld [vmem:[%s7081_s21 + $0xd8] sm:$0xf0] }
 0x1f7   : > { %2324 = vst [vmem:[#allocation2 + $0x1a0] sm:$0xf0] %v2308_v54  ;;  %2325 = vst [vmem:[#allocation2 + $0x1a8] sm:$0xf0] %v2309_v42  ;;  %1724 = vrot.lane.b32.xlu0 %v1708_v44, %s6754_s25 }
 0x1f8   : > { %v2355_v60 = vpop.permute.xlu1 %2354 }
 0x1f9   : > { %v2353_v61 = vpop.permute.xlu0 %2352 }
 0x1fa   : > { %v2366_v63 = vsel %vm561_vm1, %v7493_v55, %v2353_v61  ;;  %v2367_v0 = vsel %vm561_vm1, %v2353_v61, %v2355_v60  ;;  %1795 = vrot.lane.b32.xlu1 %v1778_v58, %s6753_s24  ;;  %v3170_v40 = vld [vmem:[#allocation2 + $0x198] sm:$0xff]  ;;  %v3169_v36 = vld [vmem:[#allocation2 + $0x190] sm:$0xff]  ;;  %v2096_v58 = vrot.slane %v2078_v32, 4 }
 0x1fb   : > { %2382 = vst [vmem:[#allocation2 + $0x1d0] sm:$0xf] %v2366_v63  ;;  %2383 = vst [vmem:[#allocation2 + $0x1d8] sm:$0xf] %v2367_v0  ;;  %1793 = vrot.lane.b32.xlu0 %v1777_v25, %s6753_s24  ;;  %v2095_v25 = vrot.slane %v2077_v33, 4 }
 0x1fc   : > { %v7865_v3 = vpop.permute.xlu1 %2358  ;;  %v2146_v61 = vld [vmem:[%s7081_s21 + $0xd8] sm:$0xf] }
 0x1fd   : > { %v2357_v4 = vpop.permute.xlu0 %2356 }
 0x1fe   : > { %v2368_v8 = vsel %vm561_vm1, %v2355_v60, %v2357_v4  ;;  %v2369_v55 = vsel %vm561_vm1, %v2357_v4, %v7865_v3  ;;  %1855 = vrot.lane.b32.xlu1 %v1829_v1, %s6756_s27  ;;  %v2147_v60 = vld [vmem:[%s7081_s21 + $0xe0] sm:$0xf]  ;;  %v3172_v0 = vld [vmem:[#allocation2 + $0x1a8] sm:$0xff] }
 0x1ff   : > { %2384 = vst [vmem:[#allocation2 + $0x1e0] sm:$0xf] %v2368_v8  ;;  %2385 = vst [vmem:[#allocation2 + $0x1e8] sm:$0xf] %v2369_v55  ;;  %1853 = vrot.lane.b32.xlu0 %v1828_v2, %s6756_s27  ;;  %v3171_v8 = vld [vmem:[#allocation2 + $0x1a0] sm:$0xff] }
 0x200   : > { %v2424_v31 = vpop.permute.xlu1 %2423 }
 0x201   : > { %v2422_v23 = vpop.permute.xlu0 %2421 }
 0x202   : > { %v2435_v34 = vsel %vm595_vm4, %v7499_v62, %v2422_v23  ;;  %v2436_v12 = vsel %vm595_vm4, %v2422_v23, %v2424_v31  ;;  %1915 = vrot.lane.b32.xlu1 %v1889_v50, %s6756_s27  ;;  %v2164_v23 = vrot.slane %v2146_v61, 4 }
 0x203   : > { %2451 = vst [vmem:[#allocation2 + $0x1d0] sm:$0xf0] %v2435_v34  ;;  %2452 = vst [vmem:[#allocation2 + $0x1d8] sm:$0xf0] %v2436_v12  ;;  %1913 = vrot.lane.b32.xlu0 %v1888_v51, %s6756_s27 }
 0x204   : > { %v7883_v20 = vpop.permute.xlu1 %2427 }
 0x205   : > { %v2426_v26 = vpop.permute.xlu0 %2425 }
 0x206   : > { %v2437_v5 = vsel %vm595_vm4, %v2424_v31, %v2426_v26  ;;  %v2438_v62 = vsel %vm595_vm4, %v2426_v26, %v7883_v20  ;;  %1975 = vrot.lane.b32.xlu1 %v1949_v13, %s6757_s28  ;;  %v2165_v31 = vrot.slane %v2147_v60, 4  ;;  %v2464_v60 = vld [vmem:[%s7081_s21 + $0xd8] sm:$0xf0] }
 0x207   : > { %2453 = vst [vmem:[#allocation2 + $0x1e0] sm:$0xf0] %v2437_v5  ;;  %2454 = vst [vmem:[#allocation2 + $0x1e8] sm:$0xf0] %v2438_v62  ;;  %1973 = vrot.lane.b32.xlu0 %v1948_v15, %s6757_s28 }
 0x208   : > { %v2493_v35 = vpop.permute.xlu1 %2492 }
 0x209   : > { %v2491_v37 = vpop.permute.xlu0 %2490 }
 0x20a   : > { %v2504_v24 = vsel %vm595_vm4, %v7519_v19, %v2491_v37  ;;  %v2505_v44 = vsel %vm595_vm4, %v2491_v37, %v2493_v35  ;;  %v3178_v49 = vld [vmem:[#allocation2 + $0x1d8] sm:$0xff]  ;;  %v3177_v52 = vld [vmem:[#allocation2 + $0x1d0] sm:$0xff]  ;;  %2044 = vrot.lane.b32.xlu1 %v2027_v39, %s6754_s25 }
 0x20b   : > { %2520 = vst [vmem:[#allocation2 + $0x210] sm:$0xf] %v2504_v24  ;;  %2521 = vst [vmem:[#allocation2 + $0x218] sm:$0xf] %v2505_v44  ;;  %2042 = vrot.lane.b32.xlu0 %v2026_v29, %s6754_s25  ;;  %v6320_v54 = vpack.c.bf16 %v3178_v49, %v3170_v40  ;;  %v6322_v42 = vpack.c.bf16 %v3177_v52, %v3169_v36  ;;  %v2276_v39 = vld [vmem:[%s7081_s21 + $0x130] sm:$0xf0] }
 0x20c   : > { %v7899_v63 = vpop.permute.xlu1 %2496  ;;  %v2275_v29 = vld [vmem:[%s7081_s21 + $0x128] sm:$0xf0]  ;;  %v2336_v40 = vld [vmem:[%s7081_s21 + $0x130] sm:$0xf]  ;;  %v2335_v24 = vld [vmem:[%s7081_s21 + $0x128] sm:$0xf] }
 0x20d   : > { %6321 = vmatprep.subr.bf16.mxu1 %v6320_v54  ;;  %v2495_v19 = vpop.permute.xlu0 %2494  ;;  %v2396_v44 = vld [vmem:[%s7081_s21 + $0xe0] sm:$0xf]  ;;  %v2395_v49 = vld [vmem:[%s7081_s21 + $0xd8] sm:$0xf] }
 0x20e   : > { %v2506_v1 = vsel %vm595_vm4, %v2493_v35, %v2495_v19  ;;  %v2507_v2 = vsel %vm595_vm4, %v2495_v19, %v7899_v63  ;;  %6323 = vmatpush1.bf16.msra.mxu1 %v6322_v42  ;;  %v3180_v4 = vld [vmem:[#allocation2 + $0x1e8] sm:$0xff]  ;;  %v3179_v55 = vld [vmem:[#allocation2 + $0x1e0] sm:$0xff]  ;;  %2113 = vrot.lane.b32.xlu1 %v2096_v58, %s6754_s25  ;;  %v2414_v42 = vrot.slane %v2396_v44, 4  ;;  %v2413_v58 = vrot.slane %v2395_v49, 4 }
 0x20f   : > { %2522 = vst [vmem:[#allocation2 + $0x220] sm:$0xf] %v2506_v1  ;;  %2523 = vst [vmem:[#allocation2 + $0x228] sm:$0xf] %v2507_v2  ;;  %2111 = vrot.lane.b32.xlu0 %v2095_v25, %s6754_s25  ;;  %v6352_v50 = vpack.c.bf16 %v3180_v4, %v3172_v0  ;;  %v6354_v51 = vpack.c.bf16 %v3179_v55, %v3171_v8  ;;  %v2465_v25 = vld [vmem:[%s7081_s21 + $0xe0] sm:$0xf0] }
 0x210   : > { %v2562_v34 = vpop.permute.xlu1 %2561  ;;  %v2483_v2 = vrot.slane %v2465_v25, 4  ;;  %v2482_v4 = vrot.slane %v2464_v60, 4  ;;  %v2534_v8 = vld [vmem:[%s7081_s21 + $0xe0] sm:$0xf]  ;;  %v2533_v55 = vld [vmem:[%s7081_s21 + $0xd8] sm:$0xf] }
 0x211   : > { %6353 = vmatprep.subr.bf16.mxu0 %v6352_v50  ;;  %v2560_v12 = vpop.permute.xlu0 %2559 }
 0x212   : > { %v2573_v13 = vsel %vm612_vm5, %v7527_v27, %v2560_v12  ;;  %v2574_v15 = vsel %vm612_vm5, %v2560_v12, %v2562_v34  ;;  %6355 = vmatpush1.bf16.msra.mxu0 %v6354_v51  ;;  %2182 = vrot.lane.b32.xlu1 %v2165_v31, %s6753_s24 }
 0x213   : > { %2589 = vst [vmem:[#allocation2 + $0x210] sm:$0xf0] %v2573_v13  ;;  %2590 = vst [vmem:[#allocation2 + $0x218] sm:$0xf0] %v2574_v15  ;;  %2180 = vrot.lane.b32.xlu0 %v2164_v23, %s6753_s24  ;;  %v2552_v23 = vrot.slane %v2534_v8, 4 }
 0x214   : > { %v7913_v26 = vpop.permute.xlu1 %2565 }
 0x215   : > { %v2564_v5 = vpop.permute.xlu0 %2563 }
 0x216   : > { %v2575_v62 = vsel %vm612_vm5, %v2562_v34, %v2564_v5  ;;  %v2576_v27 = vsel %vm612_vm5, %v2564_v5, %v7913_v26  ;;  %2242 = vrot.lane.b32.xlu1 %v2216_v30, %s6754_s25  ;;  %v2551_v34 = vrot.slane %v2533_v55, 4 }
 0x217   : > { %2591 = vst [vmem:[#allocation2 + $0x220] sm:$0xf0] %v2575_v62  ;;  %2592 = vst [vmem:[#allocation2 + $0x228] sm:$0xf0] %v2576_v27  ;;  %2240 = vrot.lane.b32.xlu0 %v2215_v16, %s6754_s25 }
 0x218   : > { %v2622_v32 = vpop.permute.xlu1 %2621 }
 0x219   : > { %v2620_v33 = vpop.permute.xlu0 %2619 }
 0x21a   : > { %v2633_v35 = vsel %vm697_vm10, %v7535_v38, %v2620_v33  ;;  %v2634_v37 = vsel %vm697_vm10, %v2620_v33, %v2622_v32  ;;  %2302 = vrot.lane.b32.xlu1 %v2276_v39, %s6754_s25  ;;  %v3186_v15 = vld [vmem:[#allocation2 + $0x218] sm:$0xff]  ;;  %v3185_v62 = vld [vmem:[#allocation2 + $0x210] sm:$0xff] }
 0x21b   : > { %2649 = vst [vmem:[#allocation2 + $0x250] sm:$0xf] %v2633_v35  ;;  %2650 = vst [vmem:[#allocation2 + $0x258] sm:$0xf] %v2634_v37  ;;  %2300 = vrot.lane.b32.xlu0 %v2275_v29, %s6754_s25  ;;  %v2602_v33 = vld [vmem:[%s7081_s21 + $0x38] sm:$0xf] }
 0x21c   : > { %v7931_v36 = vpop.permute.xlu1 %2625 }
 0x21d   : > { %v2624_v52 = vpop.permute.xlu0 %2623 }
 0x21e   : > { %v2635_v54 = vsel %vm697_vm10, %v2622_v32, %v2624_v52  ;;  %v2636_v38 = vsel %vm697_vm10, %v2624_v52, %v7931_v36  ;;  %2362 = vrot.lane.b32.xlu1 %v2336_v40, %s6753_s24  ;;  %v2603_v32 = vld [vmem:[%s7081_s21 + $0x40] sm:$0xf]  ;;  %v3188_v37 = vld [vmem:[#allocation2 + $0x228] sm:$0xff] }
 0x21f   : > { %2651 = vst [vmem:[#allocation2 + $0x260] sm:$0xf] %v2635_v54  ;;  %2652 = vst [vmem:[#allocation2 + $0x268] sm:$0xf] %v2636_v38  ;;  %2360 = vrot.lane.b32.xlu0 %v2335_v24, %s6753_s24  ;;  %v3187_v49 = vld [vmem:[#allocation2 + $0x220] sm:$0xff] }
 0x220   : > { %v2682_v61 = vpop.permute.xlu1 %2681 }
 0x221   : > { %v2680_v19 = vpop.permute.xlu0 %2679 }
 0x222   : > { %v2693_v0 = vsel %vm697_vm10, %v7545_v47, %v2680_v19  ;;  %v2694_v1 = vsel %vm697_vm10, %v2680_v19, %v2682_v61  ;;  %2431 = vrot.lane.b32.xlu1 %v2414_v42, %s6756_s27  ;;  %v2663_v42 = vld [vmem:[%s7081_s21 + $0x40] sm:$0xf0] }
 0x223   : > { %2709 = vst [vmem:[#allocation2 + $0x250] sm:$0xf0] %v2693_v0  ;;  %2710 = vst [vmem:[#allocation2 + $0x258] sm:$0xf0] %v2694_v1  ;;  %2429 = vrot.lane.b32.xlu0 %v2413_v58, %s6756_s27  ;;  %v2662_v58 = vld [vmem:[%s7081_s21 + $0x38] sm:$0xf0] }
 0x224   : > { %v7947_v50 = vpop.permute.xlu1 %2685  ;;  %v2723_v0 = vld [vmem:[%s7081_s21 + $0x40] sm:$0xf]  ;;  %v2722_v1 = vld [vmem:[%s7081_s21 + $0x38] sm:$0xf] }
 0x225   : > { %v2684_v51 = vpop.permute.xlu0 %2683 }
 0x226   : > { %v2695_v31 = vsel %vm697_vm10, %v2682_v61, %v2684_v51  ;;  %v2696_v47 = vsel %vm697_vm10, %v2684_v51, %v7947_v50  ;;  %2500 = vrot.lane.b32.xlu1 %v2483_v2, %s6756_s27  ;;  %v2783_v2 = vld [vmem:[%s7081_s21 + $0x90] sm:$0xf] }
 0x227   : > { %2711 = vst [vmem:[#allocation2 + $0x260] sm:$0xf0] %v2695_v31  ;;  %2712 = vst [vmem:[#allocation2 + $0x268] sm:$0xf0] %v2696_v47  ;;  %2498 = vrot.lane.b32.xlu0 %v2482_v4, %s6756_s27  ;;  %v2782_v4 = vld [vmem:[%s7081_s21 + $0x88] sm:$0xf] }
 0x228   : > { %v2742_v12 = vpop.permute.xlu1 %2741  ;;  %v2801_v31 = vrot.slane %v2783_v2, 4  ;;  %v2800_v47 = vrot.slane %v2782_v4, 4 }
 0x229   : > { %v2740_v13 = vpop.permute.xlu0 %2739 }
 0x22a   : > { %v2753_v30 = vsel %vm714_vm11, %v7565_v18, %v2740_v13  ;;  %v2754_v16 = vsel %vm714_vm11, %v2740_v13, %v2742_v12  ;;  %v3194_v5 = vld [vmem:[#allocation2 + $0x258] sm:$0xff]  ;;  %v3193_v27 = vld [vmem:[#allocation2 + $0x250] sm:$0xff]  ;;  %2569 = vrot.lane.b32.xlu1 %v2552_v23, %s6757_s28 }
 0x22b   : > { %2769 = vst [vmem:[#allocation2 + $0x290] sm:$0xf] %v2753_v30  ;;  %2770 = vst [vmem:[#allocation2 + $0x298] sm:$0xf] %v2754_v16  ;;  %2567 = vrot.lane.b32.xlu0 %v2551_v34, %s6757_s28  ;;  %v6324_v39 = vpack.c.bf16 %v3194_v5, %v3186_v15  ;;  %v6326_v29 = vpack.c.bf16 %v3193_v27, %v3185_v62  ;;  %v2852_v23 = vld [vmem:[%s7081_s21 + $0x90] sm:$0xf0] }
 0x22c   : > { %v7961_v35 = vpop.permute.xlu1 %2745  ;;  %v2851_v34 = vld [vmem:[%s7081_s21 + $0x88] sm:$0xf0]  ;;  %v2870_v16 = vrot.slane %v2852_v23, 4  ;;  %v2921_v62 = vld [vmem:[%s7081_s21 + $0x90] sm:$0xf] }
 0x22d   : > { %6325 = vmatprep.subr.bf16.mxu1 %v6324_v39  ;;  %v2744_v18 = vpop.permute.xlu0 %2743  ;;  %v2869_v5 = vrot.slane %v2851_v34, 4  ;;  %v2920_v27 = vld [vmem:[%s7081_s21 + $0x88] sm:$0xf]  ;;  %v1392_v34 = vld [vmem:[%s9308_s4] sm:$0xf] }
 0x22e   : > { %v2755_v40 = vsel %vm714_vm11, %v2742_v12, %v2744_v18  ;;  %v2756_v24 = vsel %vm714_vm11, %v2744_v18, %v7961_v35  ;;  %6327 = vmatpush1.bf16.msra.mxu1 %v6326_v29  ;;  %v3196_v44 = vld [vmem:[#allocation2 + $0x268] sm:$0xff]  ;;  %v3195_v52 = vld [vmem:[#allocation2 + $0x260] sm:$0xff]  ;;  %2629 = vrot.lane.b32.xlu1 %v2603_v32, %s6762_s14  ;;  %v2938_v18 = vrot.slane %v2920_v27, 4 }
 0x22f   : > { %2771 = vst [vmem:[#allocation2 + $0x2a0] sm:$0xf] %v2755_v40  ;;  %2772 = vst [vmem:[#allocation2 + $0x2a8] sm:$0xf] %v2756_v24  ;;  %2627 = vrot.lane.b32.xlu0 %v2602_v33, %s6762_s14  ;;  %v6356_v54 = vpack.c.bf16 %v3196_v44, %v3188_v37  ;;  %v6358_v38 = vpack.c.bf16 %v3195_v52, %v3187_v49  ;;  %v2939_v33 = vrot.slane %v2921_v62, 4  ;;  %v8005_v49 = vpop.f32.mrb[0].mxu0 }
 0x230   : > { %v2811_v25 = vpop.permute.xlu1 %2810  ;;  %v2990_v52 = vld [vmem:[%s7081_s21 + $0x40] sm:$0xf] }
 0x231   : > { %6357 = vmatprep.subr.bf16.mxu0 %v6356_v54  ;;  %v2809_v60 = vpop.permute.xlu0 %2808  ;;  %v2989_v54 = vld [vmem:[%s7081_s21 + $0x38] sm:$0xf] }
 0x232   : > { %v2822_v61 = vsel %vm697_vm10, %v7573_v53, %v2809_v60  ;;  %v2823_v19 = vsel %vm697_vm10, %v2809_v60, %v2811_v25  ;;  %6359 = vmatpush1.bf16.msra.mxu0 %v6358_v38  ;;  %2689 = vrot.lane.b32.xlu1 %v2663_v42, %s6762_s14  ;;  %v3049_v60 = vld [vmem:[%s7081_s21 + $0x38] sm:$0xf0] }
 0x233   : > { %2838 = vst [vmem:[#allocation2 + $0x290] sm:$0xf0] %v2822_v61  ;;  %2839 = vst [vmem:[#allocation2 + $0x298] sm:$0xf0] %v2823_v19  ;;  %2687 = vrot.lane.b32.xlu0 %v2662_v58, %s6762_s14 }
 0x234   : > { %v7979_v8 = vpop.permute.xlu1 %2814 }
 0x235   : > { %v2813_v55 = vpop.permute.xlu0 %2812 }
 0x236   : > { %v2824_v53 = vsel %vm697_vm10, %v2811_v25, %v2813_v55  ;;  %v2825_v51 = vsel %vm697_vm10, %v2813_v55, %v7979_v8  ;;  %2749 = vrot.lane.b32.xlu1 %v2723_v0, %s9359_s15  ;;  %v3050_v25 = vld [vmem:[%s7081_s21 + $0x40] sm:$0xf0]  ;;  %s9370_s21 = smov 38  }
 0x237   : > { %2840 = vst [vmem:[#allocation2 + $0x2a0] sm:$0xf0] %v2824_v53  ;;  %2841 = vst [vmem:[#allocation2 + $0x2a8] sm:$0xf0] %v2825_v51  ;;  %2747 = vrot.lane.b32.xlu0 %v2722_v1, %s9359_s15  ;;  %v8023_v51 = vpop.f32.mrb[1].mxu0 }
 0x238   : > { %v2880_v12 = vpop.permute.xlu1 %2879  ;;  %v8031_v23 = vpop.f32.mrb[2].mxu0 }
 0x239   : > { %v2878_v13 = vpop.permute.xlu0 %2877 }
 0x23a   : > { %v2891_v15 = vsel %vm697_vm10, %v7581_v46, %v2878_v13  ;;  %v2892_v30 = vsel %vm697_vm10, %v2878_v13, %v2880_v12  ;;  %2818 = vrot.lane.b32.xlu1 %v2801_v31, %s6762_s14  ;;  %v3202_v0 = vld [vmem:[#allocation2 + $0x298] sm:$0xff]  ;;  %v3201_v55 = vld [vmem:[#allocation2 + $0x290] sm:$0xff] }
 0x23b   : > { %2907 = vst [vmem:[#allocation2 + $0x2d0] sm:$0xf] %v2891_v15  ;;  %2908 = vst [vmem:[#allocation2 + $0x2d8] sm:$0xf] %v2892_v30  ;;  %2816 = vrot.lane.b32.xlu0 %v2800_v47, %s6762_s14 }
 0x23c   : > { %v7995_v39 = vpop.permute.xlu1 %2883 }
 0x23d   : > { %v2882_v29 = vpop.permute.xlu0 %2881 }
 0x23e   : > { %v2893_v32 = vsel %vm697_vm10, %v2880_v12, %v2882_v29  ;;  %v2894_v46 = vsel %vm697_vm10, %v2882_v29, %v7995_v39  ;;  %2887 = vrot.lane.b32.xlu1 %v2870_v16, %s6762_s14  ;;  %v8039_v12 = vpop.f32.mrb[3].mxu0  ;;  %v3204_v30 = vld [vmem:[#allocation2 + $0x2a8] sm:$0xff]  ;;  %v3203_v27 = vld [vmem:[#allocation2 + $0x2a0] sm:$0xff] }
 0x23f   : > { %2909 = vst [vmem:[#allocation2 + $0x2e0] sm:$0xf] %v2893_v32  ;;  %2910 = vst [vmem:[#allocation2 + $0x2e8] sm:$0xf] %v2894_v46  ;;  %2885 = vrot.lane.b32.xlu0 %v2869_v5, %s6762_s14 }
 0x240   : > { %v2949_v37 = vpop.permute.xlu1 %2948 }
 0x241   : > { %v2947_v40 = vpop.permute.xlu0 %2946 }
 0x242   : > { %v2960_v24 = vsel %vm714_vm11, %v7587_v59, %v2947_v40  ;;  %v2961_v44 = vsel %vm714_vm11, %v2947_v40, %v2949_v37  ;;  %2956 = vrot.lane.b32.xlu1 %v2939_v33, %s9359_s15  ;;  %v4034_v33 = vld [vmem:[%s9312_s8] sm:$0xf] }
 0x243   : > { %2976 = vst [vmem:[#allocation2 + $0x2d0] sm:$0xf0] %v2960_v24  ;;  %2977 = vst [vmem:[#allocation2 + $0x2d8] sm:$0xf0] %v2961_v44  ;;  %2954 = vrot.lane.b32.xlu0 %v2938_v18, %s9359_s15 }
 0x244   : > { %v8011_v38 = vpop.permute.xlu1 %2952 }
 0x245   : > { %v2951_v42 = vpop.permute.xlu0 %2950 }
 0x246   : > { %v2962_v58 = vsel %vm714_vm11, %v2949_v37, %v2951_v42  ;;  %v2963_v59 = vsel %vm714_vm11, %v2951_v42, %v8011_v38  ;;  %3016 = vrot.lane.b32.xlu1 %v2990_v52, %s9355_s19 }
 0x247   : > { %2978 = vst [vmem:[#allocation2 + $0x2e0] sm:$0xf0] %v2962_v58  ;;  %2979 = vst [vmem:[#allocation2 + $0x2e8] sm:$0xf0] %v2963_v59  ;;  %3014 = vrot.lane.b32.xlu0 %v2989_v54, %s9355_s19  ;;  %v3226_v58 = vld [vmem:[#allocation2 + $0x358] sm:$0xff]  ;;  %v3225_v59 = vld [vmem:[#allocation2 + $0x350] sm:$0xff] }
 0x248   : > { %v3009_v61 = vpop.permute.xlu1 %3008 }
 0x249   : > { %v3007_v19 = vpop.permute.xlu0 %3006 }
 0x24a   : > { %v3020_v1 = vsel %vm748_vm13, %v7607_v17, %v3007_v19  ;;  %v3021_v2 = vsel %vm748_vm13, %v3007_v19, %v3009_v61  ;;  %v3210_v4 = vld [vmem:[#allocation2 + $0x2d8] sm:$0xff]  ;;  %v3209_v53 = vld [vmem:[#allocation2 + $0x2d0] sm:$0xff]  ;;  %3076 = vrot.lane.b32.xlu1 %v3050_v25, %s9355_s19  ;;  %v3531_v17 = vld [vmem:[%s9310_s6] sm:$0xf] }
 0x24b   : > { %3036 = vst [vmem:[#allocation2 + $0x310] sm:$0xf] %v3020_v1  ;;  %3037 = vst [vmem:[#allocation2 + $0x318] sm:$0xf] %v3021_v2  ;;  %3074 = vrot.lane.b32.xlu0 %v3049_v60, %s9355_s19  ;;  %v8027_v31 = vpack.c.bf16 %v3210_v4, %v3202_v0  ;;  %v8029_v47 = vpack.c.bf16 %v3209_v53, %v3201_v55  ;;  %v8072_v4 = vld [vmem:[#allocation2 + $0x130] sm:$0xff]  ;;  %v3228_v53 = vld [vmem:[#allocation2 + $0x368] sm:$0xff] }
 0x24c   : > { %v8041_v13 = vpop.permute.xlu1 %3012  ;;  %v8076_v55 = vpack.c.bf16 %v8072_v4, %v8072_v4 }
 0x24d   : > { %6329 = vmatprep.subr.bf16.mxu1 %v8027_v31  ;;  %v3011_v15 = vpop.permute.xlu0 %3010 }
 0x24e   : > { %v3022_v16 = vsel %vm748_vm13, %v3009_v61, %v3011_v15  ;;  %v3023_v5 = vsel %vm748_vm13, %v3011_v15, %v8041_v13  ;;  %6331 = vmatpush1.bf16.msra.mxu1 %v8029_v47  ;;  %v3212_v62 = vld [vmem:[#allocation2 + $0x2e8] sm:$0xff]  ;;  %v3211_v29 = vld [vmem:[#allocation2 + $0x2e0] sm:$0xff]  ;;  %3534 = vperm.xlu1 %6699, %v3531_v17  }
 0x24f   : > { %3038 = vst [vmem:[#allocation2 + $0x320] sm:$0xf] %v3022_v16  ;;  %3039 = vst [vmem:[#allocation2 + $0x328] sm:$0xf] %v3023_v5  ;;  %1395 = vperm.xlu0 %6698, %v1392_v34   ;;  %v8048_v32 = vpack.c.bf16 %v3212_v62, %v3204_v30  ;;  %v8050_v46 = vpack.c.bf16 %v3211_v29, %v3203_v27  ;;  %v3227_v17 = vld [vmem:[#allocation2 + $0x360] sm:$0xff] }
 0x250   : > { %v3069_v18 = vpop.permute.xlu1 %3068 }
 0x251   : > { %6361 = vmatprep.subr.bf16.mxu0 %v8048_v32  ;;  %v3067_v37 = vpop.permute.xlu0 %3066 }
 0x252   : > { %v3080_v40 = vsel %vm748_vm13, %v7615_v28, %v3067_v37  ;;  %v3081_v24 = vsel %vm748_vm13, %v3067_v37, %v3069_v18  ;;  %6363 = vmatpush1.bf16.msra.mxu0 %v8050_v46  ;;  %4037 = vperm.xlu1 %6699, %v4034_v33  }
 0x253   : > { %3096 = vst [vmem:[#allocation2 + $0x310] sm:$0xf0] %v3080_v40  ;;  %3097 = vst [vmem:[#allocation2 + $0x318] sm:$0xf0] %v3081_v24  ;;  %v8098_v40 = vld [vmem:[%s9309_s5] sm:$0xff] }
 0x254   : > { %v8060_v44 = vpop.permute.xlu1 %3072 }
 0x255   : > { %v3071_v52 = vpop.permute.xlu0 %3070 }
 0x256   : > { %v3082_v54 = vsel %vm748_vm13, %v3069_v18, %v3071_v52  ;;  %v3083_v42 = vsel %vm748_vm13, %v3071_v52, %v8060_v44 }
 0x257   : > { %3098 = vst [vmem:[#allocation2 + $0x320] sm:$0xf0] %v3082_v54  ;;  %3099 = vst [vmem:[#allocation2 + $0x328] sm:$0xf0] %v3083_v42 }
 0x258   : > { %v1469_v28 = vpop.permute.xlu1 %1468 }
 0x259   : > { %v1467_v25 = vpop.permute.xlu0 %1466 }
 0x25a   : > { %v1476_v60 = vsel %vm545_vm2, %v7638_v11, %v1467_v25  ;;  %v1477_v61 = vsel %vm545_vm2, %v1467_v25, %v1469_v28  ;;  %v3218_v19 = vld [vmem:[#allocation2 + $0x318] sm:$0xff]  ;;  %v3217_v0 = vld [vmem:[#allocation2 + $0x310] sm:$0xff] }
 0x25b   : > { %1492 = vst [vmem:[#allocation2 + $0x30] sm:$0xf] %v1476_v60  ;;  %1493 = vst [vmem:[#allocation2 + $0x38] sm:$0xf] %v1477_v61  ;;  %v8068_v1 = vpack.c.bf16 %v3226_v58, %v3218_v19  ;;  %v8070_v2 = vpack.c.bf16 %v3225_v59, %v3217_v0 }
 0x25c   : > { %v1529_v34 = vpop.permute.xlu1 %1528 }
 0x25d   : > { %6333 = vmatprep.subr.bf16.mxu1 %v8068_v1  ;;  %v1527_v11 = vpop.permute.xlu0 %1526 }
 0x25e   : > { %v1536_v15 = vsel %vm545_vm2, %v7655_v56, %v1527_v11  ;;  %v1537_v30 = vsel %vm545_vm2, %v1527_v11, %v1529_v34  ;;  %6335 = vmatpush1.bf16.msra.mxu1 %v8070_v2  ;;  %v3220_v16 = vld [vmem:[#allocation2 + $0x328] sm:$0xff]  ;;  %v3219_v5 = vld [vmem:[#allocation2 + $0x320] sm:$0xff] }
 0x25f   : > { %1552 = vst [vmem:[#allocation2 + $0x30] sm:$0xf0] %v1536_v15  ;;  %1553 = vst [vmem:[#allocation2 + $0x38] sm:$0xf0] %v1537_v30  ;;  %6337 = vmatprep.subr.bf16.mxu1 %v8076_v55  ;;  %v8084_v62 = vpack.c.bf16 %v3228_v53, %v3220_v16  ;;  %v8086_v27 = vpack.c.bf16 %v3227_v17, %v3219_v5 }
 0x260   : > { %v1589_v29 = vpop.permute.xlu1 %1588 }
 0x261   : > { %6365 = vmatprep.subr.bf16.mxu0 %v8084_v62  ;;  %v1587_v33 = vpop.permute.xlu0 %1586 }
 0x262   : > { %v1596_v56 = vsel %vm561_vm1, %v7675_v7, %v1587_v33  ;;  %v1597_v18 = vsel %vm561_vm1, %v1587_v33, %v1589_v29  ;;  %6339 = vmatpush1.bf16.msra.mxu1 %v8076_v55  ;;  %6367 = vmatpush1.bf16.msra.mxu0 %v8086_v27 }
 0x263   : > { %1612 = vst [vmem:[#allocation2 + $0x70] sm:$0xf] %v1596_v56  ;;  %1613 = vst [vmem:[#allocation2 + $0x78] sm:$0xf] %v1597_v18  ;;  %6369 = vmatprep.subr.bf16.mxu0 %v8076_v55 }
 0x264   : > { %v1658_v37 = vpop.permute.xlu1 %1657 }
 0x265   : > { %3383 = vmatmul.mubr.f32.vlgmr.msra.gmra.mrb[4].mxu1 %v8098_v40  ;;  %v1656_v24 = vpop.permute.xlu0 %1655 }
 0x266   : > { %v1665_v7 = vsel %vm545_vm2, %v7689_v21, %v1656_v24  ;;  %v1666_v52 = vsel %vm545_vm2, %v1656_v24, %v1658_v37  ;;  %6371 = vmatpush1.bf16.msra.mxu0 %v8076_v55  ;;  %3524 = vmatprep.mubr.f32.mxu1 %v8072_v4  ;;  %v3126_v61 = vld [vmem:[#allocation2 + $0x38] sm:$0xff] }
 0x267   : > { %1681 = vst [vmem:[#allocation2 + $0x70] sm:$0xf0] %v1665_v7  ;;  %1682 = vst [vmem:[#allocation2 + $0x78] sm:$0xf0] %v1666_v52 }
 0x268   : > { %v1727_v54 = vpop.permute.xlu1 %1726 }
 0x269   : > { %3454 = vmatmul.mubr.f32.vlgmr.msra.gmra.mrb[6].mxu0 %v8098_v40  ;;  %v1725_v42 = vpop.permute.xlu0 %1724 }
 0x26a   : > { %v1734_v58 = vsel %vm545_vm2, %v7705_v57, %v1725_v42  ;;  %v1735_v59 = vsel %vm545_vm2, %v1725_v42, %v1727_v54  ;;  %3814 = vmatprep.mubr.f32.mxu0 %v8072_v4  ;;  %v3125_v57 = vld [vmem:[#allocation2 + $0x30] sm:$0xff] }
 0x26b   : > { %1750 = vst [vmem:[#allocation2 + $0xb0] sm:$0xf] %v1734_v58  ;;  %1751 = vst [vmem:[#allocation2 + $0xb8] sm:$0xf] %v1735_v59  ;;  %v8111_v21 = vpop.f32.mrb[4].mxu0 }
 0x26c   : > { %v8113_v28 = vpop.f32.mrb[5].mxu0  ;;  %v1796_v25 = vpop.permute.xlu1 %1795 }
 0x26d   : > { %v1794_v60 = vpop.permute.xlu0 %1793 }
 0x26e   : > { %v1803_v19 = vsel %vm561_vm1, %v7721_v14, %v1794_v60  ;;  %v1804_v0 = vsel %vm561_vm1, %v1794_v60, %v1796_v25  ;;  %v8118_v53 = vld [vmem:[#allocation2 + $0x78] sm:$0xff]  ;;  %v8120_v17 = vld [vmem:[#allocation2 + $0x70] sm:$0xff] }
 0x26f   : > { %1819 = vst [vmem:[#allocation2 + $0xb0] sm:$0xf0] %v1803_v19  ;;  %1820 = vst [vmem:[#allocation2 + $0xb8] sm:$0xf0] %v1804_v0  ;;  %v6372_v34 = vpack.c.bf16 %v8118_v53, %v3126_v61  ;;  %v6374_v11 = vpack.c.bf16 %v8120_v17, %v3125_v57  ;;  %v8140_v61 = vpop.f32.mrb[0].mxu1 }
 0x270   : > { %v1856_v15 = vpop.permute.xlu1 %1855  ;;  %v8142_v19 = vpop.f32.mrb[1].mxu1 }
 0x271   : > { %6373 = vmatprep.subr.bf16.mxu1 %v6372_v34  ;;  %v1854_v30 = vpop.permute.xlu0 %1853 }
 0x272   : > { %v1863_v16 = vsel %vm595_vm4, %v7739_v41, %v1854_v30  ;;  %v1864_v14 = vsel %vm595_vm4, %v1854_v30, %v1856_v15  ;;  %6375 = vmatpush1.bf16.msra.mxu1 %v6374_v11  ;;  %v8149_v11 = vpop.f32.mrb[2].mxu1 }
 0x273   : > { %1879 = vst [vmem:[#allocation2 + $0xf0] sm:$0xf] %v1863_v16  ;;  %1880 = vst [vmem:[#allocation2 + $0xf8] sm:$0xf] %v1864_v14  ;;  %v8151_v15 = vpop.f32.mrb[3].mxu1 }
 0x274   : > { %v1916_v5 = vpop.permute.xlu1 %1915 }
 0x275   : > { %v1914_v29 = vpop.permute.xlu0 %1913 }
 0x276   : > { %v1923_v33 = vsel %vm595_vm4, %v7755_v6, %v1914_v29  ;;  %v1924_v56 = vsel %vm595_vm4, %v1914_v29, %v1916_v5  ;;  %v3142_v54 = vld [vmem:[#allocation2 + $0xb8] sm:$0xff]  ;;  %v3141_v59 = vld [vmem:[#allocation2 + $0xb0] sm:$0xff] }
 0x277   : > { %1939 = vst [vmem:[#allocation2 + $0xf0] sm:$0xf0] %v1923_v33  ;;  %1940 = vst [vmem:[#allocation2 + $0xf8] sm:$0xf0] %v1924_v56 }
 0x278   : > { %v1976_v18 = vpop.permute.xlu1 %1975 }
 0x279   : > { %v1974_v37 = vpop.permute.xlu0 %1973 }
 0x27a   : > { %v1983_v24 = vsel %vm612_vm5, %v7771_v43, %v1974_v37  ;;  %v1984_v41 = vsel %vm612_vm5, %v1974_v37, %v1976_v18 }
 0x27b   : > { %1999 = vst [vmem:[#allocation2 + $0x130] sm:$0xf] %v1983_v24  ;;  %2000 = vst [vmem:[#allocation2 + $0x138] sm:$0xf] %v1984_v41 }
 0x27c   : > { %v2045_v7 = vpop.permute.xlu1 %2044 }
 0x27d   : > { %v2043_v52 = vpop.permute.xlu0 %2042 }
 0x27e   : > { %v2052_v42 = vsel %vm545_vm2, %v7785_v9, %v2043_v52  ;;  %v2053_v6 = vsel %vm545_vm2, %v2043_v52, %v2045_v7  ;;  %v3150_v58 = vld [vmem:[#allocation2 + $0xf8] sm:$0xff]  ;;  %v3149_v25 = vld [vmem:[#allocation2 + $0xf0] sm:$0xff] }
 0x27f   : > { %2068 = vst [vmem:[#allocation2 + $0x130] sm:$0xf0] %v2052_v42  ;;  %2069 = vst [vmem:[#allocation2 + $0x138] sm:$0xf0] %v2053_v6  ;;  %v8136_v60 = vpack.c.bf16 %v3150_v58, %v3142_v54  ;;  %v8138_v43 = vpack.c.bf16 %v3149_v25, %v3141_v59 }
 0x280   : > { %v2114_v0 = vpop.permute.xlu1 %2113 }
 0x281   : > { %6377 = vmatprep.subr.bf16.mxu1 %v8136_v60  ;;  %v2112_v57 = vpop.permute.xlu0 %2111 }
 0x282   : > { %v2121_v9 = vsel %vm545_vm2, %v7801_v22, %v2112_v57  ;;  %v2122_v34 = vsel %vm545_vm2, %v2112_v57, %v2114_v0  ;;  %6379 = vmatpush1.bf16.msra.mxu1 %v8138_v43 }
 0x283   : > { %2137 = vst [vmem:[#allocation2 + $0x170] sm:$0xf] %v2121_v9  ;;  %2138 = vst [vmem:[#allocation2 + $0x178] sm:$0xf] %v2122_v34 }
 0x284   : > { %v2183_v30 = vpop.permute.xlu1 %2182 }
 0x285   : > { %v2181_v16 = vpop.permute.xlu0 %2180 }
 0x286   : > { %v2190_v14 = vsel %vm561_vm1, %v7817_v45, %v2181_v16  ;;  %v2191_v5 = vsel %vm561_vm1, %v2181_v16, %v2183_v30  ;;  %v3158_v24 = vld [vmem:[#allocation2 + $0x138] sm:$0xff]  ;;  %v3157_v52 = vld [vmem:[#allocation2 + $0x130] sm:$0xff] }
 0x287   : > { %2206 = vst [vmem:[#allocation2 + $0x170] sm:$0xf0] %v2190_v14  ;;  %2207 = vst [vmem:[#allocation2 + $0x178] sm:$0xf0] %v2191_v5 }
 0x288   : > { %v2243_v22 = vpop.permute.xlu1 %2242 }
 0x289   : > { %v2241_v29 = vpop.permute.xlu0 %2240 }
 0x28a   : > { %v2250_v33 = vsel %vm545_vm2, %v7835_v10, %v2241_v29  ;;  %v2251_v56 = vsel %vm545_vm2, %v2241_v29, %v2243_v22 }
 0x28b   : > { %2266 = vst [vmem:[#allocation2 + $0x1b0] sm:$0xf] %v2250_v33  ;;  %2267 = vst [vmem:[#allocation2 + $0x1b8] sm:$0xf] %v2251_v56 }
 0x28c   : > { %v2303_v18 = vpop.permute.xlu1 %2302 }
 0x28d   : > { %v2301_v37 = vpop.permute.xlu0 %2300 }
 0x28e   : > { %v2310_v41 = vsel %vm545_vm2, %v7851_v48, %v2301_v37  ;;  %v2311_v45 = vsel %vm545_vm2, %v2301_v37, %v2303_v18  ;;  %v3166_v7 = vld [vmem:[#allocation2 + $0x178] sm:$0xff]  ;;  %v3165_v54 = vld [vmem:[#allocation2 + $0x170] sm:$0xff] }
 0x28f   : > { %2326 = vst [vmem:[#allocation2 + $0x1b0] sm:$0xf0] %v2310_v41  ;;  %2327 = vst [vmem:[#allocation2 + $0x1b8] sm:$0xf0] %v2311_v45  ;;  %v8162_v42 = vpack.c.bf16 %v3166_v7, %v3158_v24  ;;  %v8164_v10 = vpack.c.bf16 %v3165_v54, %v3157_v52 }
 0x290   : > { %v2363_v6 = vpop.permute.xlu1 %2362 }
 0x291   : > { %6381 = vmatprep.subr.bf16.mxu1 %v8162_v42  ;;  %v2361_v58 = vpop.permute.xlu0 %2360 }
 0x292   : > { %v2370_v59 = vsel %vm561_vm1, %v7865_v3, %v2361_v58  ;;  %v2371_v48 = vsel %vm561_vm1, %v2361_v58, %v2363_v6  ;;  %6383 = vmatpush1.bf16.msra.mxu1 %v8164_v10 }
 0x293   : > { %2386 = vst [vmem:[#allocation2 + $0x1f0] sm:$0xf] %v2370_v59  ;;  %2387 = vst [vmem:[#allocation2 + $0x1f8] sm:$0xf] %v2371_v48 }
 0x294   : > { %v2432_v25 = vpop.permute.xlu1 %2431 }
 0x295   : > { %v2430_v0 = vpop.permute.xlu0 %2429 }
 0x296   : > { %v2439_v57 = vsel %vm595_vm4, %v7883_v20, %v2430_v0  ;;  %v2440_v9 = vsel %vm595_vm4, %v2430_v0, %v2432_v25  ;;  %v3174_v22 = vld [vmem:[#allocation2 + $0x1b8] sm:$0xff]  ;;  %v3173_v56 = vld [vmem:[#allocation2 + $0x1b0] sm:$0xff] }
 0x297   : > { %2455 = vst [vmem:[#allocation2 + $0x1f0] sm:$0xf0] %v2439_v57  ;;  %2456 = vst [vmem:[#allocation2 + $0x1f8] sm:$0xf0] %v2440_v9 }
 0x298   : > { %v2501_v34 = vpop.permute.xlu1 %2500 }
 0x299   : > { %v2499_v30 = vpop.permute.xlu0 %2498 }
 0x29a   : > { %v2508_v3 = vsel %vm595_vm4, %v7899_v63, %v2499_v30  ;;  %v2509_v16 = vsel %vm595_vm4, %v2499_v30, %v2501_v34 }
 0x29b   : > { %2524 = vst [vmem:[#allocation2 + $0x230] sm:$0xf] %v2508_v3  ;;  %2525 = vst [vmem:[#allocation2 + $0x238] sm:$0xf] %v2509_v16 }
 0x29c   : > { %v2570_v14 = vpop.permute.xlu1 %2569 }
 0x29d   : > { %v2568_v5 = vpop.permute.xlu0 %2567 }
 0x29e   : > { %v2577_v29 = vsel %vm612_vm5, %v7913_v26, %v2568_v5  ;;  %v2578_v20 = vsel %vm612_vm5, %v2568_v5, %v2570_v14  ;;  %v3182_v33 = vld [vmem:[#allocation2 + $0x1f8] sm:$0xff]  ;;  %v3181_v18 = vld [vmem:[#allocation2 + $0x1f0] sm:$0xff] }
 0x29f   : > { %2593 = vst [vmem:[#allocation2 + $0x230] sm:$0xf0] %v2577_v29  ;;  %2594 = vst [vmem:[#allocation2 + $0x238] sm:$0xf0] %v2578_v20  ;;  %v8180_v37 = vpack.c.bf16 %v3182_v33, %v3174_v22  ;;  %v8182_v63 = vpack.c.bf16 %v3181_v18, %v3173_v56 }
 0x2a0   : > { %v2630_v24 = vpop.permute.xlu1 %2629 }
 0x2a1   : > { %6385 = vmatprep.subr.bf16.mxu1 %v8180_v37  ;;  %v2628_v41 = vpop.permute.xlu0 %2627 }
 0x2a2   : > { %v2637_v45 = vsel %vm697_vm10, %v7931_v36, %v2628_v41  ;;  %v2638_v26 = vsel %vm697_vm10, %v2628_v41, %v2630_v24  ;;  %6387 = vmatpush1.bf16.msra.mxu1 %v8182_v63 }
 0x2a3   : > { %2653 = vst [vmem:[#allocation2 + $0x270] sm:$0xf] %v2637_v45  ;;  %2654 = vst [vmem:[#allocation2 + $0x278] sm:$0xf] %v2638_v26 }
 0x2a4   : > { %v2690_v7 = vpop.permute.xlu1 %2689 }
 0x2a5   : > { %v2688_v52 = vpop.permute.xlu0 %2687 }
 0x2a6   : > { %v2697_v54 = vsel %vm697_vm10, %v7947_v50, %v2688_v52  ;;  %v2698_v6 = vsel %vm697_vm10, %v2688_v52, %v2690_v7  ;;  %v3190_v57 = vld [vmem:[#allocation2 + $0x238] sm:$0xff]  ;;  %v3189_v30 = vld [vmem:[#allocation2 + $0x230] sm:$0xff] }
 0x2a7   : > { %2713 = vst [vmem:[#allocation2 + $0x270] sm:$0xf0] %v2697_v54  ;;  %2714 = vst [vmem:[#allocation2 + $0x278] sm:$0xf0] %v2698_v6 }
 0x2a8   : > { %v2750_v58 = vpop.permute.xlu1 %2749 }
 0x2a9   : > { %v2748_v59 = vpop.permute.xlu0 %2747 }
 0x2aa   : > { %v2757_v36 = vsel %vm714_vm11, %v7961_v35, %v2748_v59  ;;  %v2758_v48 = vsel %vm714_vm11, %v2748_v59, %v2750_v58 }
 0x2ab   : > { %2773 = vst [vmem:[#allocation2 + $0x2b0] sm:$0xf] %v2757_v36  ;;  %2774 = vst [vmem:[#allocation2 + $0x2b8] sm:$0xf] %v2758_v48  ;;  %v3230_v36 = vld [vmem:[#allocation2 + $0x378] sm:$0xff]  ;;  %v3229_v48 = vld [vmem:[#allocation2 + $0x370] sm:$0xff] }
 0x2ac   : > { %v2819_v25 = vpop.permute.xlu1 %2818 }
 0x2ad   : > { %v2817_v0 = vpop.permute.xlu0 %2816 }
 0x2ae   : > { %v2826_v9 = vsel %vm697_vm10, %v7979_v8, %v2817_v0  ;;  %v2827_v50 = vsel %vm697_vm10, %v2817_v0, %v2819_v25  ;;  %v3198_v34 = vld [vmem:[#allocation2 + $0x278] sm:$0xff]  ;;  %v3197_v3 = vld [vmem:[#allocation2 + $0x270] sm:$0xff] }
 0x2af   : > { %2842 = vst [vmem:[#allocation2 + $0x2b0] sm:$0xf0] %v2826_v9  ;;  %2843 = vst [vmem:[#allocation2 + $0x2b8] sm:$0xf0] %v2827_v50  ;;  %v8198_v16 = vpack.c.bf16 %v3198_v34, %v3190_v57  ;;  %v8200_v35 = vpack.c.bf16 %v3197_v3, %v3189_v30 }
 0x2b0   : > { %v2888_v14 = vpop.permute.xlu1 %2887 }
 0x2b1   : > { %6389 = vmatprep.subr.bf16.mxu1 %v8198_v16  ;;  %v2886_v5 = vpop.permute.xlu0 %2885 }
 0x2b2   : > { %v2895_v22 = vsel %vm697_vm10, %v7995_v39, %v2886_v5  ;;  %v2896_v8 = vsel %vm697_vm10, %v2886_v5, %v2888_v14  ;;  %6391 = vmatpush1.bf16.msra.mxu1 %v8200_v35 }
 0x2b3   : > { %2911 = vst [vmem:[#allocation2 + $0x2f0] sm:$0xf] %v2895_v22  ;;  %2912 = vst [vmem:[#allocation2 + $0x2f8] sm:$0xf] %v2896_v8 }
 0x2b4   : > { %v2957_v29 = vpop.permute.xlu1 %2956 }
 0x2b5   : > { %v2955_v20 = vpop.permute.xlu0 %2954 }
 0x2b6   : > { %v2964_v33 = vsel %vm714_vm11, %v8011_v38, %v2955_v20  ;;  %v2965_v56 = vsel %vm714_vm11, %v2955_v20, %v2957_v29  ;;  %v3206_v7 = vld [vmem:[#allocation2 + $0x2b8] sm:$0xff]  ;;  %v3205_v6 = vld [vmem:[#allocation2 + $0x2b0] sm:$0xff] }
 0x2b7   : > { %2980 = vst [vmem:[#allocation2 + $0x2f0] sm:$0xf0] %v2964_v33  ;;  %2981 = vst [vmem:[#allocation2 + $0x2f8] sm:$0xf0] %v2965_v56 }
 0x2b8   : > { %v3017_v18 = vpop.permute.xlu1 %3016 }
 0x2b9   : > { %v3015_v24 = vpop.permute.xlu0 %3014 }
 0x2ba   : > { %v3024_v39 = vsel %vm748_vm13, %v8041_v13, %v3015_v24  ;;  %v3025_v41 = vsel %vm748_vm13, %v3015_v24, %v3017_v18 }
 0x2bb   : > { %3040 = vst [vmem:[#allocation2 + $0x330] sm:$0xf] %v3024_v39  ;;  %3041 = vst [vmem:[#allocation2 + $0x338] sm:$0xf] %v3025_v41 }
 0x2bc   : > { %v3077_v45 = vpop.permute.xlu1 %3076 }
 0x2bd   : > { %v3075_v26 = vpop.permute.xlu0 %3074 }
 0x2be   : > { %v3084_v52 = vsel %vm748_vm13, %v8060_v44, %v3075_v26  ;;  %v3085_v38 = vsel %vm748_vm13, %v3075_v26, %v3077_v45  ;;  %v3214_v54 = vld [vmem:[#allocation2 + $0x2f8] sm:$0xff]  ;;  %v3213_v58 = vld [vmem:[#allocation2 + $0x2f0] sm:$0xff] }
 0x2bf   : > { %3100 = vst [vmem:[#allocation2 + $0x330] sm:$0xf0] %v3084_v52  ;;  %3101 = vst [vmem:[#allocation2 + $0x338] sm:$0xf0] %v3085_v38  ;;  %v8216_v59 = vpack.c.bf16 %v3214_v54, %v3206_v7  ;;  %v8218_v13 = vpack.c.bf16 %v3213_v58, %v3205_v6  ;;  %v3631_v6 = vld [vmem:[#allocation2 + $0x48] sm:$0xff]  ;;  %v3630_v58 = vld [vmem:[#allocation2 + $0x40] sm:$0xff] }
 0x2c1   : > { %6393 = vmatprep.subr.bf16.mxu1 %v8216_v59 }
 0x2c2   : > { %6395 = vmatpush1.bf16.msra.mxu1 %v8218_v13 }
 0x2c6   : > { %v3222_v25 = vld [vmem:[#allocation2 + $0x338] sm:$0xff]  ;;  %v3221_v0 = vld [vmem:[#allocation2 + $0x330] sm:$0xff] }
 0x2c7   : > { %v8222_v44 = vpack.c.bf16 %v3230_v36, %v3222_v25  ;;  %v8224_v57 = vpack.c.bf16 %v3229_v48, %v3221_v0  ;;  %v3647_v25 = vld [vmem:[#allocation2 + $0xc8] sm:$0xff] }
 0x2c9   : > { %6397 = vmatprep.subr.bf16.mxu1 %v8222_v44 }
 0x2ca   : > { %6399 = vmatpush1.bf16.msra.mxu1 %v8224_v57 }
 0x2cb   : > { %6401 = vmatprep.subr.bf16.mxu1 %v8076_v55 }
 0x2cd   : > { %v8229_v9 = vpop.permute.xlu1 %3534 }
 0x2ce   : > { %6403 = vmatpush1.bf16.msra.mxu1 %v8076_v55  ;;  %v1396_v50 = vpop.permute.xlu0 %1395  ;;  %v3537_v34 = vadd.f32 %v8229_v9, %v8111_v21  ;;  %v3538_v30 = vadd.f32 %v8229_v9, %v8113_v28 }
 0x2cf   : > { %v1398_v3 = vadd.f32 %v1396_v50, %v8005_v49  ;;  %v1399_v14 = vadd.f32 %v1396_v50, %v8023_v51  ;;  %v1402_v5 = vadd.f32 %v1396_v50, %v8031_v23  ;;  %v1403_v22 = vadd.f32 %v1396_v50, %v8039_v12 }
 0x2d0   : > { %v1400_v8 = vadd.f32 %v1396_v50, %v8140_v61  ;;  %v1401_v29 = vadd.f32 %v1396_v50, %v8142_v19  ;;  %v3545_v20 = vmax.f32 %v3537_v34, 0.0  ;;  %v3546_v33 = vmax.f32 %v3538_v30, 0.0  ;;  %v3663_v30 = vld [vmem:[#allocation2 + $0x148] sm:$0xff] }
 0x2d1   : > { %v1406_v56 = vmax.f32 %v1398_v3, 0.0  ;;  %v1407_v18 = vmax.f32 %v1399_v14, 0.0  ;;  %3525 = vmatmul.mubr.f32.vlgmr.msra.gmra.mrb[6].mxu1 %v8098_v40  ;;  %v1410_v21 = vmax.f32 %v1402_v5, 0.0  ;;  %v1411_v28 = vmax.f32 %v1403_v22, 0.0  ;;  %v3638_v3 = vld [vmem:[#allocation2 + $0x80] sm:$0xff]  ;;  %v3655_v5 = vld [vmem:[#allocation2 + $0x108] sm:$0xff] }
 0x2d2   : > { %v1408_v24 = vmax.f32 %v1400_v8, 0.0  ;;  %v1409_v49 = vmax.f32 %v1401_v29, 0.0  ;;  %3885 = vmatprep.mubr.f32.mxu1 %v8072_v4  ;;  %v3561_v51 = vcombine.low %v3545_v20, %v3546_v33  ;;  %v6144_v23 = vcombine.low %v3545_v20, %v3545_v20  ;;  %v3662_v8 = vld [vmem:[#allocation2 + $0x140] sm:$0xff]  ;;  %v3679_v29 = vld [vmem:[#allocation2 + $0x1c8] sm:$0xff] }
 0x2d3   : > { %v1422_v39 = vcombine.low %v1406_v56, %v1407_v18  ;;  %v6140_v12 = vcombine.low %v1407_v18, %v1407_v18  ;;  %v1424_v41 = vcombine.low %v1410_v21, %v1411_v28  ;;  %v6142_v61 = vcombine.low %v1411_v28, %v1411_v28  ;;  %v3654_v20 = vld [vmem:[#allocation2 + $0x100] sm:$0xff]  ;;  %v3671_v56 = vld [vmem:[#allocation2 + $0x188] sm:$0xff] }
 0x2d4   : > { %v1423_v45 = vcombine.low %v1408_v24, %v1409_v49  ;;  %v6141_v19 = vcombine.low %v1409_v49, %v1409_v49  ;;  %3613 = vst [vmem:[#allocation2] sm:$0xf0] %v6144_v23  ;;  %3614 = vst [vmem:[#allocation2 + $0x8] sm:$0xf0] %v3561_v51  ;;  %v1404_v40 = vadd.f32 %v1396_v50, %v8149_v11  ;;  %v3639_v11 = vld [vmem:[#allocation2 + $0x88] sm:$0xff]  ;;  %v3678_v21 = vld [vmem:[#allocation2 + $0x1c0] sm:$0xff] }
 0x2d5   : > { %3589 = vst [vmem:[#allocation2] sm:$0xf] %v1422_v39  ;;  %3590 = vst [vmem:[#allocation2 + $0x8] sm:$0xf] %v6140_v12  ;;  %v1405_v26 = vadd.f32 %v1396_v50, %v8151_v15  ;;  %v6408_v15 = vpack.c.bf16 %v3647_v25, %v3639_v11  ;;  %v3646_v50 = vld [vmem:[#allocation2 + $0xc0] sm:$0xff]  ;;  %v6412_v22 = vpack.c.bf16 %v3663_v30, %v3655_v5  ;;  %v3695_v28 = vld [vmem:[#allocation2 + $0x248] sm:$0xff] }
 0x2d6   : > { %3593 = vst [vmem:[#allocation2 + $0x20] sm:$0xf] %v1424_v41  ;;  %3594 = vst [vmem:[#allocation2 + $0x28] sm:$0xf] %v6142_v61  ;;  %v1412_v7 = vmax.f32 %v1404_v40, 0.0  ;;  %v6410_v14 = vpack.c.bf16 %v3646_v50, %v3638_v3  ;;  %v6414_v33 = vpack.c.bf16 %v3662_v8, %v3654_v20  ;;  %v6416_v18 = vpack.c.bf16 %v3679_v29, %v3671_v56  ;;  %v3670_v24 = vld [vmem:[#allocation2 + $0x180] sm:$0xff] }
 0x2d7   : > { %3591 = vst [vmem:[#allocation2 + $0x10] sm:$0xf] %v1423_v45  ;;  %3592 = vst [vmem:[#allocation2 + $0x18] sm:$0xf] %v6141_v19  ;;  %v1413_v52 = vmax.f32 %v1405_v26, 0.0  ;;  %v6418_v49 = vpack.c.bf16 %v3678_v21, %v3670_v24  ;;  %v3687_v51 = vld [vmem:[#allocation2 + $0x208] sm:$0xff] }
 0x2d8   : > { %v6420_v23 = vpack.c.bf16 %v3695_v28, %v3687_v51  ;;  %v3694_v39 = vld [vmem:[#allocation2 + $0x240] sm:$0xff]  ;;  %v3711_v12 = vld [vmem:[#allocation2 + $0x2c8] sm:$0xff]  ;;  %v3633_v28 = vld [vmem:[#allocation2 + $0x58] sm:$0xff] }
 0x2d9   : > { %v1425_v38 = vcombine.low %v1412_v7, %v1413_v52  ;;  %v6143_v54 = vcombine.low %v1413_v52, %v1413_v52  ;;  %v3686_v41 = vld [vmem:[#allocation2 + $0x200] sm:$0xff]  ;;  %v3703_v45 = vld [vmem:[#allocation2 + $0x288] sm:$0xff]  ;;  %v3649_v24 = vld [vmem:[#allocation2 + $0xd8] sm:$0xff] }
 0x2da   : > { %v6422_v61 = vpack.c.bf16 %v3694_v39, %v3686_v41  ;;  %v6424_v19 = vpack.c.bf16 %v3711_v12, %v3703_v45  ;;  %v3710_v40 = vld [vmem:[#allocation2 + $0x2c0] sm:$0xff]  ;;  %v3719_v26 = vld [vmem:[#allocation2 + $0x308] sm:$0xff]  ;;  %v3632_v51 = vld [vmem:[#allocation2 + $0x50] sm:$0xff] }
 0x2db   : > { %3595 = vst [vmem:[#allocation2 + $0x30] sm:$0xf] %v1425_v38  ;;  %3596 = vst [vmem:[#allocation2 + $0x38] sm:$0xf] %v6143_v54  ;;  %v3727_v7 = vld [vmem:[#allocation2 + $0x348] sm:$0xff]  ;;  %v3702_v52 = vld [vmem:[#allocation2 + $0x280] sm:$0xff] }
 0x2dc   : > { %v3623_v36 = vld [vmem:[#allocation2 + $0x8] sm:$0xff]  ;;  %v3622_v48 = vld [vmem:[#allocation2] sm:$0xff]  ;;  %v6426_v38 = vpack.c.bf16 %v3710_v40, %v3702_v52  ;;  %v6428_v54 = vpack.c.bf16 %v3727_v7, %v3719_v26  ;;  %v3641_v39 = vld [vmem:[#allocation2 + $0x98] sm:$0xff] }
 0x2dd   : > { %v6404_v0 = vpack.c.bf16 %v3631_v6, %v3623_v36  ;;  %v6406_v34 = vpack.c.bf16 %v3630_v58, %v3622_v48  ;;  %v3718_v6 = vld [vmem:[#allocation2 + $0x300] sm:$0xff]  ;;  %v6440_v12 = vpack.c.bf16 %v3649_v24, %v3641_v39  ;;  %v3635_v41 = vld [vmem:[#allocation2 + $0x68] sm:$0xff]  ;;  %v3665_v40 = vld [vmem:[#allocation2 + $0x158] sm:$0xff] }
 0x2de   : > { %v3726_v58 = vld [vmem:[#allocation2 + $0x340] sm:$0xff]  ;;  %v3651_v26 = vld [vmem:[#allocation2 + $0xe8] sm:$0xff]  ;;  %v3640_v52 = vld [vmem:[#allocation2 + $0x90] sm:$0xff] }
 0x2df   : > { %6405 = vmatprep.subr.bf16.mxu0 %v6404_v0  ;;  %v6430_v36 = vpack.c.bf16 %v3726_v58, %v3718_v6  ;;  %v8251_v48 = vld [vmem:[%s9311_s7] sm:$0xff]  ;;  %v3657_v58 = vld [vmem:[#allocation2 + $0x118] sm:$0xff]  ;;  %v3675_v39 = vld [vmem:[#allocation2 + $0x1a8] sm:$0xff] }
 0x2e0   : > { %6407 = vmatpush1.bf16.msra.mxu0 %v6406_v34  ;;  %v3658_v24 = vld [vmem:[#allocation2 + $0x120] sm:$0xff] }
 0x2e1   : > { %6409 = vmatprep.subr.bf16.mxu0 %v6408_v15 }
 0x2e4   : > { %6411 = vmatpush1.bf16.msra.mxu0 %v6410_v14 }
 0x2e5   : > { %6413 = vmatprep.subr.bf16.mxu0 %v6412_v22 }
 0x2e8   : > { %6415 = vmatpush1.bf16.msra.mxu0 %v6414_v33 }
 0x2e9   : > { %6417 = vmatprep.subr.bf16.mxu0 %v6416_v18 }
 0x2ec   : > { %6419 = vmatpush1.bf16.msra.mxu0 %v6418_v49 }
 0x2ed   : > { %6421 = vmatprep.subr.bf16.mxu0 %v6420_v23 }
 0x2f0   : > { %6423 = vmatpush1.bf16.msra.mxu0 %v6422_v61  ;;  %v3648_v61 = vld [vmem:[#allocation2 + $0xd0] sm:$0xff] }
 0x2f1   : > { %6425 = vmatprep.subr.bf16.mxu0 %v6424_v19 }
 0x2f4   : > { %6427 = vmatpush1.bf16.msra.mxu0 %v6426_v38  ;;  %v3634_v38 = vld [vmem:[#allocation2 + $0x60] sm:$0xff] }
 0x2f5   : > { %6429 = vmatprep.subr.bf16.mxu0 %v6428_v54  ;;  %v6442_v54 = vpack.c.bf16 %v3648_v61, %v3640_v52  ;;  %v3696_v61 = vld [vmem:[#allocation2 + $0x250] sm:$0xff] }
 0x2f8   : > { %6431 = vmatpush1.bf16.msra.mxu0 %v6430_v36  ;;  %v3643_v36 = vld [vmem:[#allocation2 + $0xa8] sm:$0xff] }
 0x2f9   : > { %6433 = vmatprep.subr.bf16.mxu0 %v8076_v55 }
 0x2fc   : > { %6435 = vmatpush1.bf16.msra.mxu0 %v8076_v55 }
 0x2ff   : > { %3815 = vmatmul.mubr.f32.vlgmr.msra.gmra.mrb[8].mxu0 %v8251_v48 }
 0x300   : > { %3956 = vmatprep.mubr.f32.mxu0 %v8072_v4 }
 0x338   : > { %v3384_v25 = vpop.f32.mrb[4].mxu1 }
 0x339   : > { %v3539_v0 = vadd.f32 %v8229_v9, %v3384_v25  ;;  %v3386_v34 = vpop.f32.mrb[5].mxu1  ;;  %v6444_v25 = vpack.c.bf16 %v3665_v40, %v3657_v58  ;;  %v3688_v40 = vld [vmem:[#allocation2 + $0x210] sm:$0xff]  ;;  %v3690_v58 = vld [vmem:[#allocation2 + $0x220] sm:$0xff] }
 0x33a   : > { %v3540_v11 = vadd.f32 %v8229_v9, %v3386_v34  ;;  %v3664_v34 = vld [vmem:[#allocation2 + $0x150] sm:$0xff] }
 0x33b   : > { %v3547_v15 = vmax.f32 %v3539_v0, 0.0  ;;  %v6472_v0 = vpack.c.bf16 %v3651_v26, %v3643_v36  ;;  %v3674_v26 = vld [vmem:[#allocation2 + $0x1a0] sm:$0xff] }
 0x33c   : > { %v3548_v50 = vmax.f32 %v3540_v11, 0.0  ;;  %v3455_v30 = vpop.f32.mrb[6].mxu0  ;;  %v3650_v11 = vld [vmem:[#allocation2 + $0xe0] sm:$0xff] }
 0x33d   : > { %v6145_v3 = vcombine.low %v3547_v15, %v3547_v15  ;;  %v3541_v14 = vadd.f32 %v8229_v9, %v3455_v30  ;;  %v3457_v5 = vpop.f32.mrb[7].mxu0  ;;  %v3656_v30 = vld [vmem:[#allocation2 + $0x110] sm:$0xff] }
 0x33e   : > { %v3562_v22 = vcombine.low %v3547_v15, %v3548_v50  ;;  %v3542_v8 = vadd.f32 %v8229_v9, %v3457_v5  ;;  %v3681_v15 = vld [vmem:[#allocation2 + $0x1d8] sm:$0xff]  ;;  %v3667_v50 = vld [vmem:[#allocation2 + $0x168] sm:$0xff] }
 0x33f   : > { %3615 = vst [vmem:[#allocation2 + $0x10] sm:$0xf0] %v6145_v3  ;;  %v3549_v29 = vmax.f32 %v3541_v14, 0.0  ;;  %v3642_v3 = vld [vmem:[#allocation2 + $0xa0] sm:$0xff]  ;;  %v6446_v14 = vpack.c.bf16 %v3664_v34, %v3656_v30 }
 0x340   : > { %3616 = vst [vmem:[#allocation2 + $0x18] sm:$0xf0] %v3562_v22  ;;  %v3550_v20 = vmax.f32 %v3542_v8, 0.0  ;;  %v6474_v5 = vpack.c.bf16 %v3650_v11, %v3642_v3  ;;  %v3673_v22 = vld [vmem:[#allocation2 + $0x198] sm:$0xff]  ;;  %v3659_v8 = vld [vmem:[#allocation2 + $0x128] sm:$0xff] }
 0x341   : > { %v6146_v33 = vcombine.low %v3549_v29, %v3549_v29 }
 0x342   : > { %v3563_v56 = vcombine.low %v3549_v29, %v3550_v20  ;;  %v6448_v29 = vpack.c.bf16 %v3681_v15, %v3673_v22  ;;  %v6476_v20 = vpack.c.bf16 %v3667_v50, %v3659_v8 }
 0x343   : > { %3617 = vst [vmem:[#allocation2 + $0x20] sm:$0xf0] %v6146_v33  ;;  %v3680_v33 = vld [vmem:[#allocation2 + $0x1d0] sm:$0xff] }
 0x344   : > { %3618 = vst [vmem:[#allocation2 + $0x28] sm:$0xf0] %v3563_v56  ;;  %v3666_v56 = vld [vmem:[#allocation2 + $0x160] sm:$0xff] }
 0x346   : > { %v3624_v18 = vld [vmem:[#allocation2 + $0x10] sm:$0xff] }
 0x347   : > { %v3625_v21 = vld [vmem:[#allocation2 + $0x18] sm:$0xff]  ;;  %v6438_v23 = vpack.c.bf16 %v3632_v51, %v3624_v18  ;;  %v6478_v51 = vpack.c.bf16 %v3666_v56, %v3658_v24 }
 0x348   : > { %v6436_v49 = vpack.c.bf16 %v3633_v28, %v3625_v21  ;;  %v3697_v18 = vld [vmem:[#allocation2 + $0x258] sm:$0xff]  ;;  %v3683_v21 = vld [vmem:[#allocation2 + $0x1e8] sm:$0xff]  ;;  %v3672_v28 = vld [vmem:[#allocation2 + $0x190] sm:$0xff] }
 0x34a   : > { %6437 = vmatprep.subr.bf16.mxu1 %v6436_v49  ;;  %v3626_v45 = vld [vmem:[#allocation2 + $0x20] sm:$0xff]  ;;  %v6450_v49 = vpack.c.bf16 %v3680_v33, %v3672_v28 }
 0x34b   : > { %6439 = vmatpush1.bf16.msra.mxu1 %v6438_v23  ;;  %v3627_v19 = vld [vmem:[#allocation2 + $0x28] sm:$0xff]  ;;  %v6470_v6 = vpack.c.bf16 %v3634_v38, %v3626_v45  ;;  %v3689_v23 = vld [vmem:[#allocation2 + $0x218] sm:$0xff]  ;;  %v3682_v45 = vld [vmem:[#allocation2 + $0x1e0] sm:$0xff] }
 0x34c   : > { %6441 = vmatprep.subr.bf16.mxu1 %v6440_v12  ;;  %v6468_v7 = vpack.c.bf16 %v3635_v41, %v3627_v19  ;;  %v6452_v12 = vpack.c.bf16 %v3697_v18, %v3689_v23  ;;  %v6480_v41 = vpack.c.bf16 %v3683_v21, %v3675_v39  ;;  %v3699_v19 = vld [vmem:[#allocation2 + $0x268] sm:$0xff]  ;;  %v6482_v52 = vpack.c.bf16 %v3682_v45, %v3674_v26 }
 0x34d   : > { %v3691_v38 = vld [vmem:[#allocation2 + $0x228] sm:$0xff] }
 0x34e   : > { %6469 = vmatprep.subr.bf16.mxu0 %v6468_v7  ;;  %v6454_v7 = vpack.c.bf16 %v3696_v61, %v3688_v40 }
 0x34f   : > { %6443 = vmatpush1.bf16.msra.mxu1 %v6442_v54  ;;  %6471 = vmatpush1.bf16.msra.mxu0 %v6470_v6  ;;  %v6484_v54 = vpack.c.bf16 %v3699_v19, %v3691_v38  ;;  %v3698_v6 = vld [vmem:[#allocation2 + $0x260] sm:$0xff] }
 0x350   : > { %6445 = vmatprep.subr.bf16.mxu1 %v6444_v25  ;;  %6473 = vmatprep.subr.bf16.mxu0 %v6472_v0  ;;  %v6486_v36 = vpack.c.bf16 %v3698_v6, %v3690_v58 }
 0x353   : > { %6447 = vmatpush1.bf16.msra.mxu1 %v6446_v14  ;;  %6475 = vmatpush1.bf16.msra.mxu0 %v6474_v5 }
 0x354   : > { %6449 = vmatprep.subr.bf16.mxu1 %v6448_v29  ;;  %6477 = vmatprep.subr.bf16.mxu0 %v6476_v20 }
 0x357   : > { %6451 = vmatpush1.bf16.msra.mxu1 %v6450_v49  ;;  %6479 = vmatpush1.bf16.msra.mxu0 %v6478_v51 }
 0x358   : > { %6453 = vmatprep.subr.bf16.mxu1 %v6452_v12  ;;  %6481 = vmatprep.subr.bf16.mxu0 %v6480_v41 }
 0x35b   : > { %6455 = vmatpush1.bf16.msra.mxu1 %v6454_v7  ;;  %6483 = vmatpush1.bf16.msra.mxu0 %v6482_v52 }
 0x35c   : > { %6457 = vmatprep.subr.bf16.mxu1 %v8027_v31  ;;  %6485 = vmatprep.subr.bf16.mxu0 %v6484_v54 }
 0x35f   : > { %6459 = vmatpush1.bf16.msra.mxu1 %v8029_v47  ;;  %6487 = vmatpush1.bf16.msra.mxu0 %v6486_v36 }
 0x360   : > { %6461 = vmatprep.subr.bf16.mxu1 %v8068_v1  ;;  %6489 = vmatprep.subr.bf16.mxu0 %v8048_v32 }
 0x363   : > { %6463 = vmatpush1.bf16.msra.mxu1 %v8070_v2  ;;  %6491 = vmatpush1.bf16.msra.mxu0 %v8050_v46 }
 0x364   : > { %6493 = vmatprep.subr.bf16.mxu0 %v8084_v62  ;;  %6465 = vmatprep.subr.bf16.mxu1 %v8076_v55 }
 0x367   : > { %6467 = vmatpush1.bf16.msra.mxu1 %v8076_v55  ;;  %6495 = vmatpush1.bf16.msra.mxu0 %v8086_v27 }
 0x368   : > { %6497 = vmatprep.subr.bf16.mxu0 %v8076_v55 }
 0x36a   : > { %3886 = vmatmul.mubr.f32.vlgmr.msra.gmra.mrb[8].mxu1 %v8251_v48 }
 0x36b   : > { %6499 = vmatpush1.bf16.msra.mxu0 %v8076_v55  ;;  %4027 = vmatprep.mubr.f32.mxu1 %v8072_v4 }
 0x36e   : > { %3957 = vmatmul.mubr.f32.vlgmr.msra.gmra.mrb[10].mxu0 %v8251_v48 }
 0x36f   : > { %5818 = vmatprep.mubr.f32.mxu0 %v8072_v4 }
 0x3a4   : > { %v3526_v31 = vpop.f32.mrb[6].mxu1 }
 0x3a5   : > { %v3543_v47 = vadd.f32 %v8229_v9, %v3526_v31  ;;  %v3528_v32 = vpop.f32.mrb[7].mxu1 }
 0x3a6   : > { %v3544_v46 = vadd.f32 %v8229_v9, %v3528_v32 }
 0x3a7   : > { %v3551_v1 = vmax.f32 %v3543_v47, 0.0 }
 0x3a8   : > { %v3552_v2 = vmax.f32 %v3544_v46, 0.0 }
 0x3a9   : > { %v6147_v62 = vcombine.low %v3551_v1, %v3551_v1 }
 0x3aa   : > { %v3564_v27 = vcombine.low %v3551_v1, %v3552_v2 }
 0x3ab   : > { %3619 = vst [vmem:[#allocation2 + $0x30] sm:$0xf0] %v6147_v62 }
 0x3ac   : > { %3620 = vst [vmem:[#allocation2 + $0x38] sm:$0xf0] %v3564_v27 }
 0x3b2   : > { %v3628_v25 = vld [vmem:[#allocation2 + $0x30] sm:$0xff] }
 0x3b3   : > { %v3629_v0 = vld [vmem:[#allocation2 + $0x38] sm:$0xff]  ;;  %v6502_v11 = vpack.c.bf16 %v8120_v17, %v3628_v25 }
 0x3b4   : > { %v6500_v34 = vpack.c.bf16 %v8118_v53, %v3629_v0  ;;  %v4057_v53 = vlaneseq }
 0x3b6   : > { %6501 = vmatprep.subr.bf16.mxu1 %v6500_v34  ;;  %v8289_v17 = vshrl.u32 %v4057_v53, 7 }
 0x3b7   : > { %6503 = vmatpush1.bf16.msra.mxu1 %v6502_v11 }
 0x3b8   : > { %6505 = vmatprep.subr.bf16.mxu1 %v8136_v60  ;;  %v4059_v60 = vsub.s32 0, %v8289_v17  ;;  %v4075_v8 = vsub.s32 4, %v8289_v17  ;;  %v4079_v33 = vsub.s32 5, %v8289_v17  ;;  %v4083_v31 = vsub.s32 6, %v8289_v17 }
 0x3b9   : > { %v4087_v47 = vsub.s32 7, %v8289_v17 }
 0x3bb   : > { %6507 = vmatpush1.bf16.msra.mxu1 %v8138_v43  ;;  %v8297_v43 = vld [vmem:[%s9306_s2] sm:$0xff] }
 0x3bc   : > { %6509 = vmatprep.subr.bf16.mxu1 %v8162_v42  ;;  %v4063_v42 = vsub.s32 1, %v8289_v17  ;;  %v8347_v49 = vrot.slane %v8297_v43, %v4075_v8  ;;  %v8354_v12 = vrot.slane %v8297_v43, %v4079_v33  ;;  %v8437_v1 = vrot.slane %v8297_v43, %v4083_v31 }
 0x3bd   : > { %v8443_v25 = vrot.slane %v8297_v43, %v4087_v47 }
 0x3bf   : > { %6511 = vmatpush1.bf16.msra.mxu1 %v8164_v10  ;;  %v8301_v10 = vpop.permute.xlu1 %4037 }
 0x3c0   : > { %6513 = vmatprep.subr.bf16.mxu1 %v8180_v37 }
 0x3c3   : > { %6515 = vmatpush1.bf16.msra.mxu1 %v8182_v63 }
 0x3c4   : > { %6517 = vmatprep.subr.bf16.mxu1 %v8198_v16  ;;  %v8305_v16 = vrot.slane %v8297_v43, %v4059_v60 }
 0x3c7   : > { %6519 = vmatpush1.bf16.msra.mxu1 %v8200_v35 }
 0x3c8   : > { %6521 = vmatprep.subr.bf16.mxu1 %v8216_v59 }
 0x3cb   : > { %6523 = vmatpush1.bf16.msra.mxu1 %v8218_v13  ;;  %v8310_v13 = vrot.slane %v8297_v43, %v4063_v42 }
 0x3cc   : > { %6525 = vmatprep.subr.bf16.mxu1 %v8222_v44 }
 0x3cf   : > { %6527 = vmatpush1.bf16.msra.mxu1 %v8224_v57 }
 0x3d0   : > { %6529 = vmatprep.subr.bf16.mxu1 %v8076_v55 }
 0x3d2   : > { %v3816_v37 = vpop.f32.mrb[8].mxu0 }
 0x3d3   : > { %v4040_v63 = vadd.f32 %v8301_v10, %v3816_v37  ;;  %v3818_v35 = vpop.f32.mrb[9].mxu0  ;;  %6531 = vmatpush1.bf16.msra.mxu1 %v8076_v55 }
 0x3d4   : > { %v4041_v59 = vadd.f32 %v8301_v10, %v3818_v35 }
 0x3d5   : > { %v4048_v44 = vmax.f32 %v4040_v63, 0.0 }
 0x3d6   : > { %v4049_v57 = vmax.f32 %v4041_v59, 0.0  ;;  %4028 = vmatmul.mubr.f32.vlgmr.msra.gmra.mrb[10].mxu1 %v8251_v48  ;;  %v4071_v48 = vsub.s32 3, %v8289_v17 }
 0x3d7   : > { %v4097_v9 = vmul.f32 %v8305_v16, %v4048_v44  ;;  %5889 = vmatprep.mubr.f32.mxu1 %v8072_v4  ;;  %v4067_v4 = vsub.s32 2, %v8289_v17 }
 0x3d8   : > { %v8316_v15 = vmul.f32 %v8310_v13, %v4049_v57  ;;  %v8341_v20 = vrot.slane %v8297_v43, %v4071_v48 }
 0x3d9   : > { %v8322_v55 = vcombine.low %v4097_v9, %v4097_v9  ;;  %v8336_v5 = vrot.slane %v8297_v43, %v4067_v4 }
 0x3da   : > { %v8319_v50 = vcombine.low %v4097_v9, %v8316_v15 }
 0x3db   : > { %4877 = vst [vmem:[#allocation2 + $0x180] sm:$0xf0] %v8322_v55 }
 0x3dc   : > { %4122 = vst [vmem:[#allocation5 + $0x4] sm:$0xff] %v8319_v50  ;;  %4878 = vst [vmem:[#allocation2 + $0x188] sm:$0xf0] %v8319_v50 }
 0x3e3   : > { %v8326_v30 = vld [vmem:[#allocation5] sm:$0xff] }
 0x3e4   : > { %4652 = vrot.lane.b32.xlu1 %v8326_v30, %s6762_s14  ;;  %4141 = vrot.lane.b32.xlu0 %v8326_v30, %s6754_s25  ;;  %v4137_v54 = vcombine.high %v8326_v30, %v8326_v30  ;;  %v4645_v58 = vcombine.low %v8326_v30, %v8326_v30 }
 0x43d   : > { %v3887_v3 = vpop.f32.mrb[8].mxu1 }
 0x43e   : > { %v4042_v14 = vadd.f32 %v8301_v10, %v3887_v3  ;;  %v3889_v22 = vpop.f32.mrb[9].mxu1 }
 0x43f   : > { %v4043_v29 = vadd.f32 %v8301_v10, %v3889_v22 }
 0x440   : > { %v4050_v56 = vmax.f32 %v4042_v14, 0.0 }
 0x441   : > { %v4051_v18 = vmax.f32 %v4043_v29, 0.0  ;;  %v3958_v21 = vpop.f32.mrb[10].mxu0 }
 0x442   : > { %v4099_v28 = vmul.f32 %v8336_v5, %v4050_v56  ;;  %v4044_v24 = vadd.f32 %v8301_v10, %v3958_v21  ;;  %v3960_v51 = vpop.f32.mrb[11].mxu0 }
 0x443   : > { %v8350_v23 = vmul.f32 %v8341_v20, %v4051_v18  ;;  %v4045_v39 = vadd.f32 %v8301_v10, %v3960_v51 }
 0x444   : > { %v4052_v41 = vmax.f32 %v4044_v24, 0.0  ;;  %v8361_v40 = vcombine.low %v4099_v28, %v4099_v28 }
 0x445   : > { %v8357_v61 = vcombine.low %v4099_v28, %v8350_v23  ;;  %v4053_v45 = vmax.f32 %v4045_v39, 0.0 }
 0x446   : > { %v4101_v19 = vmul.f32 %v8347_v49, %v4052_v41  ;;  %4879 = vst [vmem:[#allocation2 + $0x190] sm:$0xf0] %v8361_v40 }
 0x447   : > { %4123 = vst [vmem:[#allocation5 + $0xc] sm:$0xff] %v8357_v61  ;;  %4880 = vst [vmem:[#allocation2 + $0x198] sm:$0xf0] %v8357_v61  ;;  %v4102_v26 = vmul.f32 %v8354_v12, %v4053_v45 }
 0x448   : > { %v8369_v52 = vcombine.low %v4101_v19, %v4101_v19 }
 0x449   : > { %v8365_v7 = vcombine.low %v4101_v19, %v4102_v26 }
 0x44a   : > { %4881 = vst [vmem:[#allocation2 + $0x1a0] sm:$0xf0] %v8369_v52 }
 0x44b   : > { %4124 = vst [vmem:[#allocation5 + $0x14] sm:$0xff] %v8365_v7  ;;  %4882 = vst [vmem:[#allocation2 + $0x1a8] sm:$0xf0] %v8365_v7 }
 0x44e   : > { %v4636_v38 = vld [vmem:[#allocation5 + $0x8] sm:$0xff] }
 0x44f   : > { %4656 = vrot.lane.b32.xlu1 %v4636_v38, %s6762_s14  ;;  %4145 = vrot.lane.b32.xlu0 %v4636_v38, %s6754_s25  ;;  %v4138_v6 = vcombine.high %v4636_v38, %v4636_v38  ;;  %v4646_v36 = vcombine.low %v4636_v38, %v4636_v38 }
 0x452   : > { %v8439_v62 = vld [vmem:[#allocation5 + $0x10] sm:$0xff] }
 0x453   : > { %4765 = vrot.lane.b32.xlu1 %v8326_v30, %s9357_s16  ;;  %4200 = vrot.lane.b32.xlu0 %v8326_v30, %s6753_s24  ;;  %v8454_v43 = vcombine.high %v8439_v62, %v8439_v62  ;;  %v8473_v59 = vcombine.low %v8439_v62, %v8439_v62 }
 0x456   : > { %v8466_v37 = vpop.permute.xlu1 %4652  ;;  %v4142_v63 = vpop.permute.xlu0 %4141 }
 0x457   : > { %4769 = vrot.lane.b32.xlu1 %v4636_v38, %s9357_s16  ;;  %4204 = vrot.lane.b32.xlu0 %v4636_v38, %s6753_s24 }
 0x45b   : > { %4593 = vrot.lane.b32.xlu1 %v8326_v30, %s6761_s13  ;;  %4254 = vrot.lane.b32.xlu0 %v8326_v30, %s6755_s26 }
 0x45f   : > { %4706 = vrot.lane.b32.xlu1 %v8326_v30, %s9359_s15  ;;  %4258 = vrot.lane.b32.xlu0 %v4636_v38, %s6755_s26 }
 0x463   : > { %4313 = vrot.lane.b32.xlu0 %v8326_v30, %s6756_s27  ;;  %4143 = vrot.lane.b32.xlu1 %v4137_v54, %s6754_s25 }
 0x467   : > { %4317 = vrot.lane.b32.xlu0 %v4636_v38, %s6756_s27  ;;  %4147 = vrot.lane.b32.xlu1 %v4138_v6, %s6754_s25 }
 0x46b   : > { %4367 = vrot.lane.b32.xlu0 %v8326_v30, %s6757_s28  ;;  %4198 = vrot.lane.b32.xlu1 %v4645_v58, %s6753_s24 }
 0x46f   : > { %4371 = vrot.lane.b32.xlu0 %v4636_v38, %s6757_s28  ;;  %4202 = vrot.lane.b32.xlu1 %v4646_v36, %s6753_s24 }
 0x473   : > { %4426 = vrot.lane.b32.xlu0 %v8326_v30, %s9362_s29  ;;  %4256 = vrot.lane.b32.xlu1 %v4137_v54, %s6755_s26 }
 0x477   : > { %4430 = vrot.lane.b32.xlu0 %v4636_v38, %s9362_s29  ;;  %4260 = vrot.lane.b32.xlu1 %v4138_v6, %s6755_s26 }
 0x47b   : > { %4480 = vrot.lane.b32.xlu0 %v8326_v30, %s9363_s12  ;;  %4311 = vrot.lane.b32.xlu1 %v4645_v58, %s6756_s27 }
 0x47f   : > { %4484 = vrot.lane.b32.xlu0 %v4636_v38, %s9363_s12  ;;  %4315 = vrot.lane.b32.xlu1 %v4646_v36, %s6756_s27 }
 0x483   : > { %4539 = vrot.lane.b32.xlu0 %v8326_v30, %s9364_s20  ;;  %4369 = vrot.lane.b32.xlu1 %v4137_v54, %s6757_s28 }
 0x487   : > { %4543 = vrot.lane.b32.xlu0 %v4636_v38, %s9364_s20  ;;  %4373 = vrot.lane.b32.xlu1 %v4138_v6, %s6757_s28 }
 0x48b   : > { %4597 = vrot.lane.b32.xlu0 %v4636_v38, %s6761_s13  ;;  %4424 = vrot.lane.b32.xlu1 %v4645_v58, %s9362_s29 }
 0x48f   : > { %4710 = vrot.lane.b32.xlu0 %v4636_v38, %s9359_s15  ;;  %4428 = vrot.lane.b32.xlu1 %v4646_v36, %s9362_s29 }
 0x493   : > { %4823 = vrot.lane.b32.xlu0 %v4636_v38, %s9355_s19  ;;  %4482 = vrot.lane.b32.xlu1 %v4137_v54, %s9363_s12 }
 0x497   : > { %4537 = vrot.lane.b32.xlu0 %v4645_v58, %s9364_s20  ;;  %4486 = vrot.lane.b32.xlu1 %v4138_v6, %s9363_s12 }
 0x49b   : > { %4654 = vrot.lane.b32.xlu0 %v4646_v36, %s6762_s14  ;;  %4541 = vrot.lane.b32.xlu1 %v4646_v36, %s9364_s20 }
 0x49f   : > { %4767 = vrot.lane.b32.xlu0 %v4646_v36, %s9357_s16  ;;  %4595 = vrot.lane.b32.xlu1 %v4137_v54, %s6761_s13 }
 0x4a3   : > { %4650 = vrot.lane.b32.xlu0 %v4645_v58, %s6762_s14  ;;  %4599 = vrot.lane.b32.xlu1 %v4138_v6, %s6761_s13 }
 0x4a7   : > { %4763 = vrot.lane.b32.xlu0 %v4645_v58, %s9357_s16  ;;  %4708 = vrot.lane.b32.xlu1 %v4137_v54, %s9359_s15 }
 0x4a9   : > { %v4029_v32 = vpop.f32.mrb[10].mxu1 }
 0x4aa   : > { %v4046_v46 = vadd.f32 %v8301_v10, %v4029_v32  ;;  %v4031_v2 = vpop.f32.mrb[11].mxu1 }
 0x4ab   : > { %v4047_v27 = vadd.f32 %v8301_v10, %v4031_v2  ;;  %4712 = vrot.lane.b32.xlu1 %v4138_v6, %s9359_s15  ;;  %4149 = vrot.lane.b32.xlu0 %v8439_v62, %s6754_s25 }
 0x4ac   : > { %v4054_v0 = vmax.f32 %v4046_v46, 0.0 }
 0x4ad   : > { %v4055_v34 = vmax.f32 %v4047_v27, 0.0 }
 0x4ae   : > { %v4103_v11 = vmul.f32 %v8437_v1, %v4054_v0 }
 0x4af   : > { %v4104_v53 = vmul.f32 %v8443_v25, %v4055_v34  ;;  %4821 = vrot.lane.b32.xlu1 %v4137_v54, %s9355_s19 }
 0x4b0   : > { %v6741_v60 = vcombine.low %v4103_v11, %v4103_v11 }
 0x4b1   : > { %v4117_v17 = vcombine.low %v4103_v11, %v4104_v53 }
 0x4b2   : > { %4883 = vst [vmem:[#allocation2 + $0x1b0] sm:$0xf0] %v6741_v60 }
 0x4b3   : > { %4125 = vst [vmem:[#allocation5 + $0x1c] sm:$0xff] %v4117_v17  ;;  %4884 = vst [vmem:[#allocation2 + $0x1b8] sm:$0xf0] %v4117_v17  ;;  %4825 = vrot.lane.b32.xlu1 %v4138_v6, %s9355_s19 }
 0x4b7   : > { %4151 = vrot.lane.b32.xlu1 %v8454_v43, %s6754_s25 }
 0x4ba   : > { %v8458_v42 = vld [vmem:[#allocation5 + $0x18] sm:$0xff]  ;;  %v4131_v35 = vld [vmem:[#allocation5 + $0x20] sm:$0xf] }
 0x4bb   : > { %v8462_v10 = vcombine.high %v8458_v42, %v8458_v42  ;;  %4153 = vrot.lane.b32.xlu0 %v8458_v42, %s6754_s25  ;;  %v8483_v9 = vcombine.low %v8458_v42, %v8458_v42  ;;  %v6708_v3 = vld [vmem:[#allocation5 + $0x20] ss:$0 sps:$4 sm:$0xff]  }
 0x4bc   : > { %v4244_v18 = vld [vmem:[#allocation5 + $0x20] sm:$0xf] }
 0x4bd   : > { %4155 = vrot.lane.b32.xlu1 %v8462_v10, %s6754_s25  ;;  %v6709_v19 = vld [vmem:[#allocation5 + $0x20] ss:$0 sps:$4 sm:$0xff]  }
 0x4be   : > { %v4357_v27 = vld [vmem:[#allocation5 + $0x20] sm:$0xf] }
 0x4bf   : > { %4157 = vrot.lane.b32.xlu0 %v4131_v35, %s6754_s25  ;;  %s9366_s25 = smov 119  }
 0x4c1   : > { %v8475_v44 = vpop.permute.xlu1 %4656  ;;  %v4146_v57 = vpop.permute.xlu0 %4145  ;;  %4206 = vrot.lane.b32.xlu1 %v8473_v59, %s6753_s24 }
 0x4c3   : > { %4208 = vrot.lane.b32.xlu0 %v8439_v62, %s6753_s24 }
 0x4c5   : > { %v8485_v4 = vpop.permute.xlu1 %4765  ;;  %v4201_v48 = vpop.permute.xlu0 %4200  ;;  %4210 = vrot.lane.b32.xlu1 %v8483_v9, %s6753_s24 }
 0x4c7   : > { %4212 = vrot.lane.b32.xlu0 %v8458_v42, %s6753_s24 }
 0x4c9   : > { %v8491_v14 = vpop.permute.xlu1 %4769  ;;  %v8493_v22 = vpop.permute.xlu0 %4204  ;;  %4214 = vrot.lane.b32.xlu1 %v6708_v3, %s6753_s24  ;;  %s9365_s24 = smov 127  }
 0x4cb   : > { %4262 = vrot.lane.b32.xlu0 %v8439_v62, %s6755_s26 }
 0x4cd   : > { %v8498_v8 = vpop.permute.xlu1 %4593  ;;  %v4255_v29 = vpop.permute.xlu0 %4254  ;;  %4264 = vrot.lane.b32.xlu1 %v8454_v43, %s6755_s26 }
 0x4cf   : > { %4266 = vrot.lane.b32.xlu0 %v8458_v42, %s6755_s26 }
 0x4d1   : > { %v8504_v33 = vpop.permute.xlu1 %4706  ;;  %v4259_v56 = vpop.permute.xlu0 %4258  ;;  %4268 = vrot.lane.b32.xlu1 %v8462_v10, %s6755_s26 }
 0x4d3   : > { %4270 = vrot.lane.b32.xlu0 %v4244_v18, %s6755_s26  ;;  %s9367_s26 = smov 118  }
 0x4d5   : > { %v4314_v21 = vpop.permute.xlu0 %4313  ;;  %v4144_v28 = vpop.permute.xlu1 %4143  ;;  %4319 = vrot.lane.b32.xlu1 %v8473_v59, %s6756_s27 }
 0x4d6   : > { %v4159_v24 = vsel %vm545_vm2, %v4142_v63, %v4144_v28  ;;  %v4160_v51 = vsel %vm545_vm2, %v4144_v28, %v4146_v57  ;;  %v6710_v63 = vld [vmem:[#allocation5 + $0x20] ss:$0 sps:$4 sm:$0xff]  }
 0x4d7   : > { %4175 = vst [vmem:[#allocation2] sm:$0xf] %v4159_v24  ;;  %4176 = vst [vmem:[#allocation2 + $0x8] sm:$0xf] %v4160_v51  ;;  %4321 = vrot.lane.b32.xlu0 %v8439_v62, %s6756_s27 }
 0x4d9   : > { %v8515_v39 = vpop.permute.xlu0 %4317  ;;  %v8517_v41 = vpop.permute.xlu1 %4147  ;;  %4323 = vrot.lane.b32.xlu1 %v8483_v9, %s6756_s27 }
 0x4da   : > { %v4161_v45 = vsel %vm545_vm2, %v4146_v57, %v8517_v41 }
 0x4db   : > { %4177 = vst [vmem:[#allocation2 + $0x10] sm:$0xf] %v4161_v45  ;;  %4325 = vrot.lane.b32.xlu0 %v8458_v42, %s6756_s27 }
 0x4dd   : > { %v4368_v26 = vpop.permute.xlu0 %4367  ;;  %v4199_v38 = vpop.permute.xlu1 %4198  ;;  %4327 = vrot.lane.b32.xlu1 %v6709_v19, %s6756_s27  ;;  %s9368_s27 = smov 117  }
 0x4de   : > { %v4216_v54 = vsel %vm561_vm1, %v4199_v38, %v4201_v48 }
 0x4df   : > { %4232 = vst [vmem:[#allocation2] sm:$0xf0] %v4216_v54  ;;  %4375 = vrot.lane.b32.xlu0 %v8439_v62, %s6757_s28 }
 0x4e1   : > { %v4372_v6 = vpop.permute.xlu0 %4371  ;;  %v4203_v58 = vpop.permute.xlu1 %4202  ;;  %4377 = vrot.lane.b32.xlu1 %v8454_v43, %s6757_s28 }
 0x4e2   : > { %v4217_v36 = vsel %vm561_vm1, %v4201_v48, %v4203_v58  ;;  %v4218_v31 = vsel %vm561_vm1, %v4203_v58, %v8493_v22 }
 0x4e3   : > { %4233 = vst [vmem:[#allocation2 + $0x8] sm:$0xf0] %v4217_v36  ;;  %4234 = vst [vmem:[#allocation2 + $0x10] sm:$0xf0] %v4218_v31  ;;  %4379 = vrot.lane.b32.xlu0 %v8458_v42, %s6757_s28 }
 0x4e5   : > { %v8536_v47 = vpop.permute.xlu0 %4426  ;;  %v4257_v32 = vpop.permute.xlu1 %4256  ;;  %4381 = vrot.lane.b32.xlu1 %v8462_v10, %s6757_s28 }
 0x4e6   : > { %v4272_v46 = vsel %vm578_vm3, %v4255_v29, %v4257_v32  ;;  %v4273_v2 = vsel %vm578_vm3, %v4257_v32, %v4259_v56  ;;  %v5620_v38 = vld [vmem:[#allocation2] sm:$0xff] }
 0x4e7   : > { %4288 = vst [vmem:[#allocation2 + $0x40] sm:$0xf] %v4272_v46  ;;  %4289 = vst [vmem:[#allocation2 + $0x48] sm:$0xf] %v4273_v2  ;;  %4383 = vrot.lane.b32.xlu0 %v4357_v27, %s6757_s28  ;;  %s9369_s28 = smov 39  }
 0x4e9   : > { %v8543_v0 = vpop.permute.xlu0 %4430  ;;  %v8545_v34 = vpop.permute.xlu1 %4260  ;;  %4432 = vrot.lane.b32.xlu1 %v8473_v59, %s9362_s29 }
 0x4ea   : > { %v4274_v11 = vsel %vm578_vm3, %v4259_v56, %v8545_v34  ;;  %v5621_v45 = vld [vmem:[#allocation2 + $0x8] sm:$0xff] }
 0x4eb   : > { %4290 = vst [vmem:[#allocation2 + $0x50] sm:$0xf] %v4274_v11  ;;  %4434 = vrot.lane.b32.xlu0 %v8439_v62, %s9362_s29 }
 0x4ed   : > { %v4481_v53 = vpop.permute.xlu0 %4480  ;;  %v4312_v17 = vpop.permute.xlu1 %4311  ;;  %4436 = vrot.lane.b32.xlu1 %v8483_v9, %s9362_s29 }
 0x4ee   : > { %v4329_v60 = vsel %vm595_vm4, %v4312_v17, %v4314_v21 }
 0x4ef   : > { %4345 = vst [vmem:[#allocation2 + $0x40] sm:$0xf0] %v4329_v60  ;;  %4438 = vrot.lane.b32.xlu0 %v8458_v42, %s9362_s29 }
 0x4f1   : > { %v4485_v35 = vpop.permute.xlu0 %4484  ;;  %v4316_v57 = vpop.permute.xlu1 %4315  ;;  %4440 = vrot.lane.b32.xlu1 %v6710_v63, %s9362_s29  ;;  %s9372_s29 = smov 29  }
 0x4f2   : > { %v4330_v48 = vsel %vm595_vm4, %v4314_v21, %v4316_v57  ;;  %v4331_v3 = vsel %vm595_vm4, %v4316_v57, %v8515_v39 }
 0x4f3   : > { %4346 = vst [vmem:[#allocation2 + $0x48] sm:$0xf0] %v4330_v48  ;;  %4347 = vst [vmem:[#allocation2 + $0x50] sm:$0xf0] %v4331_v3  ;;  %4488 = vrot.lane.b32.xlu0 %v8439_v62, %s9363_s12 }
 0x4f5   : > { %v4540_v9 = vpop.permute.xlu0 %4539  ;;  %v4370_v29 = vpop.permute.xlu1 %4369  ;;  %4490 = vrot.lane.b32.xlu1 %v8454_v43, %s9363_s12 }
 0x4f6   : > { %v4385_v56 = vsel %vm612_vm5, %v4368_v26, %v4370_v29  ;;  %v4386_v18 = vsel %vm612_vm5, %v4370_v29, %v4372_v6  ;;  %v5628_v24 = vld [vmem:[#allocation2 + $0x40] sm:$0xff] }
 0x4f7   : > { %4401 = vst [vmem:[#allocation2 + $0x80] sm:$0xf] %v4385_v56  ;;  %4402 = vst [vmem:[#allocation2 + $0x88] sm:$0xf] %v4386_v18  ;;  %4492 = vrot.lane.b32.xlu0 %v8458_v42, %s9363_s12  ;;  %v6534_v42 = vpack.c.bf16 %v5628_v24, %v5620_v38 }
 0x4f9   : > { %v8570_v21 = vpop.permute.xlu0 %4543  ;;  %v8572_v28 = vpop.permute.xlu1 %4373  ;;  %4494 = vrot.lane.b32.xlu1 %v8462_v10, %s9363_s12 }
 0x4fa   : > { %v4387_v51 = vsel %vm612_vm5, %v4372_v6, %v8572_v28  ;;  %v5629_v19 = vld [vmem:[#allocation2 + $0x48] sm:$0xff]  ;;  %v8590_v6 = vcombine.low %v8316_v15, %v8316_v15  ;;  %v8604_v15 = vcombine.low %v8350_v23, %v8350_v23 }
 0x4fb   : > { %4403 = vst [vmem:[#allocation2 + $0x90] sm:$0xf] %v4387_v51  ;;  %4601 = vrot.lane.b32.xlu0 %v8439_v62, %s6761_s13  ;;  %v6532_v26 = vpack.c.bf16 %v5629_v19, %v5621_v45 }
 0x4fd   : > { %v8580_v54 = vpop.permute.xlu0 %4597  ;;  %6533 = vmatprep.subr.bf16.mxu0 %v6532_v26  ;;  %v4425_v58 = vpop.permute.xlu1 %4424  ;;  %4545 = vrot.lane.b32.xlu1 %v8473_v59, %s9364_s20 }
 0x4fe   : > { %v4442_v10 = vsel %vm629_vm6, %v4425_v58, %v8536_v47  ;;  %6535 = vmatpush1.bf16.msra.mxu0 %v6534_v42 }
 0x4ff   : > { %4458 = vst [vmem:[#allocation2 + $0x80] sm:$0xf0] %v4442_v10  ;;  %4714 = vrot.lane.b32.xlu0 %v8439_v62, %s9359_s15  ;;  %s9375_s15 = smov 19  }
 0x501   : > { %v8592_v36 = vpop.permute.xlu0 %4710  ;;  %v4429_v31 = vpop.permute.xlu1 %4428  ;;  %4901 = vrot.lane.b32.xlu1 %v8590_v6, %s9365_s24 }
 0x502   : > { %v4443_v32 = vsel %vm629_vm6, %v8536_v47, %v4429_v31  ;;  %v4444_v46 = vsel %vm629_vm6, %v4429_v31, %v8543_v0 }
 0x503   : > { %4459 = vst [vmem:[#allocation2 + $0x88] sm:$0xf0] %v4443_v32  ;;  %4460 = vst [vmem:[#allocation2 + $0x90] sm:$0xf0] %v4444_v46  ;;  %4658 = vrot.lane.b32.xlu0 %v8473_v59, %s6762_s14 }
 0x505   : > { %v8606_v2 = vpop.permute.xlu0 %4823  ;;  %v4483_v27 = vpop.permute.xlu1 %4482  ;;  %4905 = vrot.lane.b32.xlu1 %v8604_v15, %s9365_s24 }
 0x506   : > { %v4498_v47 = vsel %vm646_vm7, %v4481_v53, %v4483_v27  ;;  %v4499_v11 = vsel %vm646_vm7, %v4483_v27, %v4485_v35  ;;  %v5636_v10 = vld [vmem:[#allocation2 + $0x80] sm:$0xff] }
 0x507   : > { %4514 = vst [vmem:[#allocation2 + $0xc0] sm:$0xf] %v4498_v47  ;;  %4515 = vst [vmem:[#allocation2 + $0xc8] sm:$0xf] %v4499_v11  ;;  %4771 = vrot.lane.b32.xlu0 %v8473_v59, %s9357_s16  ;;  %s9374_s16 = smov 27  }
 0x509   : > { %v4538_v17 = vpop.permute.xlu0 %4537  ;;  %v8614_v60 = vpop.permute.xlu1 %4486  ;;  %4958 = vrot.lane.b32.xlu1 %v8319_v50, %s9366_s25 }
 0x50a   : > { %v4555_v23 = vsel %vm663_vm8, %v4538_v17, %v4540_v9  ;;  %v4500_v63 = vsel %vm646_vm7, %v4485_v35, %v8614_v60  ;;  %v5637_v38 = vld [vmem:[#allocation2 + $0x88] sm:$0xff] }
 0x50b   : > { %4571 = vst [vmem:[#allocation2 + $0xc0] sm:$0xf0] %v4555_v23  ;;  %4516 = vst [vmem:[#allocation2 + $0xd0] sm:$0xf] %v4500_v63  ;;  %4827 = vrot.lane.b32.xlu0 %v8439_v62, %s9355_s19 }
 0x50d   : > { %v4655_v53 = vpop.permute.xlu0 %4654  ;;  %v4542_v57 = vpop.permute.xlu1 %4541  ;;  %4962 = vrot.lane.b32.xlu1 %v8357_v61, %s9366_s25 }
 0x50e   : > { %v4669_v59 = vsel %vm697_vm10, %v8466_v37, %v4655_v53  ;;  %v4670_v48 = vsel %vm697_vm10, %v4655_v53, %v8475_v44  ;;  %v4556_v3 = vsel %vm663_vm8, %v4540_v9, %v4542_v57  ;;  %v4557_v35 = vsel %vm663_vm8, %v4542_v57, %v8570_v21 }
 0x50f   : > { %4685 = vst [vmem:[#allocation2 + $0x108] sm:$0xf0] %v4669_v59  ;;  %4686 = vst [vmem:[#allocation2 + $0x110] sm:$0xf0] %v4670_v48  ;;  %4903 = vrot.lane.b32.xlu0 %v8357_v61, %s9365_s24 }
 0x510   : > { %4572 = vst [vmem:[#allocation2 + $0xc8] sm:$0xf0] %v4556_v3  ;;  %4573 = vst [vmem:[#allocation2 + $0xd0] sm:$0xf0] %v4557_v35 }
 0x511   : > { %v4768_v29 = vpop.permute.xlu0 %4767  ;;  %v4596_v56 = vpop.permute.xlu1 %4595  ;;  %4819 = vrot.lane.b32.xlu1 %v8326_v30, %s9355_s19  ;;  %s9373_s19 = smov 28  }
 0x512   : > { %v4782_v18 = vsel %vm731_vm12, %v8485_v4, %v4768_v29  ;;  %v4783_v9 = vsel %vm731_vm12, %v4768_v29, %v8491_v14  ;;  %v4611_v24 = vsel %vm680_vm9, %v8498_v8, %v4596_v56  ;;  %v4612_v51 = vsel %vm680_vm9, %v4596_v56, %v8580_v54  ;;  %v5644_v19 = vld [vmem:[#allocation2 + $0xc0] sm:$0xff] }
 0x513   : > { %4798 = vst [vmem:[#allocation2 + $0x148] sm:$0xf0] %v4782_v18  ;;  %4799 = vst [vmem:[#allocation2 + $0x150] sm:$0xf0] %v4783_v9  ;;  %4907 = vrot.lane.b32.xlu0 %v8365_v7, %s9365_s24  ;;  %v6538_v31 = vpack.c.bf16 %v5644_v19, %v5636_v10 }
 0x514   : > { %4627 = vst [vmem:[#allocation2 + $0x100] sm:$0xf] %v4611_v24  ;;  %4628 = vst [vmem:[#allocation2 + $0x108] sm:$0xf] %v4612_v51 }
 0x515   : > { %v4651_v30 = vpop.permute.xlu0 %4650  ;;  %v8646_v45 = vpop.permute.xlu1 %4599  ;;  %4956 = vrot.lane.b32.xlu1 %v8322_v55, %s9366_s25 }
 0x516   : > { %v4668_v8 = vsel %vm697_vm10, %v4651_v30, %v8466_v37  ;;  %v4613_v26 = vsel %vm680_vm9, %v8580_v54, %v8646_v45 }
 0x517   : > { %v5645_v42 = vld [vmem:[#allocation2 + $0xc8] sm:$0xff]  ;;  %4684 = vst [vmem:[#allocation2 + $0x100] sm:$0xf0] %v4668_v8  ;;  %4629 = vst [vmem:[#allocation2 + $0x110] sm:$0xf] %v4613_v26  ;;  %4960 = vrot.lane.b32.xlu0 %v8361_v40, %s9366_s25 }
 0x518   : > { %v6536_v58 = vpack.c.bf16 %v5645_v42, %v5637_v38 }
 0x519   : > { %v4764_v32 = vpop.permute.xlu0 %4763  ;;  %v4709_v46 = vpop.permute.xlu1 %4708  ;;  %5016 = vrot.lane.b32.xlu1 %v8357_v61, %s9367_s26 }
 0x51a   : > { %6537 = vmatprep.subr.bf16.mxu0 %v6536_v58  ;;  %v4781_v37 = vsel %vm731_vm12, %v4764_v32, %v8485_v4  ;;  %v4724_v54 = vsel %vm714_vm11, %v8504_v33, %v4709_v46  ;;  %v4725_v27 = vsel %vm714_vm11, %v4709_v46, %v8592_v36 }
 0x51b   : > { %6539 = vmatpush1.bf16.msra.mxu0 %v6538_v31  ;;  %4797 = vst [vmem:[#allocation2 + $0x140] sm:$0xf0] %v4781_v37  ;;  %4740 = vst [vmem:[#allocation2 + $0x140] sm:$0xf] %v4724_v54  ;;  %4964 = vrot.lane.b32.xlu0 %v8369_v52, %s9366_s25  ;;  %v5653_v23 = vld [vmem:[#allocation2 + $0x108] sm:$0xff] }
 0x51c   : > { %4741 = vst [vmem:[#allocation2 + $0x148] sm:$0xf] %v4725_v27 }
 0x51d   : > { %v8667_v47 = vpop.permute.xlu1 %4712  ;;  %v4150_v11 = vpop.permute.xlu0 %4149  ;;  %5020 = vrot.lane.b32.xlu1 %v8365_v7, %s9367_s26 }
 0x51e   : > { %v4726_v4 = vsel %vm714_vm11, %v8592_v36, %v8667_v47  ;;  %v4162_v33 = vsel %vm545_vm2, %v8517_v41, %v4150_v11  ;;  %v5652_v36 = vld [vmem:[#allocation2 + $0x100] sm:$0xff] }
 0x51f   : > { %4742 = vst [vmem:[#allocation2 + $0x150] sm:$0xf] %v4726_v4  ;;  %4178 = vst [vmem:[#allocation2 + $0x18] sm:$0xf] %v4162_v33  ;;  %4899 = vrot.lane.b32.xlu0 %v8319_v50, %s9365_s24  ;;  %v8742_v33 = vld [vmem:[#allocation5 + $0x4] sm:$0xff] }
 0x521   : > { %v8678_v17 = vpop.permute.xlu1 %4821  ;;  %5073 = vrot.lane.b32.xlu1 %v8361_v40, %s9368_s27 }
 0x522   : > { %v4838_v63 = vsel %vm748_vm13, %v8678_v17, %v8606_v2  ;;  %v5660_v57 = vld [vmem:[#allocation2 + $0x140] sm:$0xff] }
 0x523   : > { %v5661_v53 = vld [vmem:[#allocation2 + $0x148] sm:$0xff]  ;;  %4854 = vst [vmem:[#allocation2 + $0x188] sm:$0xf] %v4838_v63  ;;  %5014 = vrot.lane.b32.xlu0 %v8590_v6, %s9367_s26  ;;  %v6542_v59 = vpack.c.bf16 %v5660_v57, %v5652_v36 }
 0x524   : > { %v6540_v41 = vpack.c.bf16 %v5661_v53, %v5653_v23 }
 0x525   : > { %v8687_v48 = vpop.permute.xlu1 %4825  ;;  %5077 = vrot.lane.b32.xlu1 %v8369_v52, %s9368_s27 }
 0x526   : > { %6541 = vmatprep.subr.bf16.mxu0 %v6540_v41  ;;  %v4839_v3 = vsel %vm748_vm13, %v8606_v2, %v8687_v48 }
 0x527   : > { %6543 = vmatpush1.bf16.msra.mxu0 %v6542_v59  ;;  %4855 = vst [vmem:[#allocation2 + $0x190] sm:$0xf] %v4839_v3  ;;  %5018 = vrot.lane.b32.xlu0 %v8604_v15, %s9367_s26  ;;  %v5630_v59 = vld [vmem:[#allocation2 + $0x50] sm:$0xff] }
 0x529   : > { %5129 = vrot.lane.b32.xlu1 %v8357_v61, %s9369_s28  ;;  %v4152_v35 = vpop.permute.xlu1 %4151 }
 0x52a   : > { %v4163_v29 = vsel %vm545_vm2, %v4150_v11, %v4152_v35 }
 0x52b   : > { %4179 = vst [vmem:[#allocation2 + $0x20] sm:$0xf] %v4163_v29  ;;  %5071 = vrot.lane.b32.xlu0 %v8319_v50, %s9368_s27 }
 0x52d   : > { %v4154_v56 = vpop.permute.xlu0 %4153  ;;  %5133 = vrot.lane.b32.xlu1 %v8365_v7, %s9369_s28 }
 0x52e   : > { %v4164_v2 = vsel %vm545_vm2, %v4152_v35, %v4154_v56  ;;  %v8764_v35 = vld [vmem:[#allocation5 + $0xc] sm:$0xff] }
 0x52f   : > { %4180 = vst [vmem:[#allocation2 + $0x28] sm:$0xf] %v4164_v2  ;;  %5075 = vrot.lane.b32.xlu0 %v8357_v61, %s9368_s27  ;;  %v4156_v18 = vpop.permute.xlu1 %4155 }
 0x530   : > { %v4165_v9 = vsel %vm545_vm2, %v4154_v56, %v4156_v18 }
 0x531   : > { %4181 = vst [vmem:[#allocation2 + $0x30] sm:$0xf] %v4165_v9  ;;  %v4158_v24 = vpop.permute.xlu0 %4157  ;;  %5186 = vrot.lane.b32.xlu1 %v8361_v40, %s9370_s21 }
 0x532   : > { %v4166_v51 = vsel %vm545_vm2, %v4156_v18, %v4158_v24  ;;  %v5622_v18 = vld [vmem:[#allocation2 + $0x10] sm:$0xff]  ;;  %vm9378_vm2 = vmmov %vm9376_vm0 }
 0x533   : > { %4182 = vst [vmem:[#allocation2 + $0x38] sm:$0xf] %v4166_v51  ;;  %5127 = vrot.lane.b32.xlu0 %v8590_v6, %s9369_s28  ;;  %v4207_v30 = vpop.permute.xlu1 %4206  ;;  %v6566_v24 = vpack.c.bf16 %v5630_v59, %v5622_v18 }
 0x534   : > { %v4219_v19 = vsel %vm561_vm1, %v8493_v22, %v4207_v30 }
 0x535   : > { %4235 = vst [vmem:[#allocation2 + $0x18] sm:$0xf0] %v4219_v19  ;;  %v4209_v8 = vpop.permute.xlu0 %4208  ;;  %5190 = vrot.lane.b32.xlu1 %v8369_v52, %s9370_s21 }
 0x536   : > { %v4220_v26 = vsel %vm561_vm1, %v4207_v30, %v4209_v8  ;;  %v8773_v30 = vld [vmem:[#allocation5 + $0x14] sm:$0xff] }
 0x537   : > { %4236 = vst [vmem:[#allocation2 + $0x20] sm:$0xf0] %v4220_v26  ;;  %5131 = vrot.lane.b32.xlu0 %v8604_v15, %s9369_s28  ;;  %v4211_v38 = vpop.permute.xlu1 %4210  ;;  %v5404_v26 = vcombine.low %v8764_v35, %v8764_v35 }
 0x538   : > { %v4221_v42 = vsel %vm561_vm1, %v4209_v8, %v4211_v38 }
 0x539   : > { %4237 = vst [vmem:[#allocation2 + $0x28] sm:$0xf0] %v4221_v42  ;;  %v4213_v6 = vpop.permute.xlu0 %4212  ;;  %5069 = vrot.lane.b32.xlu1 %v8322_v55, %s9368_s27 }
 0x53a   : > { %v4222_v22 = vsel %vm561_vm1, %v4211_v38, %v4213_v6 }
 0x53b   : > { %4238 = vst [vmem:[#allocation2 + $0x30] sm:$0xf0] %v4222_v22  ;;  %5184 = vrot.lane.b32.xlu0 %v8319_v50, %s9370_s21  ;;  %v4215_v58 = vpop.permute.xlu1 %4214 }
 0x53c   : > { %v4223_v10 = vsel %vm561_vm1, %v4213_v6, %v4215_v58  ;;  %v5623_v29 = vld [vmem:[#allocation2 + $0x18] sm:$0xff]  ;;  %vm9377_vm1 = vmmov %vm9376_vm0 }
 0x53d   : > { %4239 = vst [vmem:[#allocation2 + $0x38] sm:$0xf0] %v4223_v10  ;;  %v4263_v31 = vpop.permute.xlu0 %4262  ;;  %5182 = vrot.lane.b32.xlu1 %v8322_v55, %s9370_s21  ;;  %v8793_v10 = vcombine.high %v8764_v35, %v8764_v35 }
 0x53e   : > { %v4275_v32 = vsel %vm578_vm3, %v8545_v34, %v4263_v31 }
 0x53f   : > { %4291 = vst [vmem:[#allocation2 + $0x58] sm:$0xf] %v4275_v32  ;;  %5188 = vrot.lane.b32.xlu0 %v8357_v61, %s9370_s21  ;;  %v4265_v46 = vpop.permute.xlu1 %4264 }
 0x540   : > { %v4276_v37 = vsel %vm578_vm3, %v4263_v31, %v4265_v46 }
 0x541   : > { %4292 = vst [vmem:[#allocation2 + $0x60] sm:$0xf] %v4276_v37  ;;  %v4267_v54 = vpop.permute.xlu0 %4266  ;;  %5242 = vrot.lane.b32.xlu1 %v8357_v61, %s9371_s23 }
 0x542   : > { %v4277_v27 = vsel %vm578_vm3, %v4265_v46, %v4267_v54  ;;  %v8799_v46 = vcombine.low %v8742_v33, %v8742_v33 }
 0x543   : > { %4293 = vst [vmem:[#allocation2 + $0x68] sm:$0xf] %v4277_v27  ;;  %5012 = vrot.lane.b32.xlu0 %v8319_v50, %s9367_s26  ;;  %v4269_v55 = vpop.permute.xlu1 %4268 }
 0x544   : > { %v4278_v34 = vsel %vm578_vm3, %v4267_v54, %v4269_v55 }
 0x545   : > { %4294 = vst [vmem:[#allocation2 + $0x70] sm:$0xf] %v4278_v34  ;;  %v4271_v11 = vpop.permute.xlu0 %4270  ;;  %5246 = vrot.lane.b32.xlu1 %v8365_v7, %s9371_s23  ;;  %v8752_v7 = vcombine.high %v8742_v33, %v8742_v33 }
 0x546   : > { %v4279_v4 = vsel %vm578_vm3, %v4269_v55, %v4271_v11  ;;  %vm9379_vm3 = vcmask 973824  }
 0x547   : > { %4295 = vst [vmem:[#allocation2 + $0x78] sm:$0xf] %v4279_v4  ;;  %5125 = vrot.lane.b32.xlu0 %v8319_v50, %s9369_s28  ;;  %v4320_v23 = vpop.permute.xlu1 %4319 }
 0x548   : > { %v4332_v63 = vsel %vm595_vm4, %v8515_v39, %v4320_v23 }
 0x549   : > { %4348 = vst [vmem:[#allocation2 + $0x58] sm:$0xf0] %v4332_v63  ;;  %v4322_v53 = vpop.permute.xlu0 %4321  ;;  %5299 = vrot.lane.b32.xlu1 %v8361_v40, %s9372_s29 }
 0x54a   : > { %v4333_v36 = vsel %vm595_vm4, %v4320_v23, %v4322_v53 }
 0x54b   : > { %4349 = vst [vmem:[#allocation2 + $0x60] sm:$0xf0] %v4333_v36  ;;  %5240 = vrot.lane.b32.xlu0 %v8752_v7, %s9371_s23  ;;  %v4324_v50 = vpop.permute.xlu1 %4323 }
 0x54c   : > { %v4334_v57 = vsel %vm595_vm4, %v4322_v53, %v4324_v50 }
 0x54d   : > { %4350 = vst [vmem:[#allocation2 + $0x68] sm:$0xf0] %v4334_v57  ;;  %v4326_v39 = vpop.permute.xlu0 %4325  ;;  %5303 = vrot.lane.b32.xlu1 %v8369_v52, %s9372_s29 }
 0x54e   : > { %v4335_v40 = vsel %vm595_vm4, %v4324_v50, %v4326_v39 }
 0x54f   : > { %4351 = vst [vmem:[#allocation2 + $0x70] sm:$0xf0] %v4335_v40  ;;  %5244 = vrot.lane.b32.xlu0 %v8604_v15, %s9371_s23  ;;  %v4328_v41 = vpop.permute.xlu1 %4327 }
 0x550   : > { %v4336_v3 = vsel %vm595_vm4, %v4326_v39, %v4328_v41  ;;  %v5631_v56 = vld [vmem:[#allocation2 + $0x58] sm:$0xff]  ;;  %vm9380_vm4 = vmmov %vm9379_vm3 }
 0x551   : > { %4352 = vst [vmem:[#allocation2 + $0x78] sm:$0xf0] %v4336_v3  ;;  %v4376_v2 = vpop.permute.xlu0 %4375  ;;  %5355 = vrot.lane.b32.xlu1 %v8764_v35, %s9373_s19  ;;  %v6564_v52 = vpack.c.bf16 %v5631_v56, %v5623_v29 }
 0x552   : > { %v4388_v9 = vsel %vm612_vm5, %v8572_v28, %v4376_v2 }
 0x553   : > { %4404 = vst [vmem:[#allocation2 + $0x98] sm:$0xf] %v4388_v9  ;;  %5297 = vrot.lane.b32.xlu0 %v8742_v33, %s9372_s29  ;;  %6565 = vmatprep.subr.bf16.mxu1 %v6564_v52  ;;  %v4378_v15 = vpop.permute.xlu1 %4377 }
 0x554   : > { %v4389_v51 = vsel %vm612_vm5, %v4376_v2, %v4378_v15  ;;  %6567 = vmatpush1.bf16.msra.mxu1 %v6566_v24  ;;  %v5638_v24 = vld [vmem:[#allocation2 + $0x90] sm:$0xff] }
 0x555   : > { %4405 = vst [vmem:[#allocation2 + $0xa0] sm:$0xf] %v4389_v51  ;;  %v4380_v19 = vpop.permute.xlu0 %4379  ;;  %5359 = vrot.lane.b32.xlu1 %v8773_v30, %s9373_s19 }
 0x556   : > { %v4390_v8 = vsel %vm612_vm5, %v4378_v15, %v4380_v19 }
 0x557   : > { %4406 = vst [vmem:[#allocation2 + $0xa8] sm:$0xf] %v4390_v8  ;;  %5301 = vrot.lane.b32.xlu0 %v8357_v61, %s9372_s29  ;;  %v4382_v28 = vpop.permute.xlu1 %4381  ;;  %v5405_v61 = vcombine.low %v8773_v30, %v8773_v30 }
 0x558   : > { %v4391_v38 = vsel %vm612_vm5, %v4380_v19, %v4382_v28 }
 0x559   : > { %4407 = vst [vmem:[#allocation2 + $0xb0] sm:$0xf] %v4391_v38  ;;  %v4384_v42 = vpop.permute.xlu0 %4383  ;;  %5412 = vrot.lane.b32.xlu1 %v5404_v26, %s9374_s16 }
 0x55a   : > { %v4392_v6 = vsel %vm612_vm5, %v4382_v28, %v4384_v42  ;;  %vm9381_vm5 = vmmov %vm9379_vm3 }
 0x55b   : > { %4408 = vst [vmem:[#allocation2 + $0xb8] sm:$0xf] %v4392_v6  ;;  %5353 = vrot.lane.b32.xlu0 %v8752_v7, %s9373_s19  ;;  %v4433_v22 = vpop.permute.xlu1 %4432 }
 0x55c   : > { %v4445_v58 = vsel %vm629_vm6, %v8543_v0, %v4433_v22 }
 0x55d   : > { %4461 = vst [vmem:[#allocation2 + $0x98] sm:$0xf0] %v4445_v58  ;;  %v4435_v31 = vpop.permute.xlu0 %4434  ;;  %5416 = vrot.lane.b32.xlu1 %v5405_v61, %s9374_s16 }
 0x55e   : > { %v4446_v32 = vsel %vm629_vm6, %v4433_v22, %v4435_v31 }
 0x55f   : > { %4462 = vst [vmem:[#allocation2 + $0xa0] sm:$0xf0] %v4446_v32  ;;  %5357 = vrot.lane.b32.xlu0 %v8793_v10, %s9373_s19  ;;  %v4437_v37 = vpop.permute.xlu1 %4436 }
 0x560   : > { %v4447_v0 = vsel %vm629_vm6, %v4435_v31, %v4437_v37  ;;  %v4470_v31 = vld [vmem:[#allocation5 + $0x20] sm:$0xf] }
 0x561   : > { %4463 = vst [vmem:[#allocation2 + $0xa8] sm:$0xf0] %v4447_v0  ;;  %v4439_v54 = vpop.permute.xlu0 %4438  ;;  %5295 = vrot.lane.b32.xlu1 %v8799_v46, %s9372_s29 }
 0x562   : > { %v4448_v27 = vsel %vm629_vm6, %v4437_v37, %v4439_v54 }
 0x563   : > { %4464 = vst [vmem:[#allocation2 + $0xb0] sm:$0xf0] %v4448_v27  ;;  %5410 = vrot.lane.b32.xlu0 %v8742_v33, %s9374_s16  ;;  %v4441_v55 = vpop.permute.xlu1 %4440 }
 0x564   : > { %v4449_v34 = vsel %vm629_vm6, %v4439_v54, %v4441_v55  ;;  %v5639_v2 = vld [vmem:[#allocation2 + $0x98] sm:$0xff]  ;;  %vm9382_vm6 = vmmov %vm9379_vm3 }
 0x565   : > { %4465 = vst [vmem:[#allocation2 + $0xb8] sm:$0xf0] %v4449_v34  ;;  %v4489_v11 = vpop.permute.xlu0 %4488  ;;  %5408 = vrot.lane.b32.xlu1 %v8799_v46, %s9374_s16 }
 0x566   : > { %v4501_v4 = vsel %vm646_vm7, %v8614_v60, %v4489_v11 }
 0x567   : > { %4517 = vst [vmem:[#allocation2 + $0xd8] sm:$0xf] %v4501_v4  ;;  %5414 = vrot.lane.b32.xlu0 %v8764_v35, %s9374_s16  ;;  %v4491_v23 = vpop.permute.xlu1 %4490 }
 0x568   : > { %v4502_v63 = vsel %vm646_vm7, %v4489_v11, %v4491_v23  ;;  %v6718_v11 = vld [vmem:[#allocation5 + $0x20] ss:$0 sps:$4 sm:$0xff]  }
 0x569   : > { %4518 = vst [vmem:[#allocation2 + $0xe0] sm:$0xf] %v4502_v63  ;;  %v4493_v53 = vpop.permute.xlu0 %4492  ;;  %5468 = vrot.lane.b32.xlu1 %v8764_v35, %s9375_s15 }
 0x56a   : > { %v4503_v36 = vsel %vm646_vm7, %v4491_v23, %v4493_v53 }
 0x56b   : > { %4519 = vst [vmem:[#allocation2 + $0xe8] sm:$0xf] %v4503_v36  ;;  %5238 = vrot.lane.b32.xlu0 %v8742_v33, %s9371_s23  ;;  %v8822_v50 = vpop.permute.xlu1 %4494 }
 0x56c   : > { %v4504_v60 = vsel %vm646_vm7, %v4493_v53, %v8822_v50 }
 0x56d   : > { %4520 = vst [vmem:[#allocation2 + $0xf0] sm:$0xf] %v4504_v60  ;;  %v8826_v57 = vpop.permute.xlu0 %4601  ;;  %5472 = vrot.lane.b32.xlu1 %v8773_v30, %s9375_s15  ;;  %v5669_v60 = vld [vmem:[#allocation2 + $0x188] sm:$0xff] }
 0x56e   : > { %v4614_v39 = vsel %vm680_vm9, %v8646_v45, %v8826_v57 }
 0x56f   : > { %4630 = vst [vmem:[#allocation2 + $0x118] sm:$0xf] %v4614_v39  ;;  %5351 = vrot.lane.b32.xlu0 %v8742_v33, %s9373_s19  ;;  %v8835_v40 = vpop.permute.xlu1 %4545 }
 0x570   : > { %v4558_v41 = vsel %vm663_vm8, %v8570_v21, %v8835_v40 }
 0x571   : > { %4574 = vst [vmem:[#allocation2 + $0xd8] sm:$0xf0] %v4558_v41  ;;  %v8840_v59 = vpop.permute.xlu0 %4714  ;;  %5525 = vrot.lane.b32.xlu1 %v5404_v26, %s6777_s30  ;;  %v5662_v26 = vld [vmem:[#allocation2 + $0x150] sm:$0xff] }
 0x572   : > { %v4727_v3 = vsel %vm714_vm11, %v8667_v47, %v8840_v59  ;;  %v5646_v47 = vld [vmem:[#allocation2 + $0xd0] sm:$0xff] }
 0x573   : > { %4743 = vst [vmem:[#allocation2 + $0x158] sm:$0xf] %v4727_v3  ;;  %5466 = vrot.lane.b32.xlu0 %v8752_v7, %s9375_s15  ;;  %v8848_v45 = vpop.permute.xlu1 %4901 }
 0x575   : > { %v8850_v29 = vpop.permute.xlu0 %4658  ;;  %5529 = vrot.lane.b32.xlu1 %v5405_v61, %s6777_s30  ;;  %v5654_v61 = vld [vmem:[#allocation2 + $0x110] sm:$0xff] }
 0x576   : > { %v4671_v21 = vsel %vm697_vm10, %v8475_v44, %v8850_v29  ;;  %v6570_v44 = vpack.c.bf16 %v5646_v47, %v5638_v24  ;;  %v6574_v32 = vpack.c.bf16 %v5662_v26, %v5654_v61  ;;  %v6720_v26 = vld [vmem:[#allocation5 + $0x20] ss:$0 sps:$4 sm:$0xff]  }
 0x577   : > { %4687 = vst [vmem:[#allocation2 + $0x118] sm:$0xf0] %v4671_v21  ;;  %5470 = vrot.lane.b32.xlu0 %v8793_v10, %s9375_s15  ;;  %v4906_v56 = vpop.permute.xlu1 %4905  ;;  %v4583_v21 = vld [vmem:[#allocation5 + $0x20] sm:$0xf] }
 0x578   : > { %v5647_v52 = vld [vmem:[#allocation2 + $0xd8] sm:$0xff] }
 0x579   : > { %v8858_v18 = vpop.permute.xlu0 %4771  ;;  %5581 = vrot.lane.b32.xlu1 %v8764_v35, %s6778_s22  ;;  %v6568_v9 = vpack.c.bf16 %v5647_v52, %v5639_v2 }
 0x57a   : > { %v4784_v15 = vsel %vm731_vm12, %v8491_v14, %v8858_v18 }
 0x57b   : > { %4800 = vst [vmem:[#allocation2 + $0x158] sm:$0xf0] %v4784_v15  ;;  %5523 = vrot.lane.b32.xlu0 %v8742_v33, %s6777_s30  ;;  %6569 = vmatprep.subr.bf16.mxu1 %v6568_v9  ;;  %v4959_v51 = vpop.permute.xlu1 %4958  ;;  %v5670_v9 = vld [vmem:[#allocation2 + $0x190] sm:$0xff] }
 0x57c   : > { %6571 = vmatpush1.bf16.msra.mxu1 %v6570_v44 }
 0x57d   : > { %v8867_v19 = vpop.permute.xlu0 %4827  ;;  %5585 = vrot.lane.b32.xlu1 %v8773_v30, %s6778_s22 }
 0x57e   : > { %v4840_v8 = vsel %vm748_vm13, %v8687_v48, %v8867_v19  ;;  %v5655_v6 = vld [vmem:[#allocation2 + $0x118] sm:$0xff] }
 0x57f   : > { %4856 = vst [vmem:[#allocation2 + $0x198] sm:$0xf] %v4840_v8  ;;  %5527 = vrot.lane.b32.xlu0 %v8764_v35, %s6777_s30  ;;  %v4963_v14 = vpop.permute.xlu1 %4962 }
 0x581   : > { %v4904_v28 = vpop.permute.xlu0 %4903  ;;  %5521 = vrot.lane.b32.xlu1 %v8799_v46, %s6777_s30  ;;  %v8885_v46 = vld [vmem:[#allocation5 + $0x18] sm:$0xff] }
 0x582   : > { %v4918_v38 = vsel %vm9376_vm0, %v8848_v45, %v4904_v28  ;;  %v4919_v42 = vsel %vm9377_vm1, %v4904_v28, %v4906_v56  ;;  %v5663_v22 = vld [vmem:[#allocation2 + $0x158] sm:$0xff]  ;;  %vm9383_vm1 = vcmask 965632  }
 0x583   : > { %4934 = vst [vmem:[#allocation2 + $0x1c8] sm:$0xf] %v4918_v38  ;;  %4935 = vst [vmem:[#allocation2 + $0x1d0] sm:$0xf] %v4919_v42  ;;  %5579 = vrot.lane.b32.xlu0 %v8752_v7, %s6778_s22  ;;  %v4820_v48 = vpop.permute.xlu1 %4819  ;;  %v6572_v35 = vpack.c.bf16 %v5663_v22, %v5655_v6  ;;  %v8938_v42 = vcombine.high %v8885_v46, %v8885_v46 }
 0x584   : > { %v4837_v58 = vsel %vm748_vm13, %v4820_v48, %v8678_v17  ;;  %v8896_v17 = vcombine.low %v8885_v46, %v8885_v46 }
 0x585   : > { %4853 = vst [vmem:[#allocation2 + $0x180] sm:$0xf] %v4837_v58  ;;  %v8887_v37 = vpop.permute.xlu0 %4907  ;;  %4496 = vrot.lane.b32.xlu1 %v4470_v31, %s9363_s12  ;;  %6573 = vmatprep.subr.bf16.mxu1 %v6572_v35  ;;  %s9387_s12 = smov 10   ;;  %v6734_v31 = vld [vmem:[#allocation5 + $0x10] sm:$0xff] }
 0x586   : > { %v4920_v0 = vsel %vm9378_vm2, %v4906_v56, %v8887_v37  ;;  %6575 = vmatpush1.bf16.msra.mxu1 %v6574_v32  ;;  %v5671_v2 = vld [vmem:[#allocation2 + $0x198] sm:$0xff]  ;;  %vm9384_vm2 = vmmov %vm9383_vm1 }
 0x587   : > { %4936 = vst [vmem:[#allocation2 + $0x1d8] sm:$0xf] %v4920_v0  ;;  %5583 = vrot.lane.b32.xlu0 %v8793_v10, %s6778_s22  ;;  %v4957_v7 = vpop.permute.xlu1 %4956  ;;  %v4696_v0 = vld [vmem:[#allocation5 + $0x20] sm:$0xf] }
 0x588   : > { %v4974_v54 = vsel %vm9379_vm3, %v4957_v7, %v4959_v51  ;;  %vm9385_vm3 = vmmov %vm9383_vm1 }
 0x589   : > { %4990 = vst [vmem:[#allocation2 + $0x1c0] sm:$0xf0] %v4974_v54  ;;  %v4961_v27 = vpop.permute.xlu0 %4960  ;;  %4549 = vrot.lane.b32.xlu1 %v8896_v17, %s9364_s20 }
 0x58a   : > { %v4975_v55 = vsel %vm9380_vm4, %v4959_v51, %v4961_v27  ;;  %v4976_v34 = vsel %vm9381_vm5, %v4961_v27, %v4963_v14  ;;  %vm9386_vm4 = vcmask 957440  }
 0x58b   : > { %4991 = vst [vmem:[#allocation2 + $0x1c8] sm:$0xf0] %v4975_v55  ;;  %4992 = vst [vmem:[#allocation2 + $0x1d0] sm:$0xf0] %v4976_v34  ;;  %5464 = vrot.lane.b32.xlu0 %v8742_v33, %s9375_s15  ;;  %v5017_v10 = vpop.permute.xlu1 %5016 }
 0x58c   : > { %v5668_v8 = vld [vmem:[#allocation2 + $0x180] sm:$0xff]  ;;  %vm9388_vm5 = vmmov %vm9386_vm4 }
 0x58d   : > { %v8905_v4 = vpop.permute.xlu0 %4964  ;;  %4553 = vrot.lane.b32.xlu1 %v6718_v11, %s9364_s20 }
 0x58e   : > { %v4977_v23 = vsel %vm9382_vm6, %v4963_v14, %v8905_v4  ;;  %vm9389_vm6 = vmmov %vm9386_vm4 }
 0x58f   : > { %4993 = vst [vmem:[#allocation2 + $0x1d8] sm:$0xf0] %v4977_v23  ;;  %5577 = vrot.lane.b32.xlu0 %v8742_v33, %s6778_s22  ;;  %v8912_v63 = vpop.permute.xlu1 %5020  ;;  %v6721_v23 = vld [vmem:[#allocation5 + $0x20] ss:$0 sps:$4 sm:$0xff]  }
 0x591   : > { %v4900_v53 = vpop.permute.xlu0 %4899  ;;  %4605 = vrot.lane.b32.xlu1 %v8885_v46, %s6761_s13 }
 0x592   : > { %v4917_v36 = vsel %vm9376_vm0, %v4900_v53, %v8848_v45  ;;  %v5677_v39 = vld [vmem:[#allocation2 + $0x1c8] sm:$0xff]  ;;  %v5678_v33 = vld [vmem:[#allocation2 + $0x1d0] sm:$0xff]  ;;  %vm9390_vm0 = vcmask 318464  }
 0x593   : > { %4933 = vst [vmem:[#allocation2 + $0x1c0] sm:$0xf] %v4917_v36  ;;  %4547 = vrot.lane.b32.xlu0 %v8439_v62, %s9364_s20  ;;  %v5074_v41 = vpop.permute.xlu1 %5073  ;;  %v6544_v3 = vpack.c.bf16 %v5677_v39, %v5669_v60  ;;  %v6578_v24 = vpack.c.bf16 %v5678_v33, %v5670_v9 }
 0x595   : > { %v8920_v56 = vpop.permute.xlu0 %5014  ;;  %4609 = vrot.lane.b32.xlu1 %v4583_v21, %s6761_s13  ;;  %6545 = vmatprep.subr.bf16.mxu0 %v6544_v3 }
 0x596   : > { %v5031_v47 = vsel %vm9383_vm1, %v8920_v56, %v5017_v10  ;;  %v5679_v45 = vld [vmem:[#allocation2 + $0x1d8] sm:$0xff]  ;;  %vm9392_vm1 = vmmov %vm9390_vm0 }
 0x597   : > { %5047 = vst [vmem:[#allocation2 + $0x208] sm:$0xf] %v5031_v47  ;;  %4551 = vrot.lane.b32.xlu0 %v8885_v46, %s9364_s20  ;;  %v8927_v52 = vpop.permute.xlu1 %5077  ;;  %v6576_v62 = vpack.c.bf16 %v5679_v45, %v5671_v2  ;;  %v4809_v47 = vld [vmem:[#allocation5 + $0x20] sm:$0xf] }
 0x599   : > { %v5019_v15 = vpop.permute.xlu0 %5018  ;;  %4662 = vrot.lane.b32.xlu1 %v8896_v17, %s6762_s14  ;;  %6577 = vmatprep.subr.bf16.mxu1 %v6576_v62 }
 0x59a   : > { %v5032_v44 = vsel %vm9384_vm2, %v5017_v10, %v5019_v15  ;;  %v5033_v51 = vsel %vm9385_vm3, %v5019_v15, %v8912_v63  ;;  %6579 = vmatpush1.bf16.msra.mxu1 %v6578_v24  ;;  %v5676_v14 = vld [vmem:[#allocation2 + $0x1c0] sm:$0xff]  ;;  %vm9393_vm2 = vmmov %vm9390_vm0 }
 0x59b   : > { %5048 = vst [vmem:[#allocation2 + $0x210] sm:$0xf] %v5032_v44  ;;  %5049 = vst [vmem:[#allocation2 + $0x218] sm:$0xf] %v5033_v51  ;;  %4603 = vrot.lane.b32.xlu0 %v8454_v43, %s6761_s13  ;;  %v5130_v28 = vpop.permute.xlu1 %5129  ;;  %v6546_v38 = vpack.c.bf16 %v5676_v14, %v5668_v8  ;;  %v8984_v44 = vld [vmem:[#allocation5 + $0x1c] sm:$0xff] }
 0x59c   : > { %vm9394_vm3 = vmmov %vm9386_vm4  ;;  %v4889_v8 = vld [vmem:[#allocation5 + $0x24] sm:$0xf] }
 0x59d   : > { %v5072_v6 = vpop.permute.xlu0 %5071  ;;  %4666 = vrot.lane.b32.xlu1 %v6720_v26, %s6762_s14  ;;  %6547 = vmatpush1.bf16.msra.mxu0 %v6546_v38 }
 0x59e   : > { %v5088_v22 = vsel %vm9386_vm4, %v5072_v6, %v5074_v41  ;;  %vm9395_vm4 = vcmask 310272  }
 0x59f   : > { %5104 = vst [vmem:[#allocation2 + $0x208] sm:$0xf0] %v5088_v22  ;;  %4607 = vrot.lane.b32.xlu0 %v8938_v42, %s6761_s13  ;;  %v8944_v48 = vpop.permute.xlu1 %5133  ;;  %s9391_s13 = smov 9  }
 0x5a1   : > { %v5076_v35 = vpop.permute.xlu0 %5075  ;;  %4718 = vrot.lane.b32.xlu1 %v8885_v46, %s9387_s12 }
 0x5a2   : > { %v5089_v61 = vsel %vm9388_vm5, %v5074_v41, %v5076_v35  ;;  %v5090_v58 = vsel %vm9389_vm6, %v5076_v35, %v8927_v52  ;;  %vm9396_vm5 = vmmov %vm9395_vm4 }
 0x5a3   : > { %5105 = vst [vmem:[#allocation2 + $0x210] sm:$0xf0] %v5089_v61  ;;  %5106 = vst [vmem:[#allocation2 + $0x218] sm:$0xf0] %v5090_v58  ;;  %4660 = vrot.lane.b32.xlu0 %v6734_v31, %s6762_s14  ;;  %v5187_v32 = vpop.permute.xlu1 %5186 }
 0x5a4   : > { %vm9398_vm6 = vmmov %vm9395_vm4 }
 0x5a5   : > { %v5128_v7 = vpop.permute.xlu0 %5127  ;;  %4722 = vrot.lane.b32.xlu1 %v4696_v0, %s9387_s12 }
 0x5a6   : > { %v5144_v54 = vsel %vm9390_vm0, %v5128_v7, %v5130_v28  ;;  %vm9399_vm0 = vmmov %vm9395_vm4  ;;  %v5685_v62 = vld [vmem:[#allocation2 + $0x208] sm:$0xff] }
 0x5a7   : > { %5160 = vst [vmem:[#allocation2 + $0x248] sm:$0xf] %v5144_v54  ;;  %4664 = vrot.lane.b32.xlu0 %v8885_v46, %s6762_s14  ;;  %v8956_v27 = vpop.permute.xlu1 %5190  ;;  %s9397_s14 = smov 1  }
 0x5a9   : > { %v5132_v55 = vpop.permute.xlu0 %5131  ;;  %4775 = vrot.lane.b32.xlu1 %v8896_v17, %s9391_s13 }
 0x5aa   : > { %v5145_v34 = vsel %vm9392_vm1, %v5130_v28, %v5132_v55  ;;  %v5146_v10 = vsel %vm9393_vm2, %v5132_v55, %v8944_v48  ;;  %vm9400_vm1 = vcmask 965632   ;;  %v5687_v14 = vld [vmem:[#allocation2 + $0x218] sm:$0xff]  ;;  %v5686_v26 = vld [vmem:[#allocation2 + $0x210] sm:$0xff] }
 0x5ab   : > { %5161 = vst [vmem:[#allocation2 + $0x250] sm:$0xf] %v5145_v34  ;;  %5162 = vst [vmem:[#allocation2 + $0x258] sm:$0xf] %v5146_v10  ;;  %4716 = vrot.lane.b32.xlu0 %v8454_v43, %s9387_s12  ;;  %v5070_v11 = vpop.permute.xlu1 %5069 }
 0x5ac   : > { %v5087_v53 = vsel %vm9394_vm3, %v5070_v11, %v5072_v6  ;;  %vm9401_vm3 = vcmask 302080  }
 0x5ad   : > { %5103 = vst [vmem:[#allocation2 + $0x200] sm:$0xf0] %v5087_v53  ;;  %v5185_v36 = vpop.permute.xlu0 %5184  ;;  %4779 = vrot.lane.b32.xlu1 %v6721_v23, %s9391_s13  ;;  %v9019_v23 = vcombine.high %v8984_v44, %v8984_v44 }
 0x5ae   : > { %v5201_v17 = vsel %vm9395_vm4, %v5185_v36, %v5187_v32  ;;  %vm9402_vm4 = vmmov %vm9401_vm3 }
 0x5af   : > { %5217 = vst [vmem:[#allocation2 + $0x248] sm:$0xf0] %v5201_v17  ;;  %4720 = vrot.lane.b32.xlu0 %v8938_v42, %s9387_s12  ;;  %v5183_v60 = vpop.permute.xlu1 %5182 }
 0x5b0   : > { %v5200_v39 = vsel %vm9396_vm5, %v5183_v60, %v5185_v36  ;;  %vm9403_vm5 = vmmov %vm9401_vm3 }
 0x5b1   : > { %5216 = vst [vmem:[#allocation2 + $0x240] sm:$0xf0] %v5200_v39  ;;  %v5189_v41 = vpop.permute.xlu0 %5188  ;;  %4831 = vrot.lane.b32.xlu1 %v8885_v46, %s9397_s14 }
 0x5b2   : > { %v5202_v3 = vsel %vm9398_vm6, %v5187_v32, %v5189_v41  ;;  %v5203_v21 = vsel %vm9399_vm0, %v5189_v41, %v8956_v27  ;;  %vm9404_vm6 = vcmask 236544  }
 0x5b3   : > { %5218 = vst [vmem:[#allocation2 + $0x250] sm:$0xf0] %v5202_v3  ;;  %5219 = vst [vmem:[#allocation2 + $0x258] sm:$0xf0] %v5203_v21  ;;  %4773 = vrot.lane.b32.xlu0 %v6734_v31, %s9391_s13  ;;  %v5243_v33 = vpop.permute.xlu1 %5242  ;;  %v9004_v31 = vld [vmem:[#allocation5 + $0x14] sm:$0xff] }
 0x5b4   : > { %v9008_v32 = vcombine.high %v9004_v31, %v9004_v31  ;;  %vm9405_vm0 = vmmov %vm9404_vm6  ;;  %v5002_v3 = vld [vmem:[#allocation5 + $0x24] sm:$0xf] }
 0x5b5   : > { %v5013_v2 = vpop.permute.xlu0 %5012  ;;  %4835 = vrot.lane.b32.xlu1 %v4809_v47, %s9397_s14 }
 0x5b6   : > { %v5030_v45 = vsel %vm9400_vm1, %v5013_v2, %v8920_v56  ;;  %v5693_v9 = vld [vmem:[#allocation2 + $0x248] sm:$0xff]  ;;  %vm9406_vm1 = vmmov %vm9405_vm0 }
 0x5b7   : > { %5046 = vst [vmem:[#allocation2 + $0x200] sm:$0xf] %v5030_v45  ;;  %4777 = vrot.lane.b32.xlu0 %v8885_v46, %s9391_s13  ;;  %v8982_v24 = vpop.permute.xlu1 %5246  ;;  %v6548_v15 = vpack.c.bf16 %v5693_v9, %v5685_v62  ;;  %v6725_v62 = vld [vmem:[#allocation5 + $0x24] ss:$0 sps:$4 sm:$0xff]  }
 0x5b9   : > { %v5126_v51 = vpop.permute.xlu0 %5125  ;;  %4911 = vrot.lane.b32.xlu1 %v8984_v44, %s9365_s24  ;;  %6549 = vmatprep.subr.bf16.mxu0 %v6548_v15 }
 0x5ba   : > { %v5143_v56 = vsel %vm9393_vm2, %v5126_v51, %v5128_v7  ;;  %v5695_v28 = vld [vmem:[#allocation2 + $0x258] sm:$0xff]  ;;  %v5694_v38 = vld [vmem:[#allocation2 + $0x250] sm:$0xff]  ;;  %v6724_v7 = vld [vmem:[#allocation5 + $0x24] ss:$0 sps:$4 sm:$0xff]   ;;  %vm9407_vm2 = vcmask 228352  }
 0x5bb   : > { %5159 = vst [vmem:[#allocation2 + $0x240] sm:$0xf] %v5143_v56  ;;  %4829 = vrot.lane.b32.xlu0 %v8454_v43, %s9397_s14  ;;  %v5300_v46 = vpop.permute.xlu1 %5299  ;;  %v6580_v6 = vpack.c.bf16 %v5695_v28, %v5687_v14  ;;  %v6582_v22 = vpack.c.bf16 %v5694_v38, %v5686_v26  ;;  %v9002_v43 = vcombine.low %v8984_v44, %v8984_v44 }
 0x5bd   : > { %v8991_v35 = vpop.permute.xlu0 %5240  ;;  %4915 = vrot.lane.b32.xlu1 %v4889_v8, %s9365_s24  ;;  %6581 = vmatprep.subr.bf16.mxu1 %v6580_v6 }
 0x5be   : > { %v5257_v61 = vsel %vm9401_vm3, %v8991_v35, %v5243_v33  ;;  %6583 = vmatpush1.bf16.msra.mxu1 %v6582_v22  ;;  %v5684_v55 = vld [vmem:[#allocation2 + $0x200] sm:$0xff]  ;;  %vm9408_vm3 = vmmov %vm9407_vm2 }
 0x5bf   : > { %5273 = vst [vmem:[#allocation2 + $0x288] sm:$0xf] %v5257_v61  ;;  %4833 = vrot.lane.b32.xlu0 %v8938_v42, %s9397_s14  ;;  %v8998_v58 = vpop.permute.xlu1 %5303  ;;  %v5115_v22 = vld [vmem:[#allocation5 + $0x24] sm:$0xf] }
 0x5c1   : > { %v5245_v0 = vpop.permute.xlu0 %5244  ;;  %4968 = vrot.lane.b32.xlu1 %v9002_v43, %s9366_s25 }
 0x5c2   : > { %v5258_v54 = vsel %vm9402_vm4, %v5243_v33, %v5245_v0  ;;  %v5259_v42 = vsel %vm9403_vm5, %v5245_v0, %v8982_v24  ;;  %v5692_v34 = vld [vmem:[#allocation2 + $0x240] sm:$0xff]  ;;  %vm9409_vm4 = vmmov %vm9407_vm2 }
 0x5c3   : > { %5274 = vst [vmem:[#allocation2 + $0x290] sm:$0xf] %v5258_v54  ;;  %5275 = vst [vmem:[#allocation2 + $0x298] sm:$0xf] %v5259_v42  ;;  %4909 = vrot.lane.b32.xlu0 %v9008_v32, %s9365_s24  ;;  %v5356_v10 = vpop.permute.xlu1 %5355  ;;  %v6550_v11 = vpack.c.bf16 %v5692_v34, %v5684_v55 }
 0x5c4   : > { %vm9410_vm5 = vmmov %vm9405_vm0 }
 0x5c5   : > { %v5298_v53 = vpop.permute.xlu0 %5297  ;;  %4972 = vrot.lane.b32.xlu1 %v6724_v7, %s9366_s25  ;;  %6551 = vmatpush1.bf16.msra.mxu0 %v6550_v11  ;;  %v6726_v11 = vld [vmem:[#allocation5 + $0x24] ss:$0 sps:$4 sm:$0xff]  }
 0x5c6   : > { %v5314_v36 = vsel %vm9404_vm6, %v5298_v53, %v5300_v46  ;;  %vm9411_vm6 = vcmask 220160  }
 0x5c7   : > { %5330 = vst [vmem:[#allocation2 + $0x288] sm:$0xf0] %v5314_v36  ;;  %4913 = vrot.lane.b32.xlu0 %v9019_v23, %s9365_s24  ;;  %v9025_v17 = vpop.permute.xlu1 %5359 }
 0x5c9   : > { %v5302_v60 = vpop.permute.xlu0 %5301  ;;  %5024 = vrot.lane.b32.xlu1 %v8984_v44, %s9367_s26 }
 0x5ca   : > { %v5315_v39 = vsel %vm9405_vm0, %v5300_v46, %v5302_v60  ;;  %v5316_v41 = vsel %vm9406_vm1, %v5302_v60, %v8998_v58  ;;  %vm9412_vm0 = vmmov %vm9411_vm6 }
 0x5cb   : > { %5331 = vst [vmem:[#allocation2 + $0x290] sm:$0xf0] %v5315_v39  ;;  %5332 = vst [vmem:[#allocation2 + $0x298] sm:$0xf0] %v5316_v41  ;;  %4966 = vrot.lane.b32.xlu0 %v9004_v31, %s9366_s25  ;;  %v5413_v21 = vpop.permute.xlu1 %5412 }
 0x5cc   : > { %vm9413_vm1 = vmmov %vm9412_vm0 }
 0x5cd   : > { %v5354_v33 = vpop.permute.xlu0 %5353  ;;  %5028 = vrot.lane.b32.xlu1 %v5002_v3, %s9367_s26 }
 0x5ce   : > { %v5370_v47 = vsel %vm9407_vm2, %v5354_v33, %v5356_v10  ;;  %vm9414_vm2 = vmmov %vm9412_vm0  ;;  %v5701_v54 = vld [vmem:[#allocation2 + $0x288] sm:$0xff] }
 0x5cf   : > { %5386 = vst [vmem:[#allocation2 + $0x2c8] sm:$0xf] %v5370_v47  ;;  %4970 = vrot.lane.b32.xlu0 %v8984_v44, %s9366_s25  ;;  %v9038_v2 = vpop.permute.xlu1 %5416 }
 0x5d1   : > { %v5358_v45 = vpop.permute.xlu0 %5357  ;;  %5081 = vrot.lane.b32.xlu1 %v9002_v43, %s9368_s27 }
 0x5d2   : > { %v5371_v9 = vsel %vm9408_vm3, %v5356_v10, %v5358_v45  ;;  %v5372_v15 = vsel %vm9409_vm4, %v5358_v45, %v9025_v17  ;;  %vm9415_vm3 = vcmask 302080  }
 0x5d3   : > { %5387 = vst [vmem:[#allocation2 + $0x2d0] sm:$0xf] %v5371_v9  ;;  %5388 = vst [vmem:[#allocation2 + $0x2d8] sm:$0xf] %v5372_v15  ;;  %5022 = vrot.lane.b32.xlu0 %v9008_v32, %s9367_s26  ;;  %v5296_v51 = vpop.permute.xlu1 %5295 }
 0x5d4   : > { %v5313_v8 = vsel %vm9410_vm5, %v5296_v51, %v5298_v53  ;;  %v5703_v53 = vld [vmem:[#allocation2 + $0x298] sm:$0xff]  ;;  %vm9416_vm5 = vcmask 154624   ;;  %v5228_v51 = vld [vmem:[#allocation5 + $0x24] sm:$0xf] }
 0x5d5   : > { %5329 = vst [vmem:[#allocation2 + $0x280] sm:$0xf0] %v5313_v8  ;;  %v5411_v14 = vpop.permute.xlu0 %5410  ;;  %5085 = vrot.lane.b32.xlu1 %v6725_v62, %s9368_s27 }
 0x5d6   : > { %v5427_v56 = vsel %vm9411_vm6, %v5411_v14, %v5413_v21  ;;  %vm9417_vm6 = vmmov %vm9416_vm5 }
 0x5d7   : > { %5443 = vst [vmem:[#allocation2 + $0x2c8] sm:$0xf0] %v5427_v56  ;;  %5026 = vrot.lane.b32.xlu0 %v9019_v23, %s9367_s26  ;;  %v5409_v28 = vpop.permute.xlu1 %5408 }
 0x5d8   : > { %v5426_v26 = vsel %vm9412_vm0, %v5409_v28, %v5411_v14  ;;  %vm9418_vm0 = vmmov %vm9416_vm5 }
 0x5d9   : > { %5442 = vst [vmem:[#allocation2 + $0x2c0] sm:$0xf0] %v5426_v26  ;;  %v5415_v38 = vpop.permute.xlu0 %5414  ;;  %5137 = vrot.lane.b32.xlu1 %v8984_v44, %s9369_s28 }
 0x5da   : > { %v5428_v46 = vsel %vm9413_vm1, %v5413_v21, %v5415_v38  ;;  %v5429_v6 = vsel %vm9414_vm2, %v5415_v38, %v9038_v2 }
 0x5db   : > { %5444 = vst [vmem:[#allocation2 + $0x2d0] sm:$0xf0] %v5428_v46  ;;  %5445 = vst [vmem:[#allocation2 + $0x2d8] sm:$0xf0] %v5429_v6  ;;  %5079 = vrot.lane.b32.xlu0 %v9004_v31, %s9368_s27  ;;  %v5469_v61 = vpop.permute.xlu1 %5468 }
 0x5dd   : > { %v5239_v0 = vpop.permute.xlu0 %5238  ;;  %5141 = vrot.lane.b32.xlu1 %v5115_v22, %s9369_s28  ;;  %v6727_v22 = vld [vmem:[#allocation5 + $0x24] ss:$0 sps:$4 sm:$0xff]  }
 0x5de   : > { %v5256_v7 = vsel %vm9415_vm3, %v5239_v0, %v8991_v35  ;;  %v5709_v42 = vld [vmem:[#allocation2 + $0x2c8] sm:$0xff]  ;;  %v5702_v35 = vld [vmem:[#allocation2 + $0x290] sm:$0xff]  ;;  %vm9428_vm3 = vcmask 965632  }
 0x5df   : > { %5272 = vst [vmem:[#allocation2 + $0x280] sm:$0xf] %v5256_v7  ;;  %5083 = vrot.lane.b32.xlu0 %v8984_v44, %s9368_s27  ;;  %v9065_v55 = vpop.permute.xlu1 %5472  ;;  %v6552_v34 = vpack.c.bf16 %v5709_v42, %v5701_v54 }
 0x5e1   : > { %v5352_v10 = vpop.permute.xlu0 %5351  ;;  %5194 = vrot.lane.b32.xlu1 %v9002_v43, %s9370_s21  ;;  %6553 = vmatprep.subr.bf16.mxu0 %v6552_v34 }
 0x5e2   : > { %v5369_v36 = vsel %vm9409_vm4, %v5352_v10, %v5354_v33  ;;  %v5711_v60 = vld [vmem:[#allocation2 + $0x2d8] sm:$0xff]  ;;  %v5710_v39 = vld [vmem:[#allocation2 + $0x2d0] sm:$0xff]  ;;  %vm9429_vm4 = vmmov %vm9428_vm3 }
 0x5e3   : > { %5385 = vst [vmem:[#allocation2 + $0x2c0] sm:$0xf] %v5369_v36  ;;  %5135 = vrot.lane.b32.xlu0 %v9008_v32, %s9369_s28  ;;  %v5526_v41 = vpop.permute.xlu1 %5525  ;;  %v6584_v3 = vpack.c.bf16 %v5711_v60, %v5703_v53  ;;  %v6586_v21 = vpack.c.bf16 %v5710_v39, %v5702_v35  ;;  %v5341_v60 = vld [vmem:[#allocation5 + $0x24] sm:$0xf] }
 0x5e5   : > { %v5467_v47 = vpop.permute.xlu0 %5466  ;;  %5198 = vrot.lane.b32.xlu1 %v6726_v11, %s9370_s21  ;;  %6585 = vmatprep.subr.bf16.mxu1 %v6584_v3 }
 0x5e6   : > { %v5483_v45 = vsel %vm9416_vm5, %v5467_v47, %v5469_v61  ;;  %6587 = vmatpush1.bf16.msra.mxu1 %v6586_v21  ;;  %v5700_v8 = vld [vmem:[#allocation2 + $0x280] sm:$0xff]  ;;  %vm9430_vm5 = vmmov %vm9428_vm3 }
 0x5e7   : > { %5499 = vst [vmem:[#allocation2 + $0x308] sm:$0xf] %v5483_v45  ;;  %5139 = vrot.lane.b32.xlu0 %v9019_v23, %s9369_s28  ;;  %v9076_v33 = vpop.permute.xlu1 %5529 }
 0x5e9   : > { %v5471_v62 = vpop.permute.xlu0 %5470  ;;  %5250 = vrot.lane.b32.xlu1 %v8984_v44, %s9371_s23 }
 0x5ea   : > { %v5484_v9 = vsel %vm9417_vm6, %v5469_v61, %v5471_v62  ;;  %v5485_v15 = vsel %vm9418_vm0, %v5471_v62, %v9065_v55  ;;  %v5708_v14 = vld [vmem:[#allocation2 + $0x2c0] sm:$0xff]  ;;  %v9118_v62 = vcombine.high %v8773_v30, %v8773_v30  ;;  %vm9431_vm6 = vmmov %vm9428_vm3 }
 0x5eb   : > { %5500 = vst [vmem:[#allocation2 + $0x310] sm:$0xf] %v5484_v9  ;;  %5501 = vst [vmem:[#allocation2 + $0x318] sm:$0xf] %v5485_v15  ;;  %5192 = vrot.lane.b32.xlu0 %v9004_v31, %s9370_s21  ;;  %v5582_v56 = vpop.permute.xlu1 %5581  ;;  %v6554_v28 = vpack.c.bf16 %v5708_v14, %v5700_v8 }
 0x5ed   : > { %v5524_v26 = vpop.permute.xlu0 %5523  ;;  %5254 = vrot.lane.b32.xlu1 %v5228_v51, %s9371_s23  ;;  %6555 = vmatpush1.bf16.msra.mxu0 %v6554_v28 }
 0x5ee   : > { %v5540_v38 = vsel %vm956_vm15, %v5524_v26, %v5526_v41 }
 0x5ef   : > { %5556 = vst [vmem:[#allocation2 + $0x308] sm:$0xf0] %v5540_v38  ;;  %5196 = vrot.lane.b32.xlu0 %v8984_v44, %s9370_s21  ;;  %v9089_v46 = vpop.permute.xlu1 %5585  ;;  %v9125_v38 = vld [vmem:[#allocation2 + $0x380] sm:$0xff] }
 0x5f1   : > { %v5528_v6 = vpop.permute.xlu0 %5527  ;;  %5307 = vrot.lane.b32.xlu1 %v9002_v43, %s9372_s29 }
 0x5f2   : > { %v5541_v61 = vsel %vm956_vm15, %v5526_v41, %v5528_v6  ;;  %v5542_v0 = vsel %vm956_vm15, %v5528_v6, %v9076_v33  ;;  %v9129_v6 = vpack.c.bf16 %v9125_v38, %v9125_v38 }
 0x5f3   : > { %5557 = vst [vmem:[#allocation2 + $0x310] sm:$0xf0] %v5541_v61  ;;  %5558 = vst [vmem:[#allocation2 + $0x318] sm:$0xf0] %v5542_v0  ;;  %5248 = vrot.lane.b32.xlu0 %v9008_v32, %s9371_s23  ;;  %v5522_v7 = vpop.permute.xlu1 %5521 }
 0x5f4   : > { %v5539_v54 = vsel %vm956_vm15, %v5522_v7, %v5524_v26  ;;  %v5635_v7 = vld [vmem:[#allocation2 + $0x78] sm:$0xff] }
 0x5f5   : > { %5555 = vst [vmem:[#allocation2 + $0x300] sm:$0xf0] %v5539_v54  ;;  %v5580_v42 = vpop.permute.xlu0 %5579  ;;  %5311 = vrot.lane.b32.xlu1 %v6727_v22, %s9372_s29 }
 0x5f6   : > { %v5596_v34 = vsel %vm973_vm14, %v5580_v42, %v5582_v56  ;;  %v5717_v41 = vld [vmem:[#allocation2 + $0x308] sm:$0xff] }
 0x5f7   : > { %5612 = vst [vmem:[#allocation2 + $0x348] sm:$0xf] %v5596_v34  ;;  %5252 = vrot.lane.b32.xlu0 %v9019_v23, %s9371_s23  ;;  %v4497_v10 = vpop.permute.xlu1 %4496 }
 0x5f8   : > { %v4505_v11 = vsel %vm646_vm7, %v8822_v50, %v4497_v10  ;;  %vm9419_vm7 = vmmov %vm9418_vm0  ;;  %vm9432_vm0 = vcmask 957440  }
 0x5f9   : > { %4521 = vst [vmem:[#allocation2 + $0xf8] sm:$0xf] %v4505_v11  ;;  %v5584_v53 = vpop.permute.xlu0 %5583  ;;  %5363 = vrot.lane.b32.xlu1 %v8984_v44, %s9373_s19  ;;  %v5634_v11 = vld [vmem:[#allocation2 + $0x70] sm:$0xff] }
 0x5fa   : > { %v5597_v32 = vsel %vm973_vm14, %v5582_v56, %v5584_v53  ;;  %v5598_v36 = vsel %vm973_vm14, %v5584_v53, %v9089_v46  ;;  %v5719_v15 = vld [vmem:[#allocation2 + $0x318] sm:$0xff]  ;;  %v5718_v8 = vld [vmem:[#allocation2 + $0x310] sm:$0xff] }
 0x5fb   : > { %5613 = vst [vmem:[#allocation2 + $0x350] sm:$0xf] %v5597_v32  ;;  %5614 = vst [vmem:[#allocation2 + $0x358] sm:$0xf] %v5598_v36  ;;  %5305 = vrot.lane.b32.xlu0 %v9004_v31, %s9372_s29  ;;  %v4550_v35 = vpop.permute.xlu1 %4549  ;;  %v6728_v31 = vld [vmem:[#allocation5 + $0x24] ss:$0 sps:$4 sm:$0xff]  }
 0x5fc   : > { %v5454_v32 = vld [vmem:[#allocation5 + $0x24] sm:$0xf] }
 0x5fd   : > { %v5465_v39 = vpop.permute.xlu0 %5464  ;;  %5367 = vrot.lane.b32.xlu1 %v5341_v60, %s9373_s19 }
 0x5fe   : > { %v5482_v50 = vsel %vm9419_vm7, %v5465_v39, %v5467_v47  ;;  %v5725_v3 = vld [vmem:[#allocation2 + $0x348] sm:$0xff]  ;;  %vm9433_vm7 = vmmov %vm9432_vm0 }
 0x5ff   : > { %5498 = vst [vmem:[#allocation2 + $0x300] sm:$0xf] %v5482_v50  ;;  %5309 = vrot.lane.b32.xlu0 %v8984_v44, %s9372_s29  ;;  %v4554_v21 = vpop.permute.xlu1 %4553  ;;  %v6556_v45 = vpack.c.bf16 %v5725_v3, %v5717_v41  ;;  %v5626_v41 = vld [vmem:[#allocation2 + $0x30] sm:$0xff] }
 0x601   : > { %v5578_v9 = vpop.permute.xlu0 %5577  ;;  %5420 = vrot.lane.b32.xlu1 %v9002_v43, %s9374_s16  ;;  %6557 = vmatprep.subr.bf16.mxu0 %v6556_v45  ;;  %v5633_v45 = vld [vmem:[#allocation2 + $0x68] sm:$0xff] }
 0x602   : > { %v5595_v47 = vsel %vm973_vm14, %v5578_v9, %v5580_v42  ;;  %v5727_v51 = vld [vmem:[#allocation2 + $0x358] sm:$0xff]  ;;  %v5726_v14 = vld [vmem:[#allocation2 + $0x350] sm:$0xff] }
 0x603   : > { %5611 = vst [vmem:[#allocation2 + $0x340] sm:$0xf] %v5595_v47  ;;  %5361 = vrot.lane.b32.xlu0 %v9118_v62, %s9373_s19  ;;  %v4606_v56 = vpop.permute.xlu1 %4605  ;;  %v6588_v28 = vpack.c.bf16 %v5727_v51, %v5719_v15  ;;  %v6590_v26 = vpack.c.bf16 %v5726_v14, %v5718_v8  ;;  %v5627_v42 = vld [vmem:[#allocation2 + $0x38] sm:$0xff]  ;;  %v5625_v15 = vld [vmem:[#allocation2 + $0x28] sm:$0xff]  ;;  %v5624_v51 = vld [vmem:[#allocation2 + $0x20] sm:$0xff] }
 0x604   : > { %v6628_v10 = vpack.c.bf16 %v5635_v7, %v5627_v42  ;;  %v6596_v47 = vpack.c.bf16 %v5633_v45, %v5625_v15  ;;  %v5632_v8 = vld [vmem:[#allocation2 + $0x60] sm:$0xff] }
 0x605   : > { %v4548_v22 = vpop.permute.xlu0 %4547  ;;  %5424 = vrot.lane.b32.xlu1 %v6728_v31, %s9374_s16  ;;  %6589 = vmatprep.subr.bf16.mxu1 %v6588_v28  ;;  %v6729_v14 = vld [vmem:[#allocation5 + $0x24] ss:$0 sps:$4 sm:$0xff]  }
 0x606   : > { %v4559_v61 = vsel %vm663_vm8, %v8835_v40, %v4548_v22  ;;  %v4560_v0 = vsel %vm663_vm8, %v4548_v22, %v4550_v35  ;;  %6591 = vmatpush1.bf16.msra.mxu1 %v6590_v26  ;;  %v5716_v36 = vld [vmem:[#allocation2 + $0x300] sm:$0xff]  ;;  %v5642_v26 = vld [vmem:[#allocation2 + $0xb0] sm:$0xff] }
 0x607   : > { %4575 = vst [vmem:[#allocation2 + $0xe0] sm:$0xf0] %v4559_v61  ;;  %4576 = vst [vmem:[#allocation2 + $0xe8] sm:$0xf0] %v4560_v0  ;;  %5365 = vrot.lane.b32.xlu0 %v9019_v23, %s9373_s19  ;;  %v4610_v54 = vpop.permute.xlu1 %4609  ;;  %6593 = vmatprep.subr.bf16.mxu1 %v9129_v6  ;;  %v5643_v0 = vld [vmem:[#allocation2 + $0xb8] sm:$0xff] }
 0x608   : > { %v5567_v45 = vld [vmem:[#allocation5 + $0x24] sm:$0xf] }
 0x609   : > { %v4552_v34 = vpop.permute.xlu0 %4551  ;;  %5476 = vrot.lane.b32.xlu1 %v8984_v44, %s9375_s15 }
 0x60a   : > { %v4561_v40 = vsel %vm663_vm8, %v4550_v35, %v4552_v34  ;;  %v4562_v53 = vsel %vm663_vm8, %v4552_v34, %v4554_v21  ;;  %6595 = vmatpush1.bf16.msra.mxu1 %v9129_v6  ;;  %v5724_v60 = vld [vmem:[#allocation2 + $0x340] sm:$0xff]  ;;  %v6630_v21 = vpack.c.bf16 %v5634_v11, %v5626_v41  ;;  %v5641_v11 = vld [vmem:[#allocation2 + $0xa8] sm:$0xff]  ;;  %vm9420_vm8 = vcmask 1039360  }
 0x60b   : > { %4577 = vst [vmem:[#allocation2 + $0xf0] sm:$0xf0] %v4561_v40  ;;  %4578 = vst [vmem:[#allocation2 + $0xf8] sm:$0xf0] %v4562_v53  ;;  %5418 = vrot.lane.b32.xlu0 %v8773_v30, %s9374_s16  ;;  %6629 = vmatprep.subr.bf16.mxu1 %v6628_v10  ;;  %v9145_v39 = vpop.permute.xlu1 %4662  ;;  %v6558_v50 = vpack.c.bf16 %v5724_v60, %v5716_v36  ;;  %v9150_v35 = vld [vmem:[%s9313_s9] sm:$0xff] }
 0x60c   : > { %v5640_v60 = vld [vmem:[#allocation2 + $0xa0] sm:$0xff] }
 0x60d   : > { %v4604_v3 = vpop.permute.xlu0 %4603  ;;  %5480 = vrot.lane.b32.xlu1 %v5454_v32, %s9375_s15  ;;  %6559 = vmatpush1.bf16.msra.mxu0 %v6558_v50 }
 0x60e   : > { %v4615_v9 = vsel %vm680_vm9, %v8826_v57, %v4604_v3  ;;  %v4616_v30 = vsel %vm680_vm9, %v4604_v3, %v4606_v56  ;;  %5890 = vmatmul.mubr.f32.vlgmr.msra.gmra.mrb[12].mxu1 %v9150_v35  ;;  %6561 = vmatprep.subr.bf16.mxu0 %v9129_v6  ;;  %v5649_v28 = vld [vmem:[#allocation2 + $0xe8] sm:$0xff] }
 0x60f   : > { %4631 = vst [vmem:[#allocation2 + $0x120] sm:$0xf] %v4615_v9  ;;  %4632 = vst [vmem:[#allocation2 + $0x128] sm:$0xf] %v4616_v30  ;;  %6631 = vmatpush1.bf16.msra.mxu1 %v6630_v21  ;;  %5422 = vrot.lane.b32.xlu0 %v8984_v44, %s9374_s16  ;;  %v4667_v31 = vpop.permute.xlu1 %4666  ;;  %v6600_v53 = vpack.c.bf16 %v5649_v28, %v5641_v11  ;;  %v6737_v9 = vld [vmem:[#allocation5 + $0x14] sm:$0xff]  ;;  %s6139_s16 = sshll.u32 %s9465_s18, 6 }
 0x610   : > { %6031 = vmatprep.mubr.f32.mxu1 %v9125_v38  ;;  %s9283_s25 = scalar_lea.vmem %s9315_s11, %s6139_s16 }
 0x611   : > { %v4608_v57 = vpop.permute.xlu0 %4607  ;;  %5533 = vrot.lane.b32.xlu1 %v9002_v43, %s6777_s30  ;;  %6563 = vmatpush1.bf16.msra.mxu0 %v9129_v6  ;;  %v6598_v43 = vpack.c.bf16 %v5632_v8, %v5624_v51 }
 0x612   : > { %v4617_v22 = vsel %vm680_vm9, %v4606_v56, %v4608_v57  ;;  %v4618_v61 = vsel %vm680_vm9, %v4608_v57, %v4610_v54  ;;  %6597 = vmatprep.subr.bf16.mxu0 %v6596_v47  ;;  %v5651_v7 = vld [vmem:[#allocation2 + $0xf8] sm:$0xff]  ;;  %v5650_v42 = vld [vmem:[#allocation2 + $0xf0] sm:$0xff]  ;;  %v5648_v56 = vld [vmem:[#allocation2 + $0xe0] sm:$0xff] }
 0x613   : > { %4633 = vst [vmem:[#allocation2 + $0x130] sm:$0xf] %v4617_v22  ;;  %4634 = vst [vmem:[#allocation2 + $0x138] sm:$0xf] %v4618_v61  ;;  %5474 = vrot.lane.b32.xlu0 %v9118_v62, %s9375_s15  ;;  %v4719_v34 = vpop.permute.xlu1 %4718  ;;  %v6632_v10 = vpack.c.bf16 %v5651_v7, %v5643_v0  ;;  %v6634_v40 = vpack.c.bf16 %v5650_v42, %v5642_v26  ;;  %v6602_v41 = vpack.c.bf16 %v5648_v56, %v5640_v60  ;;  %v5748_v26 = vld [vmem:[%s9314_s10] sm:$0xff] }
 0x614   : > { %5819 = vmatmul.mubr.f32.vlgmr.msra.gmra.mrb[12].mxu0 %v9150_v35  ;;  %vm9421_vm9 = vmmov %vm9420_vm8 }
 0x615   : > { %v4661_v32 = vpop.permute.xlu0 %4660  ;;  %5537 = vrot.lane.b32.xlu1 %v6729_v14, %s6777_s30  ;;  %6599 = vmatpush1.bf16.msra.mxu0 %v6598_v43 }
 0x616   : > { %v4672_v54 = vsel %vm697_vm10, %v8850_v29, %v4661_v32  ;;  %v4673_v36 = vsel %vm697_vm10, %v4661_v32, %v9145_v39  ;;  %6633 = vmatprep.subr.bf16.mxu1 %v6632_v10  ;;  %6601 = vmatprep.subr.bf16.mxu0 %v6600_v53 }
 0x617   : > { %4688 = vst [vmem:[#allocation2 + $0x120] sm:$0xf0] %v4672_v54  ;;  %4689 = vst [vmem:[#allocation2 + $0x128] sm:$0xf0] %v4673_v36  ;;  %6635 = vmatpush1.bf16.msra.mxu1 %v6634_v40  ;;  %5478 = vrot.lane.b32.xlu0 %v9019_v23, %s9375_s15  ;;  %v4723_v50 = vpop.permute.xlu1 %4722 }
 0x618   : > { %5960 = vmatprep.mubr.f32.mxu0 %v9125_v38 }
 0x619   : > { %v4665_v3 = vpop.permute.xlu0 %4664  ;;  %5589 = vrot.lane.b32.xlu1 %v8984_v44, %s6778_s22  ;;  %6603 = vmatpush1.bf16.msra.mxu0 %v6602_v41 }
 0x61a   : > { %v4674_v29 = vsel %vm697_vm10, %v9145_v39, %v4665_v3  ;;  %v4675_v21 = vsel %vm697_vm10, %v4665_v3, %v4667_v31  ;;  %vm9422_vm10 = vmmov %vm9420_vm8 }
 0x61b   : > { %4690 = vst [vmem:[#allocation2 + $0x130] sm:$0xf0] %v4674_v29  ;;  %4691 = vst [vmem:[#allocation2 + $0x138] sm:$0xf0] %v4675_v21  ;;  %5531 = vrot.lane.b32.xlu0 %v6737_v9, %s6777_s30  ;;  %v4776_v30 = vpop.permute.xlu1 %4775 }
 0x61d   : > { %v4717_v15 = vpop.permute.xlu0 %4716  ;;  %5593 = vrot.lane.b32.xlu1 %v5567_v45, %s6778_s22 }
 0x61e   : > { %v4728_v38 = vsel %vm714_vm11, %v8840_v59, %v4717_v15  ;;  %v4729_v47 = vsel %vm714_vm11, %v4717_v15, %v4719_v34  ;;  %v5657_v7 = vld [vmem:[#allocation2 + $0x128] sm:$0xff]  ;;  %v5656_v43 = vld [vmem:[#allocation2 + $0x120] sm:$0xff] }
 0x61f   : > { %4744 = vst [vmem:[#allocation2 + $0x160] sm:$0xf] %v4728_v38  ;;  %4745 = vst [vmem:[#allocation2 + $0x168] sm:$0xf] %v4729_v47  ;;  %5535 = vrot.lane.b32.xlu0 %v8984_v44, %s6777_s30  ;;  %v4780_v39 = vpop.permute.xlu1 %4779 }
 0x621   : > { %v4721_v31 = vpop.permute.xlu0 %4720 }
 0x622   : > { %v4730_v51 = vsel %vm714_vm11, %v4719_v34, %v4721_v31  ;;  %v4731_v8 = vsel %vm714_vm11, %v4721_v31, %v4723_v50  ;;  %v5659_v32 = vld [vmem:[#allocation2 + $0x138] sm:$0xff]  ;;  %vm9423_vm11 = vmmov %vm9420_vm8 }
 0x623   : > { %4746 = vst [vmem:[#allocation2 + $0x170] sm:$0xf] %v4730_v51  ;;  %4747 = vst [vmem:[#allocation2 + $0x178] sm:$0xf] %v4731_v8  ;;  %5587 = vrot.lane.b32.xlu0 %v9118_v62, %s6778_s22  ;;  %v4832_v57 = vpop.permute.xlu1 %4831 }
 0x625   : > { %v4774_v59 = vpop.permute.xlu0 %4773 }
 0x626   : > { %v4785_v14 = vsel %vm731_vm12, %v8858_v18, %v4774_v59  ;;  %v4786_v28 = vsel %vm731_vm12, %v4774_v59, %v4776_v30 }
 0x627   : > { %4801 = vst [vmem:[#allocation2 + $0x160] sm:$0xf0] %v4785_v14  ;;  %4802 = vst [vmem:[#allocation2 + $0x168] sm:$0xf0] %v4786_v28  ;;  %5591 = vrot.lane.b32.xlu0 %v9019_v23, %s6778_s22  ;;  %v4836_v44 = vpop.permute.xlu1 %4835 }
 0x629   : > { %v4778_v22 = vpop.permute.xlu0 %4777 }
 0x62a   : > { %v4787_v62 = vsel %vm731_vm12, %v4776_v30, %v4778_v22  ;;  %v4788_v61 = vsel %vm731_vm12, %v4778_v22, %v4780_v39  ;;  %vm9424_vm12 = vcmask 973824  }
 0x62b   : > { %4803 = vst [vmem:[#allocation2 + $0x170] sm:$0xf0] %v4787_v62  ;;  %4804 = vst [vmem:[#allocation2 + $0x178] sm:$0xf0] %v4788_v61  ;;  %5751 = vperm.xlu0 %6698, %v5748_v26   ;;  %v4912_v18 = vpop.permute.xlu1 %4911 }
 0x62c   : > { %vm9426_vm1 = vmmov %vm9424_vm12 }
 0x62d   : > { %v4830_v0 = vpop.permute.xlu0 %4829  ;;  %vm9427_vm2 = vmmov %vm9426_vm1 }
 0x62e   : > { %v4841_v42 = vsel %vm748_vm13, %v8867_v19, %v4830_v0  ;;  %v4842_v23 = vsel %vm748_vm13, %v4830_v0, %v4832_v57  ;;  %v5665_v34 = vld [vmem:[#allocation2 + $0x168] sm:$0xff]  ;;  %v5664_v10 = vld [vmem:[#allocation2 + $0x160] sm:$0xff]  ;;  %v5658_v19 = vld [vmem:[#allocation2 + $0x130] sm:$0xff] }
 0x62f   : > { %4857 = vst [vmem:[#allocation2 + $0x1a0] sm:$0xf] %v4841_v42  ;;  %4858 = vst [vmem:[#allocation2 + $0x1a8] sm:$0xf] %v4842_v23  ;;  %v4916_v11 = vpop.permute.xlu1 %4915  ;;  %v6604_v40 = vpack.c.bf16 %v5665_v34, %v5657_v7  ;;  %v6606_v53 = vpack.c.bf16 %v5664_v10, %v5656_v43 }
 0x631   : > { %v4834_v56 = vpop.permute.xlu0 %4833  ;;  %6605 = vmatprep.subr.bf16.mxu0 %v6604_v40 }
 0x632   : > { %v4843_v54 = vsel %vm748_vm13, %v4832_v57, %v4834_v56  ;;  %v4844_v36 = vsel %vm748_vm13, %v4834_v56, %v4836_v44  ;;  %6607 = vmatpush1.bf16.msra.mxu0 %v6606_v53  ;;  %v5667_v60 = vld [vmem:[#allocation2 + $0x178] sm:$0xff]  ;;  %v5666_v50 = vld [vmem:[#allocation2 + $0x170] sm:$0xff]  ;;  %vm9425_vm13 = vmmov %vm9424_vm12 }
 0x633   : > { %4859 = vst [vmem:[#allocation2 + $0x1b0] sm:$0xf] %v4843_v54  ;;  %4860 = vst [vmem:[#allocation2 + $0x1b8] sm:$0xf] %v4844_v36  ;;  %v4969_v41 = vpop.permute.xlu1 %4968  ;;  %v6636_v3 = vpack.c.bf16 %v5667_v60, %v5659_v32  ;;  %v6638_v29 = vpack.c.bf16 %v5666_v50, %v5658_v19 }
 0x635   : > { %v4910_v21 = vpop.permute.xlu0 %4909  ;;  %6637 = vmatprep.subr.bf16.mxu1 %v6636_v3 }
 0x636   : > { %v4921_v45 = vsel %vm9420_vm8, %v8887_v37, %v4910_v21  ;;  %v4922_v9 = vsel %vm9421_vm9, %v4910_v21, %v4912_v18  ;;  %6639 = vmatpush1.bf16.msra.mxu1 %v6638_v29  ;;  %v5673_v26 = vld [vmem:[#allocation2 + $0x1a8] sm:$0xff]  ;;  %v5672_v61 = vld [vmem:[#allocation2 + $0x1a0] sm:$0xff]  ;;  %vm9434_vm8 = vmmov %vm9432_vm0 }
 0x637   : > { %4937 = vst [vmem:[#allocation2 + $0x1e0] sm:$0xf] %v4921_v45  ;;  %4938 = vst [vmem:[#allocation2 + $0x1e8] sm:$0xf] %v4922_v9  ;;  %v4973_v30 = vpop.permute.xlu1 %4972 }
 0x638   : > { %vm9435_vm9 = vmmov %vm9432_vm0 }
 0x639   : > { %v4914_v15 = vpop.permute.xlu0 %4913 }
 0x63a   : > { %v4923_v38 = vsel %vm9422_vm10, %v4912_v18, %v4914_v15  ;;  %v4924_v47 = vsel %vm9423_vm11, %v4914_v15, %v4916_v11  ;;  %v5675_v34 = vld [vmem:[#allocation2 + $0x1b8] sm:$0xff]  ;;  %vm9436_vm10 = vcmask 318464  }
 0x63b   : > { %4939 = vst [vmem:[#allocation2 + $0x1f0] sm:$0xf] %v4923_v38  ;;  %4940 = vst [vmem:[#allocation2 + $0x1f8] sm:$0xf] %v4924_v47  ;;  %v5025_v39 = vpop.permute.xlu1 %5024 }
 0x63c   : > { %vm9437_vm11 = vmmov %vm9436_vm10 }
 0x63d   : > { %v4967_v31 = vpop.permute.xlu0 %4966 }
 0x63e   : > { %v4978_v51 = vsel %vm9424_vm12, %v8905_v4, %v4967_v31  ;;  %v4979_v37 = vsel %vm9425_vm13, %v4967_v31, %v4969_v41  ;;  %vm9438_vm12 = vmmov %vm9436_vm10 }
 0x63f   : > { %4994 = vst [vmem:[#allocation2 + $0x1e0] sm:$0xf0] %v4978_v51  ;;  %4995 = vst [vmem:[#allocation2 + $0x1e8] sm:$0xf0] %v4979_v37  ;;  %v5029_v8 = vpop.permute.xlu1 %5028 }
 0x640   : > { %vm9439_vm13 = vmmov %vm9436_vm10 }
 0x641   : > { %v4971_v57 = vpop.permute.xlu0 %4970 }
 0x642   : > { %v4980_v59 = vsel %vm9426_vm1, %v4969_v41, %v4971_v57  ;;  %v4981_v14 = vsel %vm9427_vm2, %v4971_v57, %v4973_v30  ;;  %vm9440_vm1 = vcmask 310272  }
 0x643   : > { %4996 = vst [vmem:[#allocation2 + $0x1f0] sm:$0xf0] %v4980_v59  ;;  %4997 = vst [vmem:[#allocation2 + $0x1f8] sm:$0xf0] %v4981_v14  ;;  %v5082_v28 = vpop.permute.xlu1 %5081 }
 0x644   : > { %vm9441_vm2 = vmmov %vm9440_vm1 }
 0x645   : > { %v5023_v44 = vpop.permute.xlu0 %5022 }
 0x646   : > { %v5034_v22 = vsel %vm9428_vm3, %v8912_v63, %v5023_v44  ;;  %v5035_v4 = vsel %vm9429_vm4, %v5023_v44, %v5025_v39  ;;  %v5681_v62 = vld [vmem:[#allocation2 + $0x1e8] sm:$0xff]  ;;  %v5680_v18 = vld [vmem:[#allocation2 + $0x1e0] sm:$0xff]  ;;  %v5674_v63 = vld [vmem:[#allocation2 + $0x1b0] sm:$0xff] }
 0x647   : > { %5050 = vst [vmem:[#allocation2 + $0x220] sm:$0xf] %v5034_v22  ;;  %5051 = vst [vmem:[#allocation2 + $0x228] sm:$0xf] %v5035_v4  ;;  %v5086_v0 = vpop.permute.xlu1 %5085  ;;  %v6608_v7 = vpack.c.bf16 %v5681_v62, %v5673_v26  ;;  %v6610_v42 = vpack.c.bf16 %v5680_v18, %v5672_v61 }
 0x648   : > { %vm9442_vm3 = vmmov %vm9440_vm1 }
 0x649   : > { %v5027_v23 = vpop.permute.xlu0 %5026  ;;  %6609 = vmatprep.subr.bf16.mxu0 %v6608_v7  ;;  %vm9443_vm4 = vmmov %vm9440_vm1 }
 0x64a   : > { %v5036_v43 = vsel %vm9430_vm5, %v5025_v39, %v5027_v23  ;;  %v5037_v10 = vsel %vm9431_vm6, %v5027_v23, %v5029_v8  ;;  %6611 = vmatpush1.bf16.msra.mxu0 %v6610_v42  ;;  %v5683_v11 = vld [vmem:[#allocation2 + $0x1f8] sm:$0xff]  ;;  %v5682_v40 = vld [vmem:[#allocation2 + $0x1f0] sm:$0xff]  ;;  %vm9444_vm5 = vcmask 302080  }
 0x64b   : > { %5052 = vst [vmem:[#allocation2 + $0x230] sm:$0xf] %v5036_v43  ;;  %5053 = vst [vmem:[#allocation2 + $0x238] sm:$0xf] %v5037_v10  ;;  %v5138_v53 = vpop.permute.xlu1 %5137  ;;  %v6640_v56 = vpack.c.bf16 %v5683_v11, %v5675_v34  ;;  %v6642_v32 = vpack.c.bf16 %v5682_v40, %v5674_v63 }
 0x64c   : > { %vm9445_vm6 = vmmov %vm9444_vm5 }
 0x64d   : > { %v5080_v54 = vpop.permute.xlu0 %5079  ;;  %6641 = vmatprep.subr.bf16.mxu1 %v6640_v56 }
 0x64e   : > { %v5091_v36 = vsel %vm9432_vm0, %v8927_v52, %v5080_v54  ;;  %v5092_v60 = vsel %vm9433_vm7, %v5080_v54, %v5082_v28  ;;  %6643 = vmatpush1.bf16.msra.mxu1 %v6642_v32  ;;  %vm9446_vm0 = vmmov %vm9444_vm5 }
 0x64f   : > { %5107 = vst [vmem:[#allocation2 + $0x220] sm:$0xf0] %v5091_v36  ;;  %5108 = vst [vmem:[#allocation2 + $0x228] sm:$0xf0] %v5092_v60  ;;  %v5142_v19 = vpop.permute.xlu1 %5141 }
 0x650   : > { %vm9447_vm7 = vmmov %vm9446_vm0 }
 0x651   : > { %v5084_v50 = vpop.permute.xlu0 %5083 }
 0x652   : > { %v5093_v41 = vsel %vm9434_vm8, %v5082_v28, %v5084_v50  ;;  %v5094_v3 = vsel %vm9435_vm9, %v5084_v50, %v5086_v0  ;;  %vm9448_vm8 = vcmask 236544  }
 0x653   : > { %5109 = vst [vmem:[#allocation2 + $0x230] sm:$0xf0] %v5093_v41  ;;  %5110 = vst [vmem:[#allocation2 + $0x238] sm:$0xf0] %v5094_v3  ;;  %v5195_v29 = vpop.permute.xlu1 %5194 }
 0x654   : > { %vm9449_vm9 = vmmov %vm9448_vm8 }
 0x655   : > { %v5136_v21 = vpop.permute.xlu0 %5135 }
 0x656   : > { %v5147_v45 = vsel %vm9436_vm10, %v8944_v48, %v5136_v21  ;;  %v5148_v52 = vsel %vm9437_vm11, %v5136_v21, %v5138_v53  ;;  %v5689_v28 = vld [vmem:[#allocation2 + $0x228] sm:$0xff]  ;;  %v5688_v22 = vld [vmem:[#allocation2 + $0x220] sm:$0xff]  ;;  %vm9450_vm10 = vmmov %vm9448_vm8 }
 0x657   : > { %5163 = vst [vmem:[#allocation2 + $0x260] sm:$0xf] %v5147_v45  ;;  %5164 = vst [vmem:[#allocation2 + $0x268] sm:$0xf] %v5148_v52  ;;  %v5199_v9 = vpop.permute.xlu1 %5198 }
 0x658   : > { %vm9451_vm11 = vmmov %vm9448_vm8 }
 0x659   : > { %v5140_v30 = vpop.permute.xlu0 %5139 }
 0x65a   : > { %v5149_v15 = vsel %vm9438_vm12, %v5138_v53, %v5140_v30  ;;  %v5150_v38 = vsel %vm9439_vm13, %v5140_v30, %v5142_v19  ;;  %v5691_v7 = vld [vmem:[#allocation2 + $0x238] sm:$0xff]  ;;  %vm9452_vm12 = vcmask 228352  }
 0x65b   : > { %5165 = vst [vmem:[#allocation2 + $0x270] sm:$0xf] %v5149_v15  ;;  %5166 = vst [vmem:[#allocation2 + $0x278] sm:$0xf] %v5150_v38  ;;  %v5251_v47 = vpop.permute.xlu1 %5250 }
 0x65c   : > { %vm9453_vm13 = vmmov %vm9452_vm12 }
 0x65d   : > { %v5193_v39 = vpop.permute.xlu0 %5192 }
 0x65e   : > { %v5204_v31 = vsel %vm9440_vm1, %v8956_v27, %v5193_v39  ;;  %v5205_v51 = vsel %vm9441_vm2, %v5193_v39, %v5195_v29  ;;  %vm9454_vm1 = vmmov %vm9452_vm12 }
 0x65f   : > { %5220 = vst [vmem:[#allocation2 + $0x260] sm:$0xf0] %v5204_v31  ;;  %5221 = vst [vmem:[#allocation2 + $0x268] sm:$0xf0] %v5205_v51  ;;  %v5255_v48 = vpop.permute.xlu1 %5254 }
 0x660   : > { %vm9455_vm2 = vmmov %vm9454_vm1 }
 0x661   : > { %v5197_v37 = vpop.permute.xlu0 %5196 }
 0x662   : > { %v5206_v8 = vsel %vm9442_vm3, %v5195_v29, %v5197_v37  ;;  %v5207_v57 = vsel %vm9443_vm4, %v5197_v37, %v5199_v9  ;;  %vm9456_vm3 = vcmask 220160  }
 0x663   : > { %5222 = vst [vmem:[#allocation2 + $0x270] sm:$0xf0] %v5206_v8  ;;  %5223 = vst [vmem:[#allocation2 + $0x278] sm:$0xf0] %v5207_v57  ;;  %v5308_v59 = vpop.permute.xlu1 %5307 }
 0x664   : > { %vm9457_vm4 = vmmov %vm9456_vm3 }
 0x665   : > { %v5249_v14 = vpop.permute.xlu0 %5248 }
 0x666   : > { %v5260_v44 = vsel %vm9444_vm5, %v8982_v24, %v5249_v14  ;;  %v5261_v27 = vsel %vm9445_vm6, %v5249_v14, %v5251_v47  ;;  %v5697_v26 = vld [vmem:[#allocation2 + $0x268] sm:$0xff]  ;;  %v5696_v4 = vld [vmem:[#allocation2 + $0x260] sm:$0xff]  ;;  %v5690_v24 = vld [vmem:[#allocation2 + $0x230] sm:$0xff] }
 0x667   : > { %5276 = vst [vmem:[#allocation2 + $0x2a0] sm:$0xf] %v5260_v44  ;;  %5277 = vst [vmem:[#allocation2 + $0x2a8] sm:$0xf] %v5261_v27  ;;  %v5312_v62 = vpop.permute.xlu1 %5311  ;;  %v6612_v61 = vpack.c.bf16 %v5697_v26, %v5689_v28  ;;  %v6614_v18 = vpack.c.bf16 %v5696_v4, %v5688_v22 }
 0x668   : > { %vm9458_vm5 = vmmov %vm9456_vm3 }
 0x669   : > { %v5253_v0 = vpop.permute.xlu0 %5252  ;;  %6613 = vmatprep.subr.bf16.mxu0 %v6612_v61  ;;  %vm9459_vm6 = vmmov %vm9456_vm3 }
 0x66a   : > { %v5262_v42 = vsel %vm9446_vm0, %v5251_v47, %v5253_v0  ;;  %v5263_v23 = vsel %vm9447_vm7, %v5253_v0, %v5255_v48  ;;  %6615 = vmatpush1.bf16.msra.mxu0 %v6614_v18  ;;  %v5699_v34 = vld [vmem:[#allocation2 + $0x278] sm:$0xff]  ;;  %v5698_v43 = vld [vmem:[#allocation2 + $0x270] sm:$0xff]  ;;  %vm9460_vm0 = vcmask 154624  }
 0x66b   : > { %5278 = vst [vmem:[#allocation2 + $0x2b0] sm:$0xf] %v5262_v42  ;;  %5279 = vst [vmem:[#allocation2 + $0x2b8] sm:$0xf] %v5263_v23  ;;  %v5364_v10 = vpop.permute.xlu1 %5363  ;;  %v6644_v11 = vpack.c.bf16 %v5699_v34, %v5691_v7  ;;  %v6646_v63 = vpack.c.bf16 %v5698_v43, %v5690_v24 }
 0x66c   : > { %vm9461_vm7 = vmmov %vm9460_vm0 }
 0x66d   : > { %v5306_v40 = vpop.permute.xlu0 %5305  ;;  %6645 = vmatprep.subr.bf16.mxu1 %v6644_v11 }
 0x66e   : > { %v5317_v53 = vsel %vm9448_vm8, %v8998_v58, %v5306_v40  ;;  %v5318_v56 = vsel %vm9449_vm9, %v5306_v40, %v5308_v59  ;;  %6647 = vmatpush1.bf16.msra.mxu1 %v6646_v63  ;;  %vm9462_vm8 = vmmov %vm9460_vm0 }
 0x66f   : > { %5333 = vst [vmem:[#allocation2 + $0x2a0] sm:$0xf0] %v5317_v53  ;;  %5334 = vst [vmem:[#allocation2 + $0x2a8] sm:$0xf0] %v5318_v56  ;;  %v5368_v32 = vpop.permute.xlu1 %5367 }
 0x670   : > { %vm9463_vm9 = vmmov %vm9460_vm0 }
 0x671   : > { %v5310_v54 = vpop.permute.xlu0 %5309 }
 0x672   : > { %v5319_v36 = vsel %vm9450_vm10, %v5308_v59, %v5310_v54  ;;  %v5320_v60 = vsel %vm9451_vm11, %v5310_v54, %v5312_v62 }
 0x673   : > { %5335 = vst [vmem:[#allocation2 + $0x2b0] sm:$0xf0] %v5319_v36  ;;  %5336 = vst [vmem:[#allocation2 + $0x2b8] sm:$0xf0] %v5320_v60  ;;  %v5421_v19 = vpop.permute.xlu1 %5420 }
 0x675   : > { %v5362_v50 = vpop.permute.xlu0 %5361 }
 0x676   : > { %v5373_v41 = vsel %vm9452_vm12, %v9025_v17, %v5362_v50  ;;  %v5374_v58 = vsel %vm9453_vm13, %v5362_v50, %v5364_v10  ;;  %v5705_v51 = vld [vmem:[#allocation2 + $0x2a8] sm:$0xff]  ;;  %v5704_v8 = vld [vmem:[#allocation2 + $0x2a0] sm:$0xff] }
 0x677   : > { %5389 = vst [vmem:[#allocation2 + $0x2e0] sm:$0xf] %v5373_v41  ;;  %5390 = vst [vmem:[#allocation2 + $0x2e8] sm:$0xf] %v5374_v58  ;;  %v5425_v3 = vpop.permute.xlu1 %5424 }
 0x679   : > { %v5366_v29 = vpop.permute.xlu0 %5365 }
 0x67a   : > { %v5375_v21 = vsel %vm9454_vm1, %v5364_v10, %v5366_v29  ;;  %v5376_v45 = vsel %vm9455_vm2, %v5366_v29, %v5368_v32  ;;  %v5707_v27 = vld [vmem:[#allocation2 + $0x2b8] sm:$0xff] }
 0x67b   : > { %5391 = vst [vmem:[#allocation2 + $0x2f0] sm:$0xf] %v5375_v21  ;;  %5392 = vst [vmem:[#allocation2 + $0x2f8] sm:$0xf] %v5376_v45  ;;  %v5477_v52 = vpop.permute.xlu1 %5476 }
 0x67d   : > { %v5419_v9 = vpop.permute.xlu0 %5418 }
 0x67e   : > { %v5430_v30 = vsel %vm9456_vm3, %v9038_v2, %v5419_v9  ;;  %v5431_v15 = vsel %vm9457_vm4, %v5419_v9, %v5421_v19 }
 0x67f   : > { %5446 = vst [vmem:[#allocation2 + $0x2e0] sm:$0xf0] %v5430_v30  ;;  %5447 = vst [vmem:[#allocation2 + $0x2e8] sm:$0xf0] %v5431_v15  ;;  %v5481_v17 = vpop.permute.xlu1 %5480 }
 0x681   : > { %v5423_v38 = vpop.permute.xlu0 %5422 }
 0x682   : > { %v5432_v47 = vsel %vm9458_vm5, %v5421_v19, %v5423_v38  ;;  %v5433_v39 = vsel %vm9459_vm6, %v5423_v38, %v5425_v3 }
 0x683   : > { %5448 = vst [vmem:[#allocation2 + $0x2f0] sm:$0xf0] %v5432_v47  ;;  %5449 = vst [vmem:[#allocation2 + $0x2f8] sm:$0xf0] %v5433_v39  ;;  %v5534_v59 = vpop.permute.xlu1 %5533 }
 0x685   : > { %v5475_v31 = vpop.permute.xlu0 %5474 }
 0x686   : > { %v5486_v48 = vsel %vm9460_vm0, %v9065_v55, %v5475_v31  ;;  %v5487_v37 = vsel %vm9461_vm7, %v5475_v31, %v5477_v52  ;;  %v5713_v2 = vld [vmem:[#allocation2 + $0x2e8] sm:$0xff]  ;;  %v5712_v57 = vld [vmem:[#allocation2 + $0x2e0] sm:$0xff]  ;;  %v5706_v55 = vld [vmem:[#allocation2 + $0x2b0] sm:$0xff] }
 0x687   : > { %5502 = vst [vmem:[#allocation2 + $0x320] sm:$0xf] %v5486_v48  ;;  %5503 = vst [vmem:[#allocation2 + $0x328] sm:$0xf] %v5487_v37  ;;  %v6616_v14 = vpack.c.bf16 %v5713_v2, %v5705_v51  ;;  %v6618_v28 = vpack.c.bf16 %v5712_v57, %v5704_v8  ;;  %v5538_v0 = vpop.permute.xlu1 %5537 }
 0x689   : > { %v5479_v44 = vpop.permute.xlu0 %5478  ;;  %6617 = vmatprep.subr.bf16.mxu0 %v6616_v14 }
 0x68a   : > { %v5488_v26 = vsel %vm9462_vm8, %v5477_v52, %v5479_v44  ;;  %v5489_v22 = vsel %vm9463_vm9, %v5479_v44, %v5481_v17  ;;  %6619 = vmatpush1.bf16.msra.mxu0 %v6618_v28  ;;  %v5715_v4 = vld [vmem:[#allocation2 + $0x2f8] sm:$0xff]  ;;  %v5714_v62 = vld [vmem:[#allocation2 + $0x2f0] sm:$0xff] }
 0x68b   : > { %5504 = vst [vmem:[#allocation2 + $0x330] sm:$0xf] %v5488_v26  ;;  %5505 = vst [vmem:[#allocation2 + $0x338] sm:$0xf] %v5489_v22  ;;  %v6648_v61 = vpack.c.bf16 %v5715_v4, %v5707_v27  ;;  %v6650_v18 = vpack.c.bf16 %v5714_v62, %v5706_v55  ;;  %v5590_v10 = vpop.permute.xlu1 %5589 }
 0x68d   : > { %v5532_v7 = vpop.permute.xlu0 %5531  ;;  %6649 = vmatprep.subr.bf16.mxu1 %v6648_v61 }
 0x68e   : > { %v5543_v42 = vsel %vm956_vm15, %v9076_v33, %v5532_v7  ;;  %v5544_v23 = vsel %vm956_vm15, %v5532_v7, %v5534_v59  ;;  %6651 = vmatpush1.bf16.msra.mxu1 %v6650_v18 }
 0x68f   : > { %5559 = vst [vmem:[#allocation2 + $0x320] sm:$0xf0] %v5543_v42  ;;  %5560 = vst [vmem:[#allocation2 + $0x328] sm:$0xf0] %v5544_v23  ;;  %v5594_v33 = vpop.permute.xlu1 %5593 }
 0x691   : > { %v5536_v34 = vpop.permute.xlu0 %5535 }
 0x692   : > { %v5545_v24 = vsel %vm956_vm15, %v5534_v59, %v5536_v34  ;;  %v5546_v43 = vsel %vm956_vm15, %v5536_v34, %v5538_v0 }
 0x693   : > { %5561 = vst [vmem:[#allocation2 + $0x330] sm:$0xf0] %v5545_v24  ;;  %5562 = vst [vmem:[#allocation2 + $0x338] sm:$0xf0] %v5546_v43 }
 0x695   : > { %v5588_v11 = vpop.permute.xlu0 %5587 }
 0x696   : > { %v5599_v63 = vsel %vm973_vm14, %v9089_v46, %v5588_v11  ;;  %v5600_v40 = vsel %vm973_vm14, %v5588_v11, %v5590_v10  ;;  %v5721_v54 = vld [vmem:[#allocation2 + $0x328] sm:$0xff]  ;;  %v5720_v60 = vld [vmem:[#allocation2 + $0x320] sm:$0xff] }
 0x697   : > { %5615 = vst [vmem:[#allocation2 + $0x360] sm:$0xf] %v5599_v63  ;;  %5616 = vst [vmem:[#allocation2 + $0x368] sm:$0xf] %v5600_v40 }
 0x699   : > { %v5592_v53 = vpop.permute.xlu0 %5591 }
 0x69a   : > { %v5601_v56 = vsel %vm973_vm14, %v5590_v10, %v5592_v53  ;;  %v5602_v32 = vsel %vm973_vm14, %v5592_v53, %v5594_v33  ;;  %v5723_v46 = vld [vmem:[#allocation2 + $0x338] sm:$0xff]  ;;  %v5722_v3 = vld [vmem:[#allocation2 + $0x330] sm:$0xff] }
 0x69b   : > { %5617 = vst [vmem:[#allocation2 + $0x370] sm:$0xf] %v5601_v56  ;;  %5618 = vst [vmem:[#allocation2 + $0x378] sm:$0xf] %v5602_v32 }
 0x69e   : > { %v5729_v36 = vld [vmem:[#allocation2 + $0x368] sm:$0xff]  ;;  %v5728_v19 = vld [vmem:[#allocation2 + $0x360] sm:$0xff] }
 0x69f   : > { %v6620_v50 = vpack.c.bf16 %v5729_v36, %v5721_v54  ;;  %v6622_v41 = vpack.c.bf16 %v5728_v19, %v5720_v60 }
 0x6a1   : > { %6621 = vmatprep.subr.bf16.mxu0 %v6620_v50 }
 0x6a2   : > { %6623 = vmatpush1.bf16.msra.mxu0 %v6622_v41  ;;  %v5731_v58 = vld [vmem:[#allocation2 + $0x378] sm:$0xff]  ;;  %v5730_v29 = vld [vmem:[#allocation2 + $0x370] sm:$0xff] }
 0x6a3   : > { %6625 = vmatprep.subr.bf16.mxu0 %v9129_v6  ;;  %v6652_v21 = vpack.c.bf16 %v5731_v58, %v5723_v46  ;;  %v6654_v45 = vpack.c.bf16 %v5730_v29, %v5722_v3 }
 0x6a5   : > { %6653 = vmatprep.subr.bf16.mxu1 %v6652_v21 }
 0x6a6   : > { %6627 = vmatpush1.bf16.msra.mxu0 %v9129_v6  ;;  %6655 = vmatpush1.bf16.msra.mxu1 %v6654_v45 }
 0x6a7   : > { %6657 = vmatprep.subr.bf16.mxu1 %v9129_v6 }
 0x6a9   : > { %5961 = vmatmul.mubr.f32.vlgmr.msra.gmra.mrb[14].mxu0 %v9150_v35 }
 0x6aa   : > { %6659 = vmatpush1.bf16.msra.mxu1 %v9129_v6  ;;  %v5752_v52 = vpop.permute.xlu0 %5751 }
 0x6ad   : > { %6032 = vmatmul.mubr.f32.vlgmr.msra.gmra.mrb[14].mxu1 %v9150_v35 }
 0x6e1   : > { %v5891_v9 = vpop.f32.mrb[12].mxu1 }
 0x6e2   : > { %v5892_v30 = vadd.f32 %v5891_v9, %v5752_v52  ;;  %v5893_v15 = vpop.f32.mrb[13].mxu1 }
 0x6e3   : > { %v5894_v17 = vadd.f32 %v5893_v15, %v5752_v52 }
 0x6e4   : > { %v6040_v38 = vmax.f32 %v5892_v30, 0.0 }
 0x6e5   : > { %v6041_v47 = vmax.f32 %v5894_v17, 0.0 }
 0x6e6   : > { %v6048_v6 = vmul.f32 %v6040_v38, %v8336_v5 }
 0x6e7   : > { %v6049_v35 = vmul.f32 %v6041_v47, %v8341_v20  ;;  %v5820_v39 = vpop.f32.mrb[12].mxu0 }
 0x6e8   : > { %6056 = vst [vmem:[%s9283_s25 + $0x10] sm:$0xff] %v6048_v6  ;;  %v5821_v31 = vadd.f32 %v5820_v39, %v5752_v52  ;;  %v5822_v51 = vpop.f32.mrb[13].mxu0 }
 0x6e9   : > { %6057 = vst [vmem:[%s9283_s25 + $0x18] sm:$0xff] %v6049_v35  ;;  %v5823_v48 = vadd.f32 %v5822_v51, %v5752_v52 }
 0x6ea   : > { %v6038_v37 = vmax.f32 %v5821_v31, 0.0 }
 0x6eb   : > { %v6039_v2 = vmax.f32 %v5823_v48, 0.0 }
 0x6ec   : > { %v6046_v8 = vmul.f32 %v6038_v37, %v8305_v16 }
 0x6ed   : > { %v6047_v57 = vmul.f32 %v6039_v2, %v8310_v13 }
 0x6ee   : > { %6054 = vst [vmem:[%s9283_s25] sm:$0xff] %v6046_v8 }
 0x6ef   : > { %6055 = vst [vmem:[%s9283_s25 + $0x8] sm:$0xff] %v6047_v57 }
 0x77c   : > { %v5962_v59 = vpop.f32.mrb[14].mxu0 }
 0x77d   : > { %v5963_v5 = vadd.f32 %v5962_v59, %v5752_v52  ;;  %v5964_v14 = vpop.f32.mrb[15].mxu0 }
 0x77e   : > { %v5965_v20 = vadd.f32 %v5964_v14, %v5752_v52 }
 0x77f   : > { %v6042_v28 = vmax.f32 %v5963_v5, 0.0 }
 0x780   : > { %v6043_v44 = vmax.f32 %v5965_v20, 0.0  ;;  %v6033_v27 = vpop.f32.mrb[14].mxu1 }
 0x781   : > { %v6050_v26 = vmul.f32 %v6042_v28, %v8347_v49  ;;  %v6034_v22 = vadd.f32 %v6033_v27, %v5752_v52  ;;  %v6035_v4 = vpop.f32.mrb[15].mxu1 }
 0x782   : > { %v6051_v16 = vmul.f32 %v6043_v44, %v8354_v12  ;;  %v6036_v55 = vadd.f32 %v6035_v4, %v5752_v52 }
 0x783   : > { %6058 = vst [vmem:[%s9283_s25 + $0x20] sm:$0xff] %v6050_v26  ;;  %v6044_v13 = vmax.f32 %v6034_v22, 0.0 }
 0x784   : > { %6059 = vst [vmem:[%s9283_s25 + $0x28] sm:$0xff] %v6051_v16  ;;  %v6045_v62 = vmax.f32 %v6036_v55, 0.0 }
 0x785   : > { %v6052_v61 = vmul.f32 %v6044_v13, %v8437_v1 }
 0x786   : > { %v6053_v18 = vmul.f32 %v6045_v62, %v8443_v25 }
 0x787   : > { %6060 = vst [vmem:[%s9283_s25 + $0x30] sm:$0xff] %v6052_v61 }
 0x788   : > { %6061 = vst [vmem:[%s9283_s25 + $0x38] sm:$0xff] %v6053_v18 }
 0x789 PF: > { %s21_s17 = sadd.s32 1, %s6750_s17  }
 0x78a   : > { %p18_p4 = scmp.ge.s32.totalorder %s21_s17, 4  }
 0x78c   :  { %20 = sbr.rel (!%p18_p4) target bundleno = 1 (0x1), region = 123 }

</bundles_post_ra>
